<compile_context>
chip_gen: v6e
topology: v6e:2x2x1
jax: 0.10.0
libtpu: 0.0.40
codegen_flags: <defaults>
</compile_context>

<pallas_src>
import functools

import jax
import jax.numpy as jnp
from jax import lax
from jax.experimental import pallas as pl
from jax.experimental.pallas import tpu as pltpu

_VMEM_LIMIT = 32 * 1024 * 1024  # safe on v5e/v6e/v7x; tiles budgeted well below


# ------------------------------ Pallas kernels ------------------------------

def _enc_stage_kernel(xwin_ref, w_ref, b_ref, o_ref, *, tr, wimg, cin, cout):
    """Fused Conv2d(3x3, pad=1) + bias + ReLU + MaxPool2d(2,2) for one row tile.

    xwin_ref : (tr+2, wimg+2, cin)  zero-padded input row window (VMEM)
    w_ref    : (9, cin, cout)       conv taps, k = kh*3 + kw (resident)
    b_ref    : (1, cout)            bias (resident)
    o_ref    : (tr//2, wimg//2, cout)  pooled output tile
    """
    trh, wh = tr // 2, wimg // 2
    m = tr * wimg
    acc = jnp.zeros((m, cout), dtype=jnp.float32)
    # 9 taps sliced directly out of the padded VMEM block (no HBM im2col copy).
    for kh in range(3):
        for kw in range(3):
            k = kh * 3 + kw
            tap = xwin_ref[kh:kh + tr, kw:kw + wimg, :].reshape(m, cin)
            if cin == 1:
                # degenerate K=1 contraction: VPU broadcast outer product
                acc = acc + tap * w_ref[k]
            else:
                acc = acc + jnp.dot(tap, w_ref[k],
                                    preferred_element_type=jnp.float32)
    # bias + ReLU before pooling (both commute with max, so result is identical
    # to PyTorch's relu(conv+bias) -> maxpool ordering).
    acc = jnp.maximum(acc + b_ref[...], 0.0)
    # 2x2/stride-2 max-pool, lane dim (channels) untouched:
    c = acc.reshape(m // 2, 2, cout)                       # pair adjacent cols
    cmax = jnp.maximum(c[:, 0, :], c[:, 1, :])             # (tr*wh, cout)
    t2 = cmax.reshape(trh, 2 * wh, cout)                   # pair adjacent rows
    pooled = jnp.maximum(t2[:, :wh, :], t2[:, wh:, :])     # (trh, wh, cout)
    o_ref[...] = pooled.astype(o_ref.dtype)


def _tconv2x2_kernel(x_ref, w_ref, b_ref, o_ref, *, sigmoid):
    """ConvTranspose2d(kernel=2, stride=2) + bias + activation, fused matmul.

    x_ref : (tm, cin)
    w_ref : (cin, 4*cout)   lanes ordered (a, b, cout)  (resident)
    b_ref : (1, 4*cout)                                  (resident)
    o_ref : (tm, 4*cout)    lane-dense output (unmasked stores)
    """
    y = jnp.dot(x_ref[...], w_ref[...], preferred_element_type=jnp.float32)
    y = y + b_ref[...]
    y = jax.nn.sigmoid(y) if sigmoid else jnp.maximum(y, 0.0)
    o_ref[...] = y.astype(o_ref.dtype)


# ------------------------------ tile choosers -------------------------------

def _choose_row_tile(h, w, cin, cout, budget=6 << 20):
    """Even divisor of h (conv-output rows per grid step) fitting a VMEM budget."""
    assert h % 2 == 0 and w % 2 == 0, "spatial dims must be even for 2x2 pooling"
    valid = [t for t in range(2, h + 1, 2) if h % t == 0]

    def footprint(t):  # rough f32 bytes incl. double-buffered in/out blocks
        return (8 * ((t + 2) * (w + 2) * cin + (t // 2) * (w // 2) * cout)
                + 8 * t * w * cout + 4 * 9 * cin * cout)

    fitting = [t for t in valid if footprint(t) <= budget]
    return max(fitting) if fitting else min(valid)


def _choose_m_tile(m_total, row_bytes, budget=4 << 20):
    """Multiple-of-8 divisor of m_total fitting a VMEM budget (else whole M)."""
    for t in (4096, 2048, 1024, 512, 256, 128, 64, 32, 16, 8):
        if m_total % t == 0 and 4 * t * row_bytes <= budget:
            return t
    return m_total


# ------------------------------ layer wrappers ------------------------------

def conv3x3_relu_pool(x_nhwc, w_torch, b):
    """Fused conv3x3(pad=1)+bias+ReLU+maxpool2x2.
    x: (N,H,W,Cin), w_torch: (Cout,Cin,3,3), b: (Cout,) -> (N,H/2,W/2,Cout)."""
    n, h, w, cin = x_nhwc.shape
    cout = w_torch.shape[0]
    hp, wp = h // 2, w // 2
    tr = _choose_row_tile(h, w, cin, cout)
    n_rt = h // tr

    xp = jnp.pad(x_nhwc, ((0, 0), (1, 1), (1, 1), (0, 0)))
    if n_rt == 1:
        xwin = xp[:, None]                                  # (N,1,H+2,W+2,Cin)
    else:  # overlapping row windows (2 halo rows per tile; negligible dup)
        xwin = jnp.stack([xp[:, r * tr:r * tr + tr + 2] for r in range(n_rt)],
                         axis=1)                            # (N,n_rt,tr+2,W+2,Cin)

    wk = jnp.transpose(w_torch, (2, 3, 1, 0)).reshape(9, cin, cout)
    bk = b.reshape(1, cout)

    kern = functools.partial(_enc_stage_kernel, tr=tr, wimg=w, cin=cin, cout=cout)
    out = pl.pallas_call(
        kern,
        grid=(n, n_rt),
        in_specs=[
            pl.BlockSpec((None, None, tr + 2, w + 2, cin),
                         lambda bi, ri: (bi, ri, 0, 0, 0)),
            pl.BlockSpec((9, cin, cout), lambda bi, ri: (0, 0, 0)),   # resident
            pl.BlockSpec((1, cout), lambda bi, ri: (0, 0)),           # resident
        ],
        out_specs=pl.BlockSpec((None, tr // 2, wp, cout),
                               lambda bi, ri: (bi, ri, 0, 0)),
        out_shape=jax.ShapeDtypeStruct((n, hp, wp, cout), x_nhwc.dtype),
        compiler_params=pltpu.CompilerParams(
            dimension_semantics=("parallel", "parallel"),
            vmem_limit_bytes=_VMEM_LIMIT),
    )(xwin, wk, bk)
    return out


def tconv2x2_stride2(x_nhwc, w_torch, b, *, sigmoid=False):
    """ConvTranspose2d(k=2, stride=2)+bias+(ReLU|sigmoid).
    x: (N,h,w,Cin), w_torch: (Cin,Cout,2,2) -> (N,2h,2w,Cout)."""
    n, h, w, cin = x_nhwc.shape
    cout = w_torch.shape[1]
    m = n * h * w
    x2d = x_nhwc.reshape(m, cin)
    # fold the 4 sub-pixel matmuls into one lane-dense (cin, 4*cout) matmul
    w4 = jnp.transpose(w_torch, (0, 2, 3, 1)).reshape(cin, 4 * cout)  # (a,b,c) lanes
    b4 = jnp.tile(b, 4).reshape(1, 4 * cout)
    tm = _choose_m_tile(m, 4 * (cin + 4 * cout))

    kern = functools.partial(_tconv2x2_kernel, sigmoid=sigmoid)
    y = pl.pallas_call(
        kern,
        grid=(m // tm,),
        in_specs=[
            pl.BlockSpec((tm, cin), lambda i: (i, 0)),
            pl.BlockSpec((cin, 4 * cout), lambda i: (0, 0)),          # resident
            pl.BlockSpec((1, 4 * cout), lambda i: (0, 0)),            # resident
        ],
        out_specs=pl.BlockSpec((tm, 4 * cout), lambda i: (i, 0)),
        out_shape=jax.ShapeDtypeStruct((m, 4 * cout), x_nhwc.dtype),
        compiler_params=pltpu.CompilerParams(
            dimension_semantics=("parallel",),
            vmem_limit_bytes=_VMEM_LIMIT),
    )(x2d, w4, b4)
    # depth-to-space (XLA glue): y[(n,i,j), (a,b,c)] -> out[n, 2i+a, 2j+b, c]
    y = y.reshape(n, h, w, 2, 2, cout)
    y = jnp.transpose(y, (0, 1, 3, 2, 4, 5)).reshape(n, 2 * h, 2 * w, cout)
    return y


# --------------------------------- model ------------------------------------

def init_params(key):
    """Deterministic PyTorch-default-style init (uniform +- 1/sqrt(fan_in))."""
    def conv_init(k, cout, cin, ks):
        k1, k2 = jax.random.split(k)
        bound = 1.0 / (cin * ks * ks) ** 0.5
        w = jax.random.uniform(k1, (cout, cin, ks, ks), jnp.float32, -bound, bound)
        bb = jax.random.uniform(k2, (cout,), jnp.float32, -bound, bound)
        return w, bb

    def tconv_init(k, cin, cout, ks):
        k1, k2 = jax.random.split(k)
        bound = 1.0 / (cin * ks * ks) ** 0.5
        w = jax.random.uniform(k1, (cin, cout, ks, ks), jnp.float32, -bound, bound)
        bb = jax.random.uniform(k2, (cout,), jnp.float32, -bound, bound)
        return w, bb

    ks = jax.random.split(key, 6)
    return {
        "conv1": conv_init(ks[0], 64, 1, 3),
        "conv2": conv_init(ks[1], 32, 64, 3),
        "conv3": conv_init(ks[2], 4, 32, 3),
        "t_conv1": tconv_init(ks[3], 4, 32, 2),
        "t_conv2": tconv_init(ks[4], 32, 64, 2),
        "t_conv3": tconv_init(ks[5], 64, 1, 2),
    }


def conv_autoencoder_forward(params, x_nchw):
    """Forward pass (training mode, decode=True, clustering=False):
    returns (encoded, decoded) in PyTorch NCHW shapes."""
    x = jnp.transpose(x_nchw, (0, 2, 3, 1))  # NCHW -> NHWC
    x = conv3x3_relu_pool(x, *params["conv1"])
    x = conv3x3_relu_pool(x, *params["conv2"])
    x = conv3x3_relu_pool(x, *params["conv3"])
    y = tconv2x2_stride2(x, *params["t_conv1"], sigmoid=False)
    y = tconv2x2_stride2(y, *params["t_conv2"], sigmoid=False)
    y = tconv2x2_stride2(y, *params["t_conv3"], sigmoid=True)
    # TODO(synk): clustering branch (torch.cdist + Student-t soft assignment q)
    # is not exercised by the default forward arguments and is not implemented.
    return (jnp.transpose(x, (0, 3, 1, 2)),   # encoded (N, 4,  H/8, W/8)
            jnp.transpose(y, (0, 3, 1, 2)))   # decoded (N, 1,  H,   W)


# --------------------------- pure-JAX reference ------------------------------

def _ref_forward(params, x_nchw):
    dn = ("NHWC", "HWIO", "NHWC")
    x = jnp.transpose(x_nchw, (0, 2, 3, 1))

    def conv(x, w, b):
        wh = jnp.transpose(w, (2, 3, 1, 0))  # HWIO
        y = lax.conv_general_dilated(x, wh, (1, 1), "SAME",
                                     dimension_numbers=dn,
                                     precision=lax.Precision.HIGHEST)
        return jax.nn.relu(y + b)

    def pool(x):
        return lax.reduce_window(x, -jnp.inf, lax.max,
                                 (1, 2, 2, 1), (1, 2, 2, 1), "VALID")

    def tconv(x, w, b, act):
        n, h, ww, _ = x.shape
        cout = w.shape[1]
        y = jnp.einsum("nijc,cdab->niajbd", x, w,
                       precision=lax.Precision.HIGHEST)
        y = y.reshape(n, 2 * h, 2 * ww, cout) + b
        return act(y)

    x = pool(conv(x, *params["conv1"]))
    x = pool(conv(x, *params["conv2"]))
    x = pool(conv(x, *params["conv3"]))
    y = tconv(x, *params["t_conv1"], jax.nn.relu)
    y = tconv(y, *params["t_conv2"], jax.nn.relu)
    y = tconv(y, *params["t_conv3"], jax.nn.sigmoid)
    return jnp.transpose(x, (0, 3, 1, 2)), jnp.transpose(y, (0, 3, 1, 2))


# ----------------------------------- main ------------------------------------

if __name__ == "__main__":
    key = jax.random.PRNGKey(0)
    pkey, xkey = jax.random.split(key)
    params = init_params(pkey)

    # small NCHW input consistent with the module (1 input channel, 3 pools)
    x = jax.random.uniform(xkey, (2, 1, 16, 16), jnp.float32)

    fwd = jax.jit(conv_autoencoder_forward)
    enc, dec = fwd(params, x)
    enc = jax.block_until_ready(enc)
    dec = jax.block_until_ready(dec)

    assert enc.shape == (2, 4, 2, 2), enc.shape
    assert dec.shape == (2, 1, 16, 16), dec.shape

    ref_enc, ref_dec = _ref_forward(params, x)
    assert jnp.allclose(enc, ref_enc, atol=1e-2, rtol=1e-2), "encoder mismatch"
    assert jnp.allclose(dec, ref_dec, atol=1e-2, rtol=1e-2), "decoder mismatch"

    print("KERNEL_OK")
</pallas_src>

<mosaic_0001>
module attributes {stable_mosaic.version = 11 : i64} {
  func.func @_enc_stage_kernel(%arg0: i32, %arg1: i32, %arg2: memref<1x1x18x18x1xf32, #tpu.memory_space<vmem>>, %arg3: memref<9x1x64xf32, #tpu.memory_space<vmem>>, %arg4: memref<1x64xf32, #tpu.memory_space<vmem>>, %arg5: memref<1x8x8x64xf32, #tpu.memory_space<vmem>>) attributes {dimension_semantics = [#tpu.dimension_semantics<parallel>, #tpu.dimension_semantics<parallel>], iteration_bounds = array<i64: 2, 1>, scalar_prefetch = 0 : i64, scratch_operands = 0 : i64, tpu.core_type = #tpu.core_type<tc>, window_params = [{transform_indices = @transform_0, window_bounds = array<i64: 1, 1, 18, 18, 1>}, {pipeline_mode = #tpu.pipeline_mode<synchronous>, transform_indices = @transform_1, window_bounds = array<i64: 9, 1, 64>}, {pipeline_mode = #tpu.pipeline_mode<synchronous>, transform_indices = @transform_2, window_bounds = array<i64: 1, 64>}, {transform_indices = @transform_3, window_bounds = array<i64: 1, 8, 8, 64>}]} {
    %cst = arith.constant 0.000000e+00 : f32
    %0 = vector.broadcast %cst : f32 to vector<256x64xf32>
    %c0 = arith.constant 0 : index
    %c0_0 = arith.constant 0 : index
    %c0_1 = arith.constant 0 : index
    %c0_2 = arith.constant 0 : index
    %c0_3 = arith.constant 0 : index
    %1 = vector.load %arg2[%c0, %c0_0, %c0_1, %c0_2, %c0_3] : memref<1x1x18x18x1xf32, #tpu.memory_space<vmem>>, vector<1x1x16x16x1xf32>
    %2 = vector.shape_cast %1 : vector<1x1x16x16x1xf32> to vector<16x16x1xf32>
    %3 = vector.shape_cast %2 : vector<16x16x1xf32> to vector<256x1xf32>
    %c0_4 = arith.constant 0 : index
    %c0_5 = arith.constant 0 : index
    %c0_6 = arith.constant 0 : index
    %4 = vector.load %arg3[%c0_4, %c0_5, %c0_6] : memref<9x1x64xf32, #tpu.memory_space<vmem>>, vector<1x1x64xf32>
    %5 = vector.shape_cast %4 : vector<1x1x64xf32> to vector<1x64xf32>
    %6 = vector.broadcast %3 : vector<256x1xf32> to vector<256x64xf32>
    %7 = vector.broadcast %5 : vector<1x64xf32> to vector<256x64xf32>
    %8 = arith.mulf %6, %7 : vector<256x64xf32>
    %9 = arith.addf %0, %8 : vector<256x64xf32>
    %c0_7 = arith.constant 0 : index
    %c0_8 = arith.constant 0 : index
    %c0_9 = arith.constant 0 : index
    %c1 = arith.constant 1 : index
    %c0_10 = arith.constant 0 : index
    %10 = vector.load %arg2[%c0_7, %c0_8, %c0_9, %c1, %c0_10] : memref<1x1x18x18x1xf32, #tpu.memory_space<vmem>>, vector<1x1x16x16x1xf32>
    %11 = vector.shape_cast %10 : vector<1x1x16x16x1xf32> to vector<16x16x1xf32>
    %12 = vector.shape_cast %11 : vector<16x16x1xf32> to vector<256x1xf32>
    %c1_11 = arith.constant 1 : index
    %c0_12 = arith.constant 0 : index
    %c0_13 = arith.constant 0 : index
    %13 = vector.load %arg3[%c1_11, %c0_12, %c0_13] : memref<9x1x64xf32, #tpu.memory_space<vmem>>, vector<1x1x64xf32>
    %14 = vector.shape_cast %13 : vector<1x1x64xf32> to vector<1x64xf32>
    %15 = vector.broadcast %12 : vector<256x1xf32> to vector<256x64xf32>
    %16 = vector.broadcast %14 : vector<1x64xf32> to vector<256x64xf32>
    %17 = arith.mulf %15, %16 : vector<256x64xf32>
    %18 = arith.addf %9, %17 : vector<256x64xf32>
    %c0_14 = arith.constant 0 : index
    %c0_15 = arith.constant 0 : index
    %c0_16 = arith.constant 0 : index
    %c2 = arith.constant 2 : index
    %c0_17 = arith.constant 0 : index
    %19 = vector.load %arg2[%c0_14, %c0_15, %c0_16, %c2, %c0_17] : memref<1x1x18x18x1xf32, #tpu.memory_space<vmem>>, vector<1x1x16x16x1xf32>
    %20 = vector.shape_cast %19 : vector<1x1x16x16x1xf32> to vector<16x16x1xf32>
    %21 = vector.shape_cast %20 : vector<16x16x1xf32> to vector<256x1xf32>
    %c2_18 = arith.constant 2 : index
    %c0_19 = arith.constant 0 : index
    %c0_20 = arith.constant 0 : index
    %22 = vector.load %arg3[%c2_18, %c0_19, %c0_20] : memref<9x1x64xf32, #tpu.memory_space<vmem>>, vector<1x1x64xf32>
    %23 = vector.shape_cast %22 : vector<1x1x64xf32> to vector<1x64xf32>
    %24 = vector.broadcast %21 : vector<256x1xf32> to vector<256x64xf32>
    %25 = vector.broadcast %23 : vector<1x64xf32> to vector<256x64xf32>
    %26 = arith.mulf %24, %25 : vector<256x64xf32>
    %27 = arith.addf %18, %26 : vector<256x64xf32>
    %c0_21 = arith.constant 0 : index
    %c0_22 = arith.constant 0 : index
    %c1_23 = arith.constant 1 : index
    %c0_24 = arith.constant 0 : index
    %c0_25 = arith.constant 0 : index
    %28 = vector.load %arg2[%c0_21, %c0_22, %c1_23, %c0_24, %c0_25] : memref<1x1x18x18x1xf32, #tpu.memory_space<vmem>>, vector<1x1x16x16x1xf32>
    %29 = vector.shape_cast %28 : vector<1x1x16x16x1xf32> to vector<16x16x1xf32>
    %30 = vector.shape_cast %29 : vector<16x16x1xf32> to vector<256x1xf32>
    %c3 = arith.constant 3 : index
    %c0_26 = arith.constant 0 : index
    %c0_27 = arith.constant 0 : index
    %31 = vector.load %arg3[%c3, %c0_26, %c0_27] : memref<9x1x64xf32, #tpu.memory_space<vmem>>, vector<1x1x64xf32>
    %32 = vector.shape_cast %31 : vector<1x1x64xf32> to vector<1x64xf32>
    %33 = vector.broadcast %30 : vector<256x1xf32> to vector<256x64xf32>
    %34 = vector.broadcast %32 : vector<1x64xf32> to vector<256x64xf32>
    %35 = arith.mulf %33, %34 : vector<256x64xf32>
    %36 = arith.addf %27, %35 : vector<256x64xf32>
    %c0_28 = arith.constant 0 : index
    %c0_29 = arith.constant 0 : index
    %c1_30 = arith.constant 1 : index
    %c1_31 = arith.constant 1 : index
    %c0_32 = arith.constant 0 : index
    %37 = vector.load %arg2[%c0_28, %c0_29, %c1_30, %c1_31, %c0_32] : memref<1x1x18x18x1xf32, #tpu.memory_space<vmem>>, vector<1x1x16x16x1xf32>
    %38 = vector.shape_cast %37 : vector<1x1x16x16x1xf32> to vector<16x16x1xf32>
    %39 = vector.shape_cast %38 : vector<16x16x1xf32> to vector<256x1xf32>
    %c4 = arith.constant 4 : index
    %c0_33 = arith.constant 0 : index
    %c0_34 = arith.constant 0 : index
    %40 = vector.load %arg3[%c4, %c0_33, %c0_34] : memref<9x1x64xf32, #tpu.memory_space<vmem>>, vector<1x1x64xf32>
    %41 = vector.shape_cast %40 : vector<1x1x64xf32> to vector<1x64xf32>
    %42 = vector.broadcast %39 : vector<256x1xf32> to vector<256x64xf32>
    %43 = vector.broadcast %41 : vector<1x64xf32> to vector<256x64xf32>
    %44 = arith.mulf %42, %43 : vector<256x64xf32>
    %45 = arith.addf %36, %44 : vector<256x64xf32>
    %c0_35 = arith.constant 0 : index
    %c0_36 = arith.constant 0 : index
    %c1_37 = arith.constant 1 : index
    %c2_38 = arith.constant 2 : index
    %c0_39 = arith.constant 0 : index
    %46 = vector.load %arg2[%c0_35, %c0_36, %c1_37, %c2_38, %c0_39] : memref<1x1x18x18x1xf32, #tpu.memory_space<vmem>>, vector<1x1x16x16x1xf32>
    %47 = vector.shape_cast %46 : vector<1x1x16x16x1xf32> to vector<16x16x1xf32>
    %48 = vector.shape_cast %47 : vector<16x16x1xf32> to vector<256x1xf32>
    %c5 = arith.constant 5 : index
    %c0_40 = arith.constant 0 : index
    %c0_41 = arith.constant 0 : index
    %49 = vector.load %arg3[%c5, %c0_40, %c0_41] : memref<9x1x64xf32, #tpu.memory_space<vmem>>, vector<1x1x64xf32>
    %50 = vector.shape_cast %49 : vector<1x1x64xf32> to vector<1x64xf32>
    %51 = vector.broadcast %48 : vector<256x1xf32> to vector<256x64xf32>
    %52 = vector.broadcast %50 : vector<1x64xf32> to vector<256x64xf32>
    %53 = arith.mulf %51, %52 : vector<256x64xf32>
    %54 = arith.addf %45, %53 : vector<256x64xf32>
    %c0_42 = arith.constant 0 : index
    %c0_43 = arith.constant 0 : index
    %c2_44 = arith.constant 2 : index
    %c0_45 = arith.constant 0 : index
    %c0_46 = arith.constant 0 : index
    %55 = vector.load %arg2[%c0_42, %c0_43, %c2_44, %c0_45, %c0_46] : memref<1x1x18x18x1xf32, #tpu.memory_space<vmem>>, vector<1x1x16x16x1xf32>
    %56 = vector.shape_cast %55 : vector<1x1x16x16x1xf32> to vector<16x16x1xf32>
    %57 = vector.shape_cast %56 : vector<16x16x1xf32> to vector<256x1xf32>
    %c6 = arith.constant 6 : index
    %c0_47 = arith.constant 0 : index
    %c0_48 = arith.constant 0 : index
    %58 = vector.load %arg3[%c6, %c0_47, %c0_48] : memref<9x1x64xf32, #tpu.memory_space<vmem>>, vector<1x1x64xf32>
    %59 = vector.shape_cast %58 : vector<1x1x64xf32> to vector<1x64xf32>
    %60 = vector.broadcast %57 : vector<256x1xf32> to vector<256x64xf32>
    %61 = vector.broadcast %59 : vector<1x64xf32> to vector<256x64xf32>
    %62 = arith.mulf %60, %61 : vector<256x64xf32>
    %63 = arith.addf %54, %62 : vector<256x64xf32>
    %c0_49 = arith.constant 0 : index
    %c0_50 = arith.constant 0 : index
    %c2_51 = arith.constant 2 : index
    %c1_52 = arith.constant 1 : index
    %c0_53 = arith.constant 0 : index
    %64 = vector.load %arg2[%c0_49, %c0_50, %c2_51, %c1_52, %c0_53] : memref<1x1x18x18x1xf32, #tpu.memory_space<vmem>>, vector<1x1x16x16x1xf32>
    %65 = vector.shape_cast %64 : vector<1x1x16x16x1xf32> to vector<16x16x1xf32>
    %66 = vector.shape_cast %65 : vector<16x16x1xf32> to vector<256x1xf32>
    %c7 = arith.constant 7 : index
    %c0_54 = arith.constant 0 : index
    %c0_55 = arith.constant 0 : index
    %67 = vector.load %arg3[%c7, %c0_54, %c0_55] : memref<9x1x64xf32, #tpu.memory_space<vmem>>, vector<1x1x64xf32>
    %68 = vector.shape_cast %67 : vector<1x1x64xf32> to vector<1x64xf32>
    %69 = vector.broadcast %66 : vector<256x1xf32> to vector<256x64xf32>
    %70 = vector.broadcast %68 : vector<1x64xf32> to vector<256x64xf32>
    %71 = arith.mulf %69, %70 : vector<256x64xf32>
    %72 = arith.addf %63, %71 : vector<256x64xf32>
    %c0_56 = arith.constant 0 : index
    %c0_57 = arith.constant 0 : index
    %c2_58 = arith.constant 2 : index
    %c2_59 = arith.constant 2 : index
    %c0_60 = arith.constant 0 : index
    %73 = vector.load %arg2[%c0_56, %c0_57, %c2_58, %c2_59, %c0_60] : memref<1x1x18x18x1xf32, #tpu.memory_space<vmem>>, vector<1x1x16x16x1xf32>
    %74 = vector.shape_cast %73 : vector<1x1x16x16x1xf32> to vector<16x16x1xf32>
    %75 = vector.shape_cast %74 : vector<16x16x1xf32> to vector<256x1xf32>
    %c8 = arith.constant 8 : index
    %c0_61 = arith.constant 0 : index
    %c0_62 = arith.constant 0 : index
    %76 = vector.load %arg3[%c8, %c0_61, %c0_62] : memref<9x1x64xf32, #tpu.memory_space<vmem>>, vector<1x1x64xf32>
    %77 = vector.shape_cast %76 : vector<1x1x64xf32> to vector<1x64xf32>
    %78 = vector.broadcast %75 : vector<256x1xf32> to vector<256x64xf32>
    %79 = vector.broadcast %77 : vector<1x64xf32> to vector<256x64xf32>
    %80 = arith.mulf %78, %79 : vector<256x64xf32>
    %81 = arith.addf %72, %80 : vector<256x64xf32>
    %c0_63 = arith.constant 0 : index
    %c0_64 = arith.constant 0 : index
    %82 = vector.load %arg4[%c0_63, %c0_64] : memref<1x64xf32, #tpu.memory_space<vmem>>, vector<1x64xf32>
    %83 = vector.broadcast %82 : vector<1x64xf32> to vector<256x64xf32>
    %84 = arith.addf %81, %83 : vector<256x64xf32>
    %cst_65 = arith.constant 0.000000e+00 : f32
    %85 = vector.broadcast %cst_65 : f32 to vector<256x64xf32>
    %86 = arith.maximumf %84, %85 : vector<256x64xf32>
    %87 = vector.shape_cast %86 : vector<256x64xf32> to vector<128x2x64xf32>
    %88 = vector.extract_strided_slice %87 {offsets = [0, 0, 0], sizes = [128, 1, 64], strides = [1, 1, 1]} : vector<128x2x64xf32> to vector<128x1x64xf32>
    %89 = vector.shape_cast %88 : vector<128x1x64xf32> to vector<128x64xf32>
    %90 = vector.extract_strided_slice %87 {offsets = [0, 1, 0], sizes = [128, 1, 64], strides = [1, 1, 1]} : vector<128x2x64xf32> to vector<128x1x64xf32>
    %91 = vector.shape_cast %90 : vector<128x1x64xf32> to vector<128x64xf32>
    %92 = arith.maximumf %89, %91 : vector<128x64xf32>
    %93 = vector.shape_cast %92 : vector<128x64xf32> to vector<8x16x64xf32>
    %94 = vector.extract_strided_slice %93 {offsets = [0, 0, 0], sizes = [8, 8, 64], strides = [1, 1, 1]} : vector<8x16x64xf32> to vector<8x8x64xf32>
    %95 = vector.extract_strided_slice %93 {offsets = [0, 8, 0], sizes = [8, 8, 64], strides = [1, 1, 1]} : vector<8x16x64xf32> to vector<8x8x64xf32>
    %96 = arith.maximumf %94, %95 : vector<8x8x64xf32>
    %c0_66 = arith.constant 0 : index
    %c0_67 = arith.constant 0 : index
    %c0_68 = arith.constant 0 : index
    %c0_69 = arith.constant 0 : index
    %97 = vector.load %arg5[%c0_66, %c0_67, %c0_68, %c0_69] : memref<1x8x8x64xf32, #tpu.memory_space<vmem>>, vector<1x8x8x64xf32>
    %98 = vector.shape_cast %97 : vector<1x8x8x64xf32> to vector<8x8x64xf32>
    %99 = vector.shape_cast %96 : vector<8x8x64xf32> to vector<1x8x8x64xf32>
    tpu.vector_store %arg5[%c0_66, %c0_67, %c0_68, %c0_69], %99 {strides = array<i32>} : memref<1x8x8x64xf32, #tpu.memory_space<vmem>>, vector<1x8x8x64xf32>,
    return
  }
  func.func @transform_0(%arg0: i32, %arg1: i32) -> (i32, i32, i32, i32, i32) {
    %c0_i32 = arith.constant 0 : i32
    %c0_i32_0 = arith.constant 0 : i32
    %c0_i32_1 = arith.constant 0 : i32
    %c0_i32_2 = arith.constant 0 : i32
    return %arg0, %arg1, %c0_i32, %c0_i32_0, %c0_i32_1 : i32, i32, i32, i32, i32
  }
  func.func @transform_1(%arg0: i32, %arg1: i32) -> (i32, i32, i32) {
    %c0_i32 = arith.constant 0 : i32
    %c0_i32_0 = arith.constant 0 : i32
    %c0_i32_1 = arith.constant 0 : i32
    %c0_i32_2 = arith.constant 0 : i32
    return %c0_i32, %c0_i32_0, %c0_i32_1 : i32, i32, i32
  }
  func.func @transform_2(%arg0: i32, %arg1: i32) -> (i32, i32) {
    %c0_i32 = arith.constant 0 : i32
    %c0_i32_0 = arith.constant 0 : i32
    %c0_i32_1 = arith.constant 0 : i32
    return %c0_i32, %c0_i32_0 : i32, i32
  }
  func.func @transform_3(%arg0: i32, %arg1: i32) -> (i32, i32, i32, i32) {
    %c0_i32 = arith.constant 0 : i32
    %c0_i32_0 = arith.constant 0 : i32
    %c0_i32_1 = arith.constant 0 : i32
    return %arg0, %arg1, %c0_i32, %c0_i32_0 : i32, i32, i32, i32
  }
}

module attributes {stable_mosaic.version = 11 : i64} {
  func.func @_enc_stage_kernel(%arg0: i32, %arg1: i32, %arg2: memref<1x1x10x10x64xf32, #tpu.memory_space<vmem>>, %arg3: memref<9x64x32xf32, #tpu.memory_space<vmem>>, %arg4: memref<1x32xf32, #tpu.memory_space<vmem>>, %arg5: memref<1x4x4x32xf32, #tpu.memory_space<vmem>>) attributes {dimension_semantics = [#tpu.dimension_semantics<parallel>, #tpu.dimension_semantics<parallel>], iteration_bounds = array<i64: 2, 1>, scalar_prefetch = 0 : i64, scratch_operands = 0 : i64, tpu.core_type = #tpu.core_type<tc>, window_params = [{transform_indices = @transform_0, window_bounds = array<i64: 1, 1, 10, 10, 64>}, {pipeline_mode = #tpu.pipeline_mode<synchronous>, transform_indices = @transform_1, window_bounds = array<i64: 9, 64, 32>}, {pipeline_mode = #tpu.pipeline_mode<synchronous>, transform_indices = @transform_2, window_bounds = array<i64: 1, 32>}, {transform_indices = @transform_3, window_bounds = array<i64: 1, 4, 4, 32>}]} {
    %cst = arith.constant 0.000000e+00 : f32
    %0 = vector.broadcast %cst : f32 to vector<64x32xf32>
    %c0 = arith.constant 0 : index
    %c0_0 = arith.constant 0 : index
    %c0_1 = arith.constant 0 : index
    %c0_2 = arith.constant 0 : index
    %c0_3 = arith.constant 0 : index
    %1 = vector.load %arg2[%c0, %c0_0, %c0_1, %c0_2, %c0_3] : memref<1x1x10x10x64xf32, #tpu.memory_space<vmem>>, vector<1x1x8x8x64xf32>
    %2 = vector.shape_cast %1 : vector<1x1x8x8x64xf32> to vector<8x8x64xf32>
    %3 = vector.shape_cast %2 : vector<8x8x64xf32> to vector<64x64xf32>
    %c0_4 = arith.constant 0 : index
    %c0_5 = arith.constant 0 : index
    %c0_6 = arith.constant 0 : index
    %4 = vector.load %arg3[%c0_4, %c0_5, %c0_6] : memref<9x64x32xf32, #tpu.memory_space<vmem>>, vector<1x64x32xf32>
    %5 = vector.shape_cast %4 : vector<1x64x32xf32> to vector<64x32xf32>
    %cst_7 = arith.constant dense<0.000000e+00> : vector<64x32xf32>
    %6 = tpu.matmul %3, %5, %cst_7 {dimension_numbers = #tpu.dot_dimension_numbers<[1], [0], [0], [1], [0, 0, 1, 1], [], []>} : vector<64x64xf32>, vector<64x32xf32>, vector<64x32xf32> -> vector<64x32xf32>
    %7 = arith.addf %0, %6 : vector<64x32xf32>
    %c0_8 = arith.constant 0 : index
    %c0_9 = arith.constant 0 : index
    %c0_10 = arith.constant 0 : index
    %c1 = arith.constant 1 : index
    %c0_11 = arith.constant 0 : index
    %8 = vector.load %arg2[%c0_8, %c0_9, %c0_10, %c1, %c0_11] : memref<1x1x10x10x64xf32, #tpu.memory_space<vmem>>, vector<1x1x8x8x64xf32>
    %9 = vector.shape_cast %8 : vector<1x1x8x8x64xf32> to vector<8x8x64xf32>
    %10 = vector.shape_cast %9 : vector<8x8x64xf32> to vector<64x64xf32>
    %c1_12 = arith.constant 1 : index
    %c0_13 = arith.constant 0 : index
    %c0_14 = arith.constant 0 : index
    %11 = vector.load %arg3[%c1_12, %c0_13, %c0_14] : memref<9x64x32xf32, #tpu.memory_space<vmem>>, vector<1x64x32xf32>
    %12 = vector.shape_cast %11 : vector<1x64x32xf32> to vector<64x32xf32>
    %cst_15 = arith.constant dense<0.000000e+00> : vector<64x32xf32>
    %13 = tpu.matmul %10, %12, %cst_15 {dimension_numbers = #tpu.dot_dimension_numbers<[1], [0], [0], [1], [0, 0, 1, 1], [], []>} : vector<64x64xf32>, vector<64x32xf32>, vector<64x32xf32> -> vector<64x32xf32>
    %14 = arith.addf %7, %13 : vector<64x32xf32>
    %c0_16 = arith.constant 0 : index
    %c0_17 = arith.constant 0 : index
    %c0_18 = arith.constant 0 : index
    %c2 = arith.constant 2 : index
    %c0_19 = arith.constant 0 : index
    %15 = vector.load %arg2[%c0_16, %c0_17, %c0_18, %c2, %c0_19] : memref<1x1x10x10x64xf32, #tpu.memory_space<vmem>>, vector<1x1x8x8x64xf32>
    %16 = vector.shape_cast %15 : vector<1x1x8x8x64xf32> to vector<8x8x64xf32>
    %17 = vector.shape_cast %16 : vector<8x8x64xf32> to vector<64x64xf32>
    %c2_20 = arith.constant 2 : index
    %c0_21 = arith.constant 0 : index
    %c0_22 = arith.constant 0 : index
    %18 = vector.load %arg3[%c2_20, %c0_21, %c0_22] : memref<9x64x32xf32, #tpu.memory_space<vmem>>, vector<1x64x32xf32>
    %19 = vector.shape_cast %18 : vector<1x64x32xf32> to vector<64x32xf32>
    %cst_23 = arith.constant dense<0.000000e+00> : vector<64x32xf32>
    %20 = tpu.matmul %17, %19, %cst_23 {dimension_numbers = #tpu.dot_dimension_numbers<[1], [0], [0], [1], [0, 0, 1, 1], [], []>} : vector<64x64xf32>, vector<64x32xf32>, vector<64x32xf32> -> vector<64x32xf32>
    %21 = arith.addf %14, %20 : vector<64x32xf32>
    %c0_24 = arith.constant 0 : index
    %c0_25 = arith.constant 0 : index
    %c1_26 = arith.constant 1 : index
    %c0_27 = arith.constant 0 : index
    %c0_28 = arith.constant 0 : index
    %22 = vector.load %arg2[%c0_24, %c0_25, %c1_26, %c0_27, %c0_28] : memref<1x1x10x10x64xf32, #tpu.memory_space<vmem>>, vector<1x1x8x8x64xf32>
    %23 = vector.shape_cast %22 : vector<1x1x8x8x64xf32> to vector<8x8x64xf32>
    %24 = vector.shape_cast %23 : vector<8x8x64xf32> to vector<64x64xf32>
    %c3 = arith.constant 3 : index
    %c0_29 = arith.constant 0 : index
    %c0_30 = arith.constant 0 : index
    %25 = vector.load %arg3[%c3, %c0_29, %c0_30] : memref<9x64x32xf32, #tpu.memory_space<vmem>>, vector<1x64x32xf32>
    %26 = vector.shape_cast %25 : vector<1x64x32xf32> to vector<64x32xf32>
    %cst_31 = arith.constant dense<0.000000e+00> : vector<64x32xf32>
    %27 = tpu.matmul %24, %26, %cst_31 {dimension_numbers = #tpu.dot_dimension_numbers<[1], [0], [0], [1], [0, 0, 1, 1], [], []>} : vector<64x64xf32>, vector<64x32xf32>, vector<64x32xf32> -> vector<64x32xf32>
    %28 = arith.addf %21, %27 : vector<64x32xf32>
    %c0_32 = arith.constant 0 : index
    %c0_33 = arith.constant 0 : index
    %c1_34 = arith.constant 1 : index
    %c1_35 = arith.constant 1 : index
    %c0_36 = arith.constant 0 : index
    %29 = vector.load %arg2[%c0_32, %c0_33, %c1_34, %c1_35, %c0_36] : memref<1x1x10x10x64xf32, #tpu.memory_space<vmem>>, vector<1x1x8x8x64xf32>
    %30 = vector.shape_cast %29 : vector<1x1x8x8x64xf32> to vector<8x8x64xf32>
    %31 = vector.shape_cast %30 : vector<8x8x64xf32> to vector<64x64xf32>
    %c4 = arith.constant 4 : index
    %c0_37 = arith.constant 0 : index
    %c0_38 = arith.constant 0 : index
    %32 = vector.load %arg3[%c4, %c0_37, %c0_38] : memref<9x64x32xf32, #tpu.memory_space<vmem>>, vector<1x64x32xf32>
    %33 = vector.shape_cast %32 : vector<1x64x32xf32> to vector<64x32xf32>
    %cst_39 = arith.constant dense<0.000000e+00> : vector<64x32xf32>
    %34 = tpu.matmul %31, %33, %cst_39 {dimension_numbers = #tpu.dot_dimension_numbers<[1], [0], [0], [1], [0, 0, 1, 1], [], []>} : vector<64x64xf32>, vector<64x32xf32>, vector<64x32xf32> -> vector<64x32xf32>
    %35 = arith.addf %28, %34 : vector<64x32xf32>
    %c0_40 = arith.constant 0 : index
    %c0_41 = arith.constant 0 : index
    %c1_42 = arith.constant 1 : index
    %c2_43 = arith.constant 2 : index
    %c0_44 = arith.constant 0 : index
    %36 = vector.load %arg2[%c0_40, %c0_41, %c1_42, %c2_43, %c0_44] : memref<1x1x10x10x64xf32, #tpu.memory_space<vmem>>, vector<1x1x8x8x64xf32>
    %37 = vector.shape_cast %36 : vector<1x1x8x8x64xf32> to vector<8x8x64xf32>
    %38 = vector.shape_cast %37 : vector<8x8x64xf32> to vector<64x64xf32>
    %c5 = arith.constant 5 : index
    %c0_45 = arith.constant 0 : index
    %c0_46 = arith.constant 0 : index
    %39 = vector.load %arg3[%c5, %c0_45, %c0_46] : memref<9x64x32xf32, #tpu.memory_space<vmem>>, vector<1x64x32xf32>
    %40 = vector.shape_cast %39 : vector<1x64x32xf32> to vector<64x32xf32>
    %cst_47 = arith.constant dense<0.000000e+00> : vector<64x32xf32>
    %41 = tpu.matmul %38, %40, %cst_47 {dimension_numbers = #tpu.dot_dimension_numbers<[1], [0], [0], [1], [0, 0, 1, 1], [], []>} : vector<64x64xf32>, vector<64x32xf32>, vector<64x32xf32> -> vector<64x32xf32>
    %42 = arith.addf %35, %41 : vector<64x32xf32>
    %c0_48 = arith.constant 0 : index
    %c0_49 = arith.constant 0 : index
    %c2_50 = arith.constant 2 : index
    %c0_51 = arith.constant 0 : index
    %c0_52 = arith.constant 0 : index
    %43 = vector.load %arg2[%c0_48, %c0_49, %c2_50, %c0_51, %c0_52] : memref<1x1x10x10x64xf32, #tpu.memory_space<vmem>>, vector<1x1x8x8x64xf32>
    %44 = vector.shape_cast %43 : vector<1x1x8x8x64xf32> to vector<8x8x64xf32>
    %45 = vector.shape_cast %44 : vector<8x8x64xf32> to vector<64x64xf32>
    %c6 = arith.constant 6 : index
    %c0_53 = arith.constant 0 : index
    %c0_54 = arith.constant 0 : index
    %46 = vector.load %arg3[%c6, %c0_53, %c0_54] : memref<9x64x32xf32, #tpu.memory_space<vmem>>, vector<1x64x32xf32>
    %47 = vector.shape_cast %46 : vector<1x64x32xf32> to vector<64x32xf32>
    %cst_55 = arith.constant dense<0.000000e+00> : vector<64x32xf32>
    %48 = tpu.matmul %45, %47, %cst_55 {dimension_numbers = #tpu.dot_dimension_numbers<[1], [0], [0], [1], [0, 0, 1, 1], [], []>} : vector<64x64xf32>, vector<64x32xf32>, vector<64x32xf32> -> vector<64x32xf32>
    %49 = arith.addf %42, %48 : vector<64x32xf32>
    %c0_56 = arith.constant 0 : index
    %c0_57 = arith.constant 0 : index
    %c2_58 = arith.constant 2 : index
    %c1_59 = arith.constant 1 : index
    %c0_60 = arith.constant 0 : index
    %50 = vector.load %arg2[%c0_56, %c0_57, %c2_58, %c1_59, %c0_60] : memref<1x1x10x10x64xf32, #tpu.memory_space<vmem>>, vector<1x1x8x8x64xf32>
    %51 = vector.shape_cast %50 : vector<1x1x8x8x64xf32> to vector<8x8x64xf32>
    %52 = vector.shape_cast %51 : vector<8x8x64xf32> to vector<64x64xf32>
    %c7 = arith.constant 7 : index
    %c0_61 = arith.constant 0 : index
    %c0_62 = arith.constant 0 : index
    %53 = vector.load %arg3[%c7, %c0_61, %c0_62] : memref<9x64x32xf32, #tpu.memory_space<vmem>>, vector<1x64x32xf32>
    %54 = vector.shape_cast %53 : vector<1x64x32xf32> to vector<64x32xf32>
    %cst_63 = arith.constant dense<0.000000e+00> : vector<64x32xf32>
    %55 = tpu.matmul %52, %54, %cst_63 {dimension_numbers = #tpu.dot_dimension_numbers<[1], [0], [0], [1], [0, 0, 1, 1], [], []>} : vector<64x64xf32>, vector<64x32xf32>, vector<64x32xf32> -> vector<64x32xf32>
    %56 = arith.addf %49, %55 : vector<64x32xf32>
    %c0_64 = arith.constant 0 : index
    %c0_65 = arith.constant 0 : index
    %c2_66 = arith.constant 2 : index
    %c2_67 = arith.constant 2 : index
    %c0_68 = arith.constant 0 : index
    %57 = vector.load %arg2[%c0_64, %c0_65, %c2_66, %c2_67, %c0_68] : memref<1x1x10x10x64xf32, #tpu.memory_space<vmem>>, vector<1x1x8x8x64xf32>
    %58 = vector.shape_cast %57 : vector<1x1x8x8x64xf32> to vector<8x8x64xf32>
    %59 = vector.shape_cast %58 : vector<8x8x64xf32> to vector<64x64xf32>
    %c8 = arith.constant 8 : index
    %c0_69 = arith.constant 0 : index
    %c0_70 = arith.constant 0 : index
    %60 = vector.load %arg3[%c8, %c0_69, %c0_70] : memref<9x64x32xf32, #tpu.memory_space<vmem>>, vector<1x64x32xf32>
    %61 = vector.shape_cast %60 : vector<1x64x32xf32> to vector<64x32xf32>
    %cst_71 = arith.constant dense<0.000000e+00> : vector<64x32xf32>
    %62 = tpu.matmul %59, %61, %cst_71 {dimension_numbers = #tpu.dot_dimension_numbers<[1], [0], [0], [1], [0, 0, 1, 1], [], []>} : vector<64x64xf32>, vector<64x32xf32>, vector<64x32xf32> -> vector<64x32xf32>
    %63 = arith.addf %56, %62 : vector<64x32xf32>
    %c0_72 = arith.constant 0 : index
    %c0_73 = arith.constant 0 : index
    %64 = vector.load %arg4[%c0_72, %c0_73] : memref<1x32xf32, #tpu.memory_space<vmem>>, vector<1x32xf32>
    %65 = vector.broadcast %64 : vector<1x32xf32> to vector<64x32xf32>
    %66 = arith.addf %63, %65 : vector<64x32xf32>
    %cst_74 = arith.constant 0.000000e+00 : f32
    %67 = vector.broadcast %cst_74 : f32 to vector<64x32xf32>
    %68 = arith.maximumf %66, %67 : vector<64x32xf32>
    %69 = vector.shape_cast %68 : vector<64x32xf32> to vector<32x2x32xf32>
    %70 = vector.extract_strided_slice %69 {offsets = [0, 0, 0], sizes = [32, 1, 32], strides = [1, 1, 1]} : vector<32x2x32xf32> to vector<32x1x32xf32>
    %71 = vector.shape_cast %70 : vector<32x1x32xf32> to vector<32x32xf32>
    %72 = vector.extract_strided_slice %69 {offsets = [0, 1, 0], sizes = [32, 1, 32], strides = [1, 1, 1]} : vector<32x2x32xf32> to vector<32x1x32xf32>
    %73 = vector.shape_cast %72 : vector<32x1x32xf32> to vector<32x32xf32>
    %74 = arith.maximumf %71, %73 : vector<32x32xf32>
    %75 = vector.shape_cast %74 : vector<32x32xf32> to vector<4x8x32xf32>
    %76 = vector.extract_strided_slice %75 {offsets = [0, 0, 0], sizes = [4, 4, 32], strides = [1, 1, 1]} : vector<4x8x32xf32> to vector<4x4x32xf32>
    %77 = vector.extract_strided_slice %75 {offsets = [0, 4, 0], sizes = [4, 4, 32], strides = [1, 1, 1]} : vector<4x8x32xf32> to vector<4x4x32xf32>
    %78 = arith.maximumf %76, %77 : vector<4x4x32xf32>
    %c0_75 = arith.constant 0 : index
    %c0_76 = arith.constant 0 : index
    %c0_77 = arith.constant 0 : index
    %c0_78 = arith.constant 0 : index
    %79 = vector.load %arg5[%c0_75, %c0_76, %c0_77, %c0_78] : memref<1x4x4x32xf32, #tpu.memory_space<vmem>>, vector<1x4x4x32xf32>
    %80 = vector.shape_cast %79 : vector<1x4x4x32xf32> to vector<4x4x32xf32>
    %81 = vector.shape_cast %78 : vector<4x4x32xf32> to vector<1x4x4x32xf32>
    tpu.vector_store %arg5[%c0_75, %c0_76, %c0_77, %c0_78], %81 {strides = array<i32>} : memref<1x4x4x32xf32, #tpu.memory_space<vmem>>, vector<1x4x4x32xf32>,
    return
  }
  func.func @transform_0(%arg0: i32, %arg1: i32) -> (i32, i32, i32, i32, i32) {
    %c0_i32 = arith.constant 0 : i32
    %c0_i32_0 = arith.constant 0 : i32
    %c0_i32_1 = arith.constant 0 : i32
    %c0_i32_2 = arith.constant 0 : i32
    return %arg0, %arg1, %c0_i32, %c0_i32_0, %c0_i32_1 : i32, i32, i32, i32, i32
  }
  func.func @transform_1(%arg0: i32, %arg1: i32) -> (i32, i32, i32) {
    %c0_i32 = arith.constant 0 : i32
    %c0_i32_0 = arith.constant 0 : i32
    %c0_i32_1 = arith.constant 0 : i32
    %c0_i32_2 = arith.constant 0 : i32
    return %c0_i32, %c0_i32_0, %c0_i32_1 : i32, i32, i32
  }
  func.func @transform_2(%arg0: i32, %arg1: i32) -> (i32, i32) {
    %c0_i32 = arith.constant 0 : i32
    %c0_i32_0 = arith.constant 0 : i32
    %c0_i32_1 = arith.constant 0 : i32
    return %c0_i32, %c0_i32_0 : i32, i32
  }
  func.func @transform_3(%arg0: i32, %arg1: i32) -> (i32, i32, i32, i32) {
    %c0_i32 = arith.constant 0 : i32
    %c0_i32_0 = arith.constant 0 : i32
    %c0_i32_1 = arith.constant 0 : i32
    return %arg0, %arg1, %c0_i32, %c0_i32_0 : i32, i32, i32, i32
  }
}

module attributes {stable_mosaic.version = 11 : i64} {
  func.func @_enc_stage_kernel(%arg0: i32, %arg1: i32, %arg2: memref<1x1x6x6x32xf32, #tpu.memory_space<vmem>>, %arg3: memref<9x32x4xf32, #tpu.memory_space<vmem>>, %arg4: memref<1x4xf32, #tpu.memory_space<vmem>>, %arg5: memref<1x2x2x4xf32, #tpu.memory_space<vmem>>) attributes {dimension_semantics = [#tpu.dimension_semantics<parallel>, #tpu.dimension_semantics<parallel>], iteration_bounds = array<i64: 2, 1>, scalar_prefetch = 0 : i64, scratch_operands = 0 : i64, tpu.core_type = #tpu.core_type<tc>, window_params = [{transform_indices = @transform_0, window_bounds = array<i64: 1, 1, 6, 6, 32>}, {pipeline_mode = #tpu.pipeline_mode<synchronous>, transform_indices = @transform_1, window_bounds = array<i64: 9, 32, 4>}, {pipeline_mode = #tpu.pipeline_mode<synchronous>, transform_indices = @transform_2, window_bounds = array<i64: 1, 4>}, {transform_indices = @transform_3, window_bounds = array<i64: 1, 2, 2, 4>}]} {
    %cst = arith.constant 0.000000e+00 : f32
    %0 = vector.broadcast %cst : f32 to vector<16x4xf32>
    %c0 = arith.constant 0 : index
    %c0_0 = arith.constant 0 : index
    %c0_1 = arith.constant 0 : index
    %c0_2 = arith.constant 0 : index
    %c0_3 = arith.constant 0 : index
    %1 = vector.load %arg2[%c0, %c0_0, %c0_1, %c0_2, %c0_3] : memref<1x1x6x6x32xf32, #tpu.memory_space<vmem>>, vector<1x1x4x4x32xf32>
    %2 = vector.shape_cast %1 : vector<1x1x4x4x32xf32> to vector<4x4x32xf32>
    %3 = vector.shape_cast %2 : vector<4x4x32xf32> to vector<16x32xf32>
    %c0_4 = arith.constant 0 : index
    %c0_5 = arith.constant 0 : index
    %c0_6 = arith.constant 0 : index
    %4 = vector.load %arg3[%c0_4, %c0_5, %c0_6] : memref<9x32x4xf32, #tpu.memory_space<vmem>>, vector<1x32x4xf32>
    %5 = vector.shape_cast %4 : vector<1x32x4xf32> to vector<32x4xf32>
    %cst_7 = arith.constant dense<0.000000e+00> : vector<16x4xf32>
    %6 = tpu.matmul %3, %5, %cst_7 {dimension_numbers = #tpu.dot_dimension_numbers<[1], [0], [0], [1], [0, 0, 1, 1], [], []>} : vector<16x32xf32>, vector<32x4xf32>, vector<16x4xf32> -> vector<16x4xf32>
    %7 = arith.addf %0, %6 : vector<16x4xf32>
    %c0_8 = arith.constant 0 : index
    %c0_9 = arith.constant 0 : index
    %c0_10 = arith.constant 0 : index
    %c1 = arith.constant 1 : index
    %c0_11 = arith.constant 0 : index
    %8 = vector.load %arg2[%c0_8, %c0_9, %c0_10, %c1, %c0_11] : memref<1x1x6x6x32xf32, #tpu.memory_space<vmem>>, vector<1x1x4x4x32xf32>
    %9 = vector.shape_cast %8 : vector<1x1x4x4x32xf32> to vector<4x4x32xf32>
    %10 = vector.shape_cast %9 : vector<4x4x32xf32> to vector<16x32xf32>
    %c1_12 = arith.constant 1 : index
    %c0_13 = arith.constant 0 : index
    %c0_14 = arith.constant 0 : index
    %11 = vector.load %arg3[%c1_12, %c0_13, %c0_14] : memref<9x32x4xf32, #tpu.memory_space<vmem>>, vector<1x32x4xf32>
    %12 = vector.shape_cast %11 : vector<1x32x4xf32> to vector<32x4xf32>
    %cst_15 = arith.constant dense<0.000000e+00> : vector<16x4xf32>
    %13 = tpu.matmul %10, %12, %cst_15 {dimension_numbers = #tpu.dot_dimension_numbers<[1], [0], [0], [1], [0, 0, 1, 1], [], []>} : vector<16x32xf32>, vector<32x4xf32>, vector<16x4xf32> -> vector<16x4xf32>
    %14 = arith.addf %7, %13 : vector<16x4xf32>
    %c0_16 = arith.constant 0 : index
    %c0_17 = arith.constant 0 : index
    %c0_18 = arith.constant 0 : index
    %c2 = arith.constant 2 : index
    %c0_19 = arith.constant 0 : index
    %15 = vector.load %arg2[%c0_16, %c0_17, %c0_18, %c2, %c0_19] : memref<1x1x6x6x32xf32, #tpu.memory_space<vmem>>, vector<1x1x4x4x32xf32>
    %16 = vector.shape_cast %15 : vector<1x1x4x4x32xf32> to vector<4x4x32xf32>
    %17 = vector.shape_cast %16 : vector<4x4x32xf32> to vector<16x32xf32>
    %c2_20 = arith.constant 2 : index
    %c0_21 = arith.constant 0 : index
    %c0_22 = arith.constant 0 : index
    %18 = vector.load %arg3[%c2_20, %c0_21, %c0_22] : memref<9x32x4xf32, #tpu.memory_space<vmem>>, vector<1x32x4xf32>
    %19 = vector.shape_cast %18 : vector<1x32x4xf32> to vector<32x4xf32>
    %cst_23 = arith.constant dense<0.000000e+00> : vector<16x4xf32>
    %20 = tpu.matmul %17, %19, %cst_23 {dimension_numbers = #tpu.dot_dimension_numbers<[1], [0], [0], [1], [0, 0, 1, 1], [], []>} : vector<16x32xf32>, vector<32x4xf32>, vector<16x4xf32> -> vector<16x4xf32>
    %21 = arith.addf %14, %20 : vector<16x4xf32>
    %c0_24 = arith.constant 0 : index
    %c0_25 = arith.constant 0 : index
    %c1_26 = arith.constant 1 : index
    %c0_27 = arith.constant 0 : index
    %c0_28 = arith.constant 0 : index
    %22 = vector.load %arg2[%c0_24, %c0_25, %c1_26, %c0_27, %c0_28] : memref<1x1x6x6x32xf32, #tpu.memory_space<vmem>>, vector<1x1x4x4x32xf32>
    %23 = vector.shape_cast %22 : vector<1x1x4x4x32xf32> to vector<4x4x32xf32>
    %24 = vector.shape_cast %23 : vector<4x4x32xf32> to vector<16x32xf32>
    %c3 = arith.constant 3 : index
    %c0_29 = arith.constant 0 : index
    %c0_30 = arith.constant 0 : index
    %25 = vector.load %arg3[%c3, %c0_29, %c0_30] : memref<9x32x4xf32, #tpu.memory_space<vmem>>, vector<1x32x4xf32>
    %26 = vector.shape_cast %25 : vector<1x32x4xf32> to vector<32x4xf32>
    %cst_31 = arith.constant dense<0.000000e+00> : vector<16x4xf32>
    %27 = tpu.matmul %24, %26, %cst_31 {dimension_numbers = #tpu.dot_dimension_numbers<[1], [0], [0], [1], [0, 0, 1, 1], [], []>} : vector<16x32xf32>, vector<32x4xf32>, vector<16x4xf32> -> vector<16x4xf32>
    %28 = arith.addf %21, %27 : vector<16x4xf32>
    %c0_32 = arith.constant 0 : index
    %c0_33 = arith.constant 0 : index
    %c1_34 = arith.constant 1 : index
    %c1_35 = arith.constant 1 : index
    %c0_36 = arith.constant 0 : index
    %29 = vector.load %arg2[%c0_32, %c0_33, %c1_34, %c1_35, %c0_36] : memref<1x1x6x6x32xf32, #tpu.memory_space<vmem>>, vector<1x1x4x4x32xf32>
    %30 = vector.shape_cast %29 : vector<1x1x4x4x32xf32> to vector<4x4x32xf32>
    %31 = vector.shape_cast %30 : vector<4x4x32xf32> to vector<16x32xf32>
    %c4 = arith.constant 4 : index
    %c0_37 = arith.constant 0 : index
    %c0_38 = arith.constant 0 : index
    %32 = vector.load %arg3[%c4, %c0_37, %c0_38] : memref<9x32x4xf32, #tpu.memory_space<vmem>>, vector<1x32x4xf32>
    %33 = vector.shape_cast %32 : vector<1x32x4xf32> to vector<32x4xf32>
    %cst_39 = arith.constant dense<0.000000e+00> : vector<16x4xf32>
    %34 = tpu.matmul %31, %33, %cst_39 {dimension_numbers = #tpu.dot_dimension_numbers<[1], [0], [0], [1], [0, 0, 1, 1], [], []>} : vector<16x32xf32>, vector<32x4xf32>, vector<16x4xf32> -> vector<16x4xf32>
    %35 = arith.addf %28, %34 : vector<16x4xf32>
    %c0_40 = arith.constant 0 : index
    %c0_41 = arith.constant 0 : index
    %c1_42 = arith.constant 1 : index
    %c2_43 = arith.constant 2 : index
    %c0_44 = arith.constant 0 : index
    %36 = vector.load %arg2[%c0_40, %c0_41, %c1_42, %c2_43, %c0_44] : memref<1x1x6x6x32xf32, #tpu.memory_space<vmem>>, vector<1x1x4x4x32xf32>
    %37 = vector.shape_cast %36 : vector<1x1x4x4x32xf32> to vector<4x4x32xf32>
    %38 = vector.shape_cast %37 : vector<4x4x32xf32> to vector<16x32xf32>
    %c5 = arith.constant 5 : index
    %c0_45 = arith.constant 0 : index
    %c0_46 = arith.constant 0 : index
    %39 = vector.load %arg3[%c5, %c0_45, %c0_46] : memref<9x32x4xf32, #tpu.memory_space<vmem>>, vector<1x32x4xf32>
    %40 = vector.shape_cast %39 : vector<1x32x4xf32> to vector<32x4xf32>
    %cst_47 = arith.constant dense<0.000000e+00> : vector<16x4xf32>
    %41 = tpu.matmul %38, %40, %cst_47 {dimension_numbers = #tpu.dot_dimension_numbers<[1], [0], [0], [1], [0, 0, 1, 1], [], []>} : vector<16x32xf32>, vector<32x4xf32>, vector<16x4xf32> -> vector<16x4xf32>
    %42 = arith.addf %35, %41 : vector<16x4xf32>
    %c0_48 = arith.constant 0 : index
    %c0_49 = arith.constant 0 : index
    %c2_50 = arith.constant 2 : index
    %c0_51 = arith.constant 0 : index
    %c0_52 = arith.constant 0 : index
    %43 = vector.load %arg2[%c0_48, %c0_49, %c2_50, %c0_51, %c0_52] : memref<1x1x6x6x32xf32, #tpu.memory_space<vmem>>, vector<1x1x4x4x32xf32>
    %44 = vector.shape_cast %43 : vector<1x1x4x4x32xf32> to vector<4x4x32xf32>
    %45 = vector.shape_cast %44 : vector<4x4x32xf32> to vector<16x32xf32>
    %c6 = arith.constant 6 : index
    %c0_53 = arith.constant 0 : index
    %c0_54 = arith.constant 0 : index
    %46 = vector.load %arg3[%c6, %c0_53, %c0_54] : memref<9x32x4xf32, #tpu.memory_space<vmem>>, vector<1x32x4xf32>
    %47 = vector.shape_cast %46 : vector<1x32x4xf32> to vector<32x4xf32>
    %cst_55 = arith.constant dense<0.000000e+00> : vector<16x4xf32>
    %48 = tpu.matmul %45, %47, %cst_55 {dimension_numbers = #tpu.dot_dimension_numbers<[1], [0], [0], [1], [0, 0, 1, 1], [], []>} : vector<16x32xf32>, vector<32x4xf32>, vector<16x4xf32> -> vector<16x4xf32>
    %49 = arith.addf %42, %48 : vector<16x4xf32>
    %c0_56 = arith.constant 0 : index
    %c0_57 = arith.constant 0 : index
    %c2_58 = arith.constant 2 : index
    %c1_59 = arith.constant 1 : index
    %c0_60 = arith.constant 0 : index
    %50 = vector.load %arg2[%c0_56, %c0_57, %c2_58, %c1_59, %c0_60] : memref<1x1x6x6x32xf32, #tpu.memory_space<vmem>>, vector<1x1x4x4x32xf32>
    %51 = vector.shape_cast %50 : vector<1x1x4x4x32xf32> to vector<4x4x32xf32>
    %52 = vector.shape_cast %51 : vector<4x4x32xf32> to vector<16x32xf32>
    %c7 = arith.constant 7 : index
    %c0_61 = arith.constant 0 : index
    %c0_62 = arith.constant 0 : index
    %53 = vector.load %arg3[%c7, %c0_61, %c0_62] : memref<9x32x4xf32, #tpu.memory_space<vmem>>, vector<1x32x4xf32>
    %54 = vector.shape_cast %53 : vector<1x32x4xf32> to vector<32x4xf32>
    %cst_63 = arith.constant dense<0.000000e+00> : vector<16x4xf32>
    %55 = tpu.matmul %52, %54, %cst_63 {dimension_numbers = #tpu.dot_dimension_numbers<[1], [0], [0], [1], [0, 0, 1, 1], [], []>} : vector<16x32xf32>, vector<32x4xf32>, vector<16x4xf32> -> vector<16x4xf32>
    %56 = arith.addf %49, %55 : vector<16x4xf32>
    %c0_64 = arith.constant 0 : index
    %c0_65 = arith.constant 0 : index
    %c2_66 = arith.constant 2 : index
    %c2_67 = arith.constant 2 : index
    %c0_68 = arith.constant 0 : index
    %57 = vector.load %arg2[%c0_64, %c0_65, %c2_66, %c2_67, %c0_68] : memref<1x1x6x6x32xf32, #tpu.memory_space<vmem>>, vector<1x1x4x4x32xf32>
    %58 = vector.shape_cast %57 : vector<1x1x4x4x32xf32> to vector<4x4x32xf32>
    %59 = vector.shape_cast %58 : vector<4x4x32xf32> to vector<16x32xf32>
    %c8 = arith.constant 8 : index
    %c0_69 = arith.constant 0 : index
    %c0_70 = arith.constant 0 : index
    %60 = vector.load %arg3[%c8, %c0_69, %c0_70] : memref<9x32x4xf32, #tpu.memory_space<vmem>>, vector<1x32x4xf32>
    %61 = vector.shape_cast %60 : vector<1x32x4xf32> to vector<32x4xf32>
    %cst_71 = arith.constant dense<0.000000e+00> : vector<16x4xf32>
    %62 = tpu.matmul %59, %61, %cst_71 {dimension_numbers = #tpu.dot_dimension_numbers<[1], [0], [0], [1], [0, 0, 1, 1], [], []>} : vector<16x32xf32>, vector<32x4xf32>, vector<16x4xf32> -> vector<16x4xf32>
    %63 = arith.addf %56, %62 : vector<16x4xf32>
    %c0_72 = arith.constant 0 : index
    %c0_73 = arith.constant 0 : index
    %64 = vector.load %arg4[%c0_72, %c0_73] : memref<1x4xf32, #tpu.memory_space<vmem>>, vector<1x4xf32>
    %65 = vector.broadcast %64 : vector<1x4xf32> to vector<16x4xf32>
    %66 = arith.addf %63, %65 : vector<16x4xf32>
    %cst_74 = arith.constant 0.000000e+00 : f32
    %67 = vector.broadcast %cst_74 : f32 to vector<16x4xf32>
    %68 = arith.maximumf %66, %67 : vector<16x4xf32>
    %69 = vector.shape_cast %68 : vector<16x4xf32> to vector<8x2x4xf32>
    %70 = vector.extract_strided_slice %69 {offsets = [0, 0, 0], sizes = [8, 1, 4], strides = [1, 1, 1]} : vector<8x2x4xf32> to vector<8x1x4xf32>
    %71 = vector.shape_cast %70 : vector<8x1x4xf32> to vector<8x4xf32>
    %72 = vector.extract_strided_slice %69 {offsets = [0, 1, 0], sizes = [8, 1, 4], strides = [1, 1, 1]} : vector<8x2x4xf32> to vector<8x1x4xf32>
    %73 = vector.shape_cast %72 : vector<8x1x4xf32> to vector<8x4xf32>
    %74 = arith.maximumf %71, %73 : vector<8x4xf32>
    %75 = vector.shape_cast %74 : vector<8x4xf32> to vector<2x4x4xf32>
    %76 = vector.extract_strided_slice %75 {offsets = [0, 0, 0], sizes = [2, 2, 4], strides = [1, 1, 1]} : vector<2x4x4xf32> to vector<2x2x4xf32>
    %77 = vector.extract_strided_slice %75 {offsets = [0, 2, 0], sizes = [2, 2, 4], strides = [1, 1, 1]} : vector<2x4x4xf32> to vector<2x2x4xf32>
    %78 = arith.maximumf %76, %77 : vector<2x2x4xf32>
    %c0_75 = arith.constant 0 : index
    %c0_76 = arith.constant 0 : index
    %c0_77 = arith.constant 0 : index
    %c0_78 = arith.constant 0 : index
    %79 = vector.load %arg5[%c0_75, %c0_76, %c0_77, %c0_78] : memref<1x2x2x4xf32, #tpu.memory_space<vmem>>, vector<1x2x2x4xf32>
    %80 = vector.shape_cast %79 : vector<1x2x2x4xf32> to vector<2x2x4xf32>
    %81 = vector.shape_cast %78 : vector<2x2x4xf32> to vector<1x2x2x4xf32>
    tpu.vector_store %arg5[%c0_75, %c0_76, %c0_77, %c0_78], %81 {strides = array<i32>} : memref<1x2x2x4xf32, #tpu.memory_space<vmem>>, vector<1x2x2x4xf32>,
    return
  }
  func.func @transform_0(%arg0: i32, %arg1: i32) -> (i32, i32, i32, i32, i32) {
    %c0_i32 = arith.constant 0 : i32
    %c0_i32_0 = arith.constant 0 : i32
    %c0_i32_1 = arith.constant 0 : i32
    %c0_i32_2 = arith.constant 0 : i32
    return %arg0, %arg1, %c0_i32, %c0_i32_0, %c0_i32_1 : i32, i32, i32, i32, i32
  }
  func.func @transform_1(%arg0: i32, %arg1: i32) -> (i32, i32, i32) {
    %c0_i32 = arith.constant 0 : i32
    %c0_i32_0 = arith.constant 0 : i32
    %c0_i32_1 = arith.constant 0 : i32
    %c0_i32_2 = arith.constant 0 : i32
    return %c0_i32, %c0_i32_0, %c0_i32_1 : i32, i32, i32
  }
  func.func @transform_2(%arg0: i32, %arg1: i32) -> (i32, i32) {
    %c0_i32 = arith.constant 0 : i32
    %c0_i32_0 = arith.constant 0 : i32
    %c0_i32_1 = arith.constant 0 : i32
    return %c0_i32, %c0_i32_0 : i32, i32
  }
  func.func @transform_3(%arg0: i32, %arg1: i32) -> (i32, i32, i32, i32) {
    %c0_i32 = arith.constant 0 : i32
    %c0_i32_0 = arith.constant 0 : i32
    %c0_i32_1 = arith.constant 0 : i32
    return %arg0, %arg1, %c0_i32, %c0_i32_0 : i32, i32, i32, i32
  }
}

module attributes {stable_mosaic.version = 11 : i64} {
  func.func @_tconv2x2_kernel(%arg0: i32, %arg1: memref<8x4xf32, #tpu.memory_space<vmem>>, %arg2: memref<4x128xf32, #tpu.memory_space<vmem>>, %arg3: memref<1x128xf32, #tpu.memory_space<vmem>>, %arg4: memref<8x128xf32, #tpu.memory_space<vmem>>) attributes {dimension_semantics = [#tpu.dimension_semantics<parallel>], iteration_bounds = array<i64: 1>, scalar_prefetch = 0 : i64, scratch_operands = 0 : i64, tpu.core_type = #tpu.core_type<tc>, window_params = [{transform_indices = @transform_0, window_bounds = array<i64: 8, 4>}, {pipeline_mode = #tpu.pipeline_mode<synchronous>, transform_indices = @transform_1, window_bounds = array<i64: 4, 128>}, {pipeline_mode = #tpu.pipeline_mode<synchronous>, transform_indices = @transform_2, window_bounds = array<i64: 1, 128>}, {transform_indices = @transform_3, window_bounds = array<i64: 8, 128>}]} {
    %c0 = arith.constant 0 : index
    %c0_0 = arith.constant 0 : index
    %0 = vector.load %arg1[%c0, %c0_0] : memref<8x4xf32, #tpu.memory_space<vmem>>, vector<8x4xf32>
    %c0_1 = arith.constant 0 : index
    %c0_2 = arith.constant 0 : index
    %1 = vector.load %arg2[%c0_1, %c0_2] : memref<4x128xf32, #tpu.memory_space<vmem>>, vector<4x128xf32>
    %cst = arith.constant dense<0.000000e+00> : vector<8x128xf32>
    %2 = tpu.matmul %0, %1, %cst {dimension_numbers = #tpu.dot_dimension_numbers<[1], [0], [0], [1], [0, 0, 1, 1], [], []>} : vector<8x4xf32>, vector<4x128xf32>, vector<8x128xf32> -> vector<8x128xf32>
    %c0_3 = arith.constant 0 : index
    %c0_4 = arith.constant 0 : index
    %3 = vector.load %arg3[%c0_3, %c0_4] : memref<1x128xf32, #tpu.memory_space<vmem>>, vector<1x128xf32>
    %4 = vector.broadcast %3 : vector<1x128xf32> to vector<8x128xf32>
    %5 = arith.addf %2, %4 : vector<8x128xf32>
    %cst_5 = arith.constant 0.000000e+00 : f32
    %6 = vector.broadcast %cst_5 : f32 to vector<8x128xf32>
    %7 = arith.maximumf %5, %6 : vector<8x128xf32>
    %c0_6 = arith.constant 0 : index
    %c0_7 = arith.constant 0 : index
    %8 = vector.load %arg4[%c0_6, %c0_7] : memref<8x128xf32, #tpu.memory_space<vmem>>, vector<8x128xf32>
    tpu.vector_store %arg4[%c0_6, %c0_7], %7 {strides = array<i32>} : memref<8x128xf32, #tpu.memory_space<vmem>>, vector<8x128xf32>,
    return
  }
  func.func @transform_0(%arg0: i32) -> (i32, i32) {
    %c0_i32 = arith.constant 0 : i32
    %c0_i32_0 = arith.constant 0 : i32
    return %arg0, %c0_i32 : i32, i32
  }
  func.func @transform_1(%arg0: i32) -> (i32, i32) {
    %c0_i32 = arith.constant 0 : i32
    %c0_i32_0 = arith.constant 0 : i32
    %c0_i32_1 = arith.constant 0 : i32
    return %c0_i32, %c0_i32_0 : i32, i32
  }
  func.func @transform_2(%arg0: i32) -> (i32, i32) {
    %c0_i32 = arith.constant 0 : i32
    %c0_i32_0 = arith.constant 0 : i32
    %c0_i32_1 = arith.constant 0 : i32
    return %c0_i32, %c0_i32_0 : i32, i32
  }
  func.func @transform_3(%arg0: i32) -> (i32, i32) {
    %c0_i32 = arith.constant 0 : i32
    %c0_i32_0 = arith.constant 0 : i32
    return %arg0, %c0_i32 : i32, i32
  }
}

module attributes {stable_mosaic.version = 11 : i64} {
  func.func @_tconv2x2_kernel(%arg0: i32, %arg1: memref<32x32xf32, #tpu.memory_space<vmem>>, %arg2: memref<32x256xf32, #tpu.memory_space<vmem>>, %arg3: memref<1x256xf32, #tpu.memory_space<vmem>>, %arg4: memref<32x256xf32, #tpu.memory_space<vmem>>) attributes {dimension_semantics = [#tpu.dimension_semantics<parallel>], iteration_bounds = array<i64: 1>, scalar_prefetch = 0 : i64, scratch_operands = 0 : i64, tpu.core_type = #tpu.core_type<tc>, window_params = [{transform_indices = @transform_0, window_bounds = array<i64: 32, 32>}, {pipeline_mode = #tpu.pipeline_mode<synchronous>, transform_indices = @transform_1, window_bounds = array<i64: 32, 256>}, {pipeline_mode = #tpu.pipeline_mode<synchronous>, transform_indices = @transform_2, window_bounds = array<i64: 1, 256>}, {transform_indices = @transform_3, window_bounds = array<i64: 32, 256>}]} {
    %c0 = arith.constant 0 : index
    %c0_0 = arith.constant 0 : index
    %0 = vector.load %arg1[%c0, %c0_0] : memref<32x32xf32, #tpu.memory_space<vmem>>, vector<32x32xf32>
    %c0_1 = arith.constant 0 : index
    %c0_2 = arith.constant 0 : index
    %1 = vector.load %arg2[%c0_1, %c0_2] : memref<32x256xf32, #tpu.memory_space<vmem>>, vector<32x256xf32>
    %cst = arith.constant dense<0.000000e+00> : vector<32x256xf32>
    %2 = tpu.matmul %0, %1, %cst {dimension_numbers = #tpu.dot_dimension_numbers<[1], [0], [0], [1], [0, 0, 1, 1], [], []>} : vector<32x32xf32>, vector<32x256xf32>, vector<32x256xf32> -> vector<32x256xf32>
    %c0_3 = arith.constant 0 : index
    %c0_4 = arith.constant 0 : index
    %3 = vector.load %arg3[%c0_3, %c0_4] : memref<1x256xf32, #tpu.memory_space<vmem>>, vector<1x256xf32>
    %4 = vector.broadcast %3 : vector<1x256xf32> to vector<32x256xf32>
    %5 = arith.addf %2, %4 : vector<32x256xf32>
    %cst_5 = arith.constant 0.000000e+00 : f32
    %6 = vector.broadcast %cst_5 : f32 to vector<32x256xf32>
    %7 = arith.maximumf %5, %6 : vector<32x256xf32>
    %c0_6 = arith.constant 0 : index
    %c0_7 = arith.constant 0 : index
    %8 = vector.load %arg4[%c0_6, %c0_7] : memref<32x256xf32, #tpu.memory_space<vmem>>, vector<32x256xf32>
    tpu.vector_store %arg4[%c0_6, %c0_7], %7 {strides = array<i32>} : memref<32x256xf32, #tpu.memory_space<vmem>>, vector<32x256xf32>,
    return
  }
  func.func @transform_0(%arg0: i32) -> (i32, i32) {
    %c0_i32 = arith.constant 0 : i32
    %c0_i32_0 = arith.constant 0 : i32
    return %arg0, %c0_i32 : i32, i32
  }
  func.func @transform_1(%arg0: i32) -> (i32, i32) {
    %c0_i32 = arith.constant 0 : i32
    %c0_i32_0 = arith.constant 0 : i32
    %c0_i32_1 = arith.constant 0 : i32
    return %c0_i32, %c0_i32_0 : i32, i32
  }
  func.func @transform_2(%arg0: i32) -> (i32, i32) {
    %c0_i32 = arith.constant 0 : i32
    %c0_i32_0 = arith.constant 0 : i32
    %c0_i32_1 = arith.constant 0 : i32
    return %c0_i32, %c0_i32_0 : i32, i32
  }
  func.func @transform_3(%arg0: i32) -> (i32, i32) {
    %c0_i32 = arith.constant 0 : i32
    %c0_i32_0 = arith.constant 0 : i32
    return %arg0, %c0_i32 : i32, i32
  }
}

module attributes {stable_mosaic.version = 11 : i64} {
  func.func @_tconv2x2_kernel(%arg0: i32, %arg1: memref<128x64xf32, #tpu.memory_space<vmem>>, %arg2: memref<64x4xf32, #tpu.memory_space<vmem>>, %arg3: memref<1x4xf32, #tpu.memory_space<vmem>>, %arg4: memref<128x4xf32, #tpu.memory_space<vmem>>) attributes {dimension_semantics = [#tpu.dimension_semantics<parallel>], iteration_bounds = array<i64: 1>, scalar_prefetch = 0 : i64, scratch_operands = 0 : i64, tpu.core_type = #tpu.core_type<tc>, window_params = [{transform_indices = @transform_0, window_bounds = array<i64: 128, 64>}, {pipeline_mode = #tpu.pipeline_mode<synchronous>, transform_indices = @transform_1, window_bounds = array<i64: 64, 4>}, {pipeline_mode = #tpu.pipeline_mode<synchronous>, transform_indices = @transform_2, window_bounds = array<i64: 1, 4>}, {transform_indices = @transform_3, window_bounds = array<i64: 128, 4>}]} {
    %c0 = arith.constant 0 : index
    %c0_0 = arith.constant 0 : index
    %0 = vector.load %arg1[%c0, %c0_0] : memref<128x64xf32, #tpu.memory_space<vmem>>, vector<128x64xf32>
    %c0_1 = arith.constant 0 : index
    %c0_2 = arith.constant 0 : index
    %1 = vector.load %arg2[%c0_1, %c0_2] : memref<64x4xf32, #tpu.memory_space<vmem>>, vector<64x4xf32>
    %cst = arith.constant dense<0.000000e+00> : vector<128x4xf32>
    %2 = tpu.matmul %0, %1, %cst {dimension_numbers = #tpu.dot_dimension_numbers<[1], [0], [0], [1], [0, 0, 1, 1], [], []>} : vector<128x64xf32>, vector<64x4xf32>, vector<128x4xf32> -> vector<128x4xf32>
    %c0_3 = arith.constant 0 : index
    %c0_4 = arith.constant 0 : index
    %3 = vector.load %arg3[%c0_3, %c0_4] : memref<1x4xf32, #tpu.memory_space<vmem>>, vector<1x4xf32>
    %4 = vector.broadcast %3 : vector<1x4xf32> to vector<128x4xf32>
    %5 = arith.addf %2, %4 : vector<128x4xf32>
    %6 = arith.negf %5 : vector<128x4xf32>
    %7 = math.exp %6 : vector<128x4xf32>
    %cst_5 = arith.constant 1.000000e+00 : f32
    %8 = vector.broadcast %cst_5 : f32 to vector<128x4xf32>
    %9 = arith.addf %8, %7 : vector<128x4xf32>
    %10 = arith.divf %8, %9 : vector<128x4xf32>
    %c0_6 = arith.constant 0 : index
    %c0_7 = arith.constant 0 : index
    %11 = vector.load %arg4[%c0_6, %c0_7] : memref<128x4xf32, #tpu.memory_space<vmem>>, vector<128x4xf32>
    tpu.vector_store %arg4[%c0_6, %c0_7], %10 {strides = array<i32>} : memref<128x4xf32, #tpu.memory_space<vmem>>, vector<128x4xf32>,
    return
  }
  func.func @transform_0(%arg0: i32) -> (i32, i32) {
    %c0_i32 = arith.constant 0 : i32
    %c0_i32_0 = arith.constant 0 : i32
    return %arg0, %c0_i32 : i32, i32
  }
  func.func @transform_1(%arg0: i32) -> (i32, i32) {
    %c0_i32 = arith.constant 0 : i32
    %c0_i32_0 = arith.constant 0 : i32
    %c0_i32_1 = arith.constant 0 : i32
    return %c0_i32, %c0_i32_0 : i32, i32
  }
  func.func @transform_2(%arg0: i32) -> (i32, i32) {
    %c0_i32 = arith.constant 0 : i32
    %c0_i32_0 = arith.constant 0 : i32
    %c0_i32_1 = arith.constant 0 : i32
    return %c0_i32, %c0_i32_0 : i32, i32
  }
  func.func @transform_3(%arg0: i32) -> (i32, i32) {
    %c0_i32 = arith.constant 0 : i32
    %c0_i32_0 = arith.constant 0 : i32
    return %arg0, %c0_i32 : i32, i32
  }
}

</mosaic_0001>

<bundles_post_ra>
// kernel: tile.18
= control target key start
LH: loop header
LB: loop body
LE: loop exit
PB: predicated region body
PF: predicated region fallthrough
CT: control target
= control target key end

     0   :  { %s22_s0 = inlined_call_operand.vmem [shape: f32[32], index: 0, kind: input, shape index: {}]   ;;  %s23_s1 = inlined_call_operand.vmem [shape: f32[4,32], index: 1, kind: output, shape index: {}]  }
   0x1   :  { %v4_v0 = vld [vmem:[%s22_s0] ss:$0 sm:$0xff] }
   0x2   :  { %5 = vst [vmem:[%s23_s1] sm:$0xf] %v4_v0 }

// kernel: tile.19
= control target key start
LH: loop header
LB: loop body
LE: loop exit
PB: predicated region body
PF: predicated region fallthrough
CT: control target
= control target key end

     0   :  { %vm8_vm0 = vcmask 261120   ;;  %s40_s8 = smov 32   ;;  %s41_s9 = smov 64   ;;  %vm14_vm1 = vcmask 1048320   ;;  %vm20_vm2 = vcmask 785920   ;;  %vm26_vm3 = vcmask 523520   ;;  %s58_s0 = inlined_call_operand.vmem [shape: f32[4,32], index: 0, kind: input, shape index: {}]   ;;  %s59_s1 = inlined_call_operand.vmem [shape: f32[1,128], index: 1, kind: output, shape index: {}]  }
   0x1   :  { %v5_v0 = vld [vmem:[%s58_s0] sm:$0xf]  ;;  %s39_s0 = smov 96  }
   0x2   :  { %6 = vst [vmem:[#allocation1] sm:$0xf] %v5_v0 }
   0x9   :  { %v11_v1 = vld [vmem:[#allocation1 + $0x3] sm:$0x1]   ;;  %v23_v2 = vld [vmem:[#allocation1 + $0x1] sm:$0x1]   ;;  %v7_v3 = vld [vmem:[#allocation1] sm:$0x1]  }
   0xa   :  { %12 = vrot.lane.b32.xlu0 %v11_v1, %s39_s0  ;;  %24 = vrot.lane.b32.xlu1 %v23_v2, %s40_s8  ;;  %v17_v4 = vld [vmem:[#allocation1 + $0x2] sm:$0x1]   ;;  %9 = vst.msk [vmem:[#allocation0] sm:$0x1] %vm8_vm0, %v7_v3  }
   0xe   :  { %18 = vrot.lane.b32.xlu0 %v17_v4, %s41_s9 }
  0x7c   :  { %v13_v5 = vpop.permute.xlu0 %12   ;;  %v25_v6 = vpop.permute.xlu1 %24  }
  0x7d   :  { %15 = vst.msk [vmem:[#allocation0] sm:$0x1] %vm14_vm1, %v13_v5  }
  0x80   :  { %v19_v7 = vpop.permute.xlu0 %18  }
  0x81   :  { %21 = vst.msk [vmem:[#allocation0] sm:$0x1] %vm20_vm2, %v19_v7  }
  0x82   :  { %27 = vst.msk [vmem:[#allocation0] sm:$0x1] %vm26_vm3, %v25_v6  }
  0x89   :  { %v32_v8 = vld [vmem:[#allocation0] sm:$0x1] }
  0x8a   :  { %35 = vst [vmem:[%s59_s1] sm:$0x1] %v32_v8 }

// kernel: conv_autoencoder_forward.9
= control target key start
LH: loop header
LB: loop body
LE: loop exit
PB: predicated region body
PF: predicated region fallthrough
CT: control target
= control target key end

     0   :  { %vm27_vm0 = vcmask 1043456   ;;  %vm23_vm1 = vcmask 31744   ;;  %v119_v0 = vmov 0.0   ;;  %vm120_vm2 = vmmov 0   ;;  %s153_s1 = inlined_call_operand.vmem [shape: f32[4,128], index: 1, kind: input, shape index: {}]   ;;  %s154_s0 = inlined_call_operand.vmem [shape: f32[8,4], index: 0, kind: input, shape index: {}]   ;;  %s155_s2 = inlined_call_operand.vmem [shape: f32[1,128], index: 2, kind: input, shape index: {}]   ;;  %s156_s3 = inlined_call_operand.vmem [shape: f32[8,128], index: 3, kind: output, shape index: {}]  }
   0x1   :  { %112 = vmatprep.subr.mxu0 %v119_v0  ;;  %v15_v1 = vld [vmem:[%s153_s1] sm:$0xf]  ;;  %114 = vmatprep.mubr.msk.f32.mxu0 %vm120_vm2, %v119_v0 }
   0x2   :  { %v14_v2 = vld [vmem:[%s154_s0] sm:$0xff]  ;;  %113 = vmatpush3.msk.msra.mxu0 %vm27_vm0, %v15_v1 }
   0x3   :  { %115 = vmatmul.mubr.msk.f32.vlgmr.msra.gmra.mxu0 %vm23_vm1, %v14_v2  ;;  %v107_v3 = vld [vmem:[%s155_s2] ss:$0 sm:$0xff] }
  0xc3   :  { %v97_v4 = vpop.f32.mrf.mxu0 }
  0xc4   :  { %v98_v5 = vadd.f32 %v107_v3, %v97_v4 }
  0xc5   :  { %v116_v6 = vpop.f32.mrf.mxu0 }
  0xc6   :  { %v101_v7 = vmax.f32 %v98_v5, 0.0 }
  0xc8   :  { %102 = vst [vmem:[%s156_s3] sm:$0xff] %v101_v7 }

// kernel: conv_autoencoder_forward.7
= control target key start
LH: loop header
LB: loop body
LE: loop exit
PB: predicated region body
PF: predicated region fallthrough
CT: control target
= control target key end

     0   :  { %s2828_s12 = smov 0   ;;  %s2830_s13 = smov 0   ;;  %s3436_s0 = inlined_call_operand.vmem [shape: f32[2,1,10,10,64], index: 0, kind: input, shape index: {}]   ;;  %s3437_s1 = inlined_call_operand.vmem [shape: f32[9,64,32], index: 1, kind: input, shape index: {}]   ;;  %s3438_s2 = inlined_call_operand.vmem [shape: f32[1,32], index: 2, kind: input, shape index: {}]   ;;  %s3439_s3 = inlined_call_operand.vmem [shape: f32[2,4,4,32], index: 3, kind: output, shape index: {}]  }
   0x1   :  { %s2832_s14 = smov 0  }
   0x2 LB: > { %s25_s15 = sadd.s32 1, %s2801_s13  ;;  %p2121_p0 = scmp.ge.s32.totalorder %s2805_s14, 1  ;;  %s2805_s14 = sphi %s2832_s14, %s13_s14   ;;  %s2801_s13 = sphi %s2830_s13, %s3447_s13   ;;  %s2797_s12 = sphi %s2828_s12, %s3446_s12  }
   0x3   : > { %p27_p1 = scmp.ge.s32.totalorder %s25_s15, 2  ;;  %p157_p2 = scmp.lt.s32.totalorder %s2805_s14, 3 }
   0x5   : > { %s3449_s15 = smov (%p27_p1, %s25_s15), 0  ;;  %p158_p3 = pnand %p2121_p0, %p157_p2 }
   0x7   : > { %161 = sbr.rel (%p158_p3) target bundleno = 371 (0x173), region = 32 }
   0xc   : > { %v2132_v0 = vld [vmem:[%s3437_s1 + $0x78] sm:$0xff]  ;;  %v2131_v2 = vld [vmem:[%s3437_s1 + $0x70] sm:$0xff]  ;;  %p189_p4 = scmp.lt.s32.totalorder %s2797_s12, 1  ;;  %v2130_v4 = vld [vmem:[%s3437_s1 + $0x68] sm:$0xff]  ;;  %vm241_vm0 = vcmask 523264   ;;  %vm2003_vm1 = vcmask 1041409  }
   0xd   : > { %v223_v1 = vld [vmem:[%s3437_s1 + $0x38] sm:$0xff]  ;;  %2489 = vmatprep.subr.mxu0 %v2132_v0  ;;  %v222_v3 = vld [vmem:[%s3437_s1 + $0x30] sm:$0xff]  ;;  %v221_v5 = vld [vmem:[%s3437_s1 + $0x28] sm:$0xff]  ;;  %vm2005_vm2 = vcmask 1042434   ;;  %vm2007_vm3 = vcmask 1043459   ;;  %vm2022_vm4 = vcmask 257024  }
   0xe   : > { %2517 = vmatprep.subr.mxu1 %v223_v1  ;;  %2490 = vmatpush3.msra.mxu0 %v2132_v0  ;;  %s3451_s12 = smov (!%p189_p4, %s2797_s12), 1  ;;  %v2129_v6 = vld [vmem:[%s3437_s1 + $0x60] sm:$0xff]  ;;  %v2128_v8 = vld [vmem:[%s3437_s1 + $0x58] sm:$0xff]  ;;  %v2127_v10 = vld [vmem:[%s3437_s1 + $0x50] sm:$0xff] }
   0xf   : > { %2518 = vmatpush3.msra.mxu1 %v223_v1  ;;  %2491 = vmatprep.subr.mxu0 %v2131_v2  ;;  %v220_v7 = vld [vmem:[%s3437_s1 + $0x20] sm:$0xff]  ;;  %v219_v9 = vld [vmem:[%s3437_s1 + $0x18] sm:$0xff]  ;;  %s2757_s9 = smul.u32 160, %s3451_s12  ;;  %v218_v11 = vld [vmem:[%s3437_s1 + $0x10] sm:$0xff]  ;;  %s2344_s5 = sshll.u32 %s3451_s12, 4 }
  0x10   : > { %2519 = vmatprep.subr.mxu1 %v222_v3  ;;  %2492 = vmatpush3.msra.mxu0 %v2131_v2  ;;  %v2126_v12 = vld [vmem:[%s3437_s1 + $0x48] sm:$0xff]  ;;  %v2125_v14 = vld [vmem:[%s3437_s1 + $0x40] sm:$0xff]  ;;  %v2156_v20 = vld [vmem:[%s3437_s1 + $0xb8] sm:$0xff]  ;;  %s3379_s7 = scalar_lea.vmem %s3439_s3, %s2344_s5 }
  0x11   : > { %2520 = vmatpush3.msra.mxu1 %v222_v3  ;;  %2493 = vmatprep.subr.mxu0 %v2130_v4  ;;  %v217_v13 = vld [vmem:[%s3437_s1 + $0x8] sm:$0xff]  ;;  %s2894_s24 = scalar_lea.vmem %s3436_s0, %s2757_s9  ;;  %v216_v15 = vld [vmem:[%s3437_s1] sm:$0xff]  ;;  %v2180_v21 = vld [vmem:[%s3437_s1 + $0xf8] sm:$0xff] }
  0x12   : > { %2521 = vmatprep.subr.mxu1 %v221_v5  ;;  %2494 = vmatpush3.msra.mxu0 %v2130_v4  ;;  %v224_v16 = vld [vmem:[%s2894_s24 + $0x1] sm:$0xff]  ;;  %v2905_v18 = vld [vmem:[%s2894_s24 + $0x11] sm:$0xff] }
  0x13   : > { %2522 = vmatpush3.msra.mxu1 %v221_v5  ;;  %2495 = vmatprep.subr.mxu0 %v2129_v6  ;;  %v208_v17 = vld [vmem:[%s2894_s24] sm:$0xff]  ;;  %v2908_v19 = vld [vmem:[%s2894_s24 + $0x10] sm:$0xff]  ;;  %v2154_v28 = vld [vmem:[%s3437_s1 + $0xa8] sm:$0xff] }
  0x14   : > { %2523 = vmatprep.subr.mxu1 %v220_v7  ;;  %2496 = vmatpush3.msra.mxu0 %v2129_v6  ;;  %v2155_v22 = vld [vmem:[%s3437_s1 + $0xb0] sm:$0xff]  ;;  %v2929_v24 = vld [vmem:[%s2894_s24 + $0x21] sm:$0xff]  ;;  %v2152_v36 = vld [vmem:[%s3437_s1 + $0x98] sm:$0xff] }
  0x15   : > { %2524 = vmatpush3.msra.mxu1 %v220_v7  ;;  %2497 = vmatprep.subr.mxu0 %v2128_v8  ;;  %v2179_v23 = vld [vmem:[%s3437_s1 + $0xf0] sm:$0xff]  ;;  %v2932_v25 = vld [vmem:[%s2894_s24 + $0x20] sm:$0xff]  ;;  %v2178_v29 = vld [vmem:[%s3437_s1 + $0xe8] sm:$0xff] }
  0x16   : > { %2525 = vmatprep.subr.mxu1 %v219_v9  ;;  %2498 = vmatpush3.msra.mxu0 %v2128_v8  ;;  %v2935_v26 = vld [vmem:[%s2894_s24 + $0x31] sm:$0xff]  ;;  %v2153_v30 = vld [vmem:[%s3437_s1 + $0xa0] sm:$0xff]  ;;  %v2150_v44 = vld [vmem:[%s3437_s1 + $0x88] sm:$0xff] }
  0x17   : > { %2526 = vmatpush3.msra.mxu1 %v219_v9  ;;  %2499 = vmatprep.subr.mxu0 %v2127_v10  ;;  %v2938_v27 = vld [vmem:[%s2894_s24 + $0x30] sm:$0xff]  ;;  %v2177_v31 = vld [vmem:[%s3437_s1 + $0xe0] sm:$0xff]  ;;  %v2176_v37 = vld [vmem:[%s3437_s1 + $0xd8] sm:$0xff] }
  0x18   : > { %2527 = vmatprep.subr.mxu1 %v218_v11  ;;  %2500 = vmatpush3.msra.mxu0 %v2127_v10  ;;  %v2961_v32 = vld [vmem:[%s2894_s24 + $0x41] sm:$0xff]  ;;  %v2967_v34 = vld [vmem:[%s2894_s24 + $0x51] sm:$0xff] }
  0x19   : > { %2528 = vmatpush3.msra.mxu1 %v218_v11  ;;  %2501 = vmatprep.subr.mxu0 %v2126_v12  ;;  %v2964_v33 = vld [vmem:[%s2894_s24 + $0x40] sm:$0xff]  ;;  %v2970_v35 = vld [vmem:[%s2894_s24 + $0x50] sm:$0xff]  ;;  %v2174_v45 = vld [vmem:[%s3437_s1 + $0xc8] sm:$0xff] }
  0x1a   : > { %2529 = vmatprep.subr.mxu1 %v217_v13  ;;  %2502 = vmatpush3.msra.mxu0 %v2126_v12  ;;  %v2151_v38 = vld [vmem:[%s3437_s1 + $0x90] sm:$0xff]  ;;  %v2993_v40 = vld [vmem:[%s2894_s24 + $0x61] sm:$0xff]  ;;  %v2204_v50 = vld [vmem:[%s3437_s1 + $0x138] sm:$0xff] }
  0x1b   : > { %2530 = vmatpush3.msra.mxu1 %v217_v13  ;;  %2503 = vmatprep.subr.mxu0 %v2125_v14  ;;  %v2175_v39 = vld [vmem:[%s3437_s1 + $0xd0] sm:$0xff]  ;;  %v2996_v41 = vld [vmem:[%s2894_s24 + $0x60] sm:$0xff]  ;;  %v2228_v51 = vld [vmem:[%s3437_s1 + $0x178] sm:$0xff] }
  0x1c   : > { %2531 = vmatprep.subr.mxu1 %v216_v15  ;;  %2504 = vmatpush3.msra.mxu0 %v2125_v14  ;;  %v2999_v42 = vld [vmem:[%s2894_s24 + $0x71] sm:$0xff]  ;;  %v2149_v46 = vld [vmem:[%s3437_s1 + $0x80] sm:$0xff]  ;;  %v2202_v56 = vld [vmem:[%s3437_s1 + $0x128] sm:$0xff] }
  0x1d   : > { %2505 = vmatprep.mubr.msk.f32.mxu0 %vm241_vm0, %v224_v16  ;;  %2532 = vmatpush3.msra.mxu1 %v216_v15  ;;  %v3002_v43 = vld [vmem:[%s2894_s24 + $0x70] sm:$0xff]  ;;  %v2173_v47 = vld [vmem:[%s3437_s1 + $0xc0] sm:$0xff]  ;;  %v2226_v57 = vld [vmem:[%s3437_s1 + $0x168] sm:$0xff] }
  0x1e   : > { %2533 = vmatprep.mubr.msk.f32.mxu1 %vm241_vm0, %v208_v17  ;;  %2506 = vmatmul.mubr.msk.f32.vlgmr.msra.gmra.mxu0 %vm241_vm0, %v2905_v18  ;;  %v500_v48 = vld [vmem:[%s2894_s24 + $0x2] sm:$0xff]  ;;  %v3026_v49 = vld [vmem:[%s2894_s24 + $0x12] sm:$0xff] }
  0x1f   : > { %2534 = vmatmul.mubr.msk.f32.vlgmr.msra.gmra.mxu1 %vm241_vm0, %v2908_v19  ;;  %2545 = vmatprep.subr.mxu0 %v2156_v20  ;;  %v2203_v52 = vld [vmem:[%s3437_s1 + $0x130] sm:$0xff]  ;;  %v3048_v54 = vld [vmem:[%s2894_s24 + $0x22] sm:$0xff]  ;;  %v2200_v62 = vld [vmem:[%s3437_s1 + $0x118] sm:$0xff] }
  0x20   : > { %2573 = vmatprep.subr.mxu1 %v2180_v21  ;;  %2546 = vmatpush3.msra.mxu0 %v2156_v20  ;;  %v2227_v53 = vld [vmem:[%s3437_s1 + $0x170] sm:$0xff]  ;;  %v2201_v58 = vld [vmem:[%s3437_s1 + $0x120] sm:$0xff]  ;;  %v2224_v63 = vld [vmem:[%s3437_s1 + $0x158] sm:$0xff] }
  0x21   : > { %2574 = vmatpush3.msra.mxu1 %v2180_v21  ;;  %2547 = vmatprep.subr.mxu0 %v2155_v22  ;;  %v3051_v55 = vld [vmem:[%s2894_s24 + $0x32] sm:$0xff]  ;;  %v2225_v59 = vld [vmem:[%s3437_s1 + $0x160] sm:$0xff]  ;;  %v2198_v5 = vld [vmem:[%s3437_s1 + $0x108] sm:$0xff] }
  0x22   : > { %2575 = vmatprep.subr.mxu1 %v2179_v23  ;;  %2508 = vmatprep.mubr.msk.f32.mxu0 %vm241_vm0, %v2929_v24  ;;  %v3074_v60 = vld [vmem:[%s2894_s24 + $0x42] sm:$0xff]  ;;  %v3077_v61 = vld [vmem:[%s2894_s24 + $0x52] sm:$0xff] }
  0x23   : > { %2536 = vmatprep.mubr.msk.f32.mxu1 %vm241_vm0, %v2932_v25  ;;  %2548 = vmatpush3.msra.mxu0 %v2155_v22  ;;  %v2199_v0 = vld [vmem:[%s3437_s1 + $0x110] sm:$0xff]  ;;  %v3100_v2 = vld [vmem:[%s2894_s24 + $0x62] sm:$0xff]  ;;  %v2252_v9 = vld [vmem:[%s3437_s1 + $0x1b8] sm:$0xff] }
  0x24   : > { %2576 = vmatpush3.msra.mxu1 %v2179_v23  ;;  %2509 = vmatmul.mubr.msk.f32.gmra.mxu0 %vm241_vm0, %v2935_v26  ;;  %v2223_v1 = vld [vmem:[%s3437_s1 + $0x150] sm:$0xff]  ;;  %v3106_v4 = vld [vmem:[%s2894_s24 + $0x80] sm:$0xff]  ;;  %v2222_v6 = vld [vmem:[%s3437_s1 + $0x148] sm:$0xff] }
  0x25   : > { %2537 = vmatmul.mubr.msk.f32.gmra.mxu1 %vm241_vm0, %v2938_v27  ;;  %2549 = vmatprep.subr.mxu0 %v2154_v28  ;;  %v3103_v3 = vld [vmem:[%s2894_s24 + $0x72] sm:$0xff]  ;;  %v2197_v7 = vld [vmem:[%s3437_s1 + $0x100] sm:$0xff]  ;;  %v2250_v13 = vld [vmem:[%s3437_s1 + $0x1a8] sm:$0xff] }
  0x26   : > { %2577 = vmatprep.subr.mxu1 %v2178_v29  ;;  %2550 = vmatpush3.msra.mxu0 %v2154_v28  ;;  %v2221_v8 = vld [vmem:[%s3437_s1 + $0x140] sm:$0xff]  ;;  %v2276_v10 = vld [vmem:[%s3437_s1 + $0x1f8] sm:$0xff]  ;;  %v2251_v11 = vld [vmem:[%s3437_s1 + $0x1b0] sm:$0xff] }
  0x27   : > { %2578 = vmatpush3.msra.mxu1 %v2178_v29  ;;  %2551 = vmatprep.subr.mxu0 %v2153_v30  ;;  %v2275_v12 = vld [vmem:[%s3437_s1 + $0x1f0] sm:$0xff]  ;;  %v2274_v14 = vld [vmem:[%s3437_s1 + $0x1e8] sm:$0xff]  ;;  %v2249_v15 = vld [vmem:[%s3437_s1 + $0x1a0] sm:$0xff] }
  0x28   : > { %2579 = vmatprep.subr.mxu1 %v2177_v31  ;;  %2511 = vmatprep.mubr.msk.f32.mxu0 %vm241_vm0, %v2961_v32  ;;  %v2273_v16 = vld [vmem:[%s3437_s1 + $0x1e0] sm:$0xff]  ;;  %v2248_v17 = vld [vmem:[%s3437_s1 + $0x198] sm:$0xff]  ;;  %v2271_v20 = vld [vmem:[%s3437_s1 + $0x1d0] sm:$0xff] }
  0x29   : > { %2539 = vmatprep.mubr.msk.f32.mxu1 %vm241_vm0, %v2964_v33  ;;  %2552 = vmatpush3.msra.mxu0 %v2153_v30  ;;  %v3189_v21 = vld [vmem:[%s2894_s24 + $0x81] sm:$0xff] }
  0x2a   : > { %2580 = vmatpush3.msra.mxu1 %v2177_v31  ;;  %2512 = vmatmul.mubr.msk.f32.gmra.mxu0 %vm241_vm0, %v2967_v34  ;;  %v3192_v22 = vld [vmem:[%s2894_s24 + $0x82] sm:$0xff]  ;;  %v2300_v31 = vld [vmem:[%s3437_s1 + $0x238] sm:$0xff] }
  0x2b   : > { %2540 = vmatmul.mubr.msk.f32.gmra.mxu1 %vm241_vm0, %v2970_v35  ;;  %2553 = vmatprep.subr.mxu0 %v2152_v36  ;;  %v2246_v23 = vld [vmem:[%s3437_s1 + $0x188] sm:$0xff]  ;;  %v2245_v29 = vld [vmem:[%s3437_s1 + $0x180] sm:$0xff] }
  0x2c   : > { %2581 = vmatprep.subr.mxu1 %v2176_v37  ;;  %2554 = vmatpush3.msra.mxu0 %v2152_v36  ;;  %v2270_v28 = vld [vmem:[%s3437_s1 + $0x1c8] sm:$0xff]  ;;  %v2269_v30 = vld [vmem:[%s3437_s1 + $0x1c0] sm:$0xff]  ;;  %v2299_v36 = vld [vmem:[%s3437_s1 + $0x230] sm:$0xff] }
  0x2d   : > { %2582 = vmatpush3.msra.mxu1 %v2176_v37  ;;  %2555 = vmatprep.subr.mxu0 %v2151_v38  ;;  %v2292_v37 = vld [vmem:[%s2894_s24 + $0x92] sm:$0xff] }
  0x2e   : > { %2583 = vmatprep.subr.mxu1 %v2175_v39  ;;  %2514 = vmatprep.mubr.msk.f32.mxu0 %vm241_vm0, %v2993_v40 }
  0x2f   : > { %2542 = vmatprep.mubr.msk.f32.mxu1 %vm241_vm0, %v2996_v41  ;;  %2556 = vmatpush3.msra.mxu0 %v2151_v38 }
  0x30   : > { %2584 = vmatpush3.msra.mxu1 %v2175_v39  ;;  %2515 = vmatmul.mubr.msk.f32.gmra.mxu0 %vm241_vm0, %v2999_v42 }
  0x31   : > { %2543 = vmatmul.mubr.msk.f32.gmra.mxu1 %vm241_vm0, %v3002_v43  ;;  %2557 = vmatprep.subr.mxu0 %v2150_v44 }
  0x32   : > { %2585 = vmatprep.subr.mxu1 %v2174_v45  ;;  %2558 = vmatpush3.msra.mxu0 %v2150_v44 }
  0x33   : > { %2586 = vmatpush3.msra.mxu1 %v2174_v45  ;;  %2559 = vmatprep.subr.mxu0 %v2149_v46 }
  0x34   : > { %2587 = vmatprep.subr.mxu1 %v2173_v47  ;;  %2560 = vmatpush3.msra.mxu0 %v2149_v46 }
  0x35   : > { %2561 = vmatprep.mubr.msk.f32.mxu0 %vm241_vm0, %v500_v48  ;;  %2588 = vmatpush3.msra.mxu1 %v2173_v47 }
  0x36   : > { %2589 = vmatprep.mubr.msk.f32.mxu1 %vm241_vm0, %v2908_v19  ;;  %2562 = vmatmul.mubr.msk.f32.vlgmr.msra.gmra.mxu0 %vm241_vm0, %v3026_v49  ;;  %v2247_v19 = vld [vmem:[%s3437_s1 + $0x190] sm:$0xff] }
  0x37   : > { %2590 = vmatmul.mubr.msk.f32.vlgmr.msra.gmra.mxu1 %vm241_vm0, %v2932_v25  ;;  %2601 = vmatprep.subr.mxu0 %v2204_v50 }
  0x38   : > { %2629 = vmatprep.subr.mxu1 %v2228_v51  ;;  %2602 = vmatpush3.msra.mxu0 %v2204_v50 }
  0x39   : > { %2630 = vmatpush3.msra.mxu1 %v2228_v51  ;;  %2603 = vmatprep.subr.mxu0 %v2203_v52 }
  0x3a   : > { %2631 = vmatprep.subr.mxu1 %v2227_v53  ;;  %2564 = vmatprep.mubr.msk.f32.mxu0 %vm241_vm0, %v3048_v54 }
  0x3b   : > { %2592 = vmatprep.mubr.msk.f32.mxu1 %vm241_vm0, %v2938_v27  ;;  %2604 = vmatpush3.msra.mxu0 %v2203_v52 }
  0x3c   : > { %2632 = vmatpush3.msra.mxu1 %v2227_v53  ;;  %2565 = vmatmul.mubr.msk.f32.gmra.mxu0 %vm241_vm0, %v3051_v55 }
  0x3d   : > { %2593 = vmatmul.mubr.msk.f32.gmra.mxu1 %vm241_vm0, %v2964_v33  ;;  %2605 = vmatprep.subr.mxu0 %v2202_v56 }
  0x3e   : > { %2633 = vmatprep.subr.mxu1 %v2226_v57  ;;  %2606 = vmatpush3.msra.mxu0 %v2202_v56 }
  0x3f   : > { %2634 = vmatpush3.msra.mxu1 %v2226_v57  ;;  %2607 = vmatprep.subr.mxu0 %v2201_v58 }
  0x40   : > { %2635 = vmatprep.subr.mxu1 %v2225_v59  ;;  %2567 = vmatprep.mubr.msk.f32.mxu0 %vm241_vm0, %v3074_v60 }
  0x41   : > { %2595 = vmatprep.mubr.msk.f32.mxu1 %vm241_vm0, %v2970_v35  ;;  %2608 = vmatpush3.msra.mxu0 %v2201_v58 }
  0x42   : > { %2636 = vmatpush3.msra.mxu1 %v2225_v59  ;;  %2568 = vmatmul.mubr.msk.f32.gmra.mxu0 %vm241_vm0, %v3077_v61 }
  0x43   : > { %2596 = vmatmul.mubr.msk.f32.gmra.mxu1 %vm241_vm0, %v2996_v41  ;;  %2609 = vmatprep.subr.mxu0 %v2200_v62 }
  0x44   : > { %2637 = vmatprep.subr.mxu1 %v2224_v63  ;;  %2610 = vmatpush3.msra.mxu0 %v2200_v62 }
  0x45   : > { %2638 = vmatpush3.msra.mxu1 %v2224_v63  ;;  %2611 = vmatprep.subr.mxu0 %v2199_v0 }
  0x46   : > { %2639 = vmatprep.subr.mxu1 %v2223_v1  ;;  %2570 = vmatprep.mubr.msk.f32.mxu0 %vm241_vm0, %v3100_v2 }
  0x47   : > { %2598 = vmatprep.mubr.msk.f32.mxu1 %vm241_vm0, %v3002_v43  ;;  %2612 = vmatpush3.msra.mxu0 %v2199_v0 }
  0x48   : > { %2640 = vmatpush3.msra.mxu1 %v2223_v1  ;;  %2571 = vmatmul.mubr.msk.f32.gmra.mxu0 %vm241_vm0, %v3103_v3 }
  0x49   : > { %2599 = vmatmul.mubr.msk.f32.gmra.mxu1 %vm241_vm0, %v3106_v4  ;;  %2613 = vmatprep.subr.mxu0 %v2198_v5 }
  0x4a   : > { %2641 = vmatprep.subr.mxu1 %v2222_v6  ;;  %2614 = vmatpush3.msra.mxu0 %v2198_v5 }
  0x4b   : > { %2642 = vmatpush3.msra.mxu1 %v2222_v6  ;;  %2615 = vmatprep.subr.mxu0 %v2197_v7 }
  0x4c   : > { %2643 = vmatprep.subr.mxu1 %v2221_v8  ;;  %2616 = vmatpush3.msra.mxu0 %v2197_v7 }
  0x4d   : > { %2617 = vmatprep.mubr.msk.f32.mxu0 %vm241_vm0, %v2905_v18  ;;  %2644 = vmatpush3.msra.mxu1 %v2221_v8  ;;  %v2272_v18 = vld [vmem:[%s3437_s1 + $0x1d8] sm:$0xff] }
  0x4e   : > { %2645 = vmatprep.mubr.msk.f32.mxu1 %vm241_vm0, %v3026_v49  ;;  %2618 = vmatmul.mubr.msk.f32.vlgmr.msra.gmra.mxu0 %vm241_vm0, %v2929_v24 }
  0x4f   : > { %2646 = vmatmul.mubr.msk.f32.vlgmr.msra.gmra.mxu1 %vm241_vm0, %v3048_v54  ;;  %2657 = vmatprep.subr.mxu0 %v2252_v9 }
  0x50   : > { %2685 = vmatprep.subr.mxu1 %v2276_v10  ;;  %2658 = vmatpush3.msra.mxu0 %v2252_v9 }
  0x51   : > { %2686 = vmatpush3.msra.mxu1 %v2276_v10  ;;  %2659 = vmatprep.subr.mxu0 %v2251_v11 }
  0x52   : > { %2687 = vmatprep.subr.mxu1 %v2275_v12  ;;  %2620 = vmatprep.mubr.msk.f32.mxu0 %vm241_vm0, %v2935_v26 }
  0x53   : > { %2648 = vmatprep.mubr.msk.f32.mxu1 %vm241_vm0, %v3051_v55  ;;  %2660 = vmatpush3.msra.mxu0 %v2251_v11 }
  0x54   : > { %2688 = vmatpush3.msra.mxu1 %v2275_v12  ;;  %2621 = vmatmul.mubr.msk.f32.gmra.mxu0 %vm241_vm0, %v2961_v32 }
  0x55   : > { %2649 = vmatmul.mubr.msk.f32.gmra.mxu1 %vm241_vm0, %v3074_v60  ;;  %2661 = vmatprep.subr.mxu0 %v2250_v13 }
  0x56   : > { %2689 = vmatprep.subr.mxu1 %v2274_v14  ;;  %2662 = vmatpush3.msra.mxu0 %v2250_v13 }
  0x57   : > { %2690 = vmatpush3.msra.mxu1 %v2274_v14  ;;  %2663 = vmatprep.subr.mxu0 %v2249_v15 }
  0x58   : > { %2691 = vmatprep.subr.mxu1 %v2273_v16  ;;  %2623 = vmatprep.mubr.msk.f32.mxu0 %vm241_vm0, %v2967_v34 }
  0x59   : > { %2651 = vmatprep.mubr.msk.f32.mxu1 %vm241_vm0, %v3077_v61  ;;  %2664 = vmatpush3.msra.mxu0 %v2249_v15 }
  0x5a   : > { %2692 = vmatpush3.msra.mxu1 %v2273_v16  ;;  %2624 = vmatmul.mubr.msk.f32.gmra.mxu0 %vm241_vm0, %v2993_v40 }
  0x5b   : > { %2652 = vmatmul.mubr.msk.f32.gmra.mxu1 %vm241_vm0, %v3100_v2  ;;  %2665 = vmatprep.subr.mxu0 %v2248_v17 }
  0x5c   : > { %2693 = vmatprep.subr.mxu1 %v2272_v18  ;;  %2666 = vmatpush3.msra.mxu0 %v2248_v17 }
  0x5d   : > { %2694 = vmatpush3.msra.mxu1 %v2272_v18  ;;  %2667 = vmatprep.subr.mxu0 %v2247_v19 }
  0x5e   : > { %2695 = vmatprep.subr.mxu1 %v2271_v20  ;;  %2626 = vmatprep.mubr.msk.f32.mxu0 %vm241_vm0, %v2999_v42 }
  0x5f   : > { %2654 = vmatprep.mubr.msk.f32.mxu1 %vm241_vm0, %v3103_v3  ;;  %2668 = vmatpush3.msra.mxu0 %v2247_v19 }
  0x60   : > { %2696 = vmatpush3.msra.mxu1 %v2271_v20  ;;  %2627 = vmatmul.mubr.msk.f32.gmra.mxu0 %vm241_vm0, %v3189_v21 }
  0x61   : > { %2655 = vmatmul.mubr.msk.f32.gmra.mxu1 %vm241_vm0, %v3192_v22  ;;  %2669 = vmatprep.subr.mxu0 %v2246_v23 }
  0x62   : > { %2697 = vmatprep.subr.mxu1 %v2270_v28  ;;  %2670 = vmatpush3.msra.mxu0 %v2246_v23 }
  0x63   : > { %2698 = vmatpush3.msra.mxu1 %v2270_v28  ;;  %2671 = vmatprep.subr.mxu0 %v2245_v29 }
  0x64   : > { %2699 = vmatprep.subr.mxu1 %v2269_v30  ;;  %2672 = vmatpush3.msra.mxu0 %v2245_v29 }
  0x65   : > { %2673 = vmatprep.mubr.msk.f32.mxu0 %vm241_vm0, %v2932_v25  ;;  %2700 = vmatpush3.msra.mxu1 %v2269_v30  ;;  %v2297_v25 = vld [vmem:[%s3437_s1 + $0x220] sm:$0xff] }
  0x66   : > { %2701 = vmatprep.mubr.msk.f32.mxu1 %vm241_vm0, %v2929_v24  ;;  %2674 = vmatmul.mubr.msk.f32.vlgmr.msra.gmra.mxu0 %vm241_vm0, %v2938_v27  ;;  %v2298_v24 = vld [vmem:[%s3437_s1 + $0x228] sm:$0xff]  ;;  %v2295_v27 = vld [vmem:[%s3437_s1 + $0x210] sm:$0xff] }
  0x67   : > { %2702 = vmatmul.mubr.msk.f32.vlgmr.msra.gmra.mxu1 %vm241_vm0, %v2935_v26  ;;  %2713 = vmatprep.subr.mxu0 %v2300_v31  ;;  %v2296_v26 = vld [vmem:[%s3437_s1 + $0x218] sm:$0xff] }
  0x68   : > { %2741 = vmatprep.subr.mxu1 %v2300_v31  ;;  %2714 = vmatpush3.msra.mxu0 %v2300_v31 }
  0x69   : > { %2749 = vmatpush3.msra.mxu1 %v2300_v31  ;;  %2715 = vmatprep.subr.mxu0 %v2299_v36 }
  0x6a   : > { %2742 = vmatprep.subr.mxu1 %v2299_v36  ;;  %2676 = vmatprep.mubr.msk.f32.mxu0 %vm241_vm0, %v2964_v33  ;;  %v2268_v33 = vld [vmem:[%s2894_s24 + $0x91] sm:$0xff] }
  0x6b   : > { %2704 = vmatprep.mubr.msk.f32.mxu1 %vm241_vm0, %v2961_v32  ;;  %2716 = vmatpush3.msra.mxu0 %v2299_v36  ;;  %v2244_v32 = vld [vmem:[%s2894_s24 + $0x90] sm:$0xff] }
  0x6c   : > { %2750 = vmatpush3.msra.mxu1 %v2299_v36  ;;  %2677 = vmatmul.mubr.msk.f32.gmra.mxu0 %vm241_vm0, %v2970_v35  ;;  %v2293_v35 = vld [vmem:[%s3437_s1 + $0x200] sm:$0xff] }
  0x6d   : > { %2705 = vmatmul.mubr.msk.f32.gmra.mxu1 %vm241_vm0, %v2967_v34  ;;  %2717 = vmatprep.subr.mxu0 %v2298_v24  ;;  %v2294_v34 = vld [vmem:[%s3437_s1 + $0x208] sm:$0xff] }
  0x6e   : > { %2743 = vmatprep.subr.mxu1 %v2298_v24  ;;  %2718 = vmatpush3.msra.mxu0 %v2298_v24 }
  0x6f   : > { %2751 = vmatpush3.msra.mxu1 %v2298_v24  ;;  %2719 = vmatprep.subr.mxu0 %v2297_v25 }
  0x70   : > { %2744 = vmatprep.subr.mxu1 %v2297_v25  ;;  %2679 = vmatprep.mubr.msk.f32.mxu0 %vm241_vm0, %v2996_v41 }
  0x71   : > { %2707 = vmatprep.mubr.msk.f32.mxu1 %vm241_vm0, %v2993_v40  ;;  %2720 = vmatpush3.msra.mxu0 %v2297_v25 }
  0x72   : > { %2752 = vmatpush3.msra.mxu1 %v2297_v25  ;;  %2680 = vmatmul.mubr.msk.f32.gmra.mxu0 %vm241_vm0, %v3002_v43 }
  0x73   : > { %2708 = vmatmul.mubr.msk.f32.gmra.mxu1 %vm241_vm0, %v2999_v42  ;;  %2721 = vmatprep.subr.mxu0 %v2296_v26 }
  0x74   : > { %2745 = vmatprep.subr.mxu1 %v2296_v26  ;;  %2722 = vmatpush3.msra.mxu0 %v2296_v26 }
  0x75   : > { %2753 = vmatpush3.msra.mxu1 %v2296_v26  ;;  %2723 = vmatprep.subr.mxu0 %v2295_v27 }
  0x76   : > { %2746 = vmatprep.subr.mxu1 %v2295_v27  ;;  %2682 = vmatprep.mubr.msk.f32.mxu0 %vm241_vm0, %v3106_v4 }
  0x77   : > { %2710 = vmatprep.mubr.msk.f32.mxu1 %vm241_vm0, %v3189_v21  ;;  %2724 = vmatpush3.msra.mxu0 %v2295_v27 }
  0x78   : > { %2754 = vmatpush3.msra.mxu1 %v2295_v27  ;;  %2683 = vmatmul.mubr.msk.f32.gmra.mxu0 %vm241_vm0, %v2244_v32 }
  0x79   : > { %2711 = vmatmul.mubr.msk.f32.gmra.mxu1 %vm241_vm0, %v2268_v33  ;;  %2725 = vmatprep.subr.mxu0 %v2294_v34 }
  0x7a   : > { %2747 = vmatprep.subr.mxu1 %v2294_v34  ;;  %2726 = vmatpush3.msra.mxu0 %v2294_v34 }
  0x7b   : > { %2755 = vmatpush3.msra.mxu1 %v2294_v34  ;;  %2727 = vmatprep.subr.mxu0 %v2293_v35 }
  0x7c   : > { %2748 = vmatprep.subr.mxu1 %v2293_v35  ;;  %2728 = vmatpush3.msra.mxu0 %v2293_v35 }
  0x7d   : > { %2756 = vmatpush3.msra.mxu1 %v2293_v35  ;;  %2729 = vmatprep.mubr.msk.f32.mxu0 %vm241_vm0, %v3048_v54 }
  0x7e   : > { %2735 = vmatprep.mubr.msk.f32.mxu1 %vm241_vm0, %v3100_v2  ;;  %2730 = vmatmul.mubr.msk.f32.vlgmr.msra.gmra.mxu0 %vm241_vm0, %v3051_v55 }
  0x7f   : > { %2736 = vmatmul.mubr.msk.f32.vlgmr.msra.gmra.mxu1 %vm241_vm0, %v3103_v3  ;;  %2732 = vmatprep.mubr.msk.f32.mxu0 %vm241_vm0, %v3074_v60 }
  0x80   : > { %2738 = vmatprep.mubr.msk.f32.mxu1 %vm241_vm0, %v3192_v22 }
  0x82   : > { %2733 = vmatmul.mubr.msk.f32.gmra.mxu0 %vm241_vm0, %v3077_v61 }
  0x83   : > { %2739 = vmatmul.mubr.msk.f32.gmra.mxu1 %vm241_vm0, %v2292_v37 }
  0xde   : > { %v2507_v38 = vpop.f32.mrf.mxu0 }
  0xdf   : > { %v2535_v39 = vpop.f32.mrf.mxu1 }
  0xe0   : > { %v332_v40 = vpop.f32.mrf.mxu0  ;;  %v467_v36 = vadd.f32 %v2535_v39, %v2507_v38 }
  0xe1   : > { %v461_v41 = vpop.f32.mrf.mxu1 }
  0xe2   : > { %v462_v27 = vadd.f32 %v461_v41, %v332_v40 }
  0xe4   : > { %v2510_v42 = vpop.f32.mrf.mxu0 }
  0xe5   : > { %v2538_v43 = vpop.f32.mrf.mxu1 }
  0xe6   : > { %v3286_v44 = vadd.f32 %v2538_v43, %v2510_v42  ;;  %v342_v45 = vpop.f32.mrf.mxu0 }
  0xe7   : > { %v471_v46 = vpop.f32.mrf.mxu1 }
  0xe8   : > { %v3288_v47 = vadd.f32 %v471_v46, %v342_v45 }
  0xea   : > { %v2513_v48 = vpop.f32.mrf.mxu0 }
  0xeb   : > { %v2541_v49 = vpop.f32.mrf.mxu1 }
  0xec   : > { %v352_v50 = vpop.f32.mrf.mxu0  ;;  %v487_v24 = vadd.f32 %v2541_v49, %v2513_v48 }
  0xed   : > { %v481_v51 = vpop.f32.mrf.mxu1 }
  0xee   : > { %v482_v32 = vadd.f32 %v481_v51, %v352_v50 }
  0xf0   : > { %v2516_v52 = vpop.f32.mrf.mxu0 }
  0xf1   : > { %v2544_v53 = vpop.f32.mrf.mxu1 }
  0xf2   : > { %v3290_v54 = vpop.f32.mrf.mxu0  ;;  %v497_v45 = vadd.f32 %v2544_v53, %v2516_v52  ;;  %v2807_v52 = vmov 1983009808  }
  0xf3   : > { %v3292_v55 = vpop.f32.mrf.mxu1  ;;  %v1613_v53 = vunpack.c.l.s4 %v2807_v52 }
  0xf6   : > { %v2563_v56 = vpop.f32.mrf.mxu0 }
  0xf7   : > { %v2591_v57 = vpop.f32.mrf.mxu1  ;;  %v647_v33 = vadd.f32 %v2563_v56, %v467_v36 }
  0xf8   : > { %v607_v58 = vpop.f32.mrf.mxu0 }
  0xf9   : > { %v762_v59 = vpop.f32.mrf.mxu1  ;;  %v646_v42 = vadd.f32 %v607_v58, %v462_v27  ;;  %v802_v46 = vadd.f32 %v2591_v57, %v647_v33  ;;  %v1615_v57 = vlaneseq }
  0xfb   : > { %v801_v49 = vadd.f32 %v762_v59, %v646_v42 }
  0xfc   : > { %v2566_v60 = vpop.f32.mrf.mxu0 }
  0xfd   : > { %v2594_v61 = vpop.f32.mrf.mxu1 }
  0xfe   : > { %v3294_v62 = vpop.f32.mrf.mxu0 }
  0xff   : > { %v3296_v63 = vpop.f32.mrf.mxu1  ;;  %v648_v59 = vadd.f32 %v3294_v62, %v3288_v47 }
 0x102   : > { %v2569_v0 = vpop.f32.mrf.mxu0 }
 0x103   : > { %v2597_v1 = vpop.f32.mrf.mxu1  ;;  %v651_v34 = vadd.f32 %v2569_v0, %v487_v24 }
 0x104   : > { %v627_v2 = vpop.f32.mrf.mxu0 }
 0x105   : > { %v782_v3 = vpop.f32.mrf.mxu1  ;;  %v650_v43 = vadd.f32 %v627_v2, %v482_v32 }
 0x108   : > { %v2572_v4 = vpop.f32.mrf.mxu0 }
 0x109   : > { %v2600_v5 = vpop.f32.mrf.mxu1  ;;  %v653_v38 = vadd.f32 %v2572_v4, %v497_v45 }
 0x10a   : > { %v3298_v6 = vpop.f32.mrf.mxu0 }
 0x10b   : > { %v3300_v7 = vpop.f32.mrf.mxu1  ;;  %v808_v24 = vadd.f32 %v2600_v5, %v653_v38 }
 0x10e   : > { %v2619_v8 = vpop.f32.mrf.mxu0 }
 0x10f   : > { %v2647_v9 = vpop.f32.mrf.mxu1  ;;  %v956_v40 = vadd.f32 %v2619_v8, %v802_v46 }
 0x110   : > { %v916_v10 = vpop.f32.mrf.mxu0 }
 0x111   : > { %v1070_v11 = vpop.f32.mrf.mxu1  ;;  %v955_v56 = vadd.f32 %v916_v10, %v801_v49  ;;  %v1110_v58 = vadd.f32 %v2647_v9, %v956_v40 }
 0x113   : > { %v1109_v8 = vadd.f32 %v1070_v11, %v955_v56 }
 0x114   : > { %v2622_v12 = vpop.f32.mrf.mxu0 }
 0x115   : > { %v3302_v13 = vpop.f32.mrf.mxu1 }
 0x116   : > { %v3304_v14 = vpop.f32.mrf.mxu0 }
 0x117   : > { %v3306_v15 = vpop.f32.mrf.mxu1 }
 0x118   : > { %3440 = vst [vmem:[#allocation2_spill] sm:$0xff] %v3306_v15  ;;  %v649_v15 = vadd.f32 %v2566_v60, %v3286_v44  ;;  %v492_v44 = vadd.f32 %v3292_v55, %v3290_v54  ;;  %v1614_v54 = vunpack.c.0.s8 %v1613_v53  ;;  %v803_v55 = vadd.f32 %v3296_v63, %v648_v59 }
 0x11a   : > { %v2625_v16 = vpop.f32.mrf.mxu0  ;;  %v804_v36 = vadd.f32 %v2594_v61, %v649_v15  ;;  %v652_v5 = vadd.f32 %v3298_v6, %v492_v44 }
 0x11b   : > { %v2653_v17 = vpop.f32.mrf.mxu1 }
 0x11c   : > { %v936_v18 = vpop.f32.mrf.mxu0  ;;  %v958_v60 = vadd.f32 %v2622_v12, %v804_v36  ;;  %v1616_v12 = vshrl.u32 %v1615_v57, 7 }
 0x11d   : > { %v1090_v19 = vpop.f32.mrf.mxu1 }
 0x11e   : > { %v1112_v47 = vadd.f32 %v3302_v13, %v958_v60  ;;  %v3341_v33 = vsub.s32 %v1614_v54, %v1616_v12 }
 0x11f   : > { %v3443_v45 = vld [vmem:[#allocation2_spill] sm:$0xff] }
 0x120   : > { %v2628_v20 = vpop.f32.mrf.mxu0 }
 0x121   : > { %v2656_v21 = vpop.f32.mrf.mxu1 }
 0x122   : > { %v3308_v22 = vpop.f32.mrf.mxu0 }
 0x123   : > { %v3310_v23 = vpop.f32.mrf.mxu1 }
 0x124   : > { %3441 = vst [vmem:[#allocation3_spill] sm:$0xff] %v3310_v23  ;;  %v806_v23 = vadd.f32 %v2597_v1, %v651_v34  ;;  %v962_v1 = vadd.f32 %v2628_v20, %v808_v24 }
 0x126   : > { %v2675_v28 = vpop.f32.mrf.mxu0  ;;  %v960_v41 = vadd.f32 %v2625_v16, %v806_v23  ;;  %v1116_v62 = vadd.f32 %v2656_v21, %v962_v1  ;;  %v957_v23 = vadd.f32 %v3304_v14, %v803_v55 }
 0x127   : > { %v2703_v29 = vpop.f32.mrf.mxu1  ;;  %v1265_v16 = vadd.f32 %v2675_v28, %v1110_v58 }
 0x128   : > { %v1225_v30 = vpop.f32.mrf.mxu0  ;;  %v1114_v2 = vadd.f32 %v2653_v17, %v960_v41  ;;  %v1111_v46 = vadd.f32 %v3443_v45, %v957_v23 }
 0x129   : > { %v3312_v31 = vpop.f32.mrf.mxu1  ;;  %v1264_v17 = vadd.f32 %v1225_v30, %v1109_v8  ;;  %v1419_v20 = vadd.f32 %v2703_v29, %v1265_v16  ;;  %v3337_v30 = vld [vmem:[%s3438_s2] ss:$0 sm:$0xff] }
 0x12b   : > { %v1418_v63 = vadd.f32 %v3312_v31, %v1264_v17  ;;  %v3445_v56 = vld [vmem:[#allocation3_spill] sm:$0xff] }
 0x12c   : > { %v2678_v25 = vpop.f32.mrf.mxu0 }
 0x12d   : > { %v3314_v26 = vpop.f32.mrf.mxu1  ;;  %v1267_v6 = vadd.f32 %v2678_v25, %v1112_v47 }
 0x12e   : > { %3442 = vst [vmem:[#allocation4_spill] sm:$0xff] %v3314_v26  ;;  %v3316_v35 = vpop.f32.mrf.mxu0  ;;  %v805_v26 = vadd.f32 %v782_v3, %v650_v43 }
 0x12f   : > { %v3318_v37 = vpop.f32.mrf.mxu1  ;;  %v3355_v36 = vadd.f32 %v3316_v35, %v1111_v46 }
 0x130   : > { %v959_v0 = vadd.f32 %v936_v18, %v805_v26 }
 0x132   : > { %v2681_v39 = vpop.f32.mrf.mxu0  ;;  %v1113_v10 = vadd.f32 %v1090_v19, %v959_v0  ;;  %v807_v19 = vadd.f32 %v3300_v7, %v652_v5 }
 0x133   : > { %v2709_v48 = vpop.f32.mrf.mxu1  ;;  %v1269_v61 = vadd.f32 %v2681_v39, %v1114_v2 }
 0x134   : > { %v1245_v50 = vpop.f32.mrf.mxu0  ;;  %v961_v29 = vadd.f32 %v3308_v22, %v807_v19 }
 0x135   : > { %v1399_v51 = vpop.f32.mrf.mxu1  ;;  %v1268_v18 = vadd.f32 %v1245_v50, %v1113_v10  ;;  %v1423_v11 = vadd.f32 %v2709_v48, %v1269_v61  ;;  %v3444_v38 = vld [vmem:[#allocation4_spill] sm:$0xff]  ;;  %v3347_v48 = vsub.s32 0, %v1616_v12 }
 0x136   : > { %v1421_v39 = vadd.f32 %v3444_v38, %v1267_v6  ;;  %v3352_v0 = vadd.f32 %v3445_v56, %v961_v29 }
 0x137   : > { %v1422_v13 = vadd.f32 %v1399_v51, %v1268_v18 }
 0x138   : > { %v2684_v3 = vpop.f32.mrf.mxu0 }
 0x139   : > { %v2712_v4 = vpop.f32.mrf.mxu1  ;;  %v1271_v28 = vadd.f32 %v2684_v3, %v1116_v62 }
 0x13a   : > { %v3326_v9 = vpop.f32.mrf.mxu0 }
 0x13b   : > { %v3328_v15 = vpop.f32.mrf.mxu1  ;;  %v1425_v31 = vadd.f32 %v2712_v4, %v1271_v28 }
 0x13e   : > { %v2731_v26 = vpop.f32.mrf.mxu0 }
 0x13f   : > { %v2737_v27 = vpop.f32.mrf.mxu1  ;;  %v1573_v21 = vadd.f32 %v2731_v26, %v1419_v20 }
 0x140   : > { %v1577_v32 = vadd.f32 %v2737_v27, %v1423_v11  ;;  %v1533_v7 = vpop.f32.mrf.mxu0 }
 0x141   : > { %v1553_v14 = vpop.f32.mrf.mxu1  ;;  %v1588_v25 = vadd.f32 %v3337_v30, %v1573_v21  ;;  %v1572_v42 = vadd.f32 %v1533_v7, %v1418_v63 }
 0x142   : > { %v1592_v34 = vadd.f32 %v3337_v30, %v1577_v32  ;;  %v1576_v43 = vadd.f32 %v1553_v14, %v1422_v13  ;;  %v2734_v49 = vpop.f32.mrf.mxu0 }
 0x143   : > { %v2740_v40 = vpop.f32.mrf.mxu1  ;;  %v1596_v22 = vmax.f32 %v1588_v25, 0.0  ;;  %v1587_v50 = vadd.f32 %v3337_v30, %v1572_v42  ;;  %v1575_v24 = vadd.f32 %v2734_v49, %v1421_v39 }
 0x144   : > { %v1600_v41 = vmax.f32 %v1592_v34, 0.0  ;;  %v1591_v51 = vadd.f32 %v3337_v30, %v1576_v43  ;;  %v1579_v58 = vadd.f32 %v2740_v40, %v1425_v31 }
 0x145   : > { %v1628_v2 = vcombine.high %v1596_v22, %v1596_v22  ;;  %v1635_v52 = vrot.slane %v1596_v22, %v3341_v33  ;;  %v1595_v44 = vmax.f32 %v1587_v50, 0.0  ;;  %v1590_v60 = vadd.f32 %v3337_v30, %v1575_v24 }
 0x146   : > { %v1696_v53 = vcombine.high %v1600_v41, %v1600_v41  ;;  %v1703_v57 = vrot.slane %v1600_v41, %v3341_v33  ;;  %v1599_v59 = vmax.f32 %v1591_v51, 0.0  ;;  %v3361_v1 = vadd.f32 %v3337_v30, %v1579_v58 }
 0x147   : > { %v1642_v3 = vrot.slane %v1628_v2, %v3341_v33  ;;  %v1643_v4 = vcombine.high %v1635_v52, %v1635_v52  ;;  %v2314_v35 = vrot.slane %v1635_v52, 9  ;;  %v1611_v61 = vcombine.high %v1595_v44, %v1595_v44 }
 0x148   : > { %v1710_v8 = vrot.slane %v1696_v53, %v3341_v33  ;;  %v1711_v10 = vcombine.high %v1703_v57, %v1703_v57  ;;  %v2330_v16 = vrot.slane %v1703_v57, 9  ;;  %v1618_v5 = vrot.slane %v1595_v44, %v3341_v33 }
 0x149   : > { %v1644_v17 = vcombine.high %v1642_v3, %v1642_v3  ;;  %v2315_v18 = vrot.slane %v1643_v4, 9  ;;  %v2316_v54 = vrot.slane %v1642_v3, 9  ;;  %v1879_v55 = vmax.f32 %v1635_v52, %v2314_v35 }
 0x14a   : > { %v1712_v47 = vcombine.high %v1710_v8, %v1710_v8  ;;  %v2331_v62 = vrot.slane %v1711_v10, 9  ;;  %v2332_v12 = vrot.slane %v1710_v8, 9  ;;  %v1895_v20 = vmax.f32 %v1703_v57, %v2330_v16 }
 0x14b   : > { %v2317_v11 = vrot.slane %v1644_v17, 9  ;;  %v1880_v19 = vmax.f32 %v1643_v4, %v2315_v18  ;;  %v1881_v23 = vmax.f32 %v1642_v3, %v2316_v54  ;;  %v1625_v6 = vrot.slane %v1611_v61, %v3341_v33 }
 0x14c   : > { %v2333_v28 = vrot.slane %v1712_v47, 9  ;;  %v1896_v26 = vmax.f32 %v1711_v10, %v2331_v62  ;;  %v1897_v27 = vmax.f32 %v1710_v8, %v2332_v12  ;;  %v1626_v63 = vcombine.high %v1618_v5, %v1618_v5  ;;  %v1543_v62 = vpop.f32.mrf.mxu0 }
 0x14d   : > { %v1882_v13 = vmax.f32 %v1644_v17, %v2317_v11  ;;  %v1627_v21 = vcombine.high %v1625_v6, %v1625_v6  ;;  %v2310_v32 = vrot.slane %v1618_v5, 9  ;;  %v2312_v29 = vrot.slane %v1625_v6, 9 }
 0x14e   : > { %v1898_v7 = vmax.f32 %v1712_v47, %v2333_v28  ;;  %v2311_v14 = vrot.slane %v1626_v63, 9  ;;  %v1679_v25 = vcombine.high %v1599_v59, %v1599_v59  ;;  %v1686_v34 = vrot.slane %v1599_v59, %v3341_v33  ;;  %v1563_v28 = vpop.f32.mrf.mxu1 }
 0x14f   : > { %v2313_v42 = vrot.slane %v1627_v21, 9  ;;  %v1875_v43 = vmax.f32 %v1618_v5, %v2310_v32  ;;  %v1877_v45 = vmax.f32 %v1625_v6, %v2312_v29  ;;  %v1598_v46 = vmax.f32 %v1590_v60, 0.0 }
 0x150   : > { %v1876_v38 = vmax.f32 %v1626_v63, %v2311_v14  ;;  %v1693_v39 = vrot.slane %v1679_v25, %v3341_v33  ;;  %v1694_v31 = vcombine.high %v1686_v34, %v1686_v34  ;;  %v2326_v49 = vrot.slane %v1686_v34, 9 }
 0x151   : > { %v1878_v40 = vmax.f32 %v1627_v21, %v2313_v42  ;;  %v1907_v22 = vmax.f32 %v1875_v43, %v1879_v55  ;;  %v1909_v41 = vmax.f32 %v1877_v45, %v1881_v23  ;;  %v1662_v50 = vcombine.high %v1598_v46, %v1598_v46 }
 0x152   : > { %v1908_v51 = vmax.f32 %v1876_v38, %v1880_v19  ;;  %v1695_v56 = vcombine.high %v1693_v39, %v1693_v39  ;;  %v2327_v24 = vrot.slane %v1694_v31, 9  ;;  %v2328_v58 = vrot.slane %v1693_v39, 9 }
 0x153   : > { %v1910_v2 = vmax.f32 %v1878_v40, %v1882_v13  ;;  %v1942_v52 = vrot.slane %v1907_v22, %v3347_v48  ;;  %v1950_v53 = vrot.slane %v1909_v41, %v3347_v48  ;;  %v1891_v57 = vmax.f32 %v1686_v34, %v2326_v49 }
 0x154   : > { %v1946_v44 = vrot.slane %v1908_v51, %v3347_v48  ;;  %v2329_v59 = vrot.slane %v1695_v56, 9  ;;  %v1892_v60 = vmax.f32 %v1694_v31, %v2327_v24  ;;  %v1893_v3 = vmax.f32 %v1693_v39, %v2328_v58 }
 0x155   : > { %v1954_v4 = vrot.slane %v1910_v2, %v3347_v48  ;;  %v1915_v35 = vmax.f32 %v1891_v57, %v1895_v20  ;;  %v1669_v8 = vrot.slane %v1598_v46, %v3341_v33  ;;  %v1676_v10 = vrot.slane %v1662_v50, %v3341_v33 }
 0x156   : > { %v2004_v16 = vsel %vm2003_vm1, %v1946_v44, %v1942_v52  ;;  %v1894_v61 = vmax.f32 %v1695_v56, %v2329_v59  ;;  %v1916_v5 = vmax.f32 %v1892_v60, %v1896_v26  ;;  %v1917_v17 = vmax.f32 %v1893_v3, %v1897_v27 }
 0x157   : > { %v1420_v18 = vadd.f32 %v3318_v37, %v3355_v36  ;;  %v1270_v54 = vadd.f32 %v3326_v9, %v3352_v0  ;;  %v2006_v55 = vsel %vm2005_vm2, %v1950_v53, %v2004_v16  ;;  %v1974_v47 = vrot.slane %v1915_v35, %v3347_v48 }
 0x158   : > { %v2008_v12 = vsel %vm2007_vm3, %v1954_v4, %v2006_v55  ;;  %v1918_v20 = vmax.f32 %v1894_v61, %v1898_v7  ;;  %v1978_v11 = vrot.slane %v1916_v5, %v3347_v48  ;;  %v1982_v19 = vrot.slane %v1917_v17, %v3347_v48 }
 0x159   : > { %2023 = vst.msk [vmem:[%s3379_s7] sm:$0xf] %vm2022_vm4, %v2008_v12  ;;  %v1677_v23 = vcombine.high %v1669_v8, %v1669_v8  ;;  %v1678_v37 = vcombine.high %v1676_v10, %v1676_v10  ;;  %v1602_v0 = vmax.f32 %v3361_v1, 0.0  ;;  %v1574_v6 = vadd.f32 %v1543_v62, %v1420_v18 }
 0x15a   : > { %v1986_v36 = vrot.slane %v1918_v20, %v3347_v48  ;;  %v2012_v9 = vsel %vm2003_vm1, %v1978_v11, %v1974_v47  ;;  %v1424_v26 = vadd.f32 %v3328_v15, %v1270_v54  ;;  %v2322_v32 = vrot.slane %v1669_v8, 9 }
 0x15b   : > { %v2013_v27 = vsel %vm2005_vm2, %v1982_v19, %v2012_v9  ;;  %v1730_v13 = vcombine.high %v1602_v0, %v1602_v0  ;;  %v1737_v21 = vrot.slane %v1602_v0, %v3341_v33  ;;  %v2323_v29 = vrot.slane %v1677_v23, 9 }
 0x15c   : > { %v2014_v63 = vsel %vm2007_vm3, %v1986_v36, %v2013_v27  ;;  %v1589_v7 = vadd.f32 %v3337_v30, %v1574_v6  ;;  %v1578_v14 = vadd.f32 %v1563_v28, %v1424_v26  ;;  %v2324_v25 = vrot.slane %v1676_v10, 9 }
 0x15d   : > { %2025 = vst.msk [vmem:[%s3379_s7 + $0x8] sm:$0xf] %vm2022_vm4, %v2014_v63  ;;  %v2325_v1 = vrot.slane %v1678_v37, 9  ;;  %v1744_v34 = vrot.slane %v1730_v13, %v3341_v33  ;;  %v1745_v42 = vcombine.high %v1737_v21, %v1737_v21  ;;  %v2338_v46 = vrot.slane %v1737_v21, 9 }
 0x15e   : > { %v1597_v15 = vmax.f32 %v1589_v7, 0.0  ;;  %v1593_v43 = vadd.f32 %v3337_v30, %v1578_v14  ;;  %v1887_v38 = vmax.f32 %v1669_v8, %v2322_v32  ;;  %v1888_v40 = vmax.f32 %v1677_v23, %v2323_v29 }
 0x15f   : > { %v1746_v45 = vcombine.high %v1744_v34, %v1744_v34  ;;  %v1889_v22 = vmax.f32 %v1676_v10, %v2324_v25  ;;  %v1890_v41 = vmax.f32 %v1678_v37, %v2325_v1  ;;  %v2339_v50 = vrot.slane %v1745_v42, 9 }
 0x160   : > { %v1645_v39 = vcombine.high %v1597_v15, %v1597_v15  ;;  %v1652_v31 = vrot.slane %v1597_v15, %v3341_v33  ;;  %v1601_v49 = vmax.f32 %v1593_v43, 0.0  ;;  %v2340_v2 = vrot.slane %v1744_v34, 9 }
 0x161   : > { %v2341_v52 = vrot.slane %v1746_v45, 9  ;;  %v1903_v53 = vmax.f32 %v1737_v21, %v2338_v46  ;;  %v1904_v3 = vmax.f32 %v1745_v42, %v2339_v50 }
 0x162   : > { %v1659_v51 = vrot.slane %v1645_v39, %v3341_v33  ;;  %v1660_v56 = vcombine.high %v1652_v31, %v1652_v31  ;;  %v2318_v24 = vrot.slane %v1652_v31, 9  ;;  %v1713_v58 = vcombine.high %v1601_v49, %v1601_v49 }
 0x163   : > { %v1720_v30 = vrot.slane %v1601_v49, %v3341_v33  ;;  %v1905_v47 = vmax.f32 %v1744_v34, %v2340_v2  ;;  %v1906_v6 = vmax.f32 %v1746_v45, %v2341_v52 }
 0x164   : > { %v1661_v57 = vcombine.high %v1659_v51, %v1659_v51  ;;  %v2319_v44 = vrot.slane %v1660_v56, 9  ;;  %v2320_v59 = vrot.slane %v1659_v51, 9  ;;  %v1883_v60 = vmax.f32 %v1652_v31, %v2318_v24 }
 0x165   : > { %v1727_v4 = vrot.slane %v1713_v58, %v3341_v33  ;;  %v1728_v35 = vcombine.high %v1720_v30, %v1720_v30  ;;  %v2334_v8 = vrot.slane %v1720_v30, 9 }
 0x166   : > { %v2321_v10 = vrot.slane %v1661_v57, 9  ;;  %v1884_v16 = vmax.f32 %v1660_v56, %v2319_v44  ;;  %v1885_v61 = vmax.f32 %v1659_v51, %v2320_v59  ;;  %v1911_v5 = vmax.f32 %v1883_v60, %v1887_v38 }
 0x167   : > { %v1729_v17 = vcombine.high %v1727_v4, %v1727_v4  ;;  %v2335_v18 = vrot.slane %v1728_v35, 9  ;;  %v2336_v54 = vrot.slane %v1727_v4, 9  ;;  %v1899_v55 = vmax.f32 %v1720_v30, %v2334_v8 }
 0x168   : > { %v1886_v62 = vmax.f32 %v1661_v57, %v2321_v10  ;;  %v1912_v12 = vmax.f32 %v1884_v16, %v1888_v40  ;;  %v1913_v20 = vmax.f32 %v1885_v61, %v1889_v22  ;;  %v1958_v33 = vrot.slane %v1911_v5, %v3347_v48 }
 0x169   : > { %v2337_v11 = vrot.slane %v1729_v17, 9  ;;  %v1900_v19 = vmax.f32 %v1728_v35, %v2335_v18  ;;  %v1901_v23 = vmax.f32 %v1727_v4, %v2336_v54  ;;  %v1919_v37 = vmax.f32 %v1899_v55, %v1903_v53 }
 0x16a   : > { %v1914_v36 = vmax.f32 %v1886_v62, %v1890_v41  ;;  %v1962_v9 = vrot.slane %v1912_v12, %v3347_v48  ;;  %v1966_v0 = vrot.slane %v1913_v20, %v3347_v48 }
 0x16b   : > { %v1902_v28 = vmax.f32 %v1729_v17, %v2337_v11  ;;  %v1920_v26 = vmax.f32 %v1900_v19, %v1904_v3  ;;  %v1921_v27 = vmax.f32 %v1901_v23, %v1905_v47  ;;  %v1990_v21 = vrot.slane %v1919_v37, %v3347_v48 }
 0x16c   : > { %v1970_v63 = vrot.slane %v1914_v36, %v3347_v48  ;;  %v2009_v13 = vsel %vm2003_vm1, %v1962_v9, %v1958_v33 }
 0x16d   : > { %v2010_v32 = vsel %vm2005_vm2, %v1966_v0, %v2009_v13  ;;  %v1922_v29 = vmax.f32 %v1902_v28, %v1906_v6  ;;  %v1994_v7 = vrot.slane %v1920_v26, %v3347_v48  ;;  %v1998_v14 = vrot.slane %v1921_v27, %v3347_v48 }
 0x16e   : > { %v2011_v25 = vsel %vm2007_vm3, %v1970_v63, %v2010_v32 }
 0x16f   : > { %2024 = vst.msk [vmem:[%s3379_s7 + $0x4] sm:$0xf] %vm2022_vm4, %v2011_v25  ;;  %v2002_v1 = vrot.slane %v1922_v29, %v3347_v48  ;;  %v2015_v34 = vsel %vm2003_vm1, %v1994_v7, %v1990_v21 }
 0x170   : > { %v2016_v42 = vsel %vm2005_vm2, %v1998_v14, %v2015_v34 }
 0x171   : > { %v2017_v15 = vsel %vm2007_vm3, %v2002_v1, %v2016_v42 }
 0x172   : > { %2026 = vst.msk [vmem:[%s3379_s7 + $0xc] sm:$0xf] %vm2022_vm4, %v2017_v15 }
 0x173 PF: > { %s13_s14 = sadd.s32 1, %s2805_s14   ;;  %s3446_s12 = smov %s2801_s13 }
 0x174   : > { %p10_p5 = scmp.ge.s32.totalorder %s13_s14, 4   ;;  %s3447_s13 = smov %s3449_s15 }
 0x176   :  { %12 = sbr.rel (!%p10_p5) target bundleno = 2 (0x2), region = 72 }

// kernel: tile.23
= control target key start
LH: loop header
LB: loop body
LE: loop exit
PB: predicated region body
PF: predicated region fallthrough
CT: control target
= control target key end

     0   :  { %s22_s0 = inlined_call_operand.vmem [shape: f32[64], index: 0, kind: input, shape index: {}]   ;;  %s23_s1 = inlined_call_operand.vmem [shape: f32[4,64], index: 1, kind: output, shape index: {}]  }
   0x1   :  { %v4_v0 = vld [vmem:[%s22_s0] ss:$0 sm:$0xff] }
   0x2   :  { %5 = vst [vmem:[%s23_s1] sm:$0xf] %v4_v0 }

// kernel: conv_autoencoder_forward.8
= control target key start
LH: loop header
LB: loop body
LE: loop exit
PB: predicated region body
PF: predicated region fallthrough
CT: control target
= control target key end

     0   :  { %s1615_s12 = smov 0   ;;  %s1617_s13 = smov 0   ;;  %s1801_s0 = inlined_call_operand.vmem [shape: f32[2,1,6,6,32], index: 0, kind: input, shape index: {}]   ;;  %s1802_s1 = inlined_call_operand.vmem [shape: f32[9,32,4], index: 1, kind: input, shape index: {}]   ;;  %s1803_s2 = inlined_call_operand.vmem [shape: f32[1,4], index: 2, kind: input, shape index: {}]   ;;  %s1804_s3 = inlined_call_operand.vmem [shape: f32[2,2,2,4], index: 3, kind: output, shape index: {}]  }
   0x1   :  { %s1619_s14 = smov 0  }
   0x2 LB: > { %s25_s15 = sadd.s32 1, %s1588_s13  ;;  %p1283_p0 = scmp.ge.s32.totalorder %s1592_s14, 1  ;;  %s1592_s14 = sphi %s1619_s14, %s13_s14   ;;  %s1588_s13 = sphi %s1617_s13, %s1806_s13   ;;  %s1584_s12 = sphi %s1615_s12, %s1805_s12  }
   0x3   : > { %p27_p1 = scmp.ge.s32.totalorder %s25_s15, 2  ;;  %p157_p2 = scmp.lt.s32.totalorder %s1592_s14, 3 }
   0x5   : > { %s1808_s15 = smov (%p27_p1, %s25_s15), 0  ;;  %p158_p3 = pnand %p1283_p0, %p157_p2 }
   0x6   : > { %p189_p4 = scmp.lt.s32.totalorder (!%p158_p3), %s1584_s12, 1 }
   0x7   : > { %161 = sbr.rel (%p158_p3) target bundleno = 277 (0x115), region = 32 }
   0xc   : > { %v1290_v0 = vld [vmem:[%s1802_s1 + $0x38] sm:$0xff]  ;;  %v1289_v2 = vld [vmem:[%s1802_s1 + $0x30] sm:$0xff]  ;;  %v1288_v4 = vld [vmem:[%s1802_s1 + $0x28] sm:$0xff]  ;;  %s1810_s12 = smov (!%p189_p4, %s1584_s12), 1  ;;  %vm231_vm0 = vcmask 261120   ;;  %vm1181_vm1 = vcmask 1041409  }
   0xd   : > { %v215_v1 = vld [vmem:[%s1802_s1 + $0x18] sm:$0xff]  ;;  %1427 = vmatprep.subr.mxu0 %v1290_v0  ;;  %v214_v3 = vld [vmem:[%s1802_s1 + $0x10] sm:$0xff]  ;;  %v213_v5 = vld [vmem:[%s1802_s1 + $0x8] sm:$0xff]  ;;  %s1526_s5 = smul.u32 48, %s1810_s12  ;;  %s1372_s26 = sshll.u32 %s1810_s12, 2  ;;  %vm1186_vm2 = vcmask 25600  }
   0xe   : > { %1438 = vmatprep.subr.mxu1 %v215_v1  ;;  %1428 = vmatpush3.msra.mxu0 %v1290_v0  ;;  %v1287_v6 = vld [vmem:[%s1802_s1 + $0x20] sm:$0xff]  ;;  %v1298_v8 = vld [vmem:[%s1802_s1 + $0x58] sm:$0xff]  ;;  %v1297_v12 = vld [vmem:[%s1802_s1 + $0x50] sm:$0xff]  ;;  %s206_s29 = scalar_lea.vmem %s1804_s3, %s1372_s26 }
   0xf   : > { %1439 = vmatpush3.msra.mxu1 %v215_v1  ;;  %1429 = vmatprep.subr.mxu0 %v1289_v2  ;;  %v212_v7 = vld [vmem:[%s1802_s1] sm:$0xff]  ;;  %s1663_s8 = scalar_lea.vmem %s1801_s0, %s1526_s5  ;;  %v1308_v9 = vld [vmem:[%s1802_s1 + $0x78] sm:$0xff]  ;;  %v1296_v15 = vld [vmem:[%s1802_s1 + $0x48] sm:$0xff] }
  0x10   : > { %1440 = vmatprep.subr.mxu1 %v214_v3  ;;  %1430 = vmatpush3.msra.mxu0 %v1289_v2  ;;  %v1552_v10 = vld [vmem:[%s1663_s8 + $0x1] ss:$8 sps:$4 sm:$0xff]   ;;  %v1554_v13 = vld [vmem:[%s1663_s8 + $0x11] ss:$8 sps:$4 sm:$0xff]  }
  0x11   : > { %1441 = vmatpush3.msra.mxu1 %v214_v3  ;;  %1431 = vmatprep.subr.mxu0 %v1288_v4  ;;  %v1553_v11 = vld [vmem:[%s1663_s8] ss:$8 sps:$4 sm:$0xff]   ;;  %v1555_v14 = vld [vmem:[%s1663_s8 + $0x10] ss:$8 sps:$4 sm:$0xff]  }
  0x12   : > { %1442 = vmatprep.subr.mxu1 %v213_v5  ;;  %1432 = vmatpush3.msra.mxu0 %v1288_v4  ;;  %v1307_v16 = vld [vmem:[%s1802_s1 + $0x70] sm:$0xff]  ;;  %v1306_v17 = vld [vmem:[%s1802_s1 + $0x68] sm:$0xff]  ;;  %v1295_v19 = vld [vmem:[%s1802_s1 + $0x40] sm:$0xff] }
  0x13   : > { %1443 = vmatpush3.msra.mxu1 %v213_v5  ;;  %1433 = vmatprep.subr.mxu0 %v1287_v6  ;;  %v1556_v18 = vld [vmem:[%s1663_s8 + $0x2] ss:$8 sps:$4 sm:$0xff]   ;;  %v1557_v20 = vld [vmem:[%s1663_s8 + $0x12] ss:$8 sps:$4 sm:$0xff]  }
  0x14   : > { %1444 = vmatprep.subr.mxu1 %v212_v7  ;;  %1434 = vmatpush3.msra.mxu0 %v1287_v6  ;;  %v1305_v21 = vld [vmem:[%s1802_s1 + $0x60] sm:$0xff]  ;;  %v1318_v22 = vld [vmem:[%s1802_s1 + $0x98] sm:$0xff]  ;;  %v1558_v23 = vld [vmem:[%s1663_s8 + $0x8] ss:$8 sps:$4 sm:$0xff]  }
  0x15   : > { %1445 = vmatpush3.msra.mxu1 %v212_v7  ;;  %1435 = vmatprep.mubr.msk.f32.mxu0 %vm231_vm0, %v1552_v10  ;;  %v1559_v24 = vld [vmem:[%s1663_s8 + $0x18] ss:$8 sps:$4 sm:$0xff]   ;;  %v1317_v25 = vld [vmem:[%s1802_s1 + $0x90] sm:$0xff]  ;;  %v1316_v27 = vld [vmem:[%s1802_s1 + $0x88] sm:$0xff] }
  0x16   : > { %1449 = vmatprep.subr.mxu0 %v1298_v8  ;;  %1446 = vmatprep.mubr.msk.f32.mxu1 %vm231_vm0, %v1553_v11  ;;  %v1328_v26 = vld [vmem:[%s1802_s1 + $0xb8] sm:$0xff]  ;;  %v1327_v28 = vld [vmem:[%s1802_s1 + $0xb0] sm:$0xff]  ;;  %v1315_v29 = vld [vmem:[%s1802_s1 + $0x80] sm:$0xff] }
  0x17   : > { %1460 = vmatprep.subr.mxu1 %v1308_v9  ;;  %1436 = vmatmul.mubr.msk.f32.vlgmr.msra.gmra.mxu0 %vm231_vm0, %v1554_v13  ;;  %v1326_v30 = vld [vmem:[%s1802_s1 + $0xa8] sm:$0xff]  ;;  %v1561_v32 = vld [vmem:[%s1663_s8 + $0x19] ss:$8 sps:$4 sm:$0xff]   ;;  %v1337_v37 = vld [vmem:[%s1802_s1 + $0xd0] sm:$0xff] }
  0x18   : > { %1447 = vmatmul.mubr.msk.f32.vlgmr.msra.gmra.mxu1 %vm231_vm0, %v1555_v14  ;;  %1450 = vmatpush3.msra.mxu0 %v1298_v8  ;;  %v1560_v31 = vld [vmem:[%s1663_s8 + $0x9] ss:$8 sps:$4 sm:$0xff]   ;;  %v1325_v33 = vld [vmem:[%s1802_s1 + $0xa0] sm:$0xff]  ;;  %v1338_v34 = vld [vmem:[%s1802_s1 + $0xd8] sm:$0xff] }
  0x19   : > { %1451 = vmatprep.subr.mxu0 %v1297_v12  ;;  %1461 = vmatpush3.msra.mxu1 %v1308_v9  ;;  %v1562_v35 = vld [vmem:[%s1663_s8 + $0xa] ss:$8 sps:$4 sm:$0xff]   ;;  %v1563_v36 = vld [vmem:[%s1663_s8 + $0x1a] ss:$8 sps:$4 sm:$0xff]  }
  0x1a   : > { %1452 = vmatpush3.msra.mxu0 %v1297_v12  ;;  %1462 = vmatprep.subr.mxu1 %v1307_v16  ;;  %v1348_v38 = vld [vmem:[%s1802_s1 + $0xf8] sm:$0xff]  ;;  %v1336_v39 = vld [vmem:[%s1802_s1 + $0xc8] sm:$0xff]  ;;  %v1347_v40 = vld [vmem:[%s1802_s1 + $0xf0] sm:$0xff] }
  0x1b   : > { %1453 = vmatprep.subr.mxu0 %v1296_v15  ;;  %1463 = vmatpush3.msra.mxu1 %v1307_v16  ;;  %v1335_v41 = vld [vmem:[%s1802_s1 + $0xc0] sm:$0xff]  ;;  %v1346_v42 = vld [vmem:[%s1802_s1 + $0xe8] sm:$0xff]  ;;  %v1564_v43 = vld [vmem:[%s1663_s8 + $0x10] ss:$8 sps:$4 sm:$0xff]   ;;  %v1594_v16 = vmov 1983009808  }
  0x1c   : > { %1454 = vmatpush3.msra.mxu0 %v1296_v15  ;;  %1464 = vmatprep.subr.mxu1 %v1306_v17  ;;  %v1565_v44 = vld [vmem:[%s1663_s8 + $0x20] ss:$8 sps:$4 sm:$0xff]   ;;  %v1358_v46 = vld [vmem:[%s1802_s1 + $0x118] sm:$0xff]  ;;  %v1357_v49 = vld [vmem:[%s1802_s1 + $0x110] sm:$0xff] }
  0x1d   : > { %1455 = vmatprep.subr.mxu0 %v1295_v19  ;;  %1457 = vmatprep.mubr.msk.f32.mxu0 %vm231_vm0, %v1556_v18  ;;  %v1345_v45 = vld [vmem:[%s1802_s1 + $0xe0] sm:$0xff]  ;;  %v1566_v47 = vld [vmem:[%s1663_s8 + $0x11] ss:$8 sps:$4 sm:$0xff]   ;;  %v1356_v51 = vld [vmem:[%s1802_s1 + $0x108] sm:$0xff]  ;;  %v1087_v18 = vlaneseq }
  0x1e   : > { %1456 = vmatpush3.msra.mxu0 %v1295_v19  ;;  %1465 = vmatpush3.msra.mxu1 %v1306_v17  ;;  %v1567_v48 = vld [vmem:[%s1663_s8 + $0x21] ss:$8 sps:$4 sm:$0xff]   ;;  %v1568_v50 = vld [vmem:[%s1663_s8 + $0x12] ss:$8 sps:$4 sm:$0xff]   ;;  %v1085_v17 = vunpack.c.l.s4 %v1594_v16 }
  0x1f   : > { %1458 = vmatmul.mubr.msk.f32.vlgmr.msra.gmra.mxu0 %vm231_vm0, %v1557_v20  ;;  %1466 = vmatprep.subr.mxu1 %v1305_v21  ;;  %v1355_v52 = vld [vmem:[%s1802_s1 + $0x100] sm:$0xff] }
  0x20   : > { %1471 = vmatprep.subr.mxu0 %v1318_v22  ;;  %1467 = vmatpush3.msra.mxu1 %v1305_v21  ;;  %v1569_v53 = vld [vmem:[%s1663_s8 + $0x22] ss:$8 sps:$4 sm:$0xff]  }
  0x21   : > { %1468 = vmatprep.mubr.msk.f32.mxu1 %vm231_vm0, %v1558_v23  ;;  %1472 = vmatpush3.msra.mxu0 %v1318_v22  ;;  %v1086_v22 = vunpack.c.0.s8 %v1085_v17  ;;  %v1088_v23 = vshrl.u32 %v1087_v18, 7 }
  0x22   : > { %1469 = vmatmul.mubr.msk.f32.vlgmr.msra.gmra.mxu1 %vm231_vm0, %v1559_v24  ;;  %1473 = vmatprep.subr.mxu0 %v1317_v25 }
  0x23   : > { %1482 = vmatprep.subr.mxu1 %v1328_v26  ;;  %1474 = vmatpush3.msra.mxu0 %v1317_v25  ;;  %v1361_v25 = vld [vmem:[%s1803_s2] ss:$0 sm:$0xff] }
  0x24   : > { %1483 = vmatpush3.msra.mxu1 %v1328_v26  ;;  %1475 = vmatprep.subr.mxu0 %v1316_v27 }
  0x25   : > { %1484 = vmatprep.subr.mxu1 %v1327_v28  ;;  %1476 = vmatpush3.msra.mxu0 %v1316_v27 }
  0x26   : > { %1485 = vmatpush3.msra.mxu1 %v1327_v28  ;;  %1477 = vmatprep.subr.mxu0 %v1315_v29 }
  0x27   : > { %1486 = vmatprep.subr.mxu1 %v1326_v30  ;;  %1478 = vmatpush3.msra.mxu0 %v1315_v29 }
  0x28   : > { %1479 = vmatprep.mubr.msk.f32.mxu0 %vm231_vm0, %v1560_v31  ;;  %1487 = vmatpush3.msra.mxu1 %v1326_v30  ;;  %v1089_v30 = vsub.s32 %v1086_v22, %v1088_v23 }
  0x29   : > { %1480 = vmatmul.mubr.msk.f32.vlgmr.msra.gmra.mxu0 %vm231_vm0, %v1561_v32  ;;  %1488 = vmatprep.subr.mxu1 %v1325_v33 }
  0x2a   : > { %1493 = vmatprep.subr.mxu0 %v1338_v34  ;;  %1489 = vmatpush3.msra.mxu1 %v1325_v33 }
  0x2b   : > { %1490 = vmatprep.mubr.msk.f32.mxu1 %vm231_vm0, %v1562_v35  ;;  %1494 = vmatpush3.msra.mxu0 %v1338_v34 }
  0x2c   : > { %1491 = vmatmul.mubr.msk.f32.vlgmr.msra.gmra.mxu1 %vm231_vm0, %v1563_v36  ;;  %1495 = vmatprep.subr.mxu0 %v1337_v37 }
  0x2d   : > { %1504 = vmatprep.subr.mxu1 %v1348_v38  ;;  %1496 = vmatpush3.msra.mxu0 %v1337_v37 }
  0x2e   : > { %1505 = vmatpush3.msra.mxu1 %v1348_v38  ;;  %1497 = vmatprep.subr.mxu0 %v1336_v39 }
  0x2f   : > { %1506 = vmatprep.subr.mxu1 %v1347_v40  ;;  %1498 = vmatpush3.msra.mxu0 %v1336_v39 }
  0x30   : > { %1507 = vmatpush3.msra.mxu1 %v1347_v40  ;;  %1499 = vmatprep.subr.mxu0 %v1335_v41 }
  0x31   : > { %1508 = vmatprep.subr.mxu1 %v1346_v42  ;;  %1500 = vmatpush3.msra.mxu0 %v1335_v41 }
  0x32   : > { %1501 = vmatprep.mubr.msk.f32.mxu0 %vm231_vm0, %v1564_v43  ;;  %1509 = vmatpush3.msra.mxu1 %v1346_v42 }
  0x33   : > { %1502 = vmatmul.mubr.msk.f32.vlgmr.msra.gmra.mxu0 %vm231_vm0, %v1565_v44  ;;  %1510 = vmatprep.subr.mxu1 %v1345_v45 }
  0x34   : > { %1515 = vmatprep.subr.mxu0 %v1358_v46  ;;  %1511 = vmatpush3.msra.mxu1 %v1345_v45 }
  0x35   : > { %1512 = vmatprep.mubr.msk.f32.mxu1 %vm231_vm0, %v1566_v47  ;;  %1516 = vmatpush3.msra.mxu0 %v1358_v46 }
  0x36   : > { %1513 = vmatmul.mubr.msk.f32.vlgmr.msra.gmra.mxu1 %vm231_vm0, %v1567_v48  ;;  %1517 = vmatprep.subr.mxu0 %v1357_v49 }
  0x37   : > { %1518 = vmatpush3.msra.mxu0 %v1357_v49  ;;  %1523 = vmatprep.mubr.msk.f32.mxu0 %vm231_vm0, %v1568_v50 }
  0x38   : > { %1519 = vmatprep.subr.mxu0 %v1356_v51 }
  0x39   : > { %1520 = vmatpush3.msra.mxu0 %v1356_v51 }
  0x3a   : > { %1521 = vmatprep.subr.mxu0 %v1355_v52 }
  0x3b   : > { %1522 = vmatpush3.msra.mxu0 %v1355_v52 }
  0x3c   : > { %1524 = vmatmul.mubr.msk.f32.vlgmr.msra.gmra.mxu0 %vm231_vm0, %v1569_v53 }
  0xd7   : > { %v1437_v54 = vpop.f32.mrf.mxu0 }
  0xd8   : > { %v1448_v55 = vpop.f32.mrf.mxu1 }
  0xd9   : > { %v302_v56 = vpop.f32.mrf.mxu0  ;;  %v393_v59 = vadd.f32 %v1448_v55, %v1437_v54 }
  0xda   : > { %v387_v58 = vpop.f32.mrf.mxu1 }
  0xdb   : > { %v388_v62 = vadd.f32 %v387_v58, %v302_v56 }
  0xdf   : > { %v1459_v57 = vpop.f32.mrf.mxu0 }
  0xe0   : > { %v491_v63 = vadd.f32 %v1459_v57, %v393_v59  ;;  %v1167_v57 = vsub.s32 0, %v1088_v23 }
  0xe1   : > { %v481_v60 = vpop.f32.mrf.mxu0 }
  0xe2   : > { %v1470_v61 = vpop.f32.mrf.mxu1  ;;  %v490_v1 = vadd.f32 %v481_v60, %v388_v62 }
  0xe3   : > { %v588_v3 = vadd.f32 %v1470_v61, %v491_v63 }
  0xe4   : > { %v578_v2 = vpop.f32.mrf.mxu1 }
  0xe5   : > { %v587_v6 = vadd.f32 %v578_v2, %v490_v1 }
  0xe9   : > { %v1481_v0 = vpop.f32.mrf.mxu0 }
  0xea   : > { %v684_v7 = vadd.f32 %v1481_v0, %v588_v3 }
  0xeb   : > { %v674_v4 = vpop.f32.mrf.mxu0 }
  0xec   : > { %v1492_v5 = vpop.f32.mrf.mxu1  ;;  %v683_v8 = vadd.f32 %v674_v4, %v587_v6 }
  0xed   : > { %v780_v11 = vadd.f32 %v1492_v5, %v684_v7 }
  0xee   : > { %v770_v10 = vpop.f32.mrf.mxu1 }
  0xef   : > { %v779_v14 = vadd.f32 %v770_v10, %v683_v8 }
  0xf3   : > { %v1503_v9 = vpop.f32.mrf.mxu0 }
  0xf4   : > { %v877_v15 = vadd.f32 %v1503_v9, %v780_v11 }
  0xf5   : > { %v867_v12 = vpop.f32.mrf.mxu0 }
  0xf6   : > { %v1514_v13 = vpop.f32.mrf.mxu1  ;;  %v876_v19 = vadd.f32 %v867_v12, %v779_v14 }
  0xf7   : > { %v973_v21 = vadd.f32 %v1514_v13, %v877_v15 }
  0xf8   : > { %v963_v20 = vpop.f32.mrf.mxu1 }
  0xf9   : > { %v972_v26 = vadd.f32 %v963_v20, %v876_v19 }
  0xfc   : > { %v1525_v24 = vpop.f32.mrf.mxu0 }
  0xfd   : > { %v1069_v27 = vadd.f32 %v1525_v24, %v973_v21 }
  0xfe   : > { %v1059_v28 = vpop.f32.mrf.mxu0 }
  0xff   : > { %v1078_v29 = vadd.f32 %v1361_v25, %v1069_v27  ;;  %v1068_v31 = vadd.f32 %v1059_v28, %v972_v26 }
 0x101   : > { %v1080_v32 = vmax.f32 %v1078_v29, 0.0  ;;  %v1077_v33 = vadd.f32 %v1361_v25, %v1068_v31 }
 0x103   : > { %v1100_v34 = vcombine.high %v1080_v32, %v1080_v32  ;;  %v1107_v35 = vrot.slane %v1080_v32, %v1089_v30  ;;  %v1079_v36 = vmax.f32 %v1077_v33, 0.0 }
 0x105   : > { %v1114_v37 = vrot.slane %v1100_v34, %v1089_v30  ;;  %v1115_v38 = vcombine.high %v1107_v35, %v1107_v35  ;;  %v1366_v39 = vrot.slane %v1107_v35, 9  ;;  %v1083_v40 = vcombine.high %v1079_v36, %v1079_v36 }
 0x106   : > { %v1090_v41 = vrot.slane %v1079_v36, %v1089_v30 }
 0x107   : > { %v1116_v42 = vcombine.high %v1114_v37, %v1114_v37  ;;  %v1367_v43 = vrot.slane %v1115_v38, 9  ;;  %v1368_v44 = vrot.slane %v1114_v37, 9  ;;  %v1097_v45 = vrot.slane %v1083_v40, %v1089_v30 }
 0x108   : > { %v1098_v46 = vcombine.high %v1090_v41, %v1090_v41  ;;  %v1362_v47 = vrot.slane %v1090_v41, 9  ;;  %v1153_v49 = vmax.f32 %v1107_v35, %v1366_v39 }
 0x109   : > { %v1369_v48 = vrot.slane %v1116_v42, 9  ;;  %v1155_v50 = vmax.f32 %v1114_v37, %v1368_v44  ;;  %v1099_v51 = vcombine.high %v1097_v45, %v1097_v45  ;;  %v1364_v53 = vrot.slane %v1097_v45, 9 }
 0x10a   : > { %v1363_v52 = vrot.slane %v1098_v46, 9  ;;  %v1154_v54 = vmax.f32 %v1115_v38, %v1367_v43  ;;  %v1149_v59 = vmax.f32 %v1090_v41, %v1362_v47 }
 0x10b   : > { %v1156_v55 = vmax.f32 %v1116_v42, %v1369_v48  ;;  %v1159_v56 = vmax.f32 %v1153_v49, %v1155_v50  ;;  %v1365_v58 = vrot.slane %v1099_v51, 9  ;;  %v1151_v60 = vmax.f32 %v1097_v45, %v1364_v53 }
 0x10c   : > { %v1150_v62 = vmax.f32 %v1098_v46, %v1363_v52 }
 0x10d   : > { %v1160_v61 = vmax.f32 %v1154_v54, %v1156_v55  ;;  %v1152_v63 = vmax.f32 %v1099_v51, %v1365_v58  ;;  %v1157_v0 = vmax.f32 %v1149_v59, %v1151_v60  ;;  %v1176_v1 = vrot.slane %v1159_v56, %v1167_v57 }
 0x10f   : > { %v1180_v2 = vrot.slane %v1160_v61, %v1167_v57  ;;  %v1158_v3 = vmax.f32 %v1150_v62, %v1152_v63  ;;  %v1168_v5 = vrot.slane %v1157_v0, %v1167_v57 }
 0x111   : > { %v1183_v4 = vsel %vm1181_vm1, %v1180_v2, %v1176_v1  ;;  %v1172_v6 = vrot.slane %v1158_v3, %v1167_v57 }
 0x112   : > { %1188 = vst.msk [vmem:[%s206_s29 + $0x2] sm:$0x3] %vm1186_vm2, %v1183_v4 }
 0x113   : > { %v1182_v7 = vsel %vm1181_vm1, %v1172_v6, %v1168_v5 }
 0x114   : > { %1187 = vst.msk [vmem:[%s206_s29] sm:$0x3] %vm1186_vm2, %v1182_v7 }
 0x115 PF: > { %s13_s14 = sadd.s32 1, %s1592_s14   ;;  %s1805_s12 = smov %s1588_s13 }
 0x116   : > { %p10_p5 = scmp.ge.s32.totalorder %s13_s14, 4   ;;  %s1806_s13 = smov %s1808_s15 }
 0x118   :  { %12 = sbr.rel (!%p10_p5) target bundleno = 2 (0x2), region = 72 }

// kernel: tile.24
= control target key start
LH: loop header
LB: loop body
LE: loop exit
PB: predicated region body
PF: predicated region fallthrough
CT: control target
= control target key end

     0   :  { %s7_s8 = smov 3  ;;  %vm9_vm0 = vcmask 523264   ;;  %s34_s9 = smov 64   ;;  %vm16_vm1 = vcmask 1048064   ;;  %s54_s0 = inlined_call_operand.vmem [shape: f32[4,64], index: 0, kind: input, shape index: {}]   ;;  %s55_s1 = inlined_call_operand.vmem [shape: f32[1,256], index: 1, kind: output, shape index: {}]  }
   0x1   :  { %v5_v0 = vld [vmem:[%s54_s0] sm:$0xf]  ;;  %s12_s0 = smov 3 }
   0x2   :  { %6 = vst [vmem:[#allocation1] sm:$0xf] %v5_v0 }
   0x9   :  { %v13_v1 = vld [vmem:[#allocation1 + $0x1] ss:$2 sm:%s12_s0]   ;;  %v8_v2 = vld [vmem:[#allocation1] ss:$2 sm:%s7_s8]  }
   0xa   :  { %14 = vrot.lane.b32.xlu0 %v13_v1, %s34_s9  ;;  %10 = vst.msk [vmem:[#allocation0] ss:$8 sm:$0x3] %vm9_vm0, %v8_v2  }
  0x7c   :  { %v15_v3 = vpop.permute.xlu0 %14  }
  0x7d   :  { %17 = vst.msk [vmem:[#allocation0] ss:$8 sm:$0x3] %vm16_vm1, %v15_v3  }
  0x84   :  { %v22_v4 = vld [vmem:[#allocation0] sm:$0x1]  ;;  %v27_v5 = vld [vmem:[#allocation0 + $0x8] sm:$0x1] }
  0x85   :  { %25 = vst [vmem:[%s55_s1] sm:$0x1] %v22_v4  ;;  %32 = vst [vmem:[%s55_s1 + $0x1] sm:$0x1] %v27_v5 }

// kernel: conv_autoencoder_forward.6
= control target key start
LH: loop header
LB: loop body
LE: loop exit
PB: predicated region body
PF: predicated region fallthrough
CT: control target
= control target key end

     0   :  { %s4857_s12 = smov 0   ;;  %s4859_s13 = smov 0   ;;  %s7012_s0 = inlined_call_operand.vmem [shape: f32[2,1,18,18,1], index: 0, kind: input, shape index: {}]   ;;  %s7013_s1 = inlined_call_operand.vmem [shape: f32[9,1,64], index: 1, kind: input, shape index: {}]   ;;  %s7014_s2 = inlined_call_operand.vmem [shape: f32[1,64], index: 2, kind: input, shape index: {}]   ;;  %s7015_s3 = inlined_call_operand.vmem [shape: f32[2,8,8,64], index: 3, kind: output, shape index: {}]  }
   0x1   :  { %s4861_s14 = smov 0  }
   0x2 LB: > { %s25_s15 = sadd.s32 1, %s4829_s13  ;;  %p4430_p0 = scmp.ge.s32.totalorder %s4833_s14, 1  ;;  %s4833_s14 = sphi %s4861_s14, %s13_s14   ;;  %s4829_s13 = sphi %s4859_s13, %s7297_s13   ;;  %s4825_s12 = sphi %s4857_s12, %s7296_s12  }
   0x3   : > { %p27_p1 = scmp.ge.s32.totalorder %s25_s15, 2  ;;  %p157_p2 = scmp.lt.s32.totalorder %s4833_s14, 3 }
   0x5   : > { %s7299_s15 = smov (%p27_p1, %s25_s15), 0  ;;  %p158_p3 = pnand %p4430_p0, %p157_p2 }
   0x7   : > { %161 = sbr.rel (%p158_p3) target bundleno = 852 (0x354), region = 32 }
   0xc   : > { %p189_p4 = scmp.lt.s32.totalorder %s4825_s12, 1  ;;  %v4835_v0 = vmov 0   ;;  %vm4256_vm0 = vcmask 1041409   ;;  %vm4258_vm1 = vcmask 1042434   ;;  %vm4260_vm2 = vcmask 1043459  }
   0xd   : > { %4803 = vset.pattern.permute.xlu1 %v4835_v0  ;;  %4802 = vset.pattern.permute.xlu0 %v4835_v0  ;;  %vm4262_vm3 = vcmask 1044484   ;;  %vm4264_vm4 = vcmask 1045509   ;;  %vm4266_vm5 = vcmask 1046534   ;;  %vm4268_vm6 = vcmask 1047559  }
   0xe   : > { %s7301_s12 = smov (!%p189_p4, %s4825_s12), 1  ;;  %vm4327_vm7 = vcmask 523264  }
   0xf   : > { %s4775_s16 = smul.u32 432, %s7301_s12  ;;  %s4774_s27 = sshll.u32 %s7301_s12, 6 }
  0x10   : > { %s6577_s29 = scalar_lea.vmem %s7015_s3, %s4774_s27 }
  0x11   : > { %s4881_s19 = scalar_lea.vmem %s7012_s0, %s4775_s16 }
  0x12   : > { %v4884_v1 = vld [vmem:[%s4881_s19 + $0x18] sm:$0xff]  ;;  %v208_v2 = vld [vmem:[%s4881_s19] sm:$0xff]  ;;  %v209_v4 = vld [vmem:[%s4881_s19 + $0x8] sm:$0xff] }
  0x13   : > { %253 = vperm.xlu1 %4803, %v4884_v1   ;;  %243 = vperm.xlu0 %4802, %v208_v2   ;;  %v4889_v3 = vld [vmem:[%s4881_s19 + $0x20] sm:$0xff]  ;;  %v4894_v5 = vld [vmem:[%s4881_s19 + $0x38] sm:$0xff]  ;;  %v4897_v6 = vld [vmem:[%s4881_s19 + $0x30] sm:$0xff] }
  0x14   : > { %v4902_v7 = vld [vmem:[%s4881_s19 + $0x50] sm:$0xff]  ;;  %v4905_v8 = vld [vmem:[%s4881_s19 + $0x48] sm:$0xff]  ;;  %v4913_v10 = vld [vmem:[%s4881_s19 + $0x60] sm:$0xff] }
  0x15   : > { %v4910_v9 = vld [vmem:[%s4881_s19 + $0x68] sm:$0xff]  ;;  %v4918_v11 = vld [vmem:[%s4881_s19 + $0x80] sm:$0xff]  ;;  %v4921_v12 = vld [vmem:[%s4881_s19 + $0x78] sm:$0xff] }
  0x16   : > { %v4926_v13 = vld [vmem:[%s4881_s19 + $0x98] sm:$0xff]  ;;  %v4929_v14 = vld [vmem:[%s4881_s19 + $0x90] sm:$0xff]  ;;  %v4937_v16 = vld [vmem:[%s4881_s19 + $0xa8] sm:$0xff] }
  0x17   : > { %258 = vperm.xlu1 %4803, %v4889_v3   ;;  %248 = vperm.xlu0 %4802, %v209_v4   ;;  %v4934_v15 = vld [vmem:[%s4881_s19 + $0xb0] sm:$0xff]  ;;  %v4942_v17 = vld [vmem:[%s4881_s19 + $0xc8] sm:$0xff]  ;;  %v4945_v18 = vld [vmem:[%s4881_s19 + $0xc0] sm:$0xff] }
  0x18   : > { %v4950_v19 = vld [vmem:[%s4881_s19 + $0xe0] sm:$0xff]  ;;  %v4953_v20 = vld [vmem:[%s4881_s19 + $0xd8] sm:$0xff]  ;;  %v4961_v22 = vld [vmem:[%s4881_s19 + $0xf0] sm:$0xff] }
  0x19   : > { %v4958_v21 = vld [vmem:[%s4881_s19 + $0xf8] sm:$0xff]  ;;  %v4966_v23 = vld [vmem:[%s4881_s19 + $0x110] sm:$0xff]  ;;  %v4969_v24 = vld [vmem:[%s4881_s19 + $0x108] sm:$0xff] }
  0x1a   : > { %v4974_v25 = vld [vmem:[%s4881_s19 + $0x128] sm:$0xff]  ;;  %v4977_v26 = vld [vmem:[%s4881_s19 + $0x120] sm:$0xff]  ;;  %v4985_v28 = vld [vmem:[%s4881_s19 + $0x138] sm:$0xff] }
  0x1b   : > { %268 = vperm.xlu1 %4803, %v4894_v5   ;;  %263 = vperm.xlu0 %4802, %v4897_v6   ;;  %v4982_v27 = vld [vmem:[%s4881_s19 + $0x140] sm:$0xff]  ;;  %v4990_v29 = vld [vmem:[%s4881_s19 + $0x158] sm:$0xff]  ;;  %v4993_v30 = vld [vmem:[%s4881_s19 + $0x150] sm:$0xff] }
  0x1c   : > { %v4998_v31 = vld [vmem:[%s4881_s19 + $0x170] sm:$0xff]  ;;  %v5001_v32 = vld [vmem:[%s4881_s19 + $0x168] sm:$0xff]  ;;  %v5011_v36 = vld [vmem:[%s4881_s19 + $0x19] sm:$0xff] }
  0x1d   : > { %v472_v33 = vld [vmem:[%s4881_s19 + $0x9] sm:$0xff]  ;;  %v471_v34 = vld [vmem:[%s4881_s19 + $0x1] sm:$0xff]  ;;  %v5016_v37 = vld [vmem:[%s4881_s19 + $0x39] sm:$0xff] }
  0x1e   : > { %v5008_v35 = vld [vmem:[%s4881_s19 + $0x21] sm:$0xff]  ;;  %7076 = vst [vmem:[#allocation2_spill] sm:$0xff] %v5016_v37  ;;  %v5019_v38 = vld [vmem:[%s4881_s19 + $0x31] sm:$0xff]  ;;  %v5027_v40 = vld [vmem:[%s4881_s19 + $0x49] sm:$0xff] }
  0x1f   : > { %278 = vperm.xlu1 %4803, %v4902_v7   ;;  %273 = vperm.xlu0 %4802, %v4905_v8   ;;  %7077 = vst [vmem:[#allocation3_spill] sm:$0xff] %v5019_v38  ;;  %v5024_v39 = vld [vmem:[%s4881_s19 + $0x51] sm:$0xff]  ;;  %7079 = vst [vmem:[#allocation5_spill] sm:$0xff] %v5027_v40  ;;  %v5032_v41 = vld [vmem:[%s4881_s19 + $0x69] sm:$0xff] }
  0x20   : > { %7078 = vst [vmem:[#allocation4_spill] sm:$0xff] %v5024_v39  ;;  %7080 = vst [vmem:[#allocation6_spill] sm:$0xff] %v5032_v41  ;;  %v5035_v42 = vld [vmem:[%s4881_s19 + $0x61] sm:$0xff]  ;;  %v5043_v44 = vld [vmem:[%s4881_s19 + $0x79] sm:$0xff] }
  0x21   : > { %7081 = vst [vmem:[#allocation7_spill] sm:$0xff] %v5035_v42  ;;  %v5040_v43 = vld [vmem:[%s4881_s19 + $0x81] sm:$0xff]  ;;  %7083 = vst [vmem:[#allocation9_spill] sm:$0xff] %v5043_v44  ;;  %v5048_v45 = vld [vmem:[%s4881_s19 + $0x99] sm:$0xff] }
  0x22   : > { %7082 = vst [vmem:[#allocation8_spill] sm:$0xff] %v5040_v43  ;;  %7084 = vst [vmem:[#allocation10_spill] sm:$0xff] %v5048_v45  ;;  %v5051_v46 = vld [vmem:[%s4881_s19 + $0x91] sm:$0xff]  ;;  %v5059_v48 = vld [vmem:[%s4881_s19 + $0xa9] sm:$0xff] }
  0x23   : > { %288 = vperm.xlu1 %4803, %v4910_v9   ;;  %283 = vperm.xlu0 %4802, %v4913_v10   ;;  %7085 = vst [vmem:[#allocation11_spill] sm:$0xff] %v5051_v46  ;;  %v5056_v47 = vld [vmem:[%s4881_s19 + $0xb1] sm:$0xff]  ;;  %7087 = vst [vmem:[#allocation13_spill] sm:$0xff] %v5059_v48  ;;  %v5064_v49 = vld [vmem:[%s4881_s19 + $0xc9] sm:$0xff] }
  0x24   : > { %7086 = vst [vmem:[#allocation12_spill] sm:$0xff] %v5056_v47  ;;  %7088 = vst [vmem:[#allocation14_spill] sm:$0xff] %v5064_v49  ;;  %v5067_v50 = vld [vmem:[%s4881_s19 + $0xc1] sm:$0xff]  ;;  %v5075_v52 = vld [vmem:[%s4881_s19 + $0xd9] sm:$0xff] }
  0x25   : > { %7089 = vst [vmem:[#allocation15_spill] sm:$0xff] %v5067_v50  ;;  %v5072_v51 = vld [vmem:[%s4881_s19 + $0xe1] sm:$0xff]  ;;  %7091 = vst [vmem:[#allocation17_spill] sm:$0xff] %v5075_v52  ;;  %v5080_v53 = vld [vmem:[%s4881_s19 + $0xf9] sm:$0xff] }
  0x26   : > { %7090 = vst [vmem:[#allocation16_spill] sm:$0xff] %v5072_v51  ;;  %7092 = vst [vmem:[#allocation18_spill] sm:$0xff] %v5080_v53  ;;  %v5083_v54 = vld [vmem:[%s4881_s19 + $0xf1] sm:$0xff]  ;;  %v5091_v56 = vld [vmem:[%s4881_s19 + $0x109] sm:$0xff] }
  0x27   : > { %298 = vperm.xlu1 %4803, %v4918_v11   ;;  %293 = vperm.xlu0 %4802, %v4921_v12   ;;  %7093 = vst [vmem:[#allocation19_spill] sm:$0xff] %v5083_v54  ;;  %v5088_v55 = vld [vmem:[%s4881_s19 + $0x111] sm:$0xff]  ;;  %7095 = vst [vmem:[#allocation21_spill] sm:$0xff] %v5091_v56  ;;  %v5096_v57 = vld [vmem:[%s4881_s19 + $0x129] sm:$0xff] }
  0x28   : > { %7094 = vst [vmem:[#allocation20_spill] sm:$0xff] %v5088_v55  ;;  %7096 = vst [vmem:[#allocation22_spill] sm:$0xff] %v5096_v57  ;;  %v5099_v58 = vld [vmem:[%s4881_s19 + $0x121] sm:$0xff]  ;;  %v5107_v60 = vld [vmem:[%s4881_s19 + $0x139] sm:$0xff] }
  0x29   : > { %7097 = vst [vmem:[#allocation23_spill] sm:$0xff] %v5099_v58  ;;  %v5104_v59 = vld [vmem:[%s4881_s19 + $0x141] sm:$0xff]  ;;  %7099 = vst [vmem:[#allocation25_spill] sm:$0xff] %v5107_v60  ;;  %v5112_v61 = vld [vmem:[%s4881_s19 + $0x159] sm:$0xff] }
  0x2a   : > { %7098 = vst [vmem:[#allocation24_spill] sm:$0xff] %v5104_v59  ;;  %7100 = vst [vmem:[#allocation26_spill] sm:$0xff] %v5112_v61  ;;  %v5115_v62 = vld [vmem:[%s4881_s19 + $0x151] sm:$0xff]  ;;  %v5123_v0 = vld [vmem:[%s4881_s19 + $0x169] sm:$0xff] }
  0x2b   : > { %308 = vperm.xlu1 %4803, %v4926_v13   ;;  %303 = vperm.xlu0 %4802, %v4929_v14   ;;  %7101 = vst [vmem:[#allocation27_spill] sm:$0xff] %v5115_v62  ;;  %v5120_v63 = vld [vmem:[%s4881_s19 + $0x171] sm:$0xff]  ;;  %7103 = vst [vmem:[#allocation29_spill] sm:$0xff] %v5123_v0 }
  0x2c   : > { %7102 = vst [vmem:[#allocation28_spill] sm:$0xff] %v5120_v63 }
  0x2f   : > { %318 = vperm.xlu1 %4803, %v4934_v15   ;;  %313 = vperm.xlu0 %4802, %v4937_v16  }
  0x33   : > { %328 = vperm.xlu1 %4803, %v4942_v17   ;;  %323 = vperm.xlu0 %4802, %v4945_v18  }
  0x37   : > { %338 = vperm.xlu1 %4803, %v4950_v19   ;;  %333 = vperm.xlu0 %4802, %v4953_v20  }
  0x3b   : > { %348 = vperm.xlu1 %4803, %v4958_v21   ;;  %343 = vperm.xlu0 %4802, %v4961_v22  }
  0x3f   : > { %358 = vperm.xlu1 %4803, %v4966_v23   ;;  %353 = vperm.xlu0 %4802, %v4969_v24  }
  0x43   : > { %368 = vperm.xlu1 %4803, %v4974_v25   ;;  %363 = vperm.xlu0 %4802, %v4977_v26  }
  0x47   : > { %378 = vperm.xlu1 %4803, %v4982_v27   ;;  %373 = vperm.xlu0 %4802, %v4985_v28  }
  0x4b   : > { %388 = vperm.xlu1 %4803, %v4990_v29   ;;  %383 = vperm.xlu0 %4802, %v4993_v30  }
  0x4f   : > { %398 = vperm.xlu1 %4803, %v4998_v31   ;;  %393 = vperm.xlu0 %4802, %v5001_v32  }
  0x53   : > { %512 = vperm.xlu1 %4803, %v472_v33   ;;  %507 = vperm.xlu0 %4802, %v471_v34   ;;  %v736_v33 = vld [vmem:[%s4881_s19 + $0xa] sm:$0xff]  ;;  %v735_v34 = vld [vmem:[%s4881_s19 + $0x2] sm:$0xff] }
  0x57   : > { %522 = vperm.xlu1 %4803, %v5008_v35   ;;  %517 = vperm.xlu0 %4802, %v5011_v36  }
  0x5b   : > { %532 = vperm.xlu1 %4803, %v5016_v37   ;;  %527 = vperm.xlu0 %4802, %v5019_v38  }
  0x5f   : > { %542 = vperm.xlu1 %4803, %v5024_v39   ;;  %537 = vperm.xlu0 %4802, %v5027_v40   ;;  %v5309_v39 = vld [vmem:[%s4881_s19 + $0x16a] sm:$0xff] }
  0x63   : > { %552 = vperm.xlu1 %4803, %v5032_v41   ;;  %547 = vperm.xlu0 %4802, %v5035_v42   ;;  %v5294_v42 = vld [vmem:[%s4881_s19 + $0x15a] sm:$0xff]  ;;  %v5297_v41 = vld [vmem:[%s4881_s19 + $0x152] sm:$0xff] }
  0x64   : > { %7138 = vst [vmem:[#allocation64_spill] sm:$0xff] %v5294_v42  ;;  %7139 = vst [vmem:[#allocation65_spill] sm:$0xff] %v5297_v41 }
  0x67   : > { %562 = vperm.xlu1 %4803, %v5040_v43   ;;  %557 = vperm.xlu0 %4802, %v5043_v44   ;;  %v5282_v44 = vld [vmem:[%s4881_s19 + $0x142] sm:$0xff]  ;;  %v5285_v43 = vld [vmem:[%s4881_s19 + $0x13a] sm:$0xff] }
  0x68   : > { %7136 = vst [vmem:[#allocation62_spill] sm:$0xff] %v5282_v44  ;;  %7137 = vst [vmem:[#allocation63_spill] sm:$0xff] %v5285_v43 }
  0x6b   : > { %572 = vperm.xlu1 %4803, %v5048_v45   ;;  %567 = vperm.xlu0 %4802, %v5051_v46   ;;  %v5270_v46 = vld [vmem:[%s4881_s19 + $0x12a] sm:$0xff]  ;;  %v5273_v45 = vld [vmem:[%s4881_s19 + $0x122] sm:$0xff] }
  0x6c   : > { %7134 = vst [vmem:[#allocation60_spill] sm:$0xff] %v5270_v46  ;;  %7135 = vst [vmem:[#allocation61_spill] sm:$0xff] %v5273_v45 }
  0x6f   : > { %582 = vperm.xlu1 %4803, %v5056_v47   ;;  %577 = vperm.xlu0 %4802, %v5059_v48   ;;  %v5258_v48 = vld [vmem:[%s4881_s19 + $0x112] sm:$0xff]  ;;  %v5261_v47 = vld [vmem:[%s4881_s19 + $0x10a] sm:$0xff] }
  0x70   : > { %7132 = vst [vmem:[#allocation58_spill] sm:$0xff] %v5258_v48  ;;  %7133 = vst [vmem:[#allocation59_spill] sm:$0xff] %v5261_v47 }
  0x73   : > { %592 = vperm.xlu1 %4803, %v5064_v49   ;;  %587 = vperm.xlu0 %4802, %v5067_v50   ;;  %v5246_v50 = vld [vmem:[%s4881_s19 + $0xfa] sm:$0xff]  ;;  %v5249_v49 = vld [vmem:[%s4881_s19 + $0xf2] sm:$0xff] }
  0x74   : > { %7130 = vst [vmem:[#allocation56_spill] sm:$0xff] %v5246_v50  ;;  %7131 = vst [vmem:[#allocation57_spill] sm:$0xff] %v5249_v49 }
  0x77   : > { %602 = vperm.xlu1 %4803, %v5072_v51   ;;  %597 = vperm.xlu0 %4802, %v5075_v52   ;;  %v5234_v52 = vld [vmem:[%s4881_s19 + $0xe2] sm:$0xff]  ;;  %v5237_v51 = vld [vmem:[%s4881_s19 + $0xda] sm:$0xff] }
  0x78   : > { %7128 = vst [vmem:[#allocation54_spill] sm:$0xff] %v5234_v52  ;;  %7129 = vst [vmem:[#allocation55_spill] sm:$0xff] %v5237_v51 }
  0x7b   : > { %612 = vperm.xlu1 %4803, %v5080_v53   ;;  %607 = vperm.xlu0 %4802, %v5083_v54   ;;  %v5222_v54 = vld [vmem:[%s4881_s19 + $0xca] sm:$0xff]  ;;  %v5225_v53 = vld [vmem:[%s4881_s19 + $0xc2] sm:$0xff] }
  0x7c   : > { %7126 = vst [vmem:[#allocation52_spill] sm:$0xff] %v5222_v54  ;;  %7127 = vst [vmem:[#allocation53_spill] sm:$0xff] %v5225_v53 }
  0x7f   : > { %622 = vperm.xlu1 %4803, %v5088_v55   ;;  %617 = vperm.xlu0 %4802, %v5091_v56   ;;  %v5210_v56 = vld [vmem:[%s4881_s19 + $0xb2] sm:$0xff]  ;;  %v5213_v55 = vld [vmem:[%s4881_s19 + $0xaa] sm:$0xff] }
  0x80   : > { %7124 = vst [vmem:[#allocation50_spill] sm:$0xff] %v5210_v56  ;;  %7125 = vst [vmem:[#allocation51_spill] sm:$0xff] %v5213_v55 }
  0x83   : > { %632 = vperm.xlu1 %4803, %v5096_v57   ;;  %627 = vperm.xlu0 %4802, %v5099_v58   ;;  %v5198_v58 = vld [vmem:[%s4881_s19 + $0x9a] sm:$0xff]  ;;  %v5201_v57 = vld [vmem:[%s4881_s19 + $0x92] sm:$0xff] }
  0x84   : > { %7122 = vst [vmem:[#allocation48_spill] sm:$0xff] %v5198_v58  ;;  %7123 = vst [vmem:[#allocation49_spill] sm:$0xff] %v5201_v57 }
  0x87   : > { %642 = vperm.xlu1 %4803, %v5104_v59   ;;  %637 = vperm.xlu0 %4802, %v5107_v60   ;;  %v5189_v59 = vld [vmem:[%s4881_s19 + $0x7a] sm:$0xff] }
  0x88   : > { %7121 = vst [vmem:[#allocation47_spill] sm:$0xff] %v5189_v59 }
  0x8b   : > { %652 = vperm.xlu1 %4803, %v5112_v61   ;;  %647 = vperm.xlu0 %4802, %v5115_v62   ;;  %v5138_v61 = vld [vmem:[%s4881_s19 + $0x22] sm:$0xff] }
  0x8c   : > { %7108 = vst [vmem:[#allocation34_spill] sm:$0xff] %v5138_v61 }
  0x8e   : > { %v5125_v2 = vpop.permute.xlu1 %253  ;;  %v5127_v4 = vpop.permute.xlu0 %243 }
  0x8f   : > { %7104 = vst [vmem:[#allocation30_spill] sm:$0xff] %v5125_v2  ;;  %7105 = vst [vmem:[#allocation31_spill] sm:$0xff] %v5127_v4  ;;  %662 = vperm.xlu1 %4803, %v5120_v63   ;;  %657 = vperm.xlu0 %4802, %v5123_v0   ;;  %v5141_v2 = vld [vmem:[%s4881_s19 + $0x1a] sm:$0xff]  ;;  %v5186_v0 = vld [vmem:[%s4881_s19 + $0x82] sm:$0xff] }
  0x90   : > { %7109 = vst [vmem:[#allocation35_spill] sm:$0xff] %v5141_v2  ;;  %7120 = vst [vmem:[#allocation46_spill] sm:$0xff] %v5186_v0 }
  0x92   : > { %v5133_v60 = vpop.permute.xlu1 %258  ;;  %v5135_v62 = vpop.permute.xlu0 %248 }
  0x93   : > { %7106 = vst [vmem:[#allocation32_spill] sm:$0xff] %v5133_v60  ;;  %7107 = vst [vmem:[#allocation33_spill] sm:$0xff] %v5135_v62  ;;  %776 = vperm.xlu1 %4803, %v736_v33   ;;  %771 = vperm.xlu0 %4802, %v735_v34   ;;  %v5150_v60 = vld [vmem:[%s4881_s19 + $0x3a] sm:$0xff]  ;;  %v5153_v62 = vld [vmem:[%s4881_s19 + $0x32] sm:$0xff] }
  0x94   : > { %7112 = vst [vmem:[#allocation38_spill] sm:$0xff] %v5150_v60  ;;  %7113 = vst [vmem:[#allocation39_spill] sm:$0xff] %v5153_v62 }
  0x96   : > { %v5143_v4 = vpop.permute.xlu1 %268  ;;  %v5145_v63 = vpop.permute.xlu0 %263 }
  0x97   : > { %7110 = vst [vmem:[#allocation36_spill] sm:$0xff] %v5143_v4  ;;  %7111 = vst [vmem:[#allocation37_spill] sm:$0xff] %v5145_v63  ;;  %786 = vperm.xlu1 %4803, %v5138_v61   ;;  %781 = vperm.xlu0 %4802, %v5141_v2   ;;  %v5162_v63 = vld [vmem:[%s4881_s19 + $0x52] sm:$0xff]  ;;  %v5165_v4 = vld [vmem:[%s4881_s19 + $0x4a] sm:$0xff] }
  0x98   : > { %7116 = vst [vmem:[#allocation42_spill] sm:$0xff] %v5162_v63  ;;  %7117 = vst [vmem:[#allocation43_spill] sm:$0xff] %v5165_v4 }
  0x9a   : > { %v5155_v33 = vpop.permute.xlu1 %278  ;;  %v5157_v34 = vpop.permute.xlu0 %273 }
  0x9b   : > { %7114 = vst [vmem:[#allocation40_spill] sm:$0xff] %v5155_v33  ;;  %7115 = vst [vmem:[#allocation41_spill] sm:$0xff] %v5157_v34  ;;  %796 = vperm.xlu1 %4803, %v5150_v60   ;;  %791 = vperm.xlu0 %4802, %v5153_v62   ;;  %v5174_v34 = vld [vmem:[%s4881_s19 + $0x6a] sm:$0xff]  ;;  %v5177_v33 = vld [vmem:[%s4881_s19 + $0x62] sm:$0xff] }
  0x9c   : > { %7118 = vst [vmem:[#allocation44_spill] sm:$0xff] %v5174_v34  ;;  %7119 = vst [vmem:[#allocation45_spill] sm:$0xff] %v5177_v33 }
  0x9e   : > { %v5167_v61 = vpop.permute.xlu1 %288  ;;  %v5169_v2 = vpop.permute.xlu0 %283 }
  0x9f   : > { %806 = vperm.xlu1 %4803, %v5162_v63   ;;  %801 = vperm.xlu0 %4802, %v5165_v4  }
  0xa2   : > { %v5179_v60 = vpop.permute.xlu1 %298  ;;  %v5181_v62 = vpop.permute.xlu0 %293 }
  0xa3   : > { %816 = vperm.xlu1 %4803, %v5174_v34   ;;  %811 = vperm.xlu0 %4802, %v5177_v33  }
  0xa6   : > { %v5191_v63 = vpop.permute.xlu1 %308  ;;  %v5193_v4 = vpop.permute.xlu0 %303 }
  0xa7   : > { %826 = vperm.xlu1 %4803, %v5186_v0   ;;  %821 = vperm.xlu0 %4802, %v5189_v59  }
  0xaa   : > { %v5203_v34 = vpop.permute.xlu1 %318  ;;  %v5205_v33 = vpop.permute.xlu0 %313 }
  0xab   : > { %836 = vperm.xlu1 %4803, %v5198_v58   ;;  %831 = vperm.xlu0 %4802, %v5201_v57  }
  0xae   : > { %v5215_v0 = vpop.permute.xlu1 %328  ;;  %v5217_v59 = vpop.permute.xlu0 %323 }
  0xaf   : > { %846 = vperm.xlu1 %4803, %v5210_v56   ;;  %841 = vperm.xlu0 %4802, %v5213_v55  }
  0xb2   : > { %v5227_v58 = vpop.permute.xlu1 %338  ;;  %v5229_v57 = vpop.permute.xlu0 %333 }
  0xb3   : > { %856 = vperm.xlu1 %4803, %v5222_v54   ;;  %851 = vperm.xlu0 %4802, %v5225_v53  }
  0xb6   : > { %v5239_v56 = vpop.permute.xlu1 %348  ;;  %v5241_v55 = vpop.permute.xlu0 %343 }
  0xb7   : > { %866 = vperm.xlu1 %4803, %v5234_v52   ;;  %861 = vperm.xlu0 %4802, %v5237_v51  }
  0xba   : > { %v5251_v54 = vpop.permute.xlu1 %358  ;;  %v5253_v53 = vpop.permute.xlu0 %353 }
  0xbb   : > { %876 = vperm.xlu1 %4803, %v5246_v50   ;;  %871 = vperm.xlu0 %4802, %v5249_v49  }
  0xbe   : > { %v5263_v52 = vpop.permute.xlu1 %368  ;;  %v5265_v51 = vpop.permute.xlu0 %363 }
  0xbf   : > { %886 = vperm.xlu1 %4803, %v5258_v48   ;;  %881 = vperm.xlu0 %4802, %v5261_v47  }
  0xc2   : > { %v5275_v50 = vpop.permute.xlu1 %378  ;;  %v5277_v49 = vpop.permute.xlu0 %373 }
  0xc3   : > { %896 = vperm.xlu1 %4803, %v5270_v46   ;;  %891 = vperm.xlu0 %4802, %v5273_v45   ;;  %v5306_v45 = vld [vmem:[%s4881_s19 + $0x172] sm:$0xff] }
  0xc6   : > { %v5287_v48 = vpop.permute.xlu1 %388  ;;  %v5289_v47 = vpop.permute.xlu0 %383 }
  0xc7   : > { %906 = vperm.xlu1 %4803, %v5282_v44   ;;  %901 = vperm.xlu0 %4802, %v5285_v43  }
  0xca   : > { %v5299_v40 = vpop.permute.xlu1 %398  ;;  %v5301_v46 = vpop.permute.xlu0 %393 }
  0xcb   : > { %916 = vperm.xlu1 %4803, %v5294_v42   ;;  %911 = vperm.xlu0 %4802, %v5297_v41  }
  0xce   : > { %v5311_v38 = vpop.permute.xlu1 %512  ;;  %v5313_v44 = vpop.permute.xlu0 %507 }
  0xcf   : > { %7140 = vst [vmem:[#allocation66_spill] sm:$0xff] %v5311_v38  ;;  %7141 = vst [vmem:[#allocation67_spill] sm:$0xff] %v5313_v44  ;;  %926 = vperm.xlu1 %4803, %v5306_v45   ;;  %921 = vperm.xlu0 %4802, %v5309_v39  }
  0xd2   : > { %v5317_v43 = vpop.permute.xlu1 %522  ;;  %v5319_v37 = vpop.permute.xlu0 %517 }
  0xd3   : > { %7142 = vst [vmem:[#allocation68_spill] sm:$0xff] %v5317_v43  ;;  %7143 = vst [vmem:[#allocation69_spill] sm:$0xff] %v5319_v37  ;;  %1041 = vperm.xlu1 %4803, %v4889_v3   ;;  %1036 = vperm.xlu0 %4802, %v4884_v1   ;;  %v5338_v1 = vld [vmem:[%s7013_s1] ss:$0 sm:$0xff] }
  0xd4   : > { %v416_v3 = vmul.f32 %v5338_v1, %v5167_v61 }
  0xd6   : > { %v5323_v41 = vpop.permute.xlu1 %532  ;;  %v5325_v42 = vpop.permute.xlu0 %527 }
  0xd7   : > { %7144 = vst [vmem:[#allocation70_spill] sm:$0xff] %v5323_v41  ;;  %7145 = vst [vmem:[#allocation71_spill] sm:$0xff] %v5325_v42  ;;  %1051 = vperm.xlu1 %4803, %v4894_v5   ;;  %1046 = vperm.xlu0 %4802, %v4897_v6   ;;  %v5345_v5 = vld [vmem:[%s7013_s1 + $0x1] ss:$0 sm:$0xff] }
  0xda   : > { %v5329_v44 = vpop.permute.xlu1 %542  ;;  %v5331_v38 = vpop.permute.xlu0 %537 }
  0xdb   : > { %7146 = vst [vmem:[#allocation72_spill] sm:$0xff] %v5329_v44  ;;  %7147 = vst [vmem:[#allocation73_spill] sm:$0xff] %v5331_v38  ;;  %1061 = vperm.xlu1 %4803, %v4902_v7   ;;  %1056 = vperm.xlu0 %4802, %v4905_v8   ;;  %v415_v7 = vmul.f32 %v5338_v1, %v5169_v2  ;;  %v418_v44 = vmul.f32 %v5338_v1, %v5179_v60 }
  0xdc   : > { %v417_v2 = vmul.f32 %v5338_v1, %v5181_v62  ;;  %v419_v62 = vmul.f32 %v5338_v1, %v5193_v4  ;;  %v421_v4 = vmul.f32 %v5338_v1, %v5205_v33  ;;  %v423_v33 = vmul.f32 %v5338_v1, %v5217_v59 }
  0xdd   : > { %v425_v59 = vmul.f32 %v5338_v1, %v5229_v57  ;;  %v427_v57 = vmul.f32 %v5338_v1, %v5241_v55  ;;  %v429_v55 = vmul.f32 %v5338_v1, %v5253_v53  ;;  %v431_v53 = vmul.f32 %v5338_v1, %v5265_v51 }
  0xde   : > { %v553_v6 = vpop.permute.xlu1 %552  ;;  %v548_v37 = vpop.permute.xlu0 %547  ;;  %v433_v51 = vmul.f32 %v5338_v1, %v5277_v49  ;;  %v435_v49 = vmul.f32 %v5338_v1, %v5289_v47  ;;  %v437_v47 = vmul.f32 %v5338_v1, %v5301_v46 }
  0xdf   : > { %v680_v8 = vmul.f32 %v5345_v5, %v553_v6  ;;  %v679_v43 = vmul.f32 %v5345_v5, %v548_v37  ;;  %1071 = vperm.xlu1 %4803, %v4910_v9   ;;  %1066 = vperm.xlu0 %4802, %v4913_v10  }
  0xe1   : > { %v5353_v38 = vadd.f32 %v680_v8, %v416_v3  ;;  %v5355_v61 = vadd.f32 %v679_v43, %v415_v7  ;;  %v420_v43 = vmul.f32 %v5338_v1, %v5191_v63 }
  0xe2   : > { %v563_v42 = vpop.permute.xlu1 %562  ;;  %v558_v41 = vpop.permute.xlu0 %557 }
  0xe3   : > { %v682_v6 = vmul.f32 %v5345_v5, %v563_v42  ;;  %v681_v37 = vmul.f32 %v5345_v5, %v558_v41  ;;  %1081 = vperm.xlu1 %4803, %v4918_v11   ;;  %1076 = vperm.xlu0 %4802, %v4921_v12  }
  0xe5   : > { %v5365_v9 = vadd.f32 %v682_v6, %v418_v44  ;;  %v5367_v10 = vadd.f32 %v681_v37, %v417_v2  ;;  %v422_v44 = vmul.f32 %v5338_v1, %v5203_v34  ;;  %v424_v34 = vmul.f32 %v5338_v1, %v5215_v0 }
  0xe6   : > { %v573_v60 = vpop.permute.xlu1 %572  ;;  %v568_v3 = vpop.permute.xlu0 %567  ;;  %v426_v0 = vmul.f32 %v5338_v1, %v5227_v58  ;;  %v428_v58 = vmul.f32 %v5338_v1, %v5239_v56  ;;  %v430_v56 = vmul.f32 %v5338_v1, %v5251_v54  ;;  %v432_v54 = vmul.f32 %v5338_v1, %v5263_v52 }
  0xe7   : > { %v684_v42 = vmul.f32 %v5345_v5, %v573_v60  ;;  %v683_v41 = vmul.f32 %v5345_v5, %v568_v3  ;;  %1091 = vperm.xlu1 %4803, %v4926_v13   ;;  %1086 = vperm.xlu0 %4802, %v4929_v14   ;;  %v434_v52 = vmul.f32 %v5338_v1, %v5275_v50 }
  0xe8   : > { %v436_v50 = vmul.f32 %v5338_v1, %v5287_v48  ;;  %v438_v48 = vmul.f32 %v5338_v1, %v5299_v40 }
  0xe9   : > { %v5377_v11 = vadd.f32 %v684_v42, %v420_v43  ;;  %v5379_v12 = vadd.f32 %v683_v41, %v419_v62 }
  0xea   : > { %v583_v63 = vpop.permute.xlu1 %582  ;;  %v578_v7 = vpop.permute.xlu0 %577 }
  0xeb   : > { %v686_v8 = vmul.f32 %v5345_v5, %v583_v63  ;;  %v685_v2 = vmul.f32 %v5345_v5, %v578_v7  ;;  %1101 = vperm.xlu1 %4803, %v4934_v15   ;;  %1096 = vperm.xlu0 %4802, %v4937_v16  }
  0xed   : > { %v5389_v13 = vadd.f32 %v686_v8, %v422_v44  ;;  %v5391_v14 = vadd.f32 %v685_v2, %v421_v4 }
  0xee   : > { %v593_v6 = vpop.permute.xlu1 %592  ;;  %v588_v37 = vpop.permute.xlu0 %587 }
  0xef   : > { %v688_v43 = vmul.f32 %v5345_v5, %v593_v6  ;;  %v687_v60 = vmul.f32 %v5345_v5, %v588_v37  ;;  %1111 = vperm.xlu1 %4803, %v4942_v17   ;;  %1106 = vperm.xlu0 %4802, %v4945_v18  }
  0xf1   : > { %v5401_v15 = vadd.f32 %v688_v43, %v424_v34  ;;  %v5403_v16 = vadd.f32 %v687_v60, %v423_v33 }
  0xf2   : > { %v603_v3 = vpop.permute.xlu1 %602  ;;  %v598_v62 = vpop.permute.xlu0 %597 }
  0xf3   : > { %v690_v42 = vmul.f32 %v5345_v5, %v603_v3  ;;  %v689_v41 = vmul.f32 %v5345_v5, %v598_v62  ;;  %1121 = vperm.xlu1 %4803, %v4950_v19   ;;  %1116 = vperm.xlu0 %4802, %v4953_v20  }
  0xf5   : > { %v5413_v17 = vadd.f32 %v690_v42, %v426_v0  ;;  %v5415_v18 = vadd.f32 %v689_v41, %v425_v59 }
  0xf6   : > { %v613_v44 = vpop.permute.xlu1 %612  ;;  %v608_v63 = vpop.permute.xlu0 %607 }
  0xf7   : > { %v692_v7 = vmul.f32 %v5345_v5, %v613_v44  ;;  %v691_v4 = vmul.f32 %v5345_v5, %v608_v63  ;;  %1131 = vperm.xlu1 %4803, %v4958_v21   ;;  %1126 = vperm.xlu0 %4802, %v4961_v22  }
  0xf9   : > { %v5425_v19 = vadd.f32 %v692_v7, %v428_v58  ;;  %v5427_v20 = vadd.f32 %v691_v4, %v427_v57 }
  0xfa   : > { %v623_v8 = vpop.permute.xlu1 %622  ;;  %v618_v2 = vpop.permute.xlu0 %617 }
  0xfb   : > { %v694_v34 = vmul.f32 %v5345_v5, %v623_v8  ;;  %v693_v6 = vmul.f32 %v5345_v5, %v618_v2  ;;  %1141 = vperm.xlu1 %4803, %v4966_v23   ;;  %1136 = vperm.xlu0 %4802, %v4969_v24  }
  0xfd   : > { %v5437_v21 = vadd.f32 %v694_v34, %v430_v56  ;;  %v5439_v22 = vadd.f32 %v693_v6, %v429_v55  ;;  %v7151_v55 = vld [vmem:[#allocation3_spill] sm:$0xff] }
  0xfe   : > { %v633_v37 = vpop.permute.xlu1 %632  ;;  %v628_v33 = vpop.permute.xlu0 %627 }
  0xff   : > { %v696_v43 = vmul.f32 %v5345_v5, %v633_v37  ;;  %v695_v60 = vmul.f32 %v5345_v5, %v628_v33  ;;  %1151 = vperm.xlu1 %4803, %v4974_v25   ;;  %1146 = vperm.xlu0 %4802, %v4977_v26   ;;  %v7153_v37 = vld [vmem:[#allocation5_spill] sm:$0xff] }
 0x101   : > { %v5449_v23 = vadd.f32 %v696_v43, %v432_v54  ;;  %v5451_v24 = vadd.f32 %v695_v60, %v431_v53  ;;  %v7152_v54 = vld [vmem:[#allocation4_spill] sm:$0xff]  ;;  %v7154_v60 = vld [vmem:[#allocation6_spill] sm:$0xff] }
 0x102   : > { %v643_v0 = vpop.permute.xlu1 %642  ;;  %v638_v3 = vpop.permute.xlu0 %637 }
 0x103   : > { %v698_v62 = vmul.f32 %v5345_v5, %v643_v0  ;;  %v697_v59 = vmul.f32 %v5345_v5, %v638_v3  ;;  %1161 = vperm.xlu1 %4803, %v4982_v27   ;;  %1156 = vperm.xlu0 %4802, %v4985_v28  }
 0x105   : > { %v5461_v25 = vadd.f32 %v698_v62, %v434_v52  ;;  %v5463_v26 = vadd.f32 %v697_v59, %v433_v51  ;;  %v7155_v52 = vld [vmem:[#allocation7_spill] sm:$0xff] }
 0x106   : > { %v653_v42 = vpop.permute.xlu1 %652  ;;  %v648_v41 = vpop.permute.xlu0 %647 }
 0x107   : > { %v700_v58 = vmul.f32 %v5345_v5, %v653_v42  ;;  %v699_v27 = vmul.f32 %v5345_v5, %v648_v41  ;;  %1171 = vperm.xlu1 %4803, %v4990_v29   ;;  %1166 = vperm.xlu0 %4802, %v4993_v30   ;;  %v5486_v29 = vld [vmem:[%s4881_s19 + $0x188] sm:$0xff]  ;;  %v5489_v30 = vld [vmem:[%s4881_s19 + $0x180] sm:$0xff]  ;;  %v7156_v42 = vld [vmem:[#allocation8_spill] sm:$0xff] }
 0x108   : > { %v7157_v41 = vld [vmem:[#allocation9_spill] sm:$0xff] }
 0x109   : > { %v5473_v28 = vadd.f32 %v700_v58, %v436_v50  ;;  %v5475_v44 = vadd.f32 %v699_v27, %v435_v49 }
 0x10a   : > { %v663_v63 = vpop.permute.xlu1 %662  ;;  %v658_v57 = vpop.permute.xlu0 %657 }
 0x10b   : > { %v702_v7 = vmul.f32 %v5345_v5, %v663_v63  ;;  %v701_v4 = vmul.f32 %v5345_v5, %v658_v57  ;;  %1181 = vperm.xlu1 %4803, %v4998_v31   ;;  %1176 = vperm.xlu0 %4802, %v5001_v32   ;;  %v7150_v5 = vld [vmem:[#allocation2_spill] sm:$0xff]  ;;  %v7159_v57 = vld [vmem:[#allocation11_spill] sm:$0xff] }
 0x10c   : > { %v7158_v63 = vld [vmem:[#allocation10_spill] sm:$0xff] }
 0x10d   : > { %v5491_v56 = vadd.f32 %v702_v7, %v438_v48  ;;  %v5493_v40 = vadd.f32 %v701_v4, %v437_v47 }
 0x10e   : > { %v5495_v8 = vpop.permute.xlu1 %776  ;;  %v5497_v2 = vpop.permute.xlu0 %771 }
 0x10f   : > { %1191 = vperm.xlu1 %4803, %v5486_v29   ;;  %1186 = vperm.xlu0 %4802, %v5489_v30  }
 0x112   : > { %v5501_v46 = vpop.permute.xlu1 %786  ;;  %v5503_v31 = vpop.permute.xlu0 %781 }
 0x113   : > { %7148 = vst [vmem:[#allocation74_spill] sm:$0xff] %v5501_v46  ;;  %7149 = vst [vmem:[#allocation75_spill] sm:$0xff] %v5503_v31  ;;  %1305 = vperm.xlu1 %4803, %v5008_v35   ;;  %1300 = vperm.xlu0 %4802, %v5011_v36   ;;  %v5522_v35 = vld [vmem:[%s7013_s1 + $0x2] ss:$0 sm:$0xff] }
 0x116   : > { %v5507_v32 = vpop.permute.xlu1 %796  ;;  %v5509_v1 = vpop.permute.xlu0 %791 }
 0x117   : > { %1315 = vperm.xlu1 %4803, %v7150_v5   ;;  %1310 = vperm.xlu0 %4802, %v7151_v55   ;;  %v7160_v55 = vld [vmem:[#allocation12_spill] sm:$0xff] }
 0x11a   : > { %v5513_v34 = vpop.permute.xlu1 %806  ;;  %v5515_v6 = vpop.permute.xlu0 %801 }
 0x11b   : > { %1325 = vperm.xlu1 %4803, %v7152_v54   ;;  %1320 = vperm.xlu0 %4802, %v7153_v37   ;;  %v7161_v54 = vld [vmem:[#allocation13_spill] sm:$0xff] }
 0x11e   : > { %v817_v36 = vpop.permute.xlu1 %816  ;;  %v812_v33 = vpop.permute.xlu0 %811 }
 0x11f   : > { %v944_v53 = vmul.f32 %v5522_v35, %v817_v36  ;;  %v943_v43 = vmul.f32 %v5522_v35, %v812_v33  ;;  %1335 = vperm.xlu1 %4803, %v7154_v60   ;;  %1330 = vperm.xlu0 %4802, %v7155_v52   ;;  %v7163_v60 = vld [vmem:[#allocation15_spill] sm:$0xff] }
 0x121   : > { %v5529_v0 = vadd.f32 %v944_v53, %v5353_v38  ;;  %v5532_v3 = vadd.f32 %v943_v43, %v5355_v61  ;;  %v7162_v43 = vld [vmem:[#allocation14_spill] sm:$0xff] }
 0x122   : > { %v827_v51 = vpop.permute.xlu1 %826  ;;  %v822_v62 = vpop.permute.xlu0 %821 }
 0x123   : > { %v946_v59 = vmul.f32 %v5522_v35, %v827_v51  ;;  %v945_v50 = vmul.f32 %v5522_v35, %v822_v62  ;;  %1345 = vperm.xlu1 %4803, %v7156_v42   ;;  %1340 = vperm.xlu0 %4802, %v7157_v41   ;;  %v7165_v42 = vld [vmem:[#allocation17_spill] sm:$0xff] }
 0x125   : > { %v5539_v49 = vadd.f32 %v946_v59, %v5365_v9  ;;  %v5542_v58 = vadd.f32 %v945_v50, %v5367_v10  ;;  %v7164_v50 = vld [vmem:[#allocation16_spill] sm:$0xff] }
 0x126   : > { %v837_v38 = vpop.permute.xlu1 %836  ;;  %v832_v27 = vpop.permute.xlu0 %831 }
 0x127   : > { %v948_v61 = vmul.f32 %v5522_v35, %v837_v38  ;;  %v947_v48 = vmul.f32 %v5522_v35, %v832_v27  ;;  %1355 = vperm.xlu1 %4803, %v7158_v63   ;;  %1350 = vperm.xlu0 %4802, %v7159_v57   ;;  %v7167_v63 = vld [vmem:[#allocation19_spill] sm:$0xff] }
 0x129   : > { %v5549_v47 = vadd.f32 %v948_v61, %v5377_v11  ;;  %v5552_v7 = vadd.f32 %v947_v48, %v5379_v12  ;;  %v7166_v48 = vld [vmem:[#allocation18_spill] sm:$0xff] }
 0x12a   : > { %v847_v9 = vpop.permute.xlu1 %846  ;;  %v842_v4 = vpop.permute.xlu0 %841 }
 0x12b   : > { %v950_v10 = vmul.f32 %v5522_v35, %v847_v9  ;;  %v949_v5 = vmul.f32 %v5522_v35, %v842_v4  ;;  %1365 = vperm.xlu1 %4803, %v7160_v55   ;;  %1360 = vperm.xlu0 %4802, %v7161_v54   ;;  %v7169_v55 = vld [vmem:[#allocation21_spill] sm:$0xff] }
 0x12d   : > { %v5559_v37 = vadd.f32 %v950_v10, %v5389_v13  ;;  %v5562_v36 = vadd.f32 %v949_v5, %v5391_v14  ;;  %v7168_v5 = vld [vmem:[#allocation20_spill] sm:$0xff] }
 0x12e   : > { %v857_v11 = vpop.permute.xlu1 %856  ;;  %v852_v33 = vpop.permute.xlu0 %851 }
 0x12f   : > { %v952_v12 = vmul.f32 %v5522_v35, %v857_v11  ;;  %v951_v53 = vmul.f32 %v5522_v35, %v852_v33  ;;  %1375 = vperm.xlu1 %4803, %v7162_v43   ;;  %1370 = vperm.xlu0 %4802, %v7163_v60   ;;  %v7171_v43 = vld [vmem:[#allocation23_spill] sm:$0xff] }
 0x131   : > { %v5569_v52 = vadd.f32 %v952_v12, %v5401_v15  ;;  %v5572_v51 = vadd.f32 %v951_v53, %v5403_v16  ;;  %v7170_v53 = vld [vmem:[#allocation22_spill] sm:$0xff] }
 0x132   : > { %v867_v13 = vpop.permute.xlu1 %866  ;;  %v862_v62 = vpop.permute.xlu0 %861 }
 0x133   : > { %v954_v14 = vmul.f32 %v5522_v35, %v867_v13  ;;  %v953_v59 = vmul.f32 %v5522_v35, %v862_v62  ;;  %1385 = vperm.xlu1 %4803, %v7164_v50   ;;  %1380 = vperm.xlu0 %4802, %v7165_v42   ;;  %v7173_v50 = vld [vmem:[#allocation25_spill] sm:$0xff] }
 0x135   : > { %v5579_v41 = vadd.f32 %v954_v14, %v5413_v17  ;;  %v5582_v38 = vadd.f32 %v953_v59, %v5415_v18  ;;  %v7172_v59 = vld [vmem:[#allocation24_spill] sm:$0xff] }
 0x136   : > { %v877_v15 = vpop.permute.xlu1 %876  ;;  %v872_v27 = vpop.permute.xlu0 %871 }
 0x137   : > { %v956_v16 = vmul.f32 %v5522_v35, %v877_v15  ;;  %v955_v61 = vmul.f32 %v5522_v35, %v872_v27  ;;  %1395 = vperm.xlu1 %4803, %v7166_v48   ;;  %1390 = vperm.xlu0 %4802, %v7167_v63   ;;  %v7175_v48 = vld [vmem:[#allocation27_spill] sm:$0xff] }
 0x139   : > { %v5589_v57 = vadd.f32 %v956_v16, %v5425_v19  ;;  %v5592_v9 = vadd.f32 %v955_v61, %v5427_v20  ;;  %v7174_v61 = vld [vmem:[#allocation26_spill] sm:$0xff] }
 0x13a   : > { %v887_v17 = vpop.permute.xlu1 %886  ;;  %v882_v4 = vpop.permute.xlu0 %881 }
 0x13b   : > { %v958_v18 = vmul.f32 %v5522_v35, %v887_v17  ;;  %v957_v10 = vmul.f32 %v5522_v35, %v882_v4  ;;  %1405 = vperm.xlu1 %4803, %v7168_v5   ;;  %1400 = vperm.xlu0 %4802, %v7169_v55   ;;  %v7177_v5 = vld [vmem:[#allocation29_spill] sm:$0xff]  ;;  %v5639_v55 = vld [vmem:[%s4881_s19 + $0x189] sm:$0xff] }
 0x13d   : > { %v5599_v54 = vadd.f32 %v958_v18, %v5437_v21  ;;  %v5602_v11 = vadd.f32 %v957_v10, %v5439_v22  ;;  %v7176_v10 = vld [vmem:[#allocation28_spill] sm:$0xff] }
 0x13e   : > { %v897_v19 = vpop.permute.xlu1 %896  ;;  %v892_v33 = vpop.permute.xlu0 %891 }
 0x13f   : > { %v960_v20 = vmul.f32 %v5522_v35, %v897_v19  ;;  %v959_v12 = vmul.f32 %v5522_v35, %v892_v33  ;;  %1415 = vperm.xlu1 %4803, %v7170_v53   ;;  %1410 = vperm.xlu0 %4802, %v7171_v43   ;;  %v5642_v19 = vld [vmem:[%s4881_s19 + $0x181] sm:$0xff] }
 0x140   : > { %v7180_v53 = vld [vmem:[#allocation34_spill] sm:$0xff]  ;;  %v7181_v43 = vld [vmem:[#allocation35_spill] sm:$0xff] }
 0x141   : > { %v5609_v60 = vadd.f32 %v960_v20, %v5449_v23  ;;  %v5612_v13 = vadd.f32 %v959_v12, %v5451_v24 }
 0x142   : > { %v907_v21 = vpop.permute.xlu1 %906  ;;  %v902_v62 = vpop.permute.xlu0 %901 }
 0x143   : > { %v962_v22 = vmul.f32 %v5522_v35, %v907_v21  ;;  %v961_v14 = vmul.f32 %v5522_v35, %v902_v62  ;;  %1425 = vperm.xlu1 %4803, %v7172_v59   ;;  %1420 = vperm.xlu0 %4802, %v7173_v50   ;;  %v7182_v21 = vld [vmem:[#allocation38_spill] sm:$0xff]  ;;  %v7183_v62 = vld [vmem:[#allocation39_spill] sm:$0xff] }
 0x144   : > { %v7184_v59 = vld [vmem:[#allocation42_spill] sm:$0xff]  ;;  %v7185_v50 = vld [vmem:[#allocation43_spill] sm:$0xff] }
 0x145   : > { %v5619_v42 = vadd.f32 %v962_v22, %v5461_v25  ;;  %v5622_v23 = vadd.f32 %v961_v14, %v5463_v26 }
 0x146   : > { %v917_v24 = vpop.permute.xlu1 %916  ;;  %v912_v15 = vpop.permute.xlu0 %911 }
 0x147   : > { %v964_v27 = vmul.f32 %v5522_v35, %v917_v24  ;;  %v963_v16 = vmul.f32 %v5522_v35, %v912_v15  ;;  %1435 = vperm.xlu1 %4803, %v7174_v61   ;;  %1430 = vperm.xlu0 %4802, %v7175_v48   ;;  %v5677_v24 = vld [vmem:[%s7013_s1 + $0x3] ss:$0 sm:$0xff]  ;;  %v7186_v48 = vld [vmem:[#allocation44_spill] sm:$0xff] }
 0x149   : > { %v5629_v63 = vadd.f32 %v964_v27, %v5473_v28  ;;  %v5632_v25 = vadd.f32 %v963_v16, %v5475_v44 }
 0x14a   : > { %v927_v17 = vpop.permute.xlu1 %926  ;;  %v922_v26 = vpop.permute.xlu0 %921 }
 0x14b   : > { %v966_v4 = vmul.f32 %v5522_v35, %v927_v17  ;;  %v965_v18 = vmul.f32 %v5522_v35, %v922_v26  ;;  %1445 = vperm.xlu1 %4803, %v7176_v10   ;;  %1440 = vperm.xlu0 %4802, %v7177_v5   ;;  %v7187_v17 = vld [vmem:[#allocation45_spill] sm:$0xff] }
 0x14d   : > { %v5645_v28 = vadd.f32 %v966_v4, %v5491_v56  ;;  %v5648_v44 = vadd.f32 %v965_v18, %v5493_v40 }
 0x14e   : > { %v5650_v33 = vpop.permute.xlu1 %1041  ;;  %v5652_v20 = vpop.permute.xlu0 %1036 }
 0x14f   : > { %1455 = vperm.xlu1 %4803, %v5639_v55   ;;  %1450 = vperm.xlu0 %4802, %v5642_v19  }
 0x152   : > { %v5656_v35 = vpop.permute.xlu1 %1051  ;;  %v5658_v12 = vpop.permute.xlu0 %1046 }
 0x153   : > { %7178 = vst [vmem:[#allocation2_spill] sm:$0xff] %v5656_v35  ;;  %7179 = vst [vmem:[#allocation3_spill] sm:$0xff] %v5658_v12  ;;  %1569 = vperm.xlu1 %4803, %v7180_v53   ;;  %1564 = vperm.xlu0 %4802, %v7181_v43   ;;  %v7188_v43 = vld [vmem:[#allocation46_spill] sm:$0xff] }
 0x156   : > { %v5662_v56 = vpop.permute.xlu1 %1061  ;;  %v5664_v40 = vpop.permute.xlu0 %1056 }
 0x157   : > { %1579 = vperm.xlu1 %4803, %v7182_v21   ;;  %1574 = vperm.xlu0 %4802, %v7183_v62   ;;  %v7189_v21 = vld [vmem:[#allocation47_spill] sm:$0xff] }
 0x15a   : > { %v5668_v22 = vpop.permute.xlu1 %1071  ;;  %v5670_v14 = vpop.permute.xlu0 %1066 }
 0x15b   : > { %1589 = vperm.xlu1 %4803, %v7184_v59   ;;  %1584 = vperm.xlu0 %4802, %v7185_v50  }
 0x15e   : > { %v1082_v15 = vpop.permute.xlu1 %1081  ;;  %v1077_v27 = vpop.permute.xlu0 %1076 }
 0x15f   : > { %v1209_v16 = vmul.f32 %v5677_v24, %v1082_v15  ;;  %v1208_v61 = vmul.f32 %v5677_v24, %v1077_v27  ;;  %1599 = vperm.xlu1 %4803, %v7186_v48   ;;  %1594 = vperm.xlu0 %4802, %v7187_v17   ;;  %v7190_v27 = vld [vmem:[#allocation48_spill] sm:$0xff] }
 0x161   : > { %v5684_v26 = vadd.f32 %v1209_v16, %v5529_v0  ;;  %v5687_v4 = vadd.f32 %v1208_v61, %v5532_v3  ;;  %v7191_v16 = vld [vmem:[#allocation49_spill] sm:$0xff] }
 0x162   : > { %v1092_v18 = vpop.permute.xlu1 %1091  ;;  %v1087_v10 = vpop.permute.xlu0 %1086 }
 0x163   : > { %v1211_v5 = vmul.f32 %v5677_v24, %v1092_v18  ;;  %v1210_v53 = vmul.f32 %v5677_v24, %v1087_v10  ;;  %1609 = vperm.xlu1 %4803, %v7188_v43   ;;  %1604 = vperm.xlu0 %4802, %v7189_v21   ;;  %v7192_v10 = vld [vmem:[#allocation50_spill] sm:$0xff] }
 0x165   : > { %v5694_v62 = vadd.f32 %v1211_v5, %v5539_v49  ;;  %v5697_v59 = vadd.f32 %v1210_v53, %v5542_v58  ;;  %v7193_v5 = vld [vmem:[#allocation51_spill] sm:$0xff] }
 0x166   : > { %v1102_v0 = vpop.permute.xlu1 %1101  ;;  %v1097_v50 = vpop.permute.xlu0 %1096 }
 0x167   : > { %v1213_v3 = vmul.f32 %v5677_v24, %v1102_v0  ;;  %v1212_v15 = vmul.f32 %v5677_v24, %v1097_v50  ;;  %1619 = vperm.xlu1 %4803, %v7190_v27   ;;  %1614 = vperm.xlu0 %4802, %v7191_v16   ;;  %v7194_v50 = vld [vmem:[#allocation52_spill] sm:$0xff] }
 0x169   : > { %v5704_v61 = vadd.f32 %v1213_v3, %v5549_v47  ;;  %v5707_v48 = vadd.f32 %v1212_v15, %v5552_v7  ;;  %v7195_v3 = vld [vmem:[#allocation53_spill] sm:$0xff] }
 0x16a   : > { %v1112_v49 = vpop.permute.xlu1 %1111  ;;  %v1107_v17 = vpop.permute.xlu0 %1106 }
 0x16b   : > { %v1215_v58 = vmul.f32 %v5677_v24, %v1112_v49  ;;  %v1214_v18 = vmul.f32 %v5677_v24, %v1107_v17  ;;  %1629 = vperm.xlu1 %4803, %v7192_v10   ;;  %1624 = vperm.xlu0 %4802, %v7193_v5   ;;  %v7196_v17 = vld [vmem:[#allocation54_spill] sm:$0xff] }
 0x16d   : > { %v5714_v53 = vadd.f32 %v1215_v58, %v5559_v37  ;;  %v5717_v43 = vadd.f32 %v1214_v18, %v5562_v36  ;;  %v7197_v58 = vld [vmem:[#allocation55_spill] sm:$0xff] }
 0x16e   : > { %v1122_v47 = vpop.permute.xlu1 %1121  ;;  %v1117_v21 = vpop.permute.xlu0 %1116 }
 0x16f   : > { %v1217_v7 = vmul.f32 %v5677_v24, %v1122_v47  ;;  %v1216_v0 = vmul.f32 %v5677_v24, %v1117_v21  ;;  %1639 = vperm.xlu1 %4803, %v7194_v50   ;;  %1634 = vperm.xlu0 %4802, %v7195_v3   ;;  %v7198_v21 = vld [vmem:[#allocation56_spill] sm:$0xff] }
 0x171   : > { %v5724_v15 = vadd.f32 %v1217_v7, %v5569_v52  ;;  %v5727_v27 = vadd.f32 %v1216_v0, %v5572_v51  ;;  %v7199_v7 = vld [vmem:[#allocation57_spill] sm:$0xff] }
 0x172   : > { %v1132_v37 = vpop.permute.xlu1 %1131  ;;  %v1127_v16 = vpop.permute.xlu0 %1126 }
 0x173   : > { %v1219_v36 = vmul.f32 %v5677_v24, %v1132_v37  ;;  %v1218_v49 = vmul.f32 %v5677_v24, %v1127_v16  ;;  %1649 = vperm.xlu1 %4803, %v7196_v17   ;;  %1644 = vperm.xlu0 %4802, %v7197_v58   ;;  %v7200_v16 = vld [vmem:[#allocation58_spill] sm:$0xff] }
 0x175   : > { %v5734_v18 = vadd.f32 %v1219_v36, %v5579_v41  ;;  %v5737_v10 = vadd.f32 %v1218_v49, %v5582_v38  ;;  %v7201_v36 = vld [vmem:[#allocation59_spill] sm:$0xff] }
 0x176   : > { %v1142_v52 = vpop.permute.xlu1 %1141  ;;  %v1137_v5 = vpop.permute.xlu0 %1136 }
 0x177   : > { %v1221_v51 = vmul.f32 %v5677_v24, %v1142_v52  ;;  %v1220_v47 = vmul.f32 %v5677_v24, %v1137_v5  ;;  %1659 = vperm.xlu1 %4803, %v7198_v21   ;;  %1654 = vperm.xlu0 %4802, %v7199_v7   ;;  %v7202_v5 = vld [vmem:[#allocation60_spill] sm:$0xff] }
 0x179   : > { %v5744_v0 = vadd.f32 %v1221_v51, %v5589_v57  ;;  %v5747_v50 = vadd.f32 %v1220_v47, %v5592_v9  ;;  %v7203_v51 = vld [vmem:[#allocation61_spill] sm:$0xff] }
 0x17a   : > { %v1152_v41 = vpop.permute.xlu1 %1151  ;;  %v1147_v3 = vpop.permute.xlu0 %1146 }
 0x17b   : > { %v1223_v38 = vmul.f32 %v5677_v24, %v1152_v41  ;;  %v1222_v37 = vmul.f32 %v5677_v24, %v1147_v3  ;;  %1669 = vperm.xlu1 %4803, %v7200_v16   ;;  %1664 = vperm.xlu0 %4802, %v7201_v36   ;;  %v7204_v3 = vld [vmem:[#allocation62_spill] sm:$0xff] }
 0x17d   : > { %v5754_v49 = vadd.f32 %v1223_v38, %v5599_v54  ;;  %v5757_v17 = vadd.f32 %v1222_v37, %v5602_v11  ;;  %v7205_v38 = vld [vmem:[#allocation63_spill] sm:$0xff] }
 0x17e   : > { %v1162_v57 = vpop.permute.xlu1 %1161  ;;  %v1157_v58 = vpop.permute.xlu0 %1156 }
 0x17f   : > { %v1225_v9 = vmul.f32 %v5677_v24, %v1162_v57  ;;  %v1224_v52 = vmul.f32 %v5677_v24, %v1157_v58  ;;  %1679 = vperm.xlu1 %4803, %v7202_v5   ;;  %1674 = vperm.xlu0 %4802, %v7203_v51   ;;  %v7206_v58 = vld [vmem:[#allocation64_spill] sm:$0xff] }
 0x181   : > { %v5764_v47 = vadd.f32 %v1225_v9, %v5609_v60  ;;  %v5767_v21 = vadd.f32 %v1224_v52, %v5612_v13  ;;  %v7207_v9 = vld [vmem:[#allocation65_spill] sm:$0xff] }
 0x182   : > { %v1172_v54 = vpop.permute.xlu1 %1171  ;;  %v1167_v7 = vpop.permute.xlu0 %1166 }
 0x183   : > { %v1227_v11 = vmul.f32 %v5677_v24, %v1172_v54  ;;  %v1226_v41 = vmul.f32 %v5677_v24, %v1167_v7  ;;  %1689 = vperm.xlu1 %4803, %v7204_v3   ;;  %1684 = vperm.xlu0 %4802, %v7205_v38   ;;  %v5794_v7 = vld [vmem:[%s4881_s19 + $0x18a] sm:$0xff] }
 0x184   : > { %v4543_v38 = vld [vmem:[%s4881_s19 + $0x48] sm:$0xff] }
 0x185   : > { %v5774_v37 = vadd.f32 %v1227_v11, %v5619_v42  ;;  %v5777_v60 = vadd.f32 %v1226_v41, %v5622_v23 }
 0x186   : > { %v1182_v13 = vpop.permute.xlu1 %1181  ;;  %v1177_v16 = vpop.permute.xlu0 %1176 }
 0x187   : > { %v1229_v36 = vmul.f32 %v5677_v24, %v1182_v13  ;;  %v1228_v57 = vmul.f32 %v5677_v24, %v1177_v16  ;;  %1699 = vperm.xlu1 %4803, %v7206_v58   ;;  %1694 = vperm.xlu0 %4802, %v7207_v9  }
 0x189   : > { %v5784_v52 = vadd.f32 %v1229_v36, %v5629_v63  ;;  %v5787_v42 = vadd.f32 %v1228_v57, %v5632_v25  ;;  %v5797_v63 = vld [vmem:[%s4881_s19 + $0x182] sm:$0xff] }
 0x18a   : > { %v1192_v23 = vpop.permute.xlu1 %1191  ;;  %v1187_v5 = vpop.permute.xlu0 %1186  ;;  %v4546_v36 = vld [vmem:[%s4881_s19 + $0x68] sm:$0xff]  ;;  %v4545_v57 = vld [vmem:[%s4881_s19 + $0x60] sm:$0xff] }
 0x18b   : > { %v1231_v51 = vmul.f32 %v5677_v24, %v1192_v23  ;;  %v1230_v54 = vmul.f32 %v5677_v24, %v1187_v5  ;;  %1709 = vperm.xlu1 %4803, %v5306_v45   ;;  %1704 = vperm.xlu0 %4802, %v5309_v39   ;;  %v4542_v39 = vld [vmem:[%s4881_s19 + $0x38] sm:$0xff]  ;;  %v4541_v45 = vld [vmem:[%s4881_s19 + $0x30] sm:$0xff]  ;;  %v4548_v23 = vld [vmem:[%s4881_s19 + $0x80] sm:$0xff] }
 0x18c   : > { %v4547_v5 = vld [vmem:[%s4881_s19 + $0x78] sm:$0xff] }
 0x18d   : > { %v5800_v25 = vadd.f32 %v1231_v51, %v5645_v28  ;;  %v5803_v11 = vadd.f32 %v1230_v54, %v5648_v44  ;;  %v4544_v44 = vld [vmem:[%s4881_s19 + $0x50] sm:$0xff]  ;;  %v5834_v51 = vld [vmem:[%s7013_s1 + $0x4] ss:$0 sm:$0xff] }
 0x18e   : > { %v5805_v41 = vpop.permute.xlu1 %1305  ;;  %v5807_v24 = vpop.permute.xlu0 %1300 }
 0x18f   : > { %1719 = vperm.xlu1 %4803, %v5794_v7   ;;  %1714 = vperm.xlu0 %4802, %v5797_v63  }
 0x192   : > { %v5813_v3 = vpop.permute.xlu1 %1315  ;;  %v5815_v28 = vpop.permute.xlu0 %1310 }
 0x193   : > { %7208 = vst [vmem:[#allocation4_spill] sm:$0xff] %v5813_v3  ;;  %7209 = vst [vmem:[#allocation5_spill] sm:$0xff] %v5815_v28  ;;  %1834 = vperm.xlu1 %4803, %v4542_v39   ;;  %1829 = vperm.xlu0 %4802, %v4541_v45  }
 0x196   : > { %v5819_v13 = vpop.permute.xlu1 %1325  ;;  %v5821_v16 = vpop.permute.xlu0 %1320 }
 0x197   : > { %1844 = vperm.xlu1 %4803, %v4544_v44   ;;  %1839 = vperm.xlu0 %4802, %v4543_v38   ;;  %v4550_v38 = vld [vmem:[%s4881_s19 + $0x98] sm:$0xff] }
 0x19a   : > { %v5825_v58 = vpop.permute.xlu1 %1335  ;;  %v5827_v9 = vpop.permute.xlu0 %1330 }
 0x19b   : > { %7210 = vst [vmem:[#allocation6_spill] sm:$0xff] %v5825_v58  ;;  %7211 = vst [vmem:[#allocation7_spill] sm:$0xff] %v5827_v9  ;;  %1854 = vperm.xlu1 %4803, %v4546_v36   ;;  %1849 = vperm.xlu0 %4802, %v4545_v57   ;;  %v4549_v36 = vld [vmem:[%s4881_s19 + $0x90] sm:$0xff] }
 0x19e   : > { %v1346_v54 = vpop.permute.xlu1 %1345  ;;  %v1341_v39 = vpop.permute.xlu0 %1340 }
 0x19f   : > { %v1473_v45 = vmul.f32 %v5834_v51, %v1346_v54  ;;  %v1472_v44 = vmul.f32 %v5834_v51, %v1341_v39  ;;  %1864 = vperm.xlu1 %4803, %v4548_v23   ;;  %1859 = vperm.xlu0 %4802, %v4547_v5   ;;  %v4552_v23 = vld [vmem:[%s4881_s19 + $0xb0] sm:$0xff]  ;;  %v4551_v5 = vld [vmem:[%s4881_s19 + $0xa8] sm:$0xff] }
 0x1a1   : > { %v5841_v57 = vadd.f32 %v1473_v45, %v5684_v26  ;;  %v5844_v28 = vadd.f32 %v1472_v44, %v5687_v4 }
 0x1a2   : > { %v1356_v3 = vpop.permute.xlu1 %1355  ;;  %v1351_v12 = vpop.permute.xlu0 %1350 }
 0x1a3   : > { %v1475_v35 = vmul.f32 %v5834_v51, %v1356_v3  ;;  %v1474_v54 = vmul.f32 %v5834_v51, %v1351_v12  ;;  %1874 = vperm.xlu1 %4803, %v4550_v38   ;;  %1869 = vperm.xlu0 %4802, %v4549_v36   ;;  %v4554_v12 = vld [vmem:[%s4881_s19 + $0xc8] sm:$0xff]  ;;  %v4553_v38 = vld [vmem:[%s4881_s19 + $0xc0] sm:$0xff] }
 0x1a5   : > { %v5851_v39 = vadd.f32 %v1475_v35, %v5694_v62  ;;  %v5854_v26 = vadd.f32 %v1474_v54, %v5697_v59 }
 0x1a6   : > { %v1366_v4 = vpop.permute.xlu1 %1365  ;;  %v1361_v45 = vpop.permute.xlu0 %1360 }
 0x1a7   : > { %v1477_v44 = vmul.f32 %v5834_v51, %v1366_v4  ;;  %v1476_v3 = vmul.f32 %v5834_v51, %v1361_v45  ;;  %1884 = vperm.xlu1 %4803, %v4552_v23   ;;  %1879 = vperm.xlu0 %4802, %v4551_v5   ;;  %v4556_v23 = vld [vmem:[%s4881_s19 + $0xe0] sm:$0xff]  ;;  %v4555_v5 = vld [vmem:[%s4881_s19 + $0xd8] sm:$0xff] }
 0x1a9   : > { %v5861_v36 = vadd.f32 %v1477_v44, %v5704_v61  ;;  %v5864_v35 = vadd.f32 %v1476_v3, %v5707_v48 }
 0x1aa   : > { %v1376_v62 = vpop.permute.xlu1 %1375  ;;  %v1371_v59 = vpop.permute.xlu0 %1370 }
 0x1ab   : > { %v1479_v54 = vmul.f32 %v5834_v51, %v1376_v62  ;;  %v1478_v4 = vmul.f32 %v5834_v51, %v1371_v59  ;;  %1894 = vperm.xlu1 %4803, %v4554_v12   ;;  %1889 = vperm.xlu0 %4802, %v4553_v38   ;;  %v4558_v12 = vld [vmem:[%s4881_s19 + $0xf8] sm:$0xff]  ;;  %v4557_v38 = vld [vmem:[%s4881_s19 + $0xf0] sm:$0xff] }
 0x1ad   : > { %v5871_v45 = vadd.f32 %v1479_v54, %v5714_v53  ;;  %v5874_v61 = vadd.f32 %v1478_v4, %v5717_v43 }
 0x1ae   : > { %v1386_v48 = vpop.permute.xlu1 %1385  ;;  %v1381_v44 = vpop.permute.xlu0 %1380 }
 0x1af   : > { %v1481_v3 = vmul.f32 %v5834_v51, %v1386_v48  ;;  %v1480_v62 = vmul.f32 %v5834_v51, %v1381_v44  ;;  %1904 = vperm.xlu1 %4803, %v4556_v23   ;;  %1899 = vperm.xlu0 %4802, %v4555_v5   ;;  %v4560_v23 = vld [vmem:[%s4881_s19 + $0x110] sm:$0xff]  ;;  %v4559_v5 = vld [vmem:[%s4881_s19 + $0x108] sm:$0xff] }
 0x1b1   : > { %v5881_v59 = vadd.f32 %v1481_v3, %v5724_v15  ;;  %v5884_v53 = vadd.f32 %v1480_v62, %v5727_v27 }
 0x1b2   : > { %v1396_v43 = vpop.permute.xlu1 %1395  ;;  %v1391_v54 = vpop.permute.xlu0 %1390 }
 0x1b3   : > { %v1483_v4 = vmul.f32 %v5834_v51, %v1396_v43  ;;  %v1482_v48 = vmul.f32 %v5834_v51, %v1391_v54  ;;  %1914 = vperm.xlu1 %4803, %v4558_v12   ;;  %1909 = vperm.xlu0 %4802, %v4557_v38   ;;  %v4562_v12 = vld [vmem:[%s4881_s19 + $0x128] sm:$0xff]  ;;  %v4561_v38 = vld [vmem:[%s4881_s19 + $0x120] sm:$0xff] }
 0x1b5   : > { %v5891_v44 = vadd.f32 %v1483_v4, %v5734_v18  ;;  %v5894_v15 = vadd.f32 %v1482_v48, %v5737_v10 }
 0x1b6   : > { %v1406_v27 = vpop.permute.xlu1 %1405  ;;  %v1401_v3 = vpop.permute.xlu0 %1400 }
 0x1b7   : > { %v1485_v62 = vmul.f32 %v5834_v51, %v1406_v27  ;;  %v1484_v43 = vmul.f32 %v5834_v51, %v1401_v3  ;;  %1924 = vperm.xlu1 %4803, %v4560_v23   ;;  %1919 = vperm.xlu0 %4802, %v4559_v5   ;;  %v4564_v23 = vld [vmem:[%s4881_s19 + $0x140] sm:$0xff]  ;;  %v4563_v5 = vld [vmem:[%s4881_s19 + $0x138] sm:$0xff] }
 0x1b9   : > { %v5901_v54 = vadd.f32 %v1485_v62, %v5744_v0  ;;  %v5904_v18 = vadd.f32 %v1484_v43, %v5747_v50 }
 0x1ba   : > { %v1416_v10 = vpop.permute.xlu1 %1415  ;;  %v1411_v4 = vpop.permute.xlu0 %1410 }
 0x1bb   : > { %v1487_v48 = vmul.f32 %v5834_v51, %v1416_v10  ;;  %v1486_v27 = vmul.f32 %v5834_v51, %v1411_v4  ;;  %1934 = vperm.xlu1 %4803, %v4562_v12   ;;  %1929 = vperm.xlu0 %4802, %v4561_v38   ;;  %v4566_v12 = vld [vmem:[%s4881_s19 + $0x158] sm:$0xff]  ;;  %v4565_v38 = vld [vmem:[%s4881_s19 + $0x150] sm:$0xff] }
 0x1bd   : > { %v5911_v3 = vadd.f32 %v1487_v48, %v5754_v49  ;;  %v5914_v0 = vadd.f32 %v1486_v27, %v5757_v17 }
 0x1be   : > { %v1426_v50 = vpop.permute.xlu1 %1425  ;;  %v1421_v62 = vpop.permute.xlu0 %1420 }
 0x1bf   : > { %v1489_v43 = vmul.f32 %v5834_v51, %v1426_v50  ;;  %v1488_v10 = vmul.f32 %v5834_v51, %v1421_v62  ;;  %1944 = vperm.xlu1 %4803, %v4564_v23   ;;  %1939 = vperm.xlu0 %4802, %v4563_v5   ;;  %v4568_v50 = vld [vmem:[%s4881_s19 + $0x170] sm:$0xff]  ;;  %v4567_v62 = vld [vmem:[%s4881_s19 + $0x168] sm:$0xff] }
 0x1c1   : > { %v5921_v4 = vadd.f32 %v1489_v43, %v5764_v47  ;;  %v5924_v49 = vadd.f32 %v1488_v10, %v5767_v21 }
 0x1c2   : > { %v1436_v17 = vpop.permute.xlu1 %1435  ;;  %v1431_v48 = vpop.permute.xlu0 %1430 }
 0x1c3   : > { %v1491_v27 = vmul.f32 %v5834_v51, %v1436_v17  ;;  %v1490_v31 = vmul.f32 %v5834_v51, %v1431_v48  ;;  %1954 = vperm.xlu1 %4803, %v4566_v12   ;;  %1949 = vperm.xlu0 %4802, %v4565_v38   ;;  %v4572_v48 = vld [vmem:[%s4881_s19 + $0x1a0] sm:$0xff] }
 0x1c5   : > { %v5931_v23 = vadd.f32 %v1491_v27, %v5774_v37  ;;  %v5934_v47 = vadd.f32 %v1490_v31, %v5777_v60 }
 0x1c6   : > { %v1446_v21 = vpop.permute.xlu1 %1445  ;;  %v1441_v5 = vpop.permute.xlu0 %1440 }
 0x1c7   : > { %v1493_v43 = vmul.f32 %v5834_v51, %v1446_v21  ;;  %v1492_v10 = vmul.f32 %v5834_v51, %v1441_v5  ;;  %1964 = vperm.xlu1 %4803, %v4568_v50   ;;  %1959 = vperm.xlu0 %4802, %v4567_v62   ;;  %v4575_v21 = vld [vmem:[%s4881_s19 + $0x31] sm:$0xff] }
 0x1c9   : > { %v5939_v12 = vadd.f32 %v1493_v43, %v5784_v52  ;;  %v5942_v37 = vadd.f32 %v1492_v10, %v5787_v42  ;;  %v4571_v52 = vld [vmem:[%s4881_s19 + $0x198] sm:$0xff] }
 0x1ca   : > { %v1456_v38 = vpop.permute.xlu1 %1455  ;;  %v1451_v31 = vpop.permute.xlu0 %1450 }
 0x1cb   : > { %v1495_v60 = vmul.f32 %v5834_v51, %v1456_v38  ;;  %v1494_v17 = vmul.f32 %v5834_v51, %v1451_v31  ;;  %1974 = vperm.xlu1 %4803, %v5486_v29   ;;  %1969 = vperm.xlu0 %4802, %v5489_v30   ;;  %v4576_v29 = vld [vmem:[%s4881_s19 + $0x39] sm:$0xff]  ;;  %v4580_v38 = vld [vmem:[%s4881_s19 + $0x69] sm:$0xff]  ;;  %v4579_v31 = vld [vmem:[%s4881_s19 + $0x61] sm:$0xff] }
 0x1cd   : > { %v5951_v27 = vadd.f32 %v1495_v60, %v5800_v25  ;;  %v5954_v42 = vadd.f32 %v1494_v17, %v5803_v11  ;;  %v4578_v25 = vld [vmem:[%s4881_s19 + $0x51] sm:$0xff]  ;;  %v4577_v11 = vld [vmem:[%s4881_s19 + $0x49] sm:$0xff] }
 0x1ce   : > { %v5956_v50 = vpop.permute.xlu1 %1569  ;;  %v5958_v62 = vpop.permute.xlu0 %1564 }
 0x1cf   : > { %1984 = vperm.xlu1 %4803, %v4572_v48   ;;  %1979 = vperm.xlu0 %4802, %v4571_v52   ;;  %v4582_v48 = vld [vmem:[%s4881_s19 + $0x81] sm:$0xff]  ;;  %v4581_v52 = vld [vmem:[%s4881_s19 + $0x79] sm:$0xff] }
 0x1d2   : > { %v5962_v30 = vpop.permute.xlu1 %1579  ;;  %v5964_v5 = vpop.permute.xlu0 %1574 }
 0x1d3   : > { %7212 = vst [vmem:[#allocation8_spill] sm:$0xff] %v5962_v30  ;;  %7213 = vst [vmem:[#allocation9_spill] sm:$0xff] %v5964_v5  ;;  %2098 = vperm.xlu1 %4803, %v4576_v29   ;;  %2093 = vperm.xlu0 %4802, %v4575_v21   ;;  %v5983_v29 = vld [vmem:[%s7013_s1 + $0x5] ss:$0 sm:$0xff]  ;;  %v4584_v30 = vld [vmem:[%s4881_s19 + $0x99] sm:$0xff] }
 0x1d6   : > { %v5968_v43 = vpop.permute.xlu1 %1589  ;;  %v5970_v10 = vpop.permute.xlu0 %1584 }
 0x1d7   : > { %2108 = vperm.xlu1 %4803, %v4578_v25   ;;  %2103 = vperm.xlu0 %4802, %v4577_v11  }
 0x1da   : > { %v5974_v60 = vpop.permute.xlu1 %1599  ;;  %v5976_v17 = vpop.permute.xlu0 %1594 }
 0x1db   : > { %7214 = vst [vmem:[#allocation10_spill] sm:$0xff] %v5974_v60  ;;  %7215 = vst [vmem:[#allocation11_spill] sm:$0xff] %v5976_v17  ;;  %2118 = vperm.xlu1 %4803, %v4580_v38   ;;  %2113 = vperm.xlu0 %4802, %v4579_v31   ;;  %v4583_v38 = vld [vmem:[%s4881_s19 + $0x91] sm:$0xff] }
 0x1de   : > { %v1610_v21 = vpop.permute.xlu1 %1609  ;;  %v1605_v25 = vpop.permute.xlu0 %1604 }
 0x1df   : > { %v1737_v11 = vmul.f32 %v5983_v29, %v1610_v21  ;;  %v1736_v5 = vmul.f32 %v5983_v29, %v1605_v25  ;;  %2128 = vperm.xlu1 %4803, %v4582_v48   ;;  %2123 = vperm.xlu0 %4802, %v4581_v52   ;;  %v4586_v48 = vld [vmem:[%s4881_s19 + $0xb1] sm:$0xff]  ;;  %v4585_v52 = vld [vmem:[%s4881_s19 + $0xa9] sm:$0xff] }
 0x1e1   : > { %v5990_v31 = vadd.f32 %v1737_v11, %v5841_v57  ;;  %v5993_v46 = vadd.f32 %v1736_v5, %v5844_v28 }
 0x1e2   : > { %v1620_v17 = vpop.permute.xlu1 %1619  ;;  %v1615_v60 = vpop.permute.xlu0 %1614 }
 0x1e3   : > { %v1739_v9 = vmul.f32 %v5983_v29, %v1620_v17  ;;  %v1738_v21 = vmul.f32 %v5983_v29, %v1615_v60  ;;  %2138 = vperm.xlu1 %4803, %v4584_v30   ;;  %2133 = vperm.xlu0 %4802, %v4583_v38   ;;  %v4588_v30 = vld [vmem:[%s4881_s19 + $0xc9] sm:$0xff]  ;;  %v4587_v60 = vld [vmem:[%s4881_s19 + $0xc1] sm:$0xff] }
 0x1e5   : > { %v6000_v25 = vadd.f32 %v1739_v9, %v5851_v39  ;;  %v6003_v57 = vadd.f32 %v1738_v21, %v5854_v26 }
 0x1e6   : > { %v1630_v28 = vpop.permute.xlu1 %1629  ;;  %v1625_v5 = vpop.permute.xlu0 %1624 }
 0x1e7   : > { %v1741_v11 = vmul.f32 %v5983_v29, %v1630_v28  ;;  %v1740_v17 = vmul.f32 %v5983_v29, %v1625_v5  ;;  %2148 = vperm.xlu1 %4803, %v4586_v48   ;;  %2143 = vperm.xlu0 %4802, %v4585_v52   ;;  %v4590_v48 = vld [vmem:[%s4881_s19 + $0xe1] sm:$0xff]  ;;  %v4589_v52 = vld [vmem:[%s4881_s19 + $0xd9] sm:$0xff] }
 0x1e9   : > { %v6010_v38 = vadd.f32 %v1741_v11, %v5861_v36  ;;  %v6013_v9 = vadd.f32 %v1740_v17, %v5864_v35 }
 0x1ea   : > { %v1640_v39 = vpop.permute.xlu1 %1639  ;;  %v1635_v26 = vpop.permute.xlu0 %1634 }
 0x1eb   : > { %v1743_v21 = vmul.f32 %v5983_v29, %v1640_v39  ;;  %v1742_v28 = vmul.f32 %v5983_v29, %v1635_v26  ;;  %2158 = vperm.xlu1 %4803, %v4588_v30   ;;  %2153 = vperm.xlu0 %4802, %v4587_v60   ;;  %v4592_v30 = vld [vmem:[%s4881_s19 + $0xf9] sm:$0xff]  ;;  %v4591_v60 = vld [vmem:[%s4881_s19 + $0xf1] sm:$0xff] }
 0x1ed   : > { %v6020_v5 = vadd.f32 %v1743_v21, %v5871_v45  ;;  %v6023_v36 = vadd.f32 %v1742_v28, %v5874_v61 }
 0x1ee   : > { %v1650_v35 = vpop.permute.xlu1 %1649  ;;  %v1645_v11 = vpop.permute.xlu0 %1644 }
 0x1ef   : > { %v1745_v17 = vmul.f32 %v5983_v29, %v1650_v35  ;;  %v1744_v39 = vmul.f32 %v5983_v29, %v1645_v11  ;;  %2168 = vperm.xlu1 %4803, %v4590_v48   ;;  %2163 = vperm.xlu0 %4802, %v4589_v52   ;;  %v4594_v48 = vld [vmem:[%s4881_s19 + $0x111] sm:$0xff]  ;;  %v4593_v52 = vld [vmem:[%s4881_s19 + $0x109] sm:$0xff] }
 0x1f1   : > { %v6030_v26 = vadd.f32 %v1745_v17, %v5881_v59  ;;  %v6033_v45 = vadd.f32 %v1744_v39, %v5884_v53 }
 0x1f2   : > { %v1660_v61 = vpop.permute.xlu1 %1659  ;;  %v1655_v21 = vpop.permute.xlu0 %1654 }
 0x1f3   : > { %v1747_v28 = vmul.f32 %v5983_v29, %v1660_v61  ;;  %v1746_v35 = vmul.f32 %v5983_v29, %v1655_v21  ;;  %2178 = vperm.xlu1 %4803, %v4592_v30   ;;  %2173 = vperm.xlu0 %4802, %v4591_v60   ;;  %v4596_v30 = vld [vmem:[%s4881_s19 + $0x129] sm:$0xff]  ;;  %v4595_v60 = vld [vmem:[%s4881_s19 + $0x121] sm:$0xff] }
 0x1f5   : > { %v6040_v11 = vadd.f32 %v1747_v28, %v5891_v44  ;;  %v6043_v59 = vadd.f32 %v1746_v35, %v5894_v15 }
 0x1f6   : > { %v1670_v53 = vpop.permute.xlu1 %1669  ;;  %v1665_v17 = vpop.permute.xlu0 %1664 }
 0x1f7   : > { %v1749_v39 = vmul.f32 %v5983_v29, %v1670_v53  ;;  %v1748_v61 = vmul.f32 %v5983_v29, %v1665_v17  ;;  %2188 = vperm.xlu1 %4803, %v4594_v48   ;;  %2183 = vperm.xlu0 %4802, %v4593_v52   ;;  %v4598_v48 = vld [vmem:[%s4881_s19 + $0x141] sm:$0xff]  ;;  %v4597_v52 = vld [vmem:[%s4881_s19 + $0x139] sm:$0xff] }
 0x1f9   : > { %v6050_v21 = vadd.f32 %v1749_v39, %v5901_v54  ;;  %v6053_v44 = vadd.f32 %v1748_v61, %v5904_v18 }
 0x1fa   : > { %v1680_v15 = vpop.permute.xlu1 %1679  ;;  %v1675_v28 = vpop.permute.xlu0 %1674 }
 0x1fb   : > { %v1751_v35 = vmul.f32 %v5983_v29, %v1680_v15  ;;  %v1750_v53 = vmul.f32 %v5983_v29, %v1675_v28  ;;  %2198 = vperm.xlu1 %4803, %v4596_v30   ;;  %2193 = vperm.xlu0 %4802, %v4595_v60   ;;  %v4600_v30 = vld [vmem:[%s4881_s19 + $0x159] sm:$0xff]  ;;  %v4599_v60 = vld [vmem:[%s4881_s19 + $0x151] sm:$0xff] }
 0x1fd   : > { %v6060_v17 = vadd.f32 %v1751_v35, %v5911_v3  ;;  %v6063_v54 = vadd.f32 %v1750_v53, %v5914_v0 }
 0x1fe   : > { %v1690_v18 = vpop.permute.xlu1 %1689  ;;  %v1685_v39 = vpop.permute.xlu0 %1684 }
 0x1ff   : > { %v1753_v61 = vmul.f32 %v5983_v29, %v1690_v18  ;;  %v1752_v15 = vmul.f32 %v5983_v29, %v1685_v39  ;;  %2208 = vperm.xlu1 %4803, %v4598_v48   ;;  %2203 = vperm.xlu0 %4802, %v4597_v52   ;;  %v4602_v18 = vld [vmem:[%s4881_s19 + $0x171] sm:$0xff]  ;;  %v4601_v39 = vld [vmem:[%s4881_s19 + $0x169] sm:$0xff] }
 0x201   : > { %v6070_v28 = vadd.f32 %v1753_v61, %v5921_v4  ;;  %v6073_v3 = vadd.f32 %v1752_v15, %v5924_v49 }
 0x202   : > { %v1700_v0 = vpop.permute.xlu1 %1699  ;;  %v1695_v35 = vpop.permute.xlu0 %1694 }
 0x203   : > { %v1755_v53 = vmul.f32 %v5983_v29, %v1700_v0  ;;  %v1754_v58 = vmul.f32 %v5983_v29, %v1695_v35  ;;  %2218 = vperm.xlu1 %4803, %v4600_v30   ;;  %2213 = vperm.xlu0 %4802, %v4599_v60   ;;  %v4606_v35 = vld [vmem:[%s4881_s19 + $0x1a1] sm:$0xff] }
 0x205   : > { %v6080_v48 = vadd.f32 %v1755_v53, %v5931_v23  ;;  %v6083_v4 = vadd.f32 %v1754_v58, %v5934_v47 }
 0x206   : > { %v1710_v49 = vpop.permute.xlu1 %1709  ;;  %v1705_v52 = vpop.permute.xlu0 %1704 }
 0x207   : > { %v1757_v61 = vmul.f32 %v5983_v29, %v1710_v49  ;;  %v1756_v15 = vmul.f32 %v5983_v29, %v1705_v52  ;;  %2228 = vperm.xlu1 %4803, %v4602_v18   ;;  %2223 = vperm.xlu0 %4802, %v4601_v39   ;;  %v4609_v49 = vld [vmem:[%s4881_s19 + $0x32] sm:$0xff] }
 0x209   : > { %v6088_v30 = vadd.f32 %v1757_v61, %v5939_v12  ;;  %v6091_v23 = vadd.f32 %v1756_v15, %v5942_v37  ;;  %v4605_v12 = vld [vmem:[%s4881_s19 + $0x199] sm:$0xff] }
 0x20a   : > { %v1720_v60 = vpop.permute.xlu1 %1719  ;;  %v1715_v58 = vpop.permute.xlu0 %1714 }
 0x20b   : > { %v1759_v47 = vmul.f32 %v5983_v29, %v1720_v60  ;;  %v1758_v0 = vmul.f32 %v5983_v29, %v1715_v58  ;;  %2238 = vperm.xlu1 %4803, %v5639_v55   ;;  %2233 = vperm.xlu0 %4802, %v5642_v19   ;;  %v4610_v55 = vld [vmem:[%s4881_s19 + $0x3a] sm:$0xff]  ;;  %v4614_v60 = vld [vmem:[%s4881_s19 + $0x6a] sm:$0xff]  ;;  %v4613_v58 = vld [vmem:[%s4881_s19 + $0x62] sm:$0xff] }
 0x20d   : > { %v6100_v53 = vadd.f32 %v1759_v47, %v5951_v27  ;;  %v6103_v37 = vadd.f32 %v1758_v0, %v5954_v42  ;;  %v4612_v27 = vld [vmem:[%s4881_s19 + $0x52] sm:$0xff]  ;;  %v4611_v42 = vld [vmem:[%s4881_s19 + $0x4a] sm:$0xff] }
 0x20e   : > { %v6105_v18 = vpop.permute.xlu1 %1834  ;;  %v6107_v39 = vpop.permute.xlu0 %1829 }
 0x20f   : > { %2248 = vperm.xlu1 %4803, %v4606_v35   ;;  %2243 = vperm.xlu0 %4802, %v4605_v12   ;;  %v4616_v35 = vld [vmem:[%s4881_s19 + $0x82] sm:$0xff]  ;;  %v4615_v12 = vld [vmem:[%s4881_s19 + $0x7a] sm:$0xff] }
 0x212   : > { %v6111_v19 = vpop.permute.xlu1 %1844  ;;  %v6113_v52 = vpop.permute.xlu0 %1839 }
 0x213   : > { %7216 = vst [vmem:[#allocation12_spill] sm:$0xff] %v6111_v19  ;;  %7217 = vst [vmem:[#allocation13_spill] sm:$0xff] %v6113_v52  ;;  %2362 = vperm.xlu1 %4803, %v4610_v55   ;;  %2357 = vperm.xlu0 %4802, %v4609_v49   ;;  %v6132_v55 = vld [vmem:[%s7013_s1 + $0x6] ss:$0 sm:$0xff]  ;;  %v4618_v19 = vld [vmem:[%s4881_s19 + $0x9a] sm:$0xff] }
 0x216   : > { %v6117_v61 = vpop.permute.xlu1 %1854  ;;  %v6119_v15 = vpop.permute.xlu0 %1849 }
 0x217   : > { %7218 = vst [vmem:[#allocation14_spill] sm:$0xff] %v6117_v61  ;;  %7219 = vst [vmem:[#allocation15_spill] sm:$0xff] %v6119_v15  ;;  %2372 = vperm.xlu1 %4803, %v4612_v27   ;;  %2367 = vperm.xlu0 %4802, %v4611_v42  }
 0x21a   : > { %v6123_v47 = vpop.permute.xlu1 %1864  ;;  %v6125_v0 = vpop.permute.xlu0 %1859 }
 0x21b   : > { %7220 = vst [vmem:[#allocation16_spill] sm:$0xff] %v6123_v47  ;;  %7221 = vst [vmem:[#allocation17_spill] sm:$0xff] %v6125_v0  ;;  %2382 = vperm.xlu1 %4803, %v4614_v60   ;;  %2377 = vperm.xlu0 %4802, %v4613_v58   ;;  %v4617_v60 = vld [vmem:[%s4881_s19 + $0x92] sm:$0xff] }
 0x21e   : > { %v1875_v49 = vpop.permute.xlu1 %1874  ;;  %v1870_v27 = vpop.permute.xlu0 %1869 }
 0x21f   : > { %v2002_v42 = vmul.f32 %v6132_v55, %v1875_v49  ;;  %v2001_v52 = vmul.f32 %v6132_v55, %v1870_v27  ;;  %2392 = vperm.xlu1 %4803, %v4616_v35   ;;  %2387 = vperm.xlu0 %4802, %v4615_v12   ;;  %v4621_v35 = vld [vmem:[%s4881_s19 + $0xc2] sm:$0xff]  ;;  %v4619_v12 = vld [vmem:[%s4881_s19 + $0xaa] sm:$0xff] }
 0x221   : > { %v6139_v58 = vadd.f32 %v2002_v42, %v5990_v31  ;;  %v6142_v0 = vadd.f32 %v2001_v52, %v5993_v46 }
 0x222   : > { %v1885_v47 = vpop.permute.xlu1 %1884  ;;  %v1880_v15 = vpop.permute.xlu0 %1879 }
 0x223   : > { %v2004_v61 = vmul.f32 %v6132_v55, %v1885_v47  ;;  %v2003_v49 = vmul.f32 %v6132_v55, %v1880_v15  ;;  %2402 = vperm.xlu1 %4803, %v4618_v19   ;;  %2397 = vperm.xlu0 %4802, %v4617_v60   ;;  %v4625_v19 = vld [vmem:[%s4881_s19 + $0xf2] sm:$0xff]  ;;  %v4623_v15 = vld [vmem:[%s4881_s19 + $0xda] sm:$0xff] }
 0x225   : > { %v6149_v27 = vadd.f32 %v2004_v61, %v6000_v25  ;;  %v6152_v31 = vadd.f32 %v2003_v49, %v6003_v57 }
 0x226   : > { %v1895_v46 = vpop.permute.xlu1 %1894  ;;  %v1890_v52 = vpop.permute.xlu0 %1889 }
 0x227   : > { %7222 = vst [vmem:[#allocation18_spill] sm:$0xff] %v6149_v27  ;;  %7223 = vst [vmem:[#allocation19_spill] sm:$0xff] %v6152_v31  ;;  %v2006_v42 = vmul.f32 %v6132_v55, %v1895_v46  ;;  %v2005_v47 = vmul.f32 %v6132_v55, %v1890_v52  ;;  %2417 = vperm.xlu1 %4803, %v4621_v35   ;;  %2407 = vperm.xlu0 %4802, %v4619_v12   ;;  %v4629_v35 = vld [vmem:[%s4881_s19 + $0x122] sm:$0xff]  ;;  %v4627_v12 = vld [vmem:[%s4881_s19 + $0x10a] sm:$0xff] }
 0x229   : > { %v6159_v60 = vadd.f32 %v2006_v42, %v6010_v38  ;;  %v6162_v25 = vadd.f32 %v2005_v47, %v6013_v9 }
 0x22a   : > { %v1905_v57 = vpop.permute.xlu1 %1904  ;;  %v1900_v61 = vpop.permute.xlu0 %1899 }
 0x22b   : > { %7224 = vst [vmem:[#allocation20_spill] sm:$0xff] %v6159_v60  ;;  %7225 = vst [vmem:[#allocation21_spill] sm:$0xff] %v6162_v25  ;;  %v2008_v49 = vmul.f32 %v6132_v55, %v1905_v57  ;;  %v2007_v46 = vmul.f32 %v6132_v55, %v1900_v61  ;;  %2437 = vperm.xlu1 %4803, %v4625_v19   ;;  %2427 = vperm.xlu0 %4802, %v4623_v15   ;;  %v4633_v57 = vld [vmem:[%s4881_s19 + $0x152] sm:$0xff]  ;;  %v4631_v19 = vld [vmem:[%s4881_s19 + $0x13a] sm:$0xff] }
 0x22c   : > { %v4628_v60 = vld [vmem:[%s4881_s19 + $0x112] sm:$0xff] }
 0x22d   : > { %v6169_v52 = vadd.f32 %v2008_v49, %v6020_v5  ;;  %v6172_v38 = vadd.f32 %v2007_v46, %v6023_v36 }
 0x22e   : > { %v1915_v9 = vpop.permute.xlu1 %1914  ;;  %v1910_v42 = vpop.permute.xlu0 %1909 }
 0x22f   : > { %7226 = vst [vmem:[#allocation22_spill] sm:$0xff] %v6169_v52  ;;  %7227 = vst [vmem:[#allocation23_spill] sm:$0xff] %v6172_v38  ;;  %v2010_v47 = vmul.f32 %v6132_v55, %v1915_v9  ;;  %v2009_v25 = vmul.f32 %v6132_v55, %v1910_v42  ;;  %2457 = vperm.xlu1 %4803, %v4629_v35   ;;  %2447 = vperm.xlu0 %4802, %v4627_v12   ;;  %v4635_v35 = vld [vmem:[%s4881_s19 + $0x16a] sm:$0xff]  ;;  %v7249_v38 = vld [vmem:[#allocation73_spill] sm:$0xff] }
 0x231   : > { %v6179_v15 = vadd.f32 %v2010_v47, %v6030_v26  ;;  %v6182_v5 = vadd.f32 %v2009_v25, %v6033_v45  ;;  %v4620_v47 = vld [vmem:[%s4881_s19 + $0xb2] sm:$0xff] }
 0x232   : > { %v1925_v36 = vpop.permute.xlu1 %1924  ;;  %v1920_v61 = vpop.permute.xlu0 %1919 }
 0x233   : > { %7228 = vst [vmem:[#allocation24_spill] sm:$0xff] %v6179_v15  ;;  %7229 = vst [vmem:[#allocation25_spill] sm:$0xff] %v6182_v5  ;;  %v2012_v49 = vmul.f32 %v6132_v55, %v1925_v36  ;;  %v2011_v46 = vmul.f32 %v6132_v55, %v1920_v61  ;;  %2477 = vperm.xlu1 %4803, %v4633_v57   ;;  %2467 = vperm.xlu0 %4802, %v4631_v19   ;;  %v4639_v57 = vld [vmem:[%s4881_s19 + $0x19a] sm:$0xff]  ;;  %v7248_v15 = vld [vmem:[#allocation72_spill] sm:$0xff] }
 0x234   : > { %v7247_v5 = vld [vmem:[#allocation41_spill] sm:$0xff] }
 0x235   : > { %v6188_v12 = vadd.f32 %v2012_v49, %v6040_v11  ;;  %v6191_v26 = vadd.f32 %v2011_v46, %v6043_v59  ;;  %v7235_v46 = vld [vmem:[#allocation31_spill] sm:$0xff] }
 0x236   : > { %v1935_v9 = vpop.permute.xlu1 %1934  ;;  %v1930_v45 = vpop.permute.xlu0 %1929 }
 0x237   : > { %7230 = vst [vmem:[#allocation26_spill] sm:$0xff] %v6188_v12  ;;  %7231 = vst [vmem:[#allocation27_spill] sm:$0xff] %v6191_v26  ;;  %v2014_v25 = vmul.f32 %v6132_v55, %v1935_v9  ;;  %v2013_v42 = vmul.f32 %v6132_v55, %v1930_v45  ;;  %2497 = vperm.xlu1 %4803, %v5797_v63   ;;  %2487 = vperm.xlu0 %4802, %v4635_v35   ;;  %v6209_v63 = vld [vmem:[%s7013_s1] ss:$0 sm:$0xff]  ;;  %v4624_v35 = vld [vmem:[%s4881_s19 + $0xe2] sm:$0xff] }
 0x238   : > { %7234 = vst [vmem:[#allocation34_spill] sm:$0xff] %v6209_v63  ;;  %v4622_v9 = vld [vmem:[%s4881_s19 + $0xca] sm:$0xff] }
 0x239   : > { %v6199_v19 = vadd.f32 %v2014_v25, %v6050_v21  ;;  %v6202_v11 = vadd.f32 %v2013_v42, %v6053_v44  ;;  %v407_v21 = vmul.f32 %v6209_v63, %v7235_v46  ;;  %v7236_v44 = vld [vmem:[#allocation33_spill] sm:$0xff]  ;;  %v7237_v25 = vld [vmem:[#allocation36_spill] sm:$0xff]  ;;  %v6230_v46 = vld [vmem:[%s7013_s1 + $0x1] ss:$0 sm:$0xff] }
 0x23a   : > { %v1945_v59 = vpop.permute.xlu1 %1944  ;;  %v1940_v36 = vpop.permute.xlu0 %1939  ;;  %v408_v45 = vmul.f32 %v6209_v63, %v7236_v44  ;;  %v412_v42 = vmul.f32 %v6209_v63, %v7237_v25  ;;  %7241 = vst [vmem:[#allocation39_spill] sm:$0xff] %v6230_v46  ;;  %v7243_v25 = vld [vmem:[#allocation67_spill] sm:$0xff]  ;;  %v7246_v12 = vld [vmem:[#allocation40_spill] sm:$0xff]  ;;  %v677_v52 = vmul.f32 %v6230_v46, %v7249_v38 }
 0x23b   : > { %7232 = vst [vmem:[#allocation28_spill] sm:$0xff] %v6199_v19  ;;  %7233 = vst [vmem:[#allocation29_spill] sm:$0xff] %v6202_v11  ;;  %v2016_v61 = vmul.f32 %v6132_v55, %v1945_v59  ;;  %v2015_v49 = vmul.f32 %v6132_v55, %v1940_v36  ;;  %2412 = vperm.xlu1 %4803, %v4620_v47   ;;  %2507 = vperm.xlu0 %4802, %v4639_v57   ;;  %v7240_v57 = vld [vmem:[#allocation37_spill] sm:$0xff]  ;;  %v7242_v11 = vld [vmem:[#allocation66_spill] sm:$0xff] }
 0x23c   : > { %v411_v36 = vmul.f32 %v6209_v63, %v7240_v57  ;;  %v672_v44 = vmul.f32 %v6230_v46, %v7242_v11  ;;  %v414_v11 = vmul.f32 %v6209_v63, %v7246_v12 }
 0x23d   : > { %v6220_v59 = vadd.f32 %v2016_v61, %v6060_v17  ;;  %v6223_v47 = vadd.f32 %v2015_v49, %v6063_v54  ;;  %v671_v17 = vmul.f32 %v6230_v46, %v7243_v25  ;;  %v7244_v61 = vld [vmem:[#allocation70_spill] sm:$0xff]  ;;  %v413_v25 = vmul.f32 %v6209_v63, %v7247_v5 }
 0x23e   : > { %v676_v54 = vmul.f32 %v6230_v46, %v7244_v61  ;;  %v1955_v49 = vpop.permute.xlu1 %1954  ;;  %v678_v61 = vmul.f32 %v6230_v46, %v7248_v15  ;;  %v704_v38 = vadd.f32 %v672_v44, %v408_v45  ;;  %v4630_v45 = vld [vmem:[%s4881_s19 + $0x12a] sm:$0xff] }
 0x23f   : > { %7238 = vst [vmem:[#allocation35_spill] sm:$0xff] %v6220_v59  ;;  %7239 = vst [vmem:[#allocation38_spill] sm:$0xff] %v6223_v47  ;;  %v1950_v47 = vpop.permute.xlu0 %1949  ;;  %v7245_v59 = vld [vmem:[#allocation71_spill] sm:$0xff]  ;;  %v2018_v19 = vmul.f32 %v6132_v55, %v1955_v49  ;;  %2432 = vperm.xlu1 %4803, %v4624_v35   ;;  %2422 = vperm.xlu0 %4802, %v4622_v9   ;;  %v703_v9 = vadd.f32 %v671_v17, %v407_v21 }
 0x240   : > { %v675_v57 = vmul.f32 %v6230_v46, %v7245_v59  ;;  %v2017_v26 = vmul.f32 %v6132_v55, %v1950_v47  ;;  %v4626_v59 = vld [vmem:[%s4881_s19 + $0xfa] sm:$0xff]  ;;  %v6255_v47 = vld [vmem:[%s7013_s1 + $0x2] ss:$0 sm:$0xff]  ;;  %v708_v49 = vadd.f32 %v676_v54, %v412_v42 }
 0x241   : > { %v936_v35 = vmul.f32 %v6255_v47, %v5495_v8  ;;  %v935_v12 = vmul.f32 %v6255_v47, %v5497_v2  ;;  %v6262_v5 = vadd.f32 %v2018_v19, %v6070_v28  ;;  %v940_v63 = vmul.f32 %v6255_v47, %v5507_v32  ;;  %v4632_v21 = vld [vmem:[%s4881_s19 + $0x142] sm:$0xff] }
 0x242   : > { %v6265_v15 = vadd.f32 %v2017_v26, %v6073_v3  ;;  %v1965_v46 = vpop.permute.xlu1 %1964  ;;  %v707_v8 = vadd.f32 %v675_v57, %v411_v36  ;;  %v710_v28 = vadd.f32 %v678_v61, %v414_v11  ;;  %v709_v3 = vadd.f32 %v677_v52, %v413_v25  ;;  %v6274_v26 = vld [vmem:[%s7013_s1 + $0x3] ss:$0 sm:$0xff]  ;;  %v4634_v57 = vld [vmem:[%s4881_s19 + $0x15a] sm:$0xff] }
 0x243   : > { %v1960_v31 = vpop.permute.xlu0 %1959  ;;  %v2020_v27 = vmul.f32 %v6132_v55, %v1965_v46  ;;  %2452 = vperm.xlu1 %4803, %v4628_v60   ;;  %2442 = vperm.xlu0 %4802, %v4626_v59   ;;  %v1201_v19 = vmul.f32 %v6274_v26, %v5650_v33  ;;  %v1200_v32 = vmul.f32 %v6274_v26, %v5652_v20 }
 0x244   : > { %v2019_v2 = vmul.f32 %v6132_v55, %v1960_v31  ;;  %v968_v42 = vadd.f32 %v936_v35, %v704_v38  ;;  %v967_v36 = vadd.f32 %v935_v12, %v703_v9  ;;  %v972_v52 = vadd.f32 %v940_v63, %v708_v49 }
 0x245   : > { %v6283_v31 = vadd.f32 %v2020_v27, %v6080_v48  ;;  %v939_v46 = vmul.f32 %v6255_v47, %v5509_v1  ;;  %v1465_v33 = vmul.f32 %v5834_v51, %v5805_v41  ;;  %v1464_v20 = vmul.f32 %v5834_v51, %v5807_v24  ;;  %v4636_v24 = vld [vmem:[%s4881_s19 + $0x172] sm:$0xff] }
 0x246   : > { %v6286_v60 = vadd.f32 %v2019_v2, %v6083_v4  ;;  %v1975_v44 = vpop.permute.xlu1 %1974  ;;  %v942_v48 = vmul.f32 %v6255_v47, %v5513_v34  ;;  %v941_v1 = vmul.f32 %v6255_v47, %v5515_v6  ;;  %v1233_v63 = vadd.f32 %v1201_v19, %v968_v42  ;;  %v4640_v2 = vld [vmem:[%s4881_s19 + $0x1a2] sm:$0xff] }
 0x247   : > { %v1970_v17 = vpop.permute.xlu0 %1969  ;;  %v2022_v4 = vmul.f32 %v6132_v55, %v1975_v44  ;;  %2472 = vperm.xlu1 %4803, %v4632_v21   ;;  %2462 = vperm.xlu0 %4802, %v4630_v45   ;;  %v1232_v54 = vadd.f32 %v1200_v32, %v967_v36  ;;  %v1729_v41 = vmul.f32 %v5983_v29, %v5956_v50 }
 0x248   : > { %v2021_v27 = vmul.f32 %v6132_v55, %v1970_v17  ;;  %v1205_v11 = vmul.f32 %v6274_v26, %v5662_v56  ;;  %v1728_v34 = vmul.f32 %v5983_v29, %v5958_v62  ;;  %v1204_v6 = vmul.f32 %v6274_v26, %v5664_v40 }
 0x249   : > { %v6309_v25 = vadd.f32 %v2022_v4, %v6088_v30  ;;  %v1497_v59 = vadd.f32 %v1465_v33, %v1233_v63  ;;  %v1496_v50 = vadd.f32 %v1464_v20, %v1232_v54  ;;  %v1994_v35 = vmul.f32 %v6132_v55, %v6105_v18  ;;  %v6327_v18 = vld [vmem:[%s7013_s1 + $0x7] ss:$0 sm:$0xff]  ;;  %v7253_v63 = vld [vmem:[#allocation15_spill] sm:$0xff] }
 0x24a   : > { %v6312_v61 = vadd.f32 %v2021_v27, %v6091_v23  ;;  %v1985_v12 = vpop.permute.xlu1 %1984  ;;  %v1993_v62 = vmul.f32 %v6132_v55, %v6107_v39  ;;  %v971_v23 = vadd.f32 %v939_v46, %v707_v8  ;;  %v974_v9 = vadd.f32 %v942_v48, %v710_v28  ;;  %v7250_v4 = vld [vmem:[#allocation6_spill] sm:$0xff]  ;;  %v7251_v27 = vld [vmem:[#allocation7_spill] sm:$0xff] }
 0x24b   : > { %v1980_v56 = vpop.permute.xlu0 %1979  ;;  %v2024_v30 = vmul.f32 %v6132_v55, %v1985_v12  ;;  %2492 = vperm.xlu1 %4803, %v4636_v24   ;;  %2482 = vperm.xlu0 %4802, %v4634_v57   ;;  %v1469_v40 = vmul.f32 %v5834_v51, %v5819_v13  ;;  %v1761_v49 = vadd.f32 %v1729_v41, %v1497_v59  ;;  %v7255_v59 = vld [vmem:[#allocation11_spill] sm:$0xff] }
 0x24c   : > { %v2023_v38 = vmul.f32 %v6132_v55, %v1980_v56  ;;  %v1468_v39 = vmul.f32 %v5834_v51, %v5821_v16  ;;  %v1760_v19 = vadd.f32 %v1728_v34, %v1496_v50  ;;  %v973_v28 = vadd.f32 %v941_v1, %v709_v3  ;;  %v7252_v1 = vld [vmem:[#allocation14_spill] sm:$0xff] }
 0x24d   : > { %v6333_v32 = vadd.f32 %v2024_v30, %v6100_v53  ;;  %v1237_v21 = vadd.f32 %v1205_v11, %v972_v52  ;;  %v1236_v13 = vadd.f32 %v1204_v6, %v971_v23  ;;  %v2026_v45 = vadd.f32 %v1994_v35, %v1761_v49  ;;  %v7254_v34 = vld [vmem:[#allocation10_spill] sm:$0xff] }
 0x24e   : > { %v6336_v8 = vadd.f32 %v2023_v38, %v6103_v37  ;;  %v2099_v42 = vpop.permute.xlu1 %2098  ;;  %v2025_v46 = vadd.f32 %v1993_v62, %v1760_v19  ;;  %v1207_v16 = vmul.f32 %v6274_v26, %v5668_v22  ;;  %v1206_v53 = vmul.f32 %v6274_v26, %v5670_v14  ;;  %v7256_v38 = vld [vmem:[#allocation16_spill] sm:$0xff] }
 0x24f   : > { %v2094_v36 = vpop.permute.xlu0 %2093  ;;  %v2258_v33 = vmul.f32 %v6327_v18, %v2099_v42  ;;  %2512 = vperm.xlu1 %4803, %v4640_v2   ;;  %2502 = vperm.xlu0 %4802, %v5794_v7   ;;  %v1733_v37 = vmul.f32 %v5983_v29, %v5968_v43  ;;  %v1732_v3 = vmul.f32 %v5983_v29, %v5970_v10 }
 0x250   : > { %v2257_v20 = vmul.f32 %v6327_v18, %v2094_v36  ;;  %v1501_v52 = vadd.f32 %v1469_v40, %v1237_v21  ;;  %v1500_v44 = vadd.f32 %v1468_v39, %v1236_v13  ;;  %v1471_v7 = vmul.f32 %v5834_v51, %v7250_v4  ;;  %v7257_v40 = vld [vmem:[#allocation17_spill] sm:$0xff] }
 0x251   : > { %v6349_v17 = vadd.f32 %v2258_v33, %v2026_v45  ;;  %v1470_v22 = vmul.f32 %v5834_v51, %v7251_v27  ;;  %v1998_v14 = vmul.f32 %v6132_v55, %v7252_v1  ;;  %v1997_v43 = vmul.f32 %v6132_v55, %v7253_v63 }
 0x252   : > { %v6351_v48 = vadd.f32 %v2257_v20, %v2025_v46  ;;  %v6361_v54 = vpop.permute.xlu1 %2108  ;;  %v1239_v41 = vadd.f32 %v1207_v16, %v974_v9  ;;  %v1238_v24 = vadd.f32 %v1206_v53, %v973_v28  ;;  %v1765_v57 = vadd.f32 %v1733_v37, %v1501_v52 }
 0x253   : > { %v6363_v10 = vpop.permute.xlu0 %2103  ;;  %v1764_v11 = vadd.f32 %v1732_v3, %v1500_v44  ;;  %v1735_v6 = vmul.f32 %v5983_v29, %v7254_v34  ;;  %v1734_v51 = vmul.f32 %v5983_v29, %v7255_v59  ;;  %v2000_v23 = vmul.f32 %v6132_v55, %v7256_v38 }
 0x254   : > { %v1503_v50 = vadd.f32 %v1471_v7, %v1239_v41  ;;  %v1502_v35 = vadd.f32 %v1470_v22, %v1238_v24  ;;  %v2030_v12 = vadd.f32 %v1998_v14, %v1765_v57  ;;  %v1999_v9 = vmul.f32 %v6132_v55, %v7257_v40  ;;  %v7258_v14 = vld [vmem:[#allocation18_spill] sm:$0xff] }
 0x255   : > { %v2029_v56 = vadd.f32 %v1997_v43, %v1764_v11  ;;  %v7259_v43 = vld [vmem:[#allocation19_spill] sm:$0xff] }
 0x256   : > { %v2119_v62 = vpop.permute.xlu1 %2118  ;;  %v1767_v39 = vadd.f32 %v1735_v6, %v1503_v50  ;;  %v1766_v19 = vadd.f32 %v1734_v51, %v1502_v35  ;;  %v7261_v6 = vld [vmem:[#allocation21_spill] sm:$0xff] }
 0x257   : > { %v2114_v30 = vpop.permute.xlu0 %2113  ;;  %v2262_v49 = vmul.f32 %v6327_v18, %v2119_v62 }
 0x258   : > { %v2261_v2 = vmul.f32 %v6327_v18, %v2114_v30  ;;  %v2032_v42 = vadd.f32 %v2000_v23, %v1767_v39  ;;  %v2031_v36 = vadd.f32 %v1999_v9, %v1766_v19  ;;  %v7263_v30 = vld [vmem:[#allocation23_spill] sm:$0xff]  ;;  %v7265_v19 = vld [vmem:[#allocation25_spill] sm:$0xff] }
 0x259   : > { %v6375_v28 = vadd.f32 %v2262_v49, %v2030_v12 }
 0x25a   : > { %v6377_v21 = vadd.f32 %v2261_v2, %v2029_v56  ;;  %v2129_v13 = vpop.permute.xlu1 %2128  ;;  %v7262_v56 = vld [vmem:[#allocation22_spill] sm:$0xff]  ;;  %v7264_v2 = vld [vmem:[#allocation24_spill] sm:$0xff] }
 0x25b   : > { %v2124_v45 = vpop.permute.xlu0 %2123  ;;  %v2264_v46 = vmul.f32 %v6327_v18, %v2129_v13 }
 0x25c   : > { %v2263_v33 = vmul.f32 %v6327_v18, %v2124_v45 }
 0x25d   : > { %v6381_v20 = vadd.f32 %v2264_v46, %v2032_v42 }
 0x25e   : > { %v6383_v16 = vadd.f32 %v2263_v33, %v2031_v36  ;;  %v2139_v53 = vpop.permute.xlu1 %2138  ;;  %v7266_v33 = vld [vmem:[#allocation26_spill] sm:$0xff] }
 0x25f   : > { %v2134_v37 = vpop.permute.xlu0 %2133  ;;  %v2266_v3 = vmul.f32 %v6327_v18, %v2139_v53 }
 0x260   : > { %v2265_v52 = vmul.f32 %v6327_v18, %v2134_v37  ;;  %v7267_v37 = vld [vmem:[#allocation27_spill] sm:$0xff] }
 0x261   : > { %v6388_v44 = vadd.f32 %v2266_v3, %v6139_v58 }
 0x262   : > { %v6391_v4 = vadd.f32 %v2265_v52, %v6142_v0  ;;  %v2149_v7 = vpop.permute.xlu1 %2148  ;;  %v7260_v0 = vld [vmem:[#allocation20_spill] sm:$0xff] }
 0x263   : > { %v2144_v27 = vpop.permute.xlu0 %2143  ;;  %v2268_v22 = vmul.f32 %v6327_v18, %v2149_v7 }
 0x264   : > { %v2267_v1 = vmul.f32 %v6327_v18, %v2144_v27 }
 0x265   : > { %v6396_v63 = vadd.f32 %v2268_v22, %v7258_v14 }
 0x266   : > { %v6399_v41 = vadd.f32 %v2267_v1, %v7259_v43  ;;  %v2159_v24 = vpop.permute.xlu1 %2158  ;;  %v7268_v1 = vld [vmem:[#allocation28_spill] sm:$0xff]  ;;  %v7269_v43 = vld [vmem:[#allocation29_spill] sm:$0xff] }
 0x267   : > { %v2154_v57 = vpop.permute.xlu0 %2153  ;;  %v2270_v58 = vmul.f32 %v6327_v18, %v2159_v24 }
 0x268   : > { %v2269_v11 = vmul.f32 %v6327_v18, %v2154_v57 }
 0x269   : > { %v6404_v34 = vadd.f32 %v2270_v58, %v7260_v0 }
 0x26a   : > { %v6407_v59 = vadd.f32 %v2269_v11, %v7261_v6  ;;  %v2169_v51 = vpop.permute.xlu1 %2168  ;;  %v7270_v6 = vld [vmem:[#allocation35_spill] sm:$0xff] }
 0x26b   : > { %v2164_v50 = vpop.permute.xlu0 %2163  ;;  %v2272_v35 = vmul.f32 %v6327_v18, %v2169_v51 }
 0x26c   : > { %v2271_v12 = vmul.f32 %v6327_v18, %v2164_v50  ;;  %v7271_v50 = vld [vmem:[#allocation38_spill] sm:$0xff] }
 0x26d   : > { %v6412_v62 = vadd.f32 %v2272_v35, %v7262_v56 }
 0x26e   : > { %v6415_v38 = vadd.f32 %v2271_v12, %v7263_v30  ;;  %v2179_v23 = vpop.permute.xlu1 %2178 }
 0x26f   : > { %v2174_v40 = vpop.permute.xlu0 %2173  ;;  %v2274_v9 = vmul.f32 %v6327_v18, %v2179_v23 }
 0x270   : > { %v2273_v49 = vmul.f32 %v6327_v18, %v2174_v40  ;;  %v7272_v40 = vld [vmem:[#allocation68_spill] sm:$0xff] }
 0x271   : > { %v6420_v39 = vadd.f32 %v2274_v9, %v7264_v2  ;;  %v7273_v9 = vld [vmem:[#allocation39_spill] sm:$0xff]  ;;  %v7274_v2 = vld [vmem:[#allocation69_spill] sm:$0xff] }
 0x272   : > { %v6423_v13 = vadd.f32 %v2273_v49, %v7265_v19  ;;  %v2189_v45 = vpop.permute.xlu1 %2188  ;;  %v674_v49 = vmul.f32 %v7273_v9, %v7272_v40  ;;  %v673_v19 = vmul.f32 %v7273_v9, %v7274_v2  ;;  %v4808_v40 = vld [vmem:[%s7013_s1 + $0x4] ss:$0 sm:$0xff]  ;;  %v7284_v9 = vld [vmem:[#allocation4_spill] sm:$0xff] }
 0x273   : > { %v2184_v42 = vpop.permute.xlu0 %2183  ;;  %v2276_v36 = vmul.f32 %v6327_v18, %v2189_v45 }
 0x274   : > { %v2275_v46 = vmul.f32 %v6327_v18, %v2184_v42 }
 0x275   : > { %v6428_v53 = vadd.f32 %v2276_v36, %v7266_v33  ;;  %v7276_v36 = vld [vmem:[#allocation30_spill] sm:$0xff] }
 0x276   : > { %v6431_v3 = vadd.f32 %v2275_v46, %v7267_v37  ;;  %v2199_v52 = vpop.permute.xlu1 %2198  ;;  %v7277_v46 = vld [vmem:[#allocation34_spill] sm:$0xff]  ;;  %v7278_v37 = vld [vmem:[#allocation32_spill] sm:$0xff] }
 0x277   : > { %v2194_v7 = vpop.permute.xlu0 %2193  ;;  %v2278_v27 = vmul.f32 %v6327_v18, %v2199_v52  ;;  %v409_v33 = vmul.f32 %v7277_v46, %v7276_v36  ;;  %v410_v52 = vmul.f32 %v7277_v46, %v7278_v37  ;;  %v7285_v36 = vld [vmem:[#allocation5_spill] sm:$0xff] }
 0x278   : > { %v2277_v22 = vmul.f32 %v6327_v18, %v2194_v7  ;;  %v7279_v7 = vld [vmem:[#allocation74_spill] sm:$0xff]  ;;  %v1466_v46 = vmul.f32 %v4808_v40, %v7285_v36 }
 0x279   : > { %v6436_v14 = vadd.f32 %v2278_v27, %v7268_v1  ;;  %v938_v27 = vmul.f32 %v6255_v47, %v7279_v7  ;;  %v7287_v7 = vld [vmem:[#allocation9_spill] sm:$0xff] }
 0x27a   : > { %v6439_v24 = vadd.f32 %v2277_v22, %v7269_v43  ;;  %v2209_v57 = vpop.permute.xlu1 %2208  ;;  %v7280_v22 = vld [vmem:[#allocation75_spill] sm:$0xff] }
 0x27b   : > { %v2204_v58 = vpop.permute.xlu0 %2203  ;;  %v2280_v11 = vmul.f32 %v6327_v18, %v2209_v57  ;;  %v937_v1 = vmul.f32 %v6255_v47, %v7280_v22 }
 0x27c   : > { %v2279_v0 = vmul.f32 %v6327_v18, %v2204_v58 }
 0x27d   : > { %v6444_v51 = vadd.f32 %v2280_v11, %v7270_v6  ;;  %v705_v11 = vadd.f32 %v673_v19, %v409_v33 }
 0x27e   : > { %v6447_v35 = vadd.f32 %v2279_v0, %v7271_v50  ;;  %v2219_v12 = vpop.permute.xlu1 %2218  ;;  %v7281_v0 = vld [vmem:[#allocation2_spill] sm:$0xff]  ;;  %v7282_v50 = vld [vmem:[#allocation3_spill] sm:$0xff] }
 0x27f   : > { %v2214_v56 = vpop.permute.xlu0 %2213  ;;  %v2282_v30 = vmul.f32 %v6327_v18, %v2219_v12  ;;  %v1203_v6 = vmul.f32 %v6274_v26, %v7281_v0  ;;  %v1202_v12 = vmul.f32 %v6274_v26, %v7282_v50 }
 0x280   : > { %v2281_v23 = vmul.f32 %v6327_v18, %v2214_v56 }
 0x281   : > { %v6456_v45 = vadd.f32 %v2282_v30, %v6262_v5 }
 0x282   : > { %v6459_v42 = vadd.f32 %v2281_v23, %v6265_v15  ;;  %v2229_v43 = vpop.permute.xlu1 %2228  ;;  %v706_v15 = vadd.f32 %v674_v49, %v410_v52  ;;  %v969_v23 = vadd.f32 %v937_v1, %v705_v11  ;;  %v1467_v49 = vmul.f32 %v4808_v40, %v7284_v9 }
 0x283   : > { %7275 = vst [vmem:[#allocation42_spill] sm:$0xff] %v6456_v45  ;;  %v2224_v57 = vpop.permute.xlu0 %2223  ;;  %v2284_v5 = vmul.f32 %v6327_v18, %v2229_v43 }
 0x284   : > { %v2283_v58 = vmul.f32 %v6327_v18, %v2224_v57  ;;  %v970_v47 = vadd.f32 %v938_v27, %v706_v15  ;;  %v1234_v37 = vadd.f32 %v1202_v12, %v969_v23  ;;  %v1730_v27 = vmul.f32 %v5983_v29, %v7287_v7  ;;  %v7289_v12 = vld [vmem:[#allocation12_spill] sm:$0xff] }
 0x285   : > { %v6476_v56 = vadd.f32 %v2284_v5, %v6283_v31  ;;  %v4836_v5 = vmov 1983009808   ;;  %v2692_v15 = vlaneseq }
 0x286   : > { %v6479_v30 = vadd.f32 %v2283_v58, %v6286_v60  ;;  %v2239_v2 = vpop.permute.xlu1 %2238  ;;  %v1235_v33 = vadd.f32 %v1203_v6, %v970_v47  ;;  %v7286_v60 = vld [vmem:[#allocation8_spill] sm:$0xff]  ;;  %v2690_v58 = vunpack.c.l.s4 %v4836_v5  ;;  %v1498_v0 = vadd.f32 %v1466_v46, %v1234_v37  ;;  %v7290_v47 = vld [vmem:[#allocation13_spill] sm:$0xff] }
 0x287   : > { %7283 = vst [vmem:[#allocation43_spill] sm:$0xff] %v6476_v56  ;;  %v2234_v19 = vpop.permute.xlu0 %2233  ;;  %v2286_v26 = vmul.f32 %v6327_v18, %v2239_v2  ;;  %v1731_v52 = vmul.f32 %v5983_v29, %v7286_v60  ;;  %v1996_v29 = vmul.f32 %v6132_v55, %v7289_v12  ;;  %v2260_v2 = vmul.f32 %v6327_v18, %v6361_v54 }
 0x288   : > { %v2285_v31 = vmul.f32 %v6327_v18, %v2234_v19  ;;  %v1499_v11 = vadd.f32 %v1467_v49, %v1235_v33  ;;  %v1762_v40 = vadd.f32 %v1730_v27, %v1498_v0  ;;  %v2259_v19 = vmul.f32 %v6327_v18, %v6363_v10 }
 0x289   : > { %v6493_v22 = vadd.f32 %v2286_v26, %v6309_v25  ;;  %v1995_v25 = vmul.f32 %v6132_v55, %v7290_v47  ;;  %v2691_v55 = vunpack.c.0.s8 %v2690_v58  ;;  %v2693_v36 = vshrl.u32 %v2692_v15, 7 }
 0x28a   : > { %v6496_v1 = vadd.f32 %v2285_v31, %v6312_v61  ;;  %v2249_v43 = vpop.permute.xlu1 %2248  ;;  %v6507_v61 = vld [vmem:[%s7013_s1 + $0x8] ss:$0 sm:$0xff]  ;;  %v1763_v23 = vadd.f32 %v1731_v52, %v1499_v11 }
 0x28b   : > { %7288 = vst [vmem:[#allocation44_spill] sm:$0xff] %v6493_v22  ;;  %v2244_v57 = vpop.permute.xlu0 %2243  ;;  %v2288_v6 = vmul.f32 %v6327_v18, %v2249_v43  ;;  %v6528_v52 = vsub.s32 %v2691_v55, %v2693_v36 }
 0x28c   : > { %v2287_v50 = vmul.f32 %v6327_v18, %v2244_v57  ;;  %v2028_v37 = vadd.f32 %v1996_v29, %v1763_v23 }
 0x28d   : > { %v6510_v9 = vadd.f32 %v2288_v6, %v6333_v32  ;;  %v2027_v32 = vadd.f32 %v1995_v25, %v1762_v40  ;;  %v6534_v6 = vsub.s32 0, %v2693_v36 }
 0x28e   : > { %v6513_v49 = vadd.f32 %v2287_v50, %v6336_v8  ;;  %v2363_v46 = vpop.permute.xlu1 %2362  ;;  %v6524_v8 = vld [vmem:[%s7014_s2] ss:$0 sm:$0xff]  ;;  %v2292_v18 = vadd.f32 %v2260_v2, %v2028_v37 }
 0x28f   : > { %7291 = vst [vmem:[#allocation45_spill] sm:$0xff] %v6510_v9  ;;  %v2358_v26 = vpop.permute.xlu0 %2357  ;;  %v2522_v31 = vmul.f32 %v6507_v61, %v2363_v46  ;;  %v2291_v10 = vadd.f32 %v2259_v19, %v2027_v32 }
 0x290   : > { %v2521_v33 = vmul.f32 %v6507_v61, %v2358_v26 }
 0x291   : > { %v2554_v54 = vadd.f32 %v2522_v31, %v6349_v17 }
 0x292   : > { %v2553_v60 = vadd.f32 %v2521_v33, %v6351_v48  ;;  %v2373_v7 = vpop.permute.xlu1 %2372 }
 0x293   : > { %v2368_v27 = vpop.permute.xlu0 %2367  ;;  %v2593_v43 = vadd.f32 %v6524_v8, %v2554_v54  ;;  %v2524_v5 = vmul.f32 %v6507_v61, %v2373_v7 }
 0x294   : > { %v2592_v57 = vadd.f32 %v6524_v8, %v2553_v60  ;;  %v2523_v58 = vmul.f32 %v6507_v61, %v2368_v27 }
 0x295   : > { %v2625_v15 = vmax.f32 %v2593_v43, 0.0  ;;  %v2556_v0 = vadd.f32 %v2524_v5, %v2292_v18 }
 0x296   : > { %v2624_v11 = vmax.f32 %v2592_v57, 0.0  ;;  %v2555_v17 = vadd.f32 %v2523_v58, %v2291_v10  ;;  %v2383_v48 = vpop.permute.xlu1 %2382 }
 0x297   : > { %v2378_v50 = vpop.permute.xlu0 %2377  ;;  %v2705_v12 = vcombine.high %v2625_v15, %v2625_v15  ;;  %v2712_v29 = vrot.slane %v2625_v15, %v6528_v52  ;;  %v2595_v23 = vadd.f32 %v6524_v8, %v2556_v0  ;;  %v2526_v2 = vmul.f32 %v6507_v61, %v2383_v48 }
 0x298   : > { %v2688_v47 = vcombine.high %v2624_v11, %v2624_v11  ;;  %v2695_v25 = vrot.slane %v2624_v11, %v6528_v52  ;;  %v2594_v40 = vadd.f32 %v6524_v8, %v2555_v17  ;;  %v6542_v19 = vmul.f32 %v6507_v61, %v2378_v50 }
 0x299   : > { %v2719_v55 = vrot.slane %v2705_v12, %v6528_v52  ;;  %v2720_v36 = vcombine.high %v2712_v29, %v2712_v29  ;;  %v4648_v46 = vrot.slane %v2712_v29, 9  ;;  %v2627_v37 = vmax.f32 %v2595_v23, 0.0 }
 0x29a   : > { %v2702_v26 = vrot.slane %v2688_v47, %v6528_v52  ;;  %v2703_v31 = vcombine.high %v2695_v25, %v2695_v25  ;;  %v4644_v33 = vrot.slane %v2695_v25, 9  ;;  %v2626_v32 = vmax.f32 %v2594_v40, 0.0 }
 0x29b   : > { %v2721_v54 = vcombine.high %v2719_v55, %v2719_v55  ;;  %v4649_v60 = vrot.slane %v2720_v36, 9  ;;  %v4650_v18 = vrot.slane %v2719_v55, 9  ;;  %v3748_v10 = vmax.f32 %v2712_v29, %v4648_v46 }
 0x29c   : > { %v2704_v7 = vcombine.high %v2702_v26, %v2702_v26  ;;  %v4645_v27 = vrot.slane %v2703_v31, 9  ;;  %v4646_v43 = vrot.slane %v2702_v26, 9  ;;  %v3744_v57 = vmax.f32 %v2695_v25, %v4644_v33 }
 0x29d   : > { %v4651_v5 = vrot.slane %v2721_v54, 9  ;;  %v3749_v58 = vmax.f32 %v2720_v36, %v4649_v60  ;;  %v3750_v15 = vmax.f32 %v2719_v55, %v4650_v18  ;;  %v2739_v11 = vcombine.high %v2627_v37, %v2627_v37 }
 0x29e   : > { %v4647_v0 = vrot.slane %v2704_v7, 9  ;;  %v3745_v17 = vmax.f32 %v2703_v31, %v4645_v27  ;;  %v3746_v48 = vmax.f32 %v2702_v26, %v4646_v43  ;;  %v2746_v50 = vrot.slane %v2627_v37, %v6528_v52 }
 0x29f   : > { %v3751_v12 = vmax.f32 %v2721_v54, %v4651_v5  ;;  %v2753_v47 = vrot.slane %v2739_v11, %v6528_v52  ;;  %v2722_v23 = vcombine.high %v2626_v32, %v2626_v32  ;;  %v2729_v40 = vrot.slane %v2626_v32, %v6528_v52 }
 0x2a0   : > { %v3747_v29 = vmax.f32 %v2704_v7, %v4647_v0  ;;  %v2754_v46 = vcombine.high %v2746_v50, %v2746_v50  ;;  %v4656_v22 = vrot.slane %v2746_v50, 9  ;;  %v2558_v25 = vadd.f32 %v2526_v2, %v6375_v28 }
 0x2a1   : > { %v2755_v36 = vcombine.high %v2753_v47, %v2753_v47  ;;  %v4658_v55 = vrot.slane %v2753_v47, 9  ;;  %v2736_v31 = vrot.slane %v2722_v23, %v6528_v52  ;;  %v2737_v26 = vcombine.high %v2729_v40, %v2729_v40 }
 0x2a2   : > { %v4657_v33 = vrot.slane %v2754_v46, 9  ;;  %v3756_v37 = vmax.f32 %v2746_v50, %v4656_v22  ;;  %v4652_v54 = vrot.slane %v2729_v40, 9  ;;  %v2597_v60 = vadd.f32 %v6524_v8, %v2558_v25 }
 0x2a3   : > { %v4659_v18 = vrot.slane %v2755_v36, 9  ;;  %v3758_v32 = vmax.f32 %v2753_v47, %v4658_v55  ;;  %v2738_v7 = vcombine.high %v2736_v31, %v2736_v31  ;;  %v4653_v27 = vrot.slane %v2737_v26, 9  ;;  %v2393_v47 = vpop.permute.xlu1 %2392 }
 0x2a4   : > { %v3757_v43 = vmax.f32 %v2754_v46, %v4657_v33  ;;  %v3876_v5 = vmax.f32 %v3748_v10, %v3756_v37  ;;  %v4654_v28 = vrot.slane %v2736_v31, 9  ;;  %v3752_v2 = vmax.f32 %v2729_v40, %v4652_v54 }
 0x2a5   : > { %v3759_v11 = vmax.f32 %v2755_v36, %v4659_v18  ;;  %v3878_v0 = vmax.f32 %v3750_v15, %v3758_v32  ;;  %v4655_v23 = vrot.slane %v2738_v7, 9  ;;  %v3753_v9 = vmax.f32 %v2737_v26, %v4653_v27 }
 0x2a6   : > { %v3877_v22 = vmax.f32 %v3749_v58, %v3757_v43  ;;  %v4019_v50 = vrot.slane %v3876_v5, %v6534_v6  ;;  %v3754_v25 = vmax.f32 %v2736_v31, %v4654_v28  ;;  %v3872_v45 = vmax.f32 %v3744_v57, %v3752_v2  ;;  %v2388_v58 = vpop.permute.xlu0 %2387 }
 0x2a7   : > { %v3879_v55 = vmax.f32 %v3751_v12, %v3759_v11  ;;  %v4027_v56 = vrot.slane %v3878_v0, %v6534_v6  ;;  %v3755_v10 = vmax.f32 %v2738_v7, %v4655_v23  ;;  %v3873_v46 = vmax.f32 %v3745_v17, %v3753_v9  ;;  %v2403_v7 = vpop.permute.xlu1 %2402 }
 0x2a8   : > { %v4023_v40 = vrot.slane %v3877_v22, %v6534_v6  ;;  %v3874_v36 = vmax.f32 %v3746_v48, %v3754_v25  ;;  %v4003_v15 = vrot.slane %v3872_v45, %v6534_v6  ;;  %v2629_v26 = vmax.f32 %v2597_v60, 0.0 }
 0x2a9   : > { %v4031_v33 = vrot.slane %v3879_v55, %v6534_v6  ;;  %v3875_v37 = vmax.f32 %v3747_v29, %v3755_v10  ;;  %v4007_v57 = vrot.slane %v3873_v46, %v6534_v6  ;;  %v2557_v12 = vadd.f32 %v6542_v19, %v6377_v21 }
 0x2aa   : > { %v4011_v31 = vrot.slane %v3874_v36, %v6534_v6  ;;  %v2773_v54 = vcombine.high %v2629_v26, %v2629_v26  ;;  %v2780_v9 = vrot.slane %v2629_v26, %v6528_v52  ;;  %v2528_v17 = vmul.f32 %v6507_v61, %v2393_v47 }
 0x2ab   : > { %v4015_v48 = vrot.slane %v3875_v37, %v6534_v6  ;;  %v4257_v45 = vsel %vm4256_vm0, %v4007_v57, %v4003_v15  ;;  %v2596_v60 = vadd.f32 %v6524_v8, %v2557_v12  ;;  %v2527_v29 = vmul.f32 %v6507_v61, %v2388_v58  ;;  %v2398_v58 = vpop.permute.xlu0 %2397  ;;  %v2418_v12 = vpop.permute.xlu1 %2417 }
 0x2ac   : > { %v4259_v18 = vsel %vm4258_vm1, %v4011_v31, %v4257_v45  ;;  %v2787_v21 = vrot.slane %v2773_v54, %v6528_v52  ;;  %v2788_v19 = vcombine.high %v2780_v9, %v2780_v9  ;;  %v4664_v32 = vrot.slane %v2780_v9, 9 }
 0x2ad   : > { %v4261_v27 = vsel %vm4260_vm2, %v4015_v48, %v4259_v18  ;;  %v2628_v43 = vmax.f32 %v2596_v60, 0.0  ;;  %v2560_v5 = vadd.f32 %v2528_v17, %v6381_v20  ;;  %v2559_v28 = vadd.f32 %v2527_v29, %v6383_v16 }
 0x2ae   : > { %v4263_v2 = vsel %vm4262_vm3, %v4019_v50, %v4261_v27  ;;  %v2789_v11 = vcombine.high %v2787_v21, %v2787_v21  ;;  %v4665_v0 = vrot.slane %v2788_v19, 9  ;;  %v4666_v23 = vrot.slane %v2787_v21, 9 }
 0x2af   : > { %v4265_v22 = vsel %vm4264_vm4, %v4023_v40, %v4263_v2  ;;  %v6580_v25 = vmax.f32 %v2780_v9, %v4664_v32  ;;  %v2756_v47 = vcombine.high %v2628_v43, %v2628_v43  ;;  %v2763_v20 = vrot.slane %v2628_v43, %v6528_v52 }
 0x2b0   : > { %v4267_v16 = vsel %vm4266_vm5, %v4027_v56, %v4265_v22  ;;  %v4667_v55 = vrot.slane %v2789_v11, 9  ;;  %v6584_v50 = vmax.f32 %v2788_v19, %v4665_v0  ;;  %v6586_v10 = vmax.f32 %v2787_v21, %v4666_v23 }
 0x2b1   : > { %v4269_v46 = vsel %vm4268_vm6, %v4031_v33, %v4267_v16  ;;  %v2770_v36 = vrot.slane %v2756_v47, %v6528_v52  ;;  %v2771_v15 = vcombine.high %v2763_v20, %v2763_v20  ;;  %v4660_v26 = vrot.slane %v2763_v20, 9 }
 0x2b2   : > { %4328 = vst.msk [vmem:[%s6577_s29] sm:$0xff] %vm4327_vm7, %v4269_v46  ;;  %v6592_v40 = vmax.f32 %v2789_v11, %v4667_v55  ;;  %v2599_v37 = vadd.f32 %v6524_v8, %v2560_v5  ;;  %v2598_v56 = vadd.f32 %v6524_v8, %v2559_v28  ;;  %v2530_v57 = vmul.f32 %v6507_v61, %v2403_v7 }
 0x2b3   : > { %v2772_v31 = vcombine.high %v2770_v36, %v2770_v36  ;;  %v4661_v54 = vrot.slane %v2771_v15, 9  ;;  %v4662_v9 = vrot.slane %v2770_v36, 9  ;;  %v3760_v33 = vmax.f32 %v2763_v20, %v4660_v26 }
 0x2b4   : > { %v2631_v17 = vmax.f32 %v2599_v37, 0.0  ;;  %v2630_v48 = vmax.f32 %v2598_v56, 0.0  ;;  %v2562_v45 = vadd.f32 %v2530_v57, %v6388_v44  ;;  %v2529_v60 = vmul.f32 %v6507_v61, %v2398_v58 }
 0x2b5   : > { %v4663_v29 = vrot.slane %v2772_v31, 9  ;;  %v3761_v18 = vmax.f32 %v2771_v15, %v4661_v54  ;;  %v3762_v21 = vmax.f32 %v2770_v36, %v4662_v9  ;;  %v2533_v19 = vmul.f32 %v6507_v61, %v2418_v12 }
 0x2b6   : > { %v2807_v32 = vcombine.high %v2631_v17, %v2631_v17  ;;  %v2814_v27 = vrot.slane %v2631_v17, %v6528_v52  ;;  %v2790_v7 = vcombine.high %v2630_v48, %v2630_v48  ;;  %v2797_v43 = vrot.slane %v2630_v48, %v6528_v52 }
 0x2b7   : > { %v3763_v5 = vmax.f32 %v2772_v31, %v4663_v29  ;;  %v2601_v28 = vadd.f32 %v6524_v8, %v2562_v45  ;;  %v2561_v2 = vadd.f32 %v2529_v60, %v6391_v4  ;;  %v2565_v44 = vadd.f32 %v2533_v19, %v6407_v59 }
 0x2b8   : > { %v2821_v11 = vrot.slane %v2807_v32, %v6528_v52  ;;  %v2822_v0 = vcombine.high %v2814_v27, %v2814_v27  ;;  %v4672_v23 = vrot.slane %v2814_v27, 9  ;;  %v2804_v22 = vrot.slane %v2790_v7, %v6528_v52 }
 0x2b9   : > { %v2805_v47 = vcombine.high %v2797_v43, %v2797_v43  ;;  %v4668_v20 = vrot.slane %v2797_v43, 9  ;;  %v2633_v16 = vmax.f32 %v2601_v28, 0.0  ;;  %v2600_v55 = vadd.f32 %v6524_v8, %v2561_v2  ;;  %v2408_v28 = vpop.permute.xlu0 %2407 }
 0x2ba   : > { %v2823_v46 = vcombine.high %v2821_v11, %v2821_v11  ;;  %v4673_v36 = vrot.slane %v2822_v0, 9  ;;  %v4674_v15 = vrot.slane %v2821_v11, 9  ;;  %v3772_v26 = vmax.f32 %v2814_v27, %v4672_v23 }
 0x2bb   : > { %v2806_v58 = vcombine.high %v2804_v22, %v2804_v22  ;;  %v4669_v37 = vrot.slane %v2805_v47, 9  ;;  %v4670_v4 = vrot.slane %v2804_v22, 9  ;;  %v3768_v56 = vmax.f32 %v2797_v43, %v4668_v20 }
 0x2bc   : > { %v4675_v59 = vrot.slane %v2823_v46, 9  ;;  %v3773_v57 = vmax.f32 %v2822_v0, %v4673_v36  ;;  %v3774_v12 = vmax.f32 %v2821_v11, %v4674_v15  ;;  %v3884_v31 = vmax.f32 %v6580_v25, %v3772_v26 }
 0x2bd   : > { %v4671_v54 = vrot.slane %v2806_v58, 9  ;;  %v3769_v9 = vmax.f32 %v2805_v47, %v4669_v37  ;;  %v3770_v17 = vmax.f32 %v2804_v22, %v4670_v4  ;;  %v3880_v48 = vmax.f32 %v3760_v33, %v3768_v56 }
 0x2be   : > { %v3775_v45 = vmax.f32 %v2823_v46, %v4675_v59  ;;  %v3885_v60 = vmax.f32 %v6584_v50, %v3773_v57  ;;  %v3886_v29 = vmax.f32 %v6586_v10, %v3774_v12  ;;  %v4051_v19 = vrot.slane %v3884_v31, %v6534_v6 }
 0x2bf   : > { %v3771_v32 = vmax.f32 %v2806_v58, %v4671_v54  ;;  %v3881_v27 = vmax.f32 %v3761_v18, %v3769_v9  ;;  %v3882_v7 = vmax.f32 %v3762_v21, %v3770_v17  ;;  %v4035_v43 = vrot.slane %v3880_v48, %v6534_v6 }
 0x2c0   : > { %v3887_v2 = vmax.f32 %v6592_v40, %v3775_v45  ;;  %v4055_v25 = vrot.slane %v3885_v60, %v6534_v6  ;;  %v4059_v11 = vrot.slane %v3886_v29, %v6534_v6  ;;  %v2841_v33 = vcombine.high %v2633_v16, %v2633_v16 }
 0x2c1   : > { %v3883_v0 = vmax.f32 %v3763_v5, %v3771_v32  ;;  %v4039_v50 = vrot.slane %v3881_v27, %v6534_v6  ;;  %v4043_v10 = vrot.slane %v3882_v7, %v6534_v6  ;;  %v2848_v23 = vrot.slane %v2633_v16, %v6528_v52  ;;  %v2438_v5 = vpop.permute.xlu1 %2437 }
 0x2c2   : > { %v4063_v18 = vrot.slane %v3887_v2, %v6534_v6  ;;  %v2855_v21 = vrot.slane %v2841_v33, %v6528_v52  ;;  %v2632_v22 = vmax.f32 %v2600_v55, 0.0  ;;  %v2604_v47 = vadd.f32 %v6524_v8, %v2565_v44  ;;  %v2428_v44 = vpop.permute.xlu0 %2427 }
 0x2c3   : > { %v4047_v40 = vrot.slane %v3883_v0, %v6534_v6  ;;  %v4270_v20 = vsel %vm4256_vm0, %v4039_v50, %v4035_v43  ;;  %v2856_v46 = vcombine.high %v2848_v23, %v2848_v23  ;;  %v4680_v36 = vrot.slane %v2848_v23, 9 }
 0x2c4   : > { %v4271_v15 = vsel %vm4258_vm1, %v4043_v10, %v4270_v20  ;;  %v2857_v26 = vcombine.high %v2855_v21, %v2855_v21  ;;  %v4682_v58 = vrot.slane %v2855_v21, 9  ;;  %v2824_v37 = vcombine.high %v2632_v22, %v2632_v22 }
 0x2c5   : > { %v4272_v16 = vsel %vm4260_vm2, %v4047_v40, %v4271_v15  ;;  %v4681_v4 = vrot.slane %v2856_v46, 9  ;;  %v6626_v56 = vmax.f32 %v2848_v23, %v4680_v36  ;;  %v2831_v55 = vrot.slane %v2632_v22, %v6528_v52  ;;  %v2458_v2 = vpop.permute.xlu1 %2457 }
 0x2c6   : > { %v4273_v59 = vsel %vm4262_vm3, %v4051_v19, %v4272_v16  ;;  %v4683_v57 = vrot.slane %v2857_v26, 9  ;;  %v6630_v12 = vmax.f32 %v2855_v21, %v4682_v58  ;;  %v2838_v31 = vrot.slane %v2824_v37, %v6528_v52  ;;  %v2448_v21 = vpop.permute.xlu0 %2447 }
 0x2c7   : > { %v4274_v54 = vsel %vm4264_vm4, %v4055_v25, %v4273_v59  ;;  %v6634_v9 = vmax.f32 %v2856_v46, %v4681_v4  ;;  %v2839_v17 = vcombine.high %v2831_v55, %v2831_v55  ;;  %v4676_v48 = vrot.slane %v2831_v55, 9 }
 0x2c8   : > { %v4275_v45 = vsel %vm4266_vm5, %v4059_v11, %v4274_v54  ;;  %v6637_v60 = vmax.f32 %v2857_v26, %v4683_v57  ;;  %v2840_v29 = vcombine.high %v2838_v31, %v2838_v31  ;;  %v4678_v32 = vrot.slane %v2838_v31, 9 }
 0x2c9   : > { %v4276_v19 = vsel %vm4268_vm6, %v4063_v18, %v4275_v45  ;;  %v4677_v27 = vrot.slane %v2839_v17, 9  ;;  %v6640_v7 = vmax.f32 %v2831_v55, %v4676_v48  ;;  %v2636_v43 = vmax.f32 %v2604_v47, 0.0 }
 0x2ca   : > { %4329 = vst.msk [vmem:[%s6577_s29 + $0x8] sm:$0xff] %vm4327_vm7, %v4276_v19  ;;  %v4679_v25 = vrot.slane %v2840_v29, 9  ;;  %v6644_v33 = vmax.f32 %v2838_v31, %v4678_v32  ;;  %v2531_v0 = vmul.f32 %v6507_v61, %v2408_v28  ;;  %v2537_v11 = vmul.f32 %v6507_v61, %v2438_v5 }
 0x2cb   : > { %v6648_v50 = vmax.f32 %v2839_v17, %v4677_v27  ;;  %v2892_v10 = vcombine.high %v2636_v43, %v2636_v43  ;;  %v2899_v23 = vrot.slane %v2636_v43, %v6528_v52  ;;  %v2535_v18 = vmul.f32 %v6507_v61, %v2428_v44 }
 0x2cc   : > { %v6652_v22 = vmax.f32 %v2840_v29, %v4679_v25  ;;  %v2563_v47 = vadd.f32 %v2531_v0, %v6399_v41  ;;  %v2569_v40 = vadd.f32 %v2537_v11, %v6423_v13  ;;  %v2541_v20 = vmul.f32 %v6507_v61, %v2458_v2 }
 0x2cd   : > { %v2906_v28 = vrot.slane %v2892_v10, %v6528_v52  ;;  %v2907_v46 = vcombine.high %v2899_v23, %v2899_v23  ;;  %v4692_v36 = vrot.slane %v2899_v23, 9  ;;  %v2567_v5 = vadd.f32 %v2535_v18, %v6415_v38 }
 0x2ce   : > { %v2602_v15 = vadd.f32 %v6524_v8, %v2563_v47  ;;  %v2608_v26 = vadd.f32 %v6524_v8, %v2569_v40  ;;  %v2573_v58 = vadd.f32 %v2541_v20, %v6439_v24  ;;  %v2539_v37 = vmul.f32 %v6507_v61, %v2448_v21 }
 0x2cf   : > { %v2908_v16 = vcombine.high %v2906_v28, %v2906_v28  ;;  %v4693_v41 = vrot.slane %v2907_v46, 9  ;;  %v4694_v4 = vrot.slane %v2906_v28, 9  ;;  %v6663_v13 = vmax.f32 %v2899_v23, %v4692_v36 }
 0x2d0   : > { %v2634_v55 = vmax.f32 %v2602_v15, 0.0  ;;  %v2640_v44 = vmax.f32 %v2608_v26, 0.0  ;;  %v2606_v59 = vadd.f32 %v6524_v8, %v2567_v5  ;;  %v2612_v57 = vadd.f32 %v6524_v8, %v2573_v58 }
 0x2d1   : > { %v4695_v38 = vrot.slane %v2908_v16, 9  ;;  %v6667_v31 = vmax.f32 %v2907_v46, %v4693_v41  ;;  %v6669_v54 = vmax.f32 %v2906_v28, %v4694_v4  ;;  %v2571_v24 = vadd.f32 %v2539_v37, %v6431_v3 }
 0x2d2   : > { %v2858_v17 = vcombine.high %v2634_v55, %v2634_v55  ;;  %v2865_v48 = vrot.slane %v2634_v55, %v6528_v52  ;;  %v2960_v45 = vcombine.high %v2640_v44, %v2640_v44  ;;  %v2967_v29 = vrot.slane %v2640_v44, %v6528_v52 }
 0x2d3   : > { %v6674_v32 = vmax.f32 %v2908_v16, %v4695_v38  ;;  %v2638_v19 = vmax.f32 %v2606_v59, 0.0  ;;  %v2644_v27 = vmax.f32 %v2612_v57, 0.0  ;;  %v2610_v43 = vadd.f32 %v6524_v8, %v2571_v24 }
 0x2d4   : > { %v2872_v2 = vrot.slane %v2858_v17, %v6528_v52  ;;  %v2873_v25 = vcombine.high %v2865_v48, %v2865_v48  ;;  %v4684_v0 = vrot.slane %v2865_v48, 9  ;;  %v2974_v11 = vrot.slane %v2960_v45, %v6528_v52 }
 0x2d5   : > { %v2975_v10 = vcombine.high %v2967_v29, %v2967_v29  ;;  %v4708_v3 = vrot.slane %v2967_v29, 9  ;;  %v2926_v23 = vcombine.high %v2638_v19, %v2638_v19  ;;  %v2933_v18 = vrot.slane %v2638_v19, %v6528_v52 }
 0x2d6   : > { %v2874_v21 = vcombine.high %v2872_v2, %v2872_v2  ;;  %v4685_v47 = vrot.slane %v2873_v25, 9  ;;  %v4686_v40 = vrot.slane %v2872_v2, 9  ;;  %v3784_v20 = vmax.f32 %v2865_v48, %v4684_v0 }
 0x2d7   : > { %v2976_v28 = vcombine.high %v2974_v11, %v2974_v11  ;;  %v4709_v46 = vrot.slane %v2975_v10, 9  ;;  %v4710_v36 = vrot.slane %v2974_v11, 9  ;;  %v6680_v5 = vmax.f32 %v2967_v29, %v4708_v3 }
 0x2d8   : > { %v4687_v15 = vrot.slane %v2874_v21, 9  ;;  %v3785_v26 = vmax.f32 %v2873_v25, %v4685_v47  ;;  %v3786_v58 = vmax.f32 %v2872_v2, %v4686_v40  ;;  %v3888_v37 = vmax.f32 %v6640_v7, %v3784_v20  ;;  %v2478_v20 = vpop.permute.xlu1 %2477 }
 0x2d9   : > { %v4711_v16 = vrot.slane %v2976_v28, 9  ;;  %v6683_v41 = vmax.f32 %v2975_v10, %v4709_v46  ;;  %v6685_v4 = vmax.f32 %v2974_v11, %v4710_v36  ;;  %v2940_v55 = vrot.slane %v2926_v23, %v6528_v52 }
 0x2da   : > { %v3787_v44 = vmax.f32 %v2874_v21, %v4687_v15  ;;  %v3889_v59 = vmax.f32 %v6648_v50, %v3785_v26  ;;  %v3890_v57 = vmax.f32 %v6644_v33, %v3786_v58  ;;  %v4067_v38 = vrot.slane %v3888_v37, %v6534_v6 }
 0x2db   : > { %v6691_v24 = vmax.f32 %v2976_v28, %v4711_v16  ;;  %v2941_v17 = vcombine.high %v2933_v18, %v2933_v18  ;;  %v2942_v48 = vcombine.high %v2940_v55, %v2940_v55  ;;  %v4700_v45 = vrot.slane %v2933_v18, 9  ;;  %v2468_v28 = vpop.permute.xlu0 %2467 }
 0x2dc   : > { %v3891_v7 = vmax.f32 %v6652_v22, %v3787_v44  ;;  %v4071_v29 = vrot.slane %v3889_v59, %v6534_v6  ;;  %v4075_v19 = vrot.slane %v3890_v57, %v6534_v6  ;;  %v4702_v2 = vrot.slane %v2940_v55, 9 }
 0x2dd   : > { %v4701_v25 = vrot.slane %v2941_v17, 9  ;;  %v4703_v0 = vrot.slane %v2942_v48, 9  ;;  %v3800_v11 = vmax.f32 %v2933_v18, %v4700_v45  ;;  %v3028_v50 = vcombine.high %v2644_v27, %v2644_v27 }
 0x2de   : > { %v6697_v33 = vrot.slane %v3891_v7, %v6534_v6  ;;  %v4277_v10 = vsel %vm4256_vm0, %v4071_v29, %v4067_v38  ;;  %v3802_v3 = vmax.f32 %v2940_v55, %v4702_v2  ;;  %v3035_v23 = vrot.slane %v2644_v27, %v6528_v52 }
 0x2df   : > { %v6702_v21 = vsel %vm4258_vm1, %v4075_v19, %v4277_v10  ;;  %v3801_v22 = vmax.f32 %v2941_v17, %v4701_v25  ;;  %v3803_v47 = vmax.f32 %v2942_v48, %v4703_v0  ;;  %v3896_v40 = vmax.f32 %v6663_v13, %v3800_v11  ;;  %v2498_v19 = vpop.permute.xlu1 %2497  ;;  %v2488_v2 = vpop.permute.xlu0 %2487 }
 0x2e0   : > { %v3898_v18 = vmax.f32 %v6669_v54, %v3802_v3  ;;  %v3042_v46 = vrot.slane %v3028_v50, %v6528_v52  ;;  %v3043_v36 = vcombine.high %v3035_v23, %v3035_v23  ;;  %v4724_v15 = vrot.slane %v3035_v23, 9 }
 0x2e1   : > { %v3897_v26 = vmax.f32 %v6667_v31, %v3801_v22  ;;  %v3899_v58 = vmax.f32 %v6674_v32, %v3803_v47  ;;  %v4099_v27 = vrot.slane %v3896_v40, %v6534_v6  ;;  %v2642_v37 = vmax.f32 %v2610_v43, 0.0 }
 0x2e2   : > { %v4107_v16 = vrot.slane %v3898_v18, %v6534_v6  ;;  %v3044_v55 = vcombine.high %v3042_v46, %v3042_v46  ;;  %v4725_v44 = vrot.slane %v3043_v36, 9  ;;  %v4726_v13 = vrot.slane %v3042_v46, 9 }
 0x2e3   : > { %v4103_v59 = vrot.slane %v3897_v26, %v6534_v6  ;;  %v6713_v54 = vrot.slane %v3899_v58, %v6534_v6  ;;  %v6715_v57 = vmax.f32 %v3035_v23, %v4724_v15  ;;  %v2994_v38 = vcombine.high %v2642_v37, %v2642_v37 }
 0x2e4   : > { %v4727_v17 = vrot.slane %v3044_v55, 9  ;;  %v6717_v31 = vmax.f32 %v3043_v36, %v4725_v44  ;;  %v6719_v32 = vmax.f32 %v3042_v46, %v4726_v13  ;;  %v3001_v43 = vrot.slane %v2642_v37, %v6528_v52 }
 0x2e5   : > { %v4284_v48 = vsel %vm4256_vm0, %v4103_v59, %v4099_v27  ;;  %v3008_v45 = vrot.slane %v2994_v38, %v6528_v52  ;;  %v2545_v7 = vmul.f32 %v6507_v61, %v2478_v20  ;;  %v2543_v29 = vmul.f32 %v6507_v61, %v2468_v28 }
 0x2e6   : > { %v6727_v25 = vsel %vm4258_vm1, %v4107_v16, %v4284_v48  ;;  %v6729_v0 = vmax.f32 %v3044_v55, %v4727_v17  ;;  %v3009_v11 = vcombine.high %v3001_v43, %v3001_v43  ;;  %v4716_v50 = vrot.slane %v3001_v43, 9 }
 0x2e7   : > { %v3010_v10 = vcombine.high %v3008_v45, %v3008_v45  ;;  %v4718_v3 = vrot.slane %v3008_v45, 9  ;;  %v2577_v23 = vadd.f32 %v2545_v7, %v6459_v42  ;;  %v2575_v22 = vadd.f32 %v2543_v29, %v6447_v35 }
 0x2e8   : > { %v4717_v47 = vrot.slane %v3009_v11, 9  ;;  %v3816_v40 = vmax.f32 %v3001_v43, %v4716_v50  ;;  %v2549_v20 = vmul.f32 %v6507_v61, %v2498_v19  ;;  %v2547_v28 = vmul.f32 %v6507_v61, %v2488_v2 }
 0x2e9   : > { %v4719_v18 = vrot.slane %v3010_v10, 9  ;;  %v3818_v46 = vmax.f32 %v3008_v45, %v4718_v3  ;;  %v2616_v36 = vadd.f32 %v6524_v8, %v2577_v23  ;;  %v2614_v15 = vadd.f32 %v6524_v8, %v2575_v22 }
 0x2ea   : > { %v3817_v26 = vmax.f32 %v3009_v11, %v4717_v47  ;;  %v3904_v58 = vmax.f32 %v6680_v5, %v3816_v40  ;;  %v2581_v27 = vadd.f32 %v2549_v20, %v6496_v1  ;;  %v2579_v42 = vadd.f32 %v2547_v28, %v6479_v30 }
 0x2eb   : > { %v3819_v35 = vmax.f32 %v3010_v10, %v4719_v18  ;;  %v3906_v37 = vmax.f32 %v6685_v4, %v3818_v46  ;;  %v2648_v16 = vmax.f32 %v2616_v36, 0.0  ;;  %v2646_v55 = vmax.f32 %v2614_v15, 0.0 }
 0x2ec   : > { %v3905_v44 = vmax.f32 %v6683_v41, %v3817_v26  ;;  %v4131_v13 = vrot.slane %v3904_v58, %v6534_v6  ;;  %v2620_v59 = vadd.f32 %v6524_v8, %v2581_v27  ;;  %v2618_v38 = vadd.f32 %v6524_v8, %v2579_v42 }
 0x2ed   : > { %v3907_v17 = vmax.f32 %v6691_v24, %v3819_v35  ;;  %v4139_v5 = vrot.slane %v3906_v37, %v6534_v6  ;;  %v3096_v1 = vcombine.high %v2648_v16, %v2648_v16  ;;  %v3103_v30 = vrot.slane %v2648_v16, %v6528_v52 }
 0x2ee   : > { %v4135_v43 = vrot.slane %v3905_v44, %v6534_v6  ;;  %v3062_v4 = vcombine.high %v2646_v55, %v2646_v55  ;;  %v3069_v48 = vrot.slane %v2646_v55, %v6528_v52  ;;  %v2652_v45 = vmax.f32 %v2620_v59, 0.0  ;;  %v2413_v44 = vpop.permute.xlu1 %2412 }
 0x2ef   : > { %v6751_v41 = vrot.slane %v3907_v17, %v6534_v6  ;;  %v3110_v7 = vrot.slane %v3096_v1, %v6528_v52  ;;  %v3111_v29 = vcombine.high %v3103_v30, %v3103_v30  ;;  %v4740_v19 = vrot.slane %v3103_v30, 9 }
 0x2f0   : > { %v4291_v24 = vsel %vm4256_vm0, %v4135_v43, %v4131_v13  ;;  %v3076_v2 = vrot.slane %v3062_v4, %v6528_v52  ;;  %v3077_v11 = vcombine.high %v3069_v48, %v3069_v48  ;;  %v4732_v50 = vrot.slane %v3069_v48, 9 }
 0x2f1   : > { %v6757_v10 = vsel %vm4258_vm1, %v4139_v5, %v4291_v24  ;;  %v3112_v3 = vcombine.high %v3110_v7, %v3110_v7  ;;  %v4741_v23 = vrot.slane %v3111_v29, 9  ;;  %v4742_v22 = vrot.slane %v3110_v7, 9 }
 0x2f2   : > { %v6759_v47 = vmax.f32 %v3103_v30, %v4740_v19  ;;  %v3078_v40 = vcombine.high %v3076_v2, %v3076_v2  ;;  %v4733_v20 = vrot.slane %v3077_v11, 9  ;;  %v4734_v28 = vrot.slane %v3076_v2, 9 }
 0x2f3   : > { %v4743_v18 = vrot.slane %v3112_v3, 9  ;;  %v6761_v46 = vmax.f32 %v3111_v29, %v4741_v23  ;;  %v6763_v36 = vmax.f32 %v3110_v7, %v4742_v22  ;;  %v3832_v15 = vmax.f32 %v3069_v48, %v4732_v50  ;;  %v2508_v7 = vpop.permute.xlu0 %2507 }
 0x2f4   : > { %v4735_v26 = vrot.slane %v3078_v40, 9  ;;  %v3833_v58 = vmax.f32 %v3077_v11, %v4733_v20  ;;  %v3834_v27 = vmax.f32 %v3076_v2, %v4734_v28  ;;  %v3164_v42 = vcombine.high %v2652_v45, %v2652_v45 }
 0x2f5   : > { %v6765_v35 = vmax.f32 %v3112_v3, %v4743_v18  ;;  %v3912_v37 = vmax.f32 %v6715_v57, %v3832_v15  ;;  %v3171_v16 = vrot.slane %v2652_v45, %v6528_v52  ;;  %v2650_v55 = vmax.f32 %v2618_v38, 0.0 }
 0x2f6   : > { %v3835_v13 = vmax.f32 %v3078_v40, %v4735_v26  ;;  %v3913_v59 = vmax.f32 %v6717_v31, %v3833_v58  ;;  %v3914_v17 = vmax.f32 %v6719_v32, %v3834_v27  ;;  %v3178_v5 = vrot.slane %v3164_v42, %v6528_v52  ;;  %v2433_v40 = vpop.permute.xlu1 %2432 }
 0x2f7   : > { %v4163_v1 = vrot.slane %v3912_v37, %v6534_v6  ;;  %v3179_v30 = vcombine.high %v3171_v16, %v3171_v16  ;;  %v4756_v43 = vrot.slane %v3171_v16, 9  ;;  %v3130_v4 = vcombine.high %v2650_v55, %v2650_v55 }
 0x2f8   : > { %v3915_v48 = vmax.f32 %v6729_v0, %v3835_v13  ;;  %v4167_v57 = vrot.slane %v3913_v59, %v6534_v6  ;;  %v4171_v45 = vrot.slane %v3914_v17, %v6534_v6  ;;  %v3180_v38 = vcombine.high %v3178_v5, %v3178_v5  ;;  %v2423_v59 = vpop.permute.xlu0 %2422 }
 0x2f9   : > { %v4757_v29 = vrot.slane %v3179_v30, 9  ;;  %v4758_v19 = vrot.slane %v3178_v5, 9  ;;  %v6776_v31 = vmax.f32 %v3171_v16, %v4756_v43  ;;  %v3137_v32 = vrot.slane %v2650_v55, %v6528_v52 }
 0x2fa   : > { %v6780_v24 = vrot.slane %v3915_v48, %v6534_v6  ;;  %v4298_v2 = vsel %vm4256_vm0, %v4167_v57, %v4163_v1  ;;  %v4759_v11 = vrot.slane %v3180_v38, 9  ;;  %v3144_v0 = vrot.slane %v3130_v4, %v6528_v52  ;;  %v2453_v57 = vpop.permute.xlu1 %2452 }
 0x2fb   : > { %v6785_v50 = vsel %vm4258_vm1, %v4171_v45, %v4298_v2  ;;  %v6787_v3 = vmax.f32 %v3179_v30, %v4757_v29  ;;  %v6789_v23 = vmax.f32 %v3178_v5, %v4758_v19  ;;  %v3145_v22 = vcombine.high %v3137_v32, %v3137_v32 }
 0x2fc   : > { %v6791_v20 = vmax.f32 %v3180_v38, %v4759_v11  ;;  %v3146_v28 = vcombine.high %v3144_v0, %v3144_v0  ;;  %v4748_v18 = vrot.slane %v3137_v32, 9  ;;  %v4750_v15 = vrot.slane %v3144_v0, 9 }
 0x2fd   : > { %v4749_v26 = vrot.slane %v3145_v22, 9  ;;  %v2532_v58 = vmul.f32 %v6507_v61, %v2413_v44  ;;  %v6797_v27 = vsel %vm4260_vm2, %v6697_v33, %v6702_v21  ;;  %v2551_v42 = vmul.f32 %v6507_v61, %v2508_v7 }
 0x2fe   : > { %v4751_v37 = vrot.slane %v3146_v28, 9  ;;  %v3848_v16 = vmax.f32 %v3137_v32, %v4748_v18  ;;  %v3850_v55 = vmax.f32 %v3144_v0, %v4750_v15  ;;  %v2536_v13 = vmul.f32 %v6507_v61, %v2433_v40 }
 0x2ff   : > { %v3849_v17 = vmax.f32 %v3145_v22, %v4749_v26  ;;  %v2564_v5 = vadd.f32 %v2532_v58, %v6396_v63  ;;  %v2583_v1 = vadd.f32 %v2551_v42, %v6513_v49  ;;  %v6806_v44 = vsel %vm4260_vm2, %v6713_v54, %v6727_v25  ;;  %v2443_v42 = vpop.permute.xlu0 %2442 }
 0x300   : > { %v3851_v33 = vmax.f32 %v3146_v28, %v4751_v37  ;;  %v3920_v21 = vmax.f32 %v6759_v47, %v3848_v16  ;;  %v3922_v30 = vmax.f32 %v6763_v36, %v3850_v55  ;;  %v2568_v43 = vadd.f32 %v2536_v13, %v6412_v62 }
 0x301   : > { %v3921_v4 = vmax.f32 %v6761_v46, %v3849_v17  ;;  %v2603_v48 = vadd.f32 %v6524_v8, %v2564_v5  ;;  %v2622_v63 = vadd.f32 %v6524_v8, %v2583_v1  ;;  %v2534_v49 = vmul.f32 %v6507_v61, %v2423_v59 }
 0x302   : > { %v3923_v45 = vmax.f32 %v6765_v35, %v3851_v33  ;;  %v4195_v54 = vrot.slane %v3920_v21, %v6534_v6  ;;  %v4203_v25 = vrot.slane %v3922_v30, %v6534_v6  ;;  %v2607_v47 = vadd.f32 %v6524_v8, %v2568_v43 }
 0x303   : > { %v4199_v36 = vrot.slane %v3921_v4, %v6534_v6  ;;  %v2635_v62 = vmax.f32 %v2603_v48, 0.0  ;;  %v2654_v38 = vmax.f32 %v2622_v63, 0.0  ;;  %v6821_v46 = vadd.f32 %v2534_v49, %v6404_v34 }
 0x304   : > { %v6824_v7 = vrot.slane %v3923_v45, %v6534_v6  ;;  %v2639_v29 = vmax.f32 %v2607_v47, 0.0  ;;  %v6827_v19 = vmul.f32 %v6507_v61, %v2453_v57  ;;  %v6832_v35 = vsel %vm4260_vm2, %v6751_v41, %v6757_v10  ;;  %v2473_v47 = vpop.permute.xlu1 %2472 }
 0x305   : > { %v4305_v8 = vsel %vm4256_vm0, %v4199_v36, %v4195_v54  ;;  %v2875_v32 = vcombine.high %v2635_v62, %v2635_v62  ;;  %v2882_v2 = vrot.slane %v2635_v62, %v6528_v52  ;;  %v3198_v11 = vcombine.high %v2654_v38, %v2654_v38 }
 0x306   : > { %v6837_v34 = vsel %vm4258_vm1, %v4203_v25, %v4305_v8  ;;  %v3205_v0 = vrot.slane %v2654_v38, %v6528_v52  ;;  %v2943_v22 = vcombine.high %v2639_v29, %v2639_v29  ;;  %v2950_v61 = vrot.slane %v2639_v29, %v6528_v52  ;;  %v2463_v29 = vpop.permute.xlu0 %2462 }
 0x307   : > { %v2889_v40 = vrot.slane %v2875_v32, %v6528_v52  ;;  %v2890_v28 = vcombine.high %v2882_v2, %v2882_v2  ;;  %v4688_v18 = vrot.slane %v2882_v2, 9  ;;  %v3212_v41 = vrot.slane %v3198_v11, %v6528_v52 }
 0x308   : > { %v3213_v10 = vcombine.high %v3205_v0, %v3205_v0  ;;  %v4764_v15 = vrot.slane %v3205_v0, 9  ;;  %v2957_v26 = vrot.slane %v2943_v22, %v6528_v52  ;;  %v2958_v58 = vcombine.high %v2950_v61, %v2950_v61 }
 0x309   : > { %v2891_v37 = vcombine.high %v2889_v40, %v2889_v40  ;;  %v4689_v16 = vrot.slane %v2890_v28, 9  ;;  %v4690_v55 = vrot.slane %v2889_v40, 9  ;;  %v3788_v13 = vmax.f32 %v2882_v2, %v4688_v18 }
 0x30a   : > { %v3214_v59 = vcombine.high %v3212_v41, %v3212_v41  ;;  %v4765_v17 = vrot.slane %v3213_v10, 9  ;;  %v4766_v5 = vrot.slane %v3212_v41, 9  ;;  %v3864_v1 = vmax.f32 %v3205_v0, %v4764_v15 }
 0x30b   : > { %v4691_v33 = vrot.slane %v2891_v37, 9  ;;  %v3789_v21 = vmax.f32 %v2890_v28, %v4689_v16  ;;  %v3790_v30 = vmax.f32 %v2889_v40, %v4690_v55  ;;  %v3892_v43 = vmax.f32 %v6626_v56, %v3788_v13  ;;  %v6876_v13 = vld [vmem:[%s7014_s2] ss:$0 sm:$0xff] }
 0x30c   : > { %v4767_v4 = vrot.slane %v3214_v59, 9  ;;  %v3865_v48 = vmax.f32 %v3213_v10, %v4765_v17  ;;  %v3866_v63 = vmax.f32 %v3212_v41, %v4766_v5  ;;  %v3928_v49 = vmax.f32 %v6776_v31, %v3864_v1  ;;  %v2483_v5 = vpop.permute.xlu0 %2482 }
 0x30d   : > { %v3791_v57 = vmax.f32 %v2891_v37, %v4691_v33  ;;  %v3893_v45 = vmax.f32 %v6634_v9, %v3789_v21  ;;  %v3894_v54 = vmax.f32 %v6630_v12, %v3790_v30  ;;  %v4083_v25 = vrot.slane %v3892_v43, %v6534_v6  ;;  %v2493_v37 = vpop.permute.xlu1 %2492 }
 0x30e   : > { %v3867_v36 = vmax.f32 %v3214_v59, %v4767_v4  ;;  %v3929_v62 = vmax.f32 %v6787_v3, %v3865_v48  ;;  %v3930_v38 = vmax.f32 %v6789_v23, %v3866_v63  ;;  %v4227_v56 = vrot.slane %v3928_v49, %v6534_v6 }
 0x30f   : > { %v3895_v8 = vmax.f32 %v6637_v60, %v3791_v57  ;;  %v4087_v31 = vrot.slane %v3893_v45, %v6534_v6  ;;  %v4091_v32 = vrot.slane %v3894_v54, %v6534_v6  ;;  %v4280_v12 = vsel %vm4262_vm3, %v4083_v25, %v6797_v27 }
 0x310   : > { %v3931_v9 = vmax.f32 %v6791_v20, %v3867_v36  ;;  %v4231_v2 = vrot.slane %v3929_v62, %v6534_v6  ;;  %v4235_v3 = vrot.slane %v3930_v38, %v6534_v6  ;;  %v2959_v23 = vcombine.high %v2957_v26, %v2957_v26 }
 0x311   : > { %v4095_v11 = vrot.slane %v3895_v8, %v6534_v6  ;;  %v4281_v0 = vsel %vm4264_vm4, %v4087_v31, %v4280_v12  ;;  %v4704_v60 = vrot.slane %v2950_v61, 9  ;;  %v4705_v22 = vrot.slane %v2958_v58, 9 }
 0x312   : > { %v4282_v40 = vsel %vm4266_vm5, %v4091_v32, %v4281_v0  ;;  %v6864_v28 = vrot.slane %v3931_v9, %v6534_v6  ;;  %v4312_v27 = vsel %vm4256_vm0, %v4231_v2, %v4227_v56  ;;  %v4706_v20 = vrot.slane %v2957_v26, 9 }
 0x313   : > { %v4283_v18 = vsel %vm4268_vm6, %v4095_v11, %v4282_v40  ;;  %v6869_v41 = vsel %vm4258_vm1, %v4235_v3, %v4312_v27  ;;  %v4707_v10 = vrot.slane %v2959_v23, 9  ;;  %v3804_v15 = vmax.f32 %v2950_v61, %v4704_v60  ;;  %v6885_v61 = vld [vmem:[%s7013_s1 + $0x8] ss:$0 sm:$0xff] }
 0x314   : > { %4330 = vst.msk [vmem:[%s6577_s29 + $0x10] sm:$0xff] %vm4327_vm7, %v4283_v18  ;;  %v3805_v16 = vmax.f32 %v2958_v58, %v4705_v22  ;;  %v3806_v55 = vmax.f32 %v2957_v26, %v4706_v20  ;;  %v2605_v59 = vadd.f32 %v6876_v13, %v6821_v46  ;;  %v2572_v17 = vadd.f32 %v6827_v19, %v6428_v53 }
 0x315   : > { %v3807_v1 = vmax.f32 %v2959_v23, %v4707_v10  ;;  %v2538_v26 = vmul.f32 %v6885_v61, %v2443_v42  ;;  %v2544_v58 = vmul.f32 %v6885_v61, %v2473_v47  ;;  %v6892_v33 = vsel %vm4260_vm2, %v6780_v24, %v6785_v50 }
 0x316   : > { %v2637_v46 = vmax.f32 %v2605_v59, 0.0  ;;  %v2611_v21 = vadd.f32 %v6876_v13, %v2572_v17  ;;  %v2542_v53 = vmul.f32 %v6885_v61, %v2463_v29  ;;  %v2548_v19 = vmul.f32 %v6885_v61, %v2493_v37 }
 0x317   : > { %v2570_v30 = vadd.f32 %v2538_v26, %v6420_v39  ;;  %v2576_v43 = vadd.f32 %v2544_v58, %v6444_v51  ;;  %v6902_v42 = vsel %vm4260_vm2, %v6824_v7, %v6837_v34  ;;  %v2546_v4 = vmul.f32 %v6885_v61, %v2483_v5  ;;  %v7292_v39 = vld [vmem:[#allocation43_spill] sm:$0xff]  ;;  %v7293_v51 = vld [vmem:[#allocation42_spill] sm:$0xff] }
 0x318   : > { %v2909_v24 = vcombine.high %v2637_v46, %v2637_v46  ;;  %v2916_v50 = vrot.slane %v2637_v46, %v6528_v52  ;;  %v2643_v48 = vmax.f32 %v2611_v21, 0.0  ;;  %v2574_v63 = vadd.f32 %v2542_v53, %v6436_v14 }
 0x319   : > { %v2609_v49 = vadd.f32 %v6876_v13, %v2570_v30  ;;  %v2615_v57 = vadd.f32 %v6876_v13, %v2576_v43  ;;  %v6910_v45 = vadd.f32 %v2548_v19, %v7292_v39  ;;  %v6913_v54 = vadd.f32 %v2546_v4, %v7293_v51 }
 0x31a   : > { %v2923_v7 = vrot.slane %v2909_v24, %v6528_v52  ;;  %v2924_v34 = vcombine.high %v2916_v50, %v2916_v50  ;;  %v4696_v25 = vrot.slane %v2916_v50, 9  ;;  %v3011_v47 = vcombine.high %v2643_v48, %v2643_v48 }
 0x31b   : > { %v3018_v36 = vrot.slane %v2643_v48, %v6528_v52  ;;  %v2641_v62 = vmax.f32 %v2609_v49, 0.0  ;;  %v2647_v38 = vmax.f32 %v2615_v57, 0.0  ;;  %v6918_v14 = vadd.f32 %v6876_v13, %v2574_v63 }
 0x31c   : > { %v2925_v56 = vcombine.high %v2923_v7, %v2923_v7  ;;  %v4697_v29 = vrot.slane %v2924_v34, 9  ;;  %v4698_v8 = vrot.slane %v2923_v7, 9  ;;  %v3796_v31 = vmax.f32 %v2916_v50, %v4696_v25 }
 0x31d   : > { %v3025_v32 = vrot.slane %v3011_v47, %v6528_v52  ;;  %v3026_v12 = vcombine.high %v3018_v36, %v3018_v36  ;;  %v4720_v9 = vrot.slane %v3018_v36, 9  ;;  %v2977_v2 = vcombine.high %v2641_v62, %v2641_v62 }
 0x31e   : > { %v4699_v3 = vrot.slane %v2925_v56, 9  ;;  %v3797_v23 = vmax.f32 %v2924_v34, %v4697_v29  ;;  %v3798_v11 = vmax.f32 %v2923_v7, %v4698_v8  ;;  %v3900_v0 = vmax.f32 %v3796_v31, %v3804_v15 }
 0x31f   : > { %v3027_v60 = vcombine.high %v3025_v32, %v3025_v32  ;;  %v4721_v22 = vrot.slane %v3026_v12, 9  ;;  %v4722_v40 = vrot.slane %v3025_v32, 9  ;;  %v3820_v27 = vmax.f32 %v3018_v36, %v4720_v9 }
 0x320   : > { %v3799_v20 = vmax.f32 %v2925_v56, %v4699_v3  ;;  %v3901_v18 = vmax.f32 %v3797_v23, %v3805_v16  ;;  %v3902_v10 = vmax.f32 %v3798_v11, %v3806_v55  ;;  %v4115_v37 = vrot.slane %v3900_v0, %v6534_v6 }
 0x321   : > { %v4723_v59 = vrot.slane %v3027_v60, 9  ;;  %v3821_v17 = vmax.f32 %v3026_v12, %v4721_v22  ;;  %v3822_v5 = vmax.f32 %v3025_v32, %v4722_v40  ;;  %v2984_v26 = vrot.slane %v2641_v62, %v6528_v52 }
 0x322   : > { %v3903_v58 = vmax.f32 %v3799_v20, %v3807_v1  ;;  %v4119_v46 = vrot.slane %v3901_v18, %v6534_v6  ;;  %v4123_v21 = vrot.slane %v3902_v10, %v6534_v6  ;;  %v4287_v15 = vsel %vm4262_vm3, %v4115_v37, %v6806_v44 }
 0x323   : > { %v3823_v53 = vmax.f32 %v3027_v60, %v4723_v59  ;;  %v2991_v16 = vrot.slane %v2977_v2, %v6528_v52  ;;  %v2992_v55 = vcombine.high %v2984_v26, %v2984_v26  ;;  %v4712_v19 = vrot.slane %v2984_v26, 9  ;;  %v2513_v60 = vpop.permute.xlu1 %2512 }
 0x324   : > { %v4127_v30 = vrot.slane %v3903_v58, %v6534_v6  ;;  %v4288_v43 = vsel %vm4264_vm4, %v4119_v46, %v4287_v15  ;;  %v3079_v4 = vcombine.high %v2647_v38, %v2647_v38  ;;  %v3086_v1 = vrot.slane %v2647_v38, %v6528_v52 }
 0x325   : > { %v4289_v24 = vsel %vm4266_vm5, %v4123_v21, %v4288_v43  ;;  %v2993_v50 = vcombine.high %v2991_v16, %v2991_v16  ;;  %v4713_v48 = vrot.slane %v2992_v55, 9  ;;  %v4714_v63 = vrot.slane %v2991_v16, 9 }
 0x326   : > { %v4290_v44 = vsel %vm4268_vm6, %v4127_v30, %v4289_v24  ;;  %v3812_v49 = vmax.f32 %v2984_v26, %v4712_v19  ;;  %v3093_v57 = vrot.slane %v3079_v4, %v6528_v52  ;;  %v3094_v39 = vcombine.high %v3086_v1, %v3086_v1 }
 0x327   : > { %4331 = vst.msk [vmem:[%s6577_s29 + $0x18] sm:$0xff] %vm4327_vm7, %v4290_v44  ;;  %v4715_v51 = vrot.slane %v2993_v50, 9  ;;  %v3813_v7 = vmax.f32 %v2992_v55, %v4713_v48  ;;  %v3814_v34 = vmax.f32 %v2991_v16, %v4714_v63  ;;  %v4736_v25 = vrot.slane %v3086_v1, 9 }
 0x328   : > { %v3908_v47 = vmax.f32 %v3812_v49, %v3820_v27  ;;  %v3095_v36 = vcombine.high %v3093_v57, %v3093_v57  ;;  %v4737_v62 = vrot.slane %v3094_v39, 9  ;;  %v4738_v38 = vrot.slane %v3093_v57, 9 }
 0x329   : > { %v3815_v56 = vmax.f32 %v2993_v50, %v4715_v51  ;;  %v3909_v29 = vmax.f32 %v3813_v7, %v3821_v17  ;;  %v3910_v8 = vmax.f32 %v3814_v34, %v3822_v5  ;;  %v3836_v31 = vmax.f32 %v3086_v1, %v4736_v25 }
 0x32a   : > { %v4147_v32 = vrot.slane %v3908_v47, %v6534_v6  ;;  %v4739_v12 = vrot.slane %v3095_v36, 9  ;;  %v3837_v9 = vmax.f32 %v3094_v39, %v4737_v62  ;;  %v3838_v2 = vmax.f32 %v3093_v57, %v4738_v38 }
 0x32b   : > { %v3911_v3 = vmax.f32 %v3815_v56, %v3823_v53  ;;  %v4151_v23 = vrot.slane %v3909_v29, %v6534_v6  ;;  %v4155_v11 = vrot.slane %v3910_v8, %v6534_v6  ;;  %v2645_v0 = vmax.f32 %v6918_v14, 0.0 }
 0x32c   : > { %v4294_v22 = vsel %vm4262_vm3, %v4147_v32, %v6832_v35  ;;  %v3839_v40 = vmax.f32 %v3095_v36, %v4739_v12  ;;  %v2619_v27 = vadd.f32 %v6876_v13, %v6910_v45  ;;  %v2617_v20 = vadd.f32 %v6876_v13, %v6913_v54 }
 0x32d   : > { %v4159_v18 = vrot.slane %v3911_v3, %v6534_v6  ;;  %v4295_v10 = vsel %vm4264_vm4, %v4151_v23, %v4294_v22  ;;  %v3045_v37 = vcombine.high %v2645_v0, %v2645_v0  ;;  %v3052_v59 = vrot.slane %v2645_v0, %v6528_v52 }
 0x32e   : > { %v4296_v14 = vsel %vm4266_vm5, %v4155_v11, %v4295_v10  ;;  %v2651_v17 = vmax.f32 %v2619_v27, 0.0  ;;  %v2649_v5 = vmax.f32 %v2617_v20, 0.0  ;;  %v2552_v35 = vmul.f32 %v6885_v61, %v2513_v60  ;;  %v7294_v60 = vld [vmem:[#allocation45_spill] sm:$0xff] }
 0x32f   : > { %v4297_v26 = vsel %vm4268_vm6, %v4159_v18, %v4296_v14  ;;  %v3059_v45 = vrot.slane %v3045_v37, %v6528_v52  ;;  %v3060_v58 = vcombine.high %v3052_v59, %v3052_v59  ;;  %v4728_v46 = vrot.slane %v3052_v59, 9 }
 0x330   : > { %4332 = vst.msk [vmem:[%s6577_s29 + $0x20] sm:$0xff] %vm4327_vm7, %v4297_v26  ;;  %v3147_v54 = vcombine.high %v2651_v17, %v2651_v17  ;;  %v3154_v21 = vrot.slane %v2651_v17, %v6528_v52  ;;  %v3113_v15 = vcombine.high %v2649_v5, %v2649_v5  ;;  %v3120_v53 = vrot.slane %v2649_v5, %v6528_v52 }
 0x331   : > { %v3061_v16 = vcombine.high %v3059_v45, %v3059_v45  ;;  %v4729_v55 = vrot.slane %v3060_v58, 9  ;;  %v4730_v19 = vrot.slane %v3059_v45, 9  ;;  %v3828_v30 = vmax.f32 %v3052_v59, %v4728_v46 }
 0x332   : > { %v3161_v43 = vrot.slane %v3147_v54, %v6528_v52  ;;  %v3162_v4 = vcombine.high %v3154_v21, %v3154_v21  ;;  %v4752_v1 = vrot.slane %v3154_v21, 9  ;;  %v3127_v24 = vrot.slane %v3113_v15, %v6528_v52  ;;  %v7295_v15 = vld [vmem:[#allocation44_spill] sm:$0xff] }
 0x333   : > { %v4731_v50 = vrot.slane %v3061_v16, 9  ;;  %v3829_v48 = vmax.f32 %v3060_v58, %v4729_v55  ;;  %v3830_v63 = vmax.f32 %v3059_v45, %v4730_v19  ;;  %v3916_v44 = vmax.f32 %v3828_v30, %v3836_v31 }
 0x334   : > { %v3163_v49 = vcombine.high %v3161_v43, %v3161_v43  ;;  %v4753_v57 = vrot.slane %v3162_v4, 9  ;;  %v4754_v39 = vrot.slane %v3161_v43, 9  ;;  %v3852_v51 = vmax.f32 %v3154_v21, %v4752_v1 }
 0x335   : > { %v3831_v7 = vmax.f32 %v3061_v16, %v4731_v50  ;;  %v3917_v34 = vmax.f32 %v3829_v48, %v3837_v9  ;;  %v3918_v25 = vmax.f32 %v3830_v63, %v3838_v2  ;;  %v4179_v47 = vrot.slane %v3916_v44, %v6534_v6 }
 0x336   : > { %v4755_v36 = vrot.slane %v3163_v49, 9  ;;  %v3853_v62 = vmax.f32 %v3162_v4, %v4753_v57  ;;  %v3854_v38 = vmax.f32 %v3161_v43, %v4754_v39  ;;  %v3128_v56 = vcombine.high %v3120_v53, %v3120_v53 }
 0x337   : > { %v3919_v29 = vmax.f32 %v3831_v7, %v3839_v40  ;;  %v4183_v8 = vrot.slane %v3917_v34, %v6534_v6  ;;  %v4187_v32 = vrot.slane %v3918_v25, %v6534_v6  ;;  %v4301_v31 = vsel %vm4262_vm3, %v4179_v47, %v6892_v33  ;;  %v2503_v40 = vpop.permute.xlu0 %2502 }
 0x338   : > { %v3855_v12 = vmax.f32 %v3163_v49, %v4755_v36  ;;  %v3129_v3 = vcombine.high %v3127_v24, %v3127_v24  ;;  %v4744_v23 = vrot.slane %v3120_v53, 9  ;;  %v4745_v9 = vrot.slane %v3128_v56, 9 }
 0x339   : > { %v4191_v2 = vrot.slane %v3919_v29, %v6534_v6  ;;  %v4302_v11 = vsel %vm4264_vm4, %v4183_v8, %v4301_v31  ;;  %v4746_v0 = vrot.slane %v3127_v24, 9  ;;  %v2584_v22 = vadd.f32 %v2552_v35, %v7294_v60 }
 0x33a   : > { %v4303_v27 = vsel %vm4266_vm5, %v4187_v32, %v4302_v11  ;;  %v4747_v20 = vrot.slane %v3129_v3, 9  ;;  %v3844_v18 = vmax.f32 %v3120_v53, %v4744_v23  ;;  %v3845_v10 = vmax.f32 %v3128_v56, %v4745_v9 }
 0x33b   : > { %v4304_v33 = vsel %vm4268_vm6, %v4191_v2, %v4303_v27  ;;  %v3846_v37 = vmax.f32 %v3127_v24, %v4746_v0  ;;  %v2623_v59 = vadd.f32 %v6876_v13, %v2584_v22  ;;  %v4314_v14 = vsel %vm4260_vm2, %v6864_v28, %v6869_v41 }
 0x33c   : > { %4333 = vst.msk [vmem:[%s6577_s29 + $0x28] sm:$0xff] %vm4327_vm7, %v4304_v33  ;;  %v3847_v17 = vmax.f32 %v3129_v3, %v4747_v20  ;;  %v3924_v5 = vmax.f32 %v3844_v18, %v3852_v51  ;;  %v3925_v35 = vmax.f32 %v3845_v10, %v3853_v62  ;;  %v2550_v26 = vmul.f32 %v6885_v61, %v2503_v40 }
 0x33d   : > { %v3926_v45 = vmax.f32 %v3846_v37, %v3854_v38  ;;  %v2655_v58 = vmax.f32 %v2623_v59, 0.0 }
 0x33e   : > { %v3927_v46 = vmax.f32 %v3847_v17, %v3855_v12  ;;  %v4211_v54 = vrot.slane %v3924_v5, %v6534_v6  ;;  %v4215_v21 = vrot.slane %v3925_v35, %v6534_v6  ;;  %v2582_v53 = vadd.f32 %v2550_v26, %v7295_v15 }
 0x33f   : > { %v4219_v16 = vrot.slane %v3926_v45, %v6534_v6  ;;  %v3215_v28 = vcombine.high %v2655_v58, %v2655_v58  ;;  %v3222_v41 = vrot.slane %v2655_v58, %v6528_v52 }
 0x340   : > { %v4223_v55 = vrot.slane %v3927_v46, %v6534_v6  ;;  %v4308_v61 = vsel %vm4262_vm3, %v4211_v54, %v6902_v42  ;;  %v2621_v19 = vadd.f32 %v6876_v13, %v2582_v53 }
 0x341   : > { %v4309_v30 = vsel %vm4264_vm4, %v4215_v21, %v4308_v61  ;;  %v3229_v43 = vrot.slane %v3215_v28, %v6528_v52  ;;  %v3230_v4 = vcombine.high %v3222_v41, %v3222_v41  ;;  %v4768_v24 = vrot.slane %v3222_v41, 9 }
 0x342   : > { %v4310_v1 = vsel %vm4266_vm5, %v4219_v16, %v4309_v30  ;;  %v2653_v50 = vmax.f32 %v2621_v19, 0.0 }
 0x343   : > { %v4311_v48 = vsel %vm4268_vm6, %v4223_v55, %v4310_v1  ;;  %v3231_v63 = vcombine.high %v3229_v43, %v3229_v43  ;;  %v4769_v44 = vrot.slane %v3230_v4, 9  ;;  %v4770_v49 = vrot.slane %v3229_v43, 9 }
 0x344   : > { %4334 = vst.msk [vmem:[%s6577_s29 + $0x30] sm:$0xff] %vm4327_vm7, %v4311_v48  ;;  %v3181_v57 = vcombine.high %v2653_v50, %v2653_v50  ;;  %v3188_v42 = vrot.slane %v2653_v50, %v6528_v52  ;;  %v3868_v39 = vmax.f32 %v3222_v41, %v4768_v24 }
 0x345   : > { %v4771_v13 = vrot.slane %v3231_v63, 9  ;;  %v3869_v25 = vmax.f32 %v3230_v4, %v4769_v44  ;;  %v3870_v47 = vmax.f32 %v3229_v43, %v4770_v49 }
 0x346   : > { %v3195_v51 = vrot.slane %v3181_v57, %v6528_v52  ;;  %v3196_v7 = vcombine.high %v3188_v42, %v3188_v42  ;;  %v4760_v34 = vrot.slane %v3188_v42, 9 }
 0x347   : > { %v3871_v29 = vmax.f32 %v3231_v63, %v4771_v13 }
 0x348   : > { %v3197_v36 = vcombine.high %v3195_v51, %v3195_v51  ;;  %v4761_v62 = vrot.slane %v3196_v7, 9  ;;  %v4762_v38 = vrot.slane %v3195_v51, 9  ;;  %v3860_v56 = vmax.f32 %v3188_v42, %v4760_v34 }
 0x34a   : > { %v4763_v8 = vrot.slane %v3197_v36, 9  ;;  %v3861_v32 = vmax.f32 %v3196_v7, %v4761_v62  ;;  %v3862_v31 = vmax.f32 %v3195_v51, %v4762_v38  ;;  %v3932_v12 = vmax.f32 %v3860_v56, %v3868_v39 }
 0x34c   : > { %v3863_v3 = vmax.f32 %v3197_v36, %v4763_v8  ;;  %v3933_v23 = vmax.f32 %v3861_v32, %v3869_v25  ;;  %v3934_v9 = vmax.f32 %v3862_v31, %v3870_v47  ;;  %v4243_v2 = vrot.slane %v3932_v12, %v6534_v6 }
 0x34e   : > { %v3935_v52 = vmax.f32 %v3863_v3, %v3871_v29  ;;  %v4247_v11 = vrot.slane %v3933_v23, %v6534_v6  ;;  %v4251_v0 = vrot.slane %v3934_v9, %v6534_v6  ;;  %v4315_v60 = vsel %vm4262_vm3, %v4243_v2, %v4314_v14 }
 0x350   : > { %v4255_v22 = vrot.slane %v3935_v52, %v6534_v6  ;;  %v4316_v40 = vsel %vm4264_vm4, %v4247_v11, %v4315_v60 }
 0x351   : > { %v4317_v27 = vsel %vm4266_vm5, %v4251_v0, %v4316_v40 }
 0x352   : > { %v4318_v20 = vsel %vm4268_vm6, %v4255_v22, %v4317_v27 }
 0x353   : > { %4335 = vst.msk [vmem:[%s6577_s29 + $0x38] sm:$0xff] %vm4327_vm7, %v4318_v20 }
 0x354 PF: > { %s13_s14 = sadd.s32 1, %s4833_s14   ;;  %s7296_s12 = smov %s4829_s13 }
 0x355   : > { %p10_p5 = scmp.ge.s32.totalorder %s13_s14, 4   ;;  %s7297_s13 = smov %s7299_s15 }
 0x357   :  { %12 = sbr.rel (!%p10_p5) target bundleno = 2 (0x2), region = 72 }

// kernel: conv_autoencoder_forward.10
= control target key start
LH: loop header
LB: loop body
LE: loop exit
PB: predicated region body
PF: predicated region fallthrough
CT: control target
= control target key end

     0   :  { %v173_v3 = vmov 0.0   ;;  %vm38_vm0 = vcmask 261120   ;;  %v28_v13 = vlaneseq  ;;  %s257_s1 = inlined_call_operand.vmem [shape: f32[32,256], index: 1, kind: input, shape index: {}]   ;;  %s258_s0 = inlined_call_operand.vmem [shape: f32[32,32], index: 0, kind: input, shape index: {}]   ;;  %s259_s2 = inlined_call_operand.vmem [shape: f32[1,256], index: 2, kind: input, shape index: {}]   ;;  %s260_s3 = inlined_call_operand.vmem [shape: f32[32,256], index: 3, kind: output, shape index: {}]  }
   0x1   :  { %v25_v0 = vld [vmem:[%s257_s1 + $0x38] sm:$0xff]  ;;  %v24_v1 = vld [vmem:[%s257_s1 + $0x30] sm:$0xff]  ;;  %v23_v2 = vld [vmem:[%s257_s1 + $0x28] sm:$0xff]  ;;  %115 = vmatprep.mubr.f32.mxu0 %v173_v3  ;;  %127 = vmatprep.mubr.f32.mxu1 %v173_v3 }
   0x2   :  { %75 = vmatprep.subr.mxu0 %v25_v0  ;;  %164 = vmatprep.subr.mxu1 %v25_v0  ;;  %v22_v4 = vld [vmem:[%s257_s1 + $0x20] sm:$0xff]  ;;  %v21_v5 = vld [vmem:[%s257_s1 + $0x18] sm:$0xff]  ;;  %v20_v6 = vld [vmem:[%s257_s1 + $0x10] sm:$0xff]  ;;  %v29_v14 = vshrl.u32 %v28_v13, 7 }
   0x3   :  { %76 = vmatpush1.msra.mxu0 %v24_v1  ;;  %168 = vmatpush1.msra.mxu1 %v24_v1  ;;  %v19_v7 = vld [vmem:[%s257_s1 + $0x8] sm:$0xff]  ;;  %v18_v8 = vld [vmem:[%s257_s1] sm:$0xff]  ;;  %v16_v10 = vld [vmem:[%s258_s0 + $0x10] sm:$0xff] }
   0x4   :  { %77 = vmatprep.subr.mxu0 %v23_v2  ;;  %165 = vmatprep.subr.mxu1 %v23_v2  ;;  %v14_v9 = vld [vmem:[%s258_s0] sm:$0xff]  ;;  %v15_v11 = vld [vmem:[%s258_s0 + $0x8] sm:$0xff]  ;;  %v17_v12 = vld [vmem:[%s258_s0 + $0x18] sm:$0xff]  ;;  %v30_v15 = vsub.s32 0, %v29_v14  ;;  %v34_v17 = vsub.s32 1, %v29_v14 }
   0x5   :  { %78 = vmatpush1.msra.mxu0 %v22_v4  ;;  %169 = vmatpush1.msra.mxu1 %v22_v4  ;;  %v26_v16 = vld [vmem:[%s259_s2] sm:$0x3] }
   0x6   :  { %79 = vmatprep.subr.mxu0 %v21_v5  ;;  %166 = vmatprep.subr.mxu1 %v21_v5  ;;  %v31_v18 = vrot.slane %v26_v16, %v30_v15  ;;  %v35_v19 = vrot.slane %v26_v16, %v34_v17 }
   0x7   :  { %80 = vmatpush1.msra.mxu0 %v20_v6  ;;  %170 = vmatpush1.msra.mxu1 %v20_v6 }
   0x8   :  { %81 = vmatprep.subr.mxu0 %v19_v7  ;;  %167 = vmatprep.subr.mxu1 %v19_v7 }
   0x9   :  { %82 = vmatpush1.msra.mxu0 %v18_v8  ;;  %171 = vmatpush1.msra.mxu1 %v18_v8 }
   0xa   :  { %160 = vmatmul.mubr.msk.f32.vlgmr.msra.gmra.mxu0 %vm38_vm0, %v14_v9  ;;  %162 = vmatmul.mubr.msk.f32.vlgmr.msra.gmra.mxu1 %vm38_vm0, %v16_v10 }
   0xb   :  { %121 = vmatprep.mubr.f32.mxu0 %v173_v3  ;;  %133 = vmatprep.mubr.f32.mxu1 %v173_v3 }
   0xe   :  { %161 = vmatmul.mubr.msk.f32.gmra.mxu0 %vm38_vm0, %v15_v11  ;;  %163 = vmatmul.mubr.msk.f32.gmra.mxu1 %vm38_vm0, %v17_v12 }
  0xca   :  { %v117_v20 = vpop.f32.mrf.mxu0  ;;  %v129_v21 = vpop.f32.mrf.mxu1 }
  0xcb   :  { %v118_v22 = vadd.f32 %v117_v20, %v31_v18  ;;  %v130_v23 = vadd.f32 %v129_v21, %v31_v18 }
  0xcc   :  { %v119_v24 = vpop.f32.mrf.mxu0  ;;  %v131_v25 = vpop.f32.mrf.mxu1 }
  0xcd   :  { %v140_v26 = vmax.f32 %v118_v22, 0.0  ;;  %v144_v27 = vmax.f32 %v130_v23, 0.0  ;;  %v120_v28 = vadd.f32 %v119_v24, %v35_v19  ;;  %v132_v29 = vadd.f32 %v131_v25, %v35_v19 }
  0xce   :  { %v123_v30 = vpop.f32.mrf.mxu0  ;;  %v135_v31 = vpop.f32.mrf.mxu1 }
  0xcf   :  { %148 = vst [vmem:[%s260_s3] sm:$0xff] %v140_v26  ;;  %152 = vst [vmem:[%s260_s3 + $0x20] sm:$0xff] %v144_v27  ;;  %v141_v32 = vmax.f32 %v120_v28, 0.0  ;;  %v145_v33 = vmax.f32 %v132_v29, 0.0  ;;  %v124_v34 = vadd.f32 %v123_v30, %v31_v18  ;;  %v136_v35 = vadd.f32 %v135_v31, %v31_v18 }
  0xd0   :  { %v125_v36 = vpop.f32.mrf.mxu0  ;;  %v137_v37 = vpop.f32.mrf.mxu1 }
  0xd1   :  { %149 = vst [vmem:[%s260_s3 + $0x8] sm:$0xff] %v141_v32  ;;  %153 = vst [vmem:[%s260_s3 + $0x28] sm:$0xff] %v145_v33  ;;  %v142_v38 = vmax.f32 %v124_v34, 0.0  ;;  %v146_v39 = vmax.f32 %v136_v35, 0.0  ;;  %v126_v40 = vadd.f32 %v125_v36, %v35_v19  ;;  %v138_v41 = vadd.f32 %v137_v37, %v35_v19 }
  0xd3   :  { %150 = vst [vmem:[%s260_s3 + $0x10] sm:$0xff] %v142_v38  ;;  %154 = vst [vmem:[%s260_s3 + $0x30] sm:$0xff] %v146_v39  ;;  %v143_v42 = vmax.f32 %v126_v40, 0.0  ;;  %v147_v43 = vmax.f32 %v138_v41, 0.0 }
  0xd5   :  { %151 = vst [vmem:[%s260_s3 + $0x18] sm:$0xff] %v143_v42  ;;  %155 = vst [vmem:[%s260_s3 + $0x38] sm:$0xff] %v147_v43 }

// kernel: conv_autoencoder_forward.11
= control target key start
LH: loop header
LB: loop body
LE: loop exit
PB: predicated region body
PF: predicated region fallthrough
CT: control target
= control target key end

     0   :  { %vm45_vm0 = vcmask 523264   ;;  %vm335_vm1 = vcmask 31744   ;;  %s708_s1 = inlined_call_operand.vmem [shape: f32[64,4], index: 1, kind: input, shape index: {}]   ;;  %s709_s0 = inlined_call_operand.vmem [shape: f32[128,64], index: 0, kind: input, shape index: {}]   ;;  %s710_s2 = inlined_call_operand.vmem [shape: f32[1,4], index: 2, kind: input, shape index: {}]   ;;  %s711_s3 = inlined_call_operand.vmem [shape: f32[128,4], index: 3, kind: output, shape index: {}]  }
   0x1   :  { %v37_v0 = vld [vmem:[%s708_s1 + $0x38] sm:$0xff]  ;;  %v36_v1 = vld [vmem:[%s708_s1 + $0x30] sm:$0xff]  ;;  %v35_v2 = vld [vmem:[%s708_s1 + $0x28] sm:$0xff] }
   0x2   :  { %413 = vmatprep.subr.mxu0 %v37_v0  ;;  %453 = vmatprep.subr.mxu1 %v37_v0  ;;  %v34_v3 = vld [vmem:[%s708_s1 + $0x20] sm:$0xff]  ;;  %v33_v4 = vld [vmem:[%s708_s1 + $0x18] sm:$0xff]  ;;  %v32_v5 = vld [vmem:[%s708_s1 + $0x10] sm:$0xff] }
   0x3   :  { %414 = vmatpush3.msra.mxu0 %v37_v0  ;;  %461 = vmatpush3.msra.mxu1 %v37_v0  ;;  %v31_v6 = vld [vmem:[%s708_s1 + $0x8] sm:$0xff]  ;;  %v30_v7 = vld [vmem:[%s708_s1] sm:$0xff]  ;;  %v16_v12 = vld [vmem:[%s709_s0 + $0x10] sm:$0xff] }
   0x4   :  { %415 = vmatprep.subr.mxu0 %v36_v1  ;;  %454 = vmatprep.subr.mxu1 %v36_v1  ;;  %v14_v8 = vld [vmem:[%s709_s0] sm:$0xff]  ;;  %v15_v10 = vld [vmem:[%s709_s0 + $0x8] sm:$0xff]  ;;  %v24_v13 = vld [vmem:[%s709_s0 + $0x50] sm:$0xff] }
   0x5   :  { %416 = vmatpush3.msra.mxu0 %v36_v1  ;;  %462 = vmatpush3.msra.mxu1 %v36_v1  ;;  %v22_v9 = vld [vmem:[%s709_s0 + $0x40] sm:$0xff]  ;;  %v23_v11 = vld [vmem:[%s709_s0 + $0x48] sm:$0xff]  ;;  %v17_v14 = vld [vmem:[%s709_s0 + $0x18] sm:$0xff] }
   0x6   :  { %417 = vmatprep.subr.mxu0 %v35_v2  ;;  %455 = vmatprep.subr.mxu1 %v35_v2  ;;  %v25_v15 = vld [vmem:[%s709_s0 + $0x58] sm:$0xff]  ;;  %v18_v16 = vld [vmem:[%s709_s0 + $0x20] sm:$0xff]  ;;  %v19_v18 = vld [vmem:[%s709_s0 + $0x28] sm:$0xff] }
   0x7   :  { %418 = vmatpush3.msra.mxu0 %v35_v2  ;;  %463 = vmatpush3.msra.mxu1 %v35_v2  ;;  %v26_v17 = vld [vmem:[%s709_s0 + $0x60] sm:$0xff]  ;;  %v27_v19 = vld [vmem:[%s709_s0 + $0x68] sm:$0xff]  ;;  %v20_v20 = vld [vmem:[%s709_s0 + $0x30] sm:$0xff] }
   0x8   :  { %419 = vmatprep.subr.mxu0 %v34_v3  ;;  %456 = vmatprep.subr.mxu1 %v34_v3  ;;  %v28_v21 = vld [vmem:[%s709_s0 + $0x70] sm:$0xff]  ;;  %v21_v22 = vld [vmem:[%s709_s0 + $0x38] sm:$0xff]  ;;  %v356_v24 = vld [vmem:[%s710_s2] ss:$0 sm:$0xff] }
   0x9   :  { %420 = vmatpush3.msra.mxu0 %v34_v3  ;;  %464 = vmatpush3.msra.mxu1 %v34_v3  ;;  %v29_v23 = vld [vmem:[%s709_s0 + $0x78] sm:$0xff] }
   0xa   :  { %421 = vmatprep.subr.mxu0 %v33_v4  ;;  %457 = vmatprep.subr.mxu1 %v33_v4 }
   0xb   :  { %422 = vmatpush3.msra.mxu0 %v33_v4  ;;  %465 = vmatpush3.msra.mxu1 %v33_v4 }
   0xc   :  { %423 = vmatprep.subr.mxu0 %v32_v5  ;;  %458 = vmatprep.subr.mxu1 %v32_v5 }
   0xd   :  { %424 = vmatpush3.msra.mxu0 %v32_v5  ;;  %466 = vmatpush3.msra.mxu1 %v32_v5 }
   0xe   :  { %425 = vmatprep.subr.mxu0 %v31_v6  ;;  %459 = vmatprep.subr.mxu1 %v31_v6 }
   0xf   :  { %426 = vmatpush3.msra.mxu0 %v31_v6  ;;  %467 = vmatpush3.msra.mxu1 %v31_v6 }
  0x10   :  { %427 = vmatprep.subr.mxu0 %v30_v7  ;;  %460 = vmatprep.subr.mxu1 %v30_v7 }
  0x11   :  { %428 = vmatpush3.msra.mxu0 %v30_v7  ;;  %468 = vmatpush3.msra.mxu1 %v30_v7 }
  0x12   :  { %429 = vmatprep.mubr.msk.f32.mxu0 %vm45_vm0, %v14_v8  ;;  %441 = vmatprep.mubr.msk.f32.mxu1 %vm45_vm0, %v22_v9 }
  0x13   :  { %430 = vmatmul.mubr.msk.f32.vlgmr.msra.gmra.mxu0 %vm45_vm0, %v15_v10  ;;  %442 = vmatmul.mubr.msk.f32.vlgmr.msra.gmra.mxu1 %vm45_vm0, %v23_v11 }
  0x14   :  { %432 = vmatprep.mubr.msk.f32.mxu0 %vm45_vm0, %v16_v12  ;;  %444 = vmatprep.mubr.msk.f32.mxu1 %vm45_vm0, %v24_v13 }
  0x17   :  { %433 = vmatmul.mubr.msk.f32.gmra.mxu0 %vm45_vm0, %v17_v14  ;;  %445 = vmatmul.mubr.msk.f32.gmra.mxu1 %vm45_vm0, %v25_v15 }
  0x18   :  { %435 = vmatprep.mubr.msk.f32.mxu0 %vm45_vm0, %v18_v16  ;;  %447 = vmatprep.mubr.msk.f32.mxu1 %vm45_vm0, %v26_v17 }
  0x1b   :  { %436 = vmatmul.mubr.msk.f32.gmra.mxu0 %vm45_vm0, %v19_v18  ;;  %448 = vmatmul.mubr.msk.f32.gmra.mxu1 %vm45_vm0, %v27_v19 }
  0x1c   :  { %438 = vmatprep.mubr.msk.f32.mxu0 %vm45_vm0, %v20_v20  ;;  %450 = vmatprep.mubr.msk.f32.mxu1 %vm45_vm0, %v28_v21 }
  0x1f   :  { %439 = vmatmul.mubr.msk.f32.gmra.mxu0 %vm45_vm0, %v21_v22  ;;  %451 = vmatmul.mubr.msk.f32.gmra.mxu1 %vm45_vm0, %v29_v23 }
  0xd3   :  { %v431_v25 = vpop.f32.mrf.mxu0  ;;  %v443_v26 = vpop.f32.mrf.mxu1 }
  0xd4   :  { %v166_v27 = vadd.f32 %v431_v25, %v356_v24  ;;  %v206_v28 = vadd.f32 %v443_v26, %v356_v24 }
  0xd5   :  { %v160_v29 = vpop.f32.mrf.mxu0  ;;  %v200_v30 = vpop.f32.mrf.mxu1 }
  0xd6   :  { %v374_v31 = vmul.f32 -1.442695, %v166_v27  ;;  %v382_v32 = vmul.f32 -1.442695, %v206_v28  ;;  %v161_v33 = vadd.f32 %v356_v24, %v160_v29  ;;  %v201_v34 = vadd.f32 %v356_v24, %v200_v30 }
  0xd7   :  { %v434_v35 = vpop.f32.mrf.mxu0  ;;  %v446_v36 = vpop.f32.mrf.mxu1 }
  0xd8   :  { %469 = vpow2.f32 %v374_v31  ;;  %v373_v37 = vmul.f32 -1.442695, %v161_v33  ;;  %v381_v38 = vmul.f32 -1.442695, %v201_v34  ;;  %v176_v39 = vadd.f32 %v434_v35, %v356_v24 }
  0xd9   :  { %471 = vpow2.f32 %v382_v32  ;;  %v216_v40 = vadd.f32 %v446_v36, %v356_v24  ;;  %v170_v41 = vpop.f32.mrf.mxu0  ;;  %v210_v42 = vpop.f32.mrf.mxu1 }
  0xda   :  { %473 = vpow2.f32 %v373_v37  ;;  %v376_v43 = vmul.f32 -1.442695, %v176_v39  ;;  %v171_v44 = vadd.f32 %v356_v24, %v170_v41  ;;  %v211_v45 = vadd.f32 %v356_v24, %v210_v42 }
  0xdb   :  { %475 = vpow2.f32 %v381_v38  ;;  %v384_v46 = vmul.f32 -1.442695, %v216_v40  ;;  %v437_v47 = vpop.f32.mrf.mxu0  ;;  %v449_v48 = vpop.f32.mrf.mxu1 }
  0xdc   :  { %477 = vpow2.f32 %v376_v43  ;;  %v375_v49 = vmul.f32 -1.442695, %v171_v44  ;;  %v383_v50 = vmul.f32 -1.442695, %v211_v45  ;;  %v186_v51 = vadd.f32 %v437_v47, %v356_v24 }
  0xdd   :  { %479 = vpow2.f32 %v384_v46  ;;  %v226_v52 = vadd.f32 %v449_v48, %v356_v24  ;;  %v180_v53 = vpop.f32.mrf.mxu0  ;;  %v220_v54 = vpop.f32.mrf.mxu1 }
  0xde   :  { %481 = vpow2.f32 %v375_v49  ;;  %v378_v55 = vmul.f32 -1.442695, %v186_v51  ;;  %v181_v56 = vadd.f32 %v356_v24, %v180_v53  ;;  %v221_v57 = vadd.f32 %v356_v24, %v220_v54 }
  0xdf   :  { %483 = vpow2.f32 %v383_v50  ;;  %v386_v58 = vmul.f32 -1.442695, %v226_v52  ;;  %v440_v59 = vpop.f32.mrf.mxu0  ;;  %v452_v60 = vpop.f32.mrf.mxu1 }
  0xe0   :  { %485 = vpow2.f32 %v378_v55  ;;  %v377_v61 = vmul.f32 -1.442695, %v181_v56  ;;  %v385_v62 = vmul.f32 -1.442695, %v221_v57  ;;  %v196_v63 = vadd.f32 %v440_v59, %v356_v24 }
  0xe1   :  { %487 = vpow2.f32 %v386_v58  ;;  %v236_v0 = vadd.f32 %v452_v60, %v356_v24  ;;  %v190_v1 = vpop.f32.mrf.mxu0  ;;  %v230_v2 = vpop.f32.mrf.mxu1 }
  0xe2   :  { %489 = vpow2.f32 %v377_v61  ;;  %v380_v3 = vmul.f32 -1.442695, %v196_v63  ;;  %v191_v4 = vadd.f32 %v356_v24, %v190_v1  ;;  %v231_v5 = vadd.f32 %v356_v24, %v230_v2 }
  0xe3   :  { %491 = vpow2.f32 %v385_v62  ;;  %v388_v6 = vmul.f32 -1.442695, %v236_v0 }
  0xe4   :  { %493 = vpow2.f32 %v380_v3  ;;  %v379_v7 = vmul.f32 -1.442695, %v191_v4  ;;  %v387_v8 = vmul.f32 -1.442695, %v231_v5 }
  0xe5   :  { %v470_v9 = vpop.eup %469  ;;  %495 = vpow2.f32 %v388_v6 }
  0xe6   :  { %v472_v10 = vpop.eup %471  ;;  %v288_v11 = vadd.f32 1.0, %v470_v9  ;;  %497 = vpow2.f32 %v379_v7 }
  0xe7   :  { %v474_v12 = vpop.eup %473  ;;  %v296_v13 = vadd.f32 1.0, %v472_v10  ;;  %499 = vpow2.f32 %v387_v8 }
  0xe8   :  { %v476_v14 = vpop.eup %475  ;;  %501 = vrcp.f32 %v288_v11  ;;  %v287_v15 = vadd.f32 1.0, %v474_v12 }
  0xe9   :  { %v478_v16 = vpop.eup %477  ;;  %503 = vrcp.f32 %v296_v13  ;;  %v295_v17 = vadd.f32 1.0, %v476_v14 }
  0xea   :  { %v480_v18 = vpop.eup %479  ;;  %505 = vrcp.f32 %v287_v15  ;;  %v290_v19 = vadd.f32 1.0, %v478_v16 }
  0xeb   :  { %v482_v20 = vpop.eup %481  ;;  %507 = vrcp.f32 %v295_v17  ;;  %v298_v21 = vadd.f32 1.0, %v480_v18 }
  0xec   :  { %v484_v22 = vpop.eup %483  ;;  %509 = vrcp.f32 %v290_v19  ;;  %v289_v23 = vadd.f32 1.0, %v482_v20 }
  0xed   :  { %v486_v24 = vpop.eup %485  ;;  %511 = vrcp.f32 %v298_v21  ;;  %v297_v25 = vadd.f32 1.0, %v484_v22 }
  0xee   :  { %v488_v26 = vpop.eup %487  ;;  %513 = vrcp.f32 %v289_v23  ;;  %v292_v27 = vadd.f32 1.0, %v486_v24 }
  0xef   :  { %v490_v28 = vpop.eup %489  ;;  %515 = vrcp.f32 %v297_v25  ;;  %v300_v29 = vadd.f32 1.0, %v488_v26 }
  0xf0   :  { %v492_v30 = vpop.eup %491  ;;  %517 = vrcp.f32 %v292_v27  ;;  %v291_v31 = vadd.f32 1.0, %v490_v28 }
  0xf1   :  { %v494_v32 = vpop.eup %493  ;;  %519 = vrcp.f32 %v300_v29  ;;  %v299_v33 = vadd.f32 1.0, %v492_v30 }
  0xf2   :  { %v496_v34 = vpop.eup %495  ;;  %521 = vrcp.f32 %v291_v31  ;;  %v294_v35 = vadd.f32 1.0, %v494_v32 }
  0xf3   :  { %v498_v36 = vpop.eup %497  ;;  %523 = vrcp.f32 %v299_v33  ;;  %v302_v37 = vadd.f32 1.0, %v496_v34 }
  0xf4   :  { %v500_v38 = vpop.eup %499  ;;  %525 = vrcp.f32 %v294_v35  ;;  %v293_v39 = vadd.f32 1.0, %v498_v36 }
  0xf5   :  { %v502_v40 = vpop.eup %501  ;;  %527 = vrcp.f32 %v302_v37  ;;  %v301_v41 = vadd.f32 1.0, %v500_v38 }
  0xf6   :  { %v504_v42 = vpop.eup %503  ;;  %337 = vst.msk [vmem:[%s711_s3 + $0x8] sm:$0xff] %vm335_vm1, %v502_v40  ;;  %529 = vrcp.f32 %v293_v39 }
  0xf7   :  { %v506_v43 = vpop.eup %505  ;;  %345 = vst.msk [vmem:[%s711_s3 + $0x48] sm:$0xff] %vm335_vm1, %v504_v42  ;;  %531 = vrcp.f32 %v301_v41 }
  0xf8   :  { %v508_v44 = vpop.eup %507  ;;  %336 = vst.msk [vmem:[%s711_s3] sm:$0xff] %vm335_vm1, %v506_v43 }
  0xf9   :  { %v510_v45 = vpop.eup %509  ;;  %344 = vst.msk [vmem:[%s711_s3 + $0x40] sm:$0xff] %vm335_vm1, %v508_v44 }
  0xfa   :  { %v512_v46 = vpop.eup %511  ;;  %339 = vst.msk [vmem:[%s711_s3 + $0x18] sm:$0xff] %vm335_vm1, %v510_v45 }
  0xfb   :  { %v514_v47 = vpop.eup %513  ;;  %347 = vst.msk [vmem:[%s711_s3 + $0x58] sm:$0xff] %vm335_vm1, %v512_v46 }
  0xfc   :  { %v516_v48 = vpop.eup %515  ;;  %338 = vst.msk [vmem:[%s711_s3 + $0x10] sm:$0xff] %vm335_vm1, %v514_v47 }
  0xfd   :  { %v518_v49 = vpop.eup %517  ;;  %346 = vst.msk [vmem:[%s711_s3 + $0x50] sm:$0xff] %vm335_vm1, %v516_v48 }
  0xfe   :  { %v520_v50 = vpop.eup %519  ;;  %341 = vst.msk [vmem:[%s711_s3 + $0x28] sm:$0xff] %vm335_vm1, %v518_v49 }
  0xff   :  { %v522_v51 = vpop.eup %521  ;;  %349 = vst.msk [vmem:[%s711_s3 + $0x68] sm:$0xff] %vm335_vm1, %v520_v50 }
 0x100   :  { %v524_v52 = vpop.eup %523  ;;  %340 = vst.msk [vmem:[%s711_s3 + $0x20] sm:$0xff] %vm335_vm1, %v522_v51 }
 0x101   :  { %v526_v53 = vpop.eup %525  ;;  %348 = vst.msk [vmem:[%s711_s3 + $0x60] sm:$0xff] %vm335_vm1, %v524_v52 }
 0x102   :  { %v528_v54 = vpop.eup %527  ;;  %343 = vst.msk [vmem:[%s711_s3 + $0x38] sm:$0xff] %vm335_vm1, %v526_v53 }
 0x103   :  { %v530_v55 = vpop.eup %529  ;;  %351 = vst.msk [vmem:[%s711_s3 + $0x78] sm:$0xff] %vm335_vm1, %v528_v54 }
 0x104   :  { %v532_v56 = vpop.eup %531  ;;  %342 = vst.msk [vmem:[%s711_s3 + $0x30] sm:$0xff] %vm335_vm1, %v530_v55 }
 0x105   :  { %350 = vst.msk [vmem:[%s711_s3 + $0x70] sm:$0xff] %vm335_vm1, %v532_v56 }

</bundles_post_ra>
